<compile_context>
chip_gen: v7x
topology: tpu7x:2x2x1
jax: 0.10.0
libtpu: 0.0.40
codegen_flags: <defaults>
</compile_context>

<pallas_src>
from functools import partial

import jax
import jax.numpy as jnp
from jax import lax
from jax.experimental import pallas as pl
from jax.experimental.pallas import tpu as pltpu


# ------------------------------------------------------------------ helpers --

def _round_up(x, m):
    return (x + m - 1) // m * m


def _choose_m_tile(M, row_bytes, budget=8 << 20):
    """Largest M-tile (<=1024) that divides M, leaves >=2 grid blocks (v7x has
    2 TensorCores) and fits a VMEM budget; pads only for awkward M."""
    for tm in (1024, 512, 256, 128, 64, 32, 16, 8):
        if tm * row_bytes > budget:
            continue
        if M % tm == 0 and M // tm >= 2:
            return tm, M
    if M <= 1024:
        tm = min(1024, _round_up(M, 16))
        return tm, _round_up(M, tm)
    return 256, _round_up(M, 256)


def _choose_band_rows(N, Ho, Wp, Cin, Cout, budget=6 << 20):
    """Output-row band height for the halo conv: biggest divisor of Ho that fits
    the VMEM budget, while keeping >=2 grid blocks for v7x's 2 TensorCores."""
    th = 1
    for cand in range(Ho, 0, -1):
        if Ho % cand:
            continue
        band = (cand + 2) * Wp * Cin * 2            # bf16 input band (+halo)
        outb = cand * (Wp - 2) * Cout * 2           # bf16 output band
        accb = cand * (Wp - 2) * Cout * 4           # f32 accumulator value
        if 2 * (band + outb) + accb <= budget:
            th = cand
            break
    nb = Ho // th
    if N * nb < 2 and th % 2 == 0:                  # give both v7x TCs work
        th //= 2
        nb *= 2
    return th, nb


def _mosaic_params(block_bytes, semantics):
    # Explicit scoped-VMEM limit: v5e defaults to 16 MiB (too small for the
    # larger tiles used here); stay well under v7x's 64 MiB physical VMEM.
    limit = int(min(max(3 * block_bytes + (4 << 20), 24 << 20), 40 << 20))
    return pltpu.CompilerParams(dimension_semantics=semantics,
                                vmem_limit_bytes=limit)


# ------------------------------------------------------------------ kernels --

def _mm_bn_relu_kernel(x_ref, w_ref, shift_ref, o_ref):
    # Single K step: x:(TM,K) bf16, w:(K,Cout) bf16 (BN scale folded),
    # shift:(1,Cout) f32 -> o:(TM,Cout) bf16.  No accumulator scratch needed.
    y = jnp.dot(x_ref[...], w_ref[...], preferred_element_type=jnp.float32)
    o_ref[...] = jnp.maximum(y + shift_ref[...], 0.0).astype(o_ref.dtype)


def _conv3x3_band_kernel(x_ref, w_ref, shift_ref, o_ref, *, th, wo):
    # Halo/band 3x3 stride-1 conv: x:(th+2, wo+2, Cin) bf16 band,
    # w:(3,3,Cin,Cout) bf16 (BN scale folded), shift:(1,Cout) f32,
    # o:(th*wo, Cout) bf16.  Nine shifted MXU matmuls accumulated in f32.
    cin = x_ref.shape[-1]
    cout = o_ref.shape[-1]
    acc = jnp.zeros((th * wo, cout), jnp.float32)
    for ky in range(3):
        for kx in range(3):
            patch = x_ref[ky:ky + th, kx:kx + wo, :].reshape(th * wo, cin)
            acc = acc + jnp.dot(patch, w_ref[ky, kx],
                                preferred_element_type=jnp.float32)
    o_ref[...] = jnp.maximum(acc + shift_ref[...], 0.0).astype(o_ref.dtype)


def _fusion_kernel(x1_ref, x2_ref, w1_ref, w2_ref, b_ref, o_ref):
    # x1/x2: (TM, C) bf16; w1/w2: (1, C) f32 (BN scale folded); b: (2,) f32 SMEM.
    x1 = x1_ref[...].astype(jnp.float32)
    x2 = x2_ref[...].astype(jnp.float32)
    l1 = jnp.sum(x1 * w1_ref[...], axis=-1, keepdims=True) + b_ref[0]
    l2 = jnp.sum(x2 * w2_ref[...], axis=-1, keepdims=True) + b_ref[1]
    m = jnp.maximum(l1, l2)
    e1 = jnp.exp(l1 - m)
    e2 = jnp.exp(l2 - m)
    inv = pl.reciprocal(e1 + e2, approx=True)      # EUP path
    o_ref[...] = (x1 * (e1 * inv) + x2 * (e2 * inv)).astype(o_ref.dtype)


# ------------------------------------------------------------------ wrappers --

def matmul_bn_relu(x2d, w, shift, out_dtype=jnp.bfloat16):
    """relu((x2d @ w) + shift).  x2d:(M,K) bf16, w:(K,Cout) bf16, shift:(1,Cout) f32.
    Single K step -- all weights in this network fit VMEM resident."""
    M, K = x2d.shape
    Cout = w.shape[1]
    TM, Mp = _choose_m_tile(M, row_bytes=(K + Cout) * 2)
    if Mp != M:
        x2d = jnp.pad(x2d, ((0, Mp - M), (0, 0)))
    block_bytes = TM * K * 2 + K * Cout * 2 + TM * Cout * 2
    out = pl.pallas_call(
        _mm_bn_relu_kernel,
        out_shape=jax.ShapeDtypeStruct((Mp, Cout), out_dtype),
        grid=(Mp // TM,),
        in_specs=[
            pl.BlockSpec((TM, K), lambda i: (i, 0)),
            pl.BlockSpec((K, Cout), lambda i: (0, 0)),   # weight stays resident
            pl.BlockSpec((1, Cout), lambda i: (0, 0)),
        ],
        out_specs=pl.BlockSpec((TM, Cout), lambda i: (i, 0)),
        compiler_params=_mosaic_params(block_bytes, ("parallel",)),
    )(x2d, w, shift)
    return out[:M] if Mp != M else out


def conv3x3_s1_bn_relu(x, w9, shift):
    """Conv2d(k=3, pad=1, stride=1, bias=False) + BN + ReLU via halo/band kernel.
    x:(N,H,W,Cin) bf16, w9:(3,3,Cin,Cout) bf16 (BN scale folded), shift:(1,Cout)."""
    N, H, W, Cin = x.shape
    Cout = w9.shape[-1]
    Ho, Wo, Wp = H, W, W + 2
    xp = jnp.pad(x, ((0, 0), (1, 1), (1, 1), (0, 0)))          # (N, H+2, W+2, Cin)
    th, nb = _choose_band_rows(N, Ho, Wp, Cin, Cout)
    R = th + 2
    if nb == 1:
        bands = xp.reshape(N, 1, R, Wp, Cin)                   # free reshape
    else:
        # replicate only the 2 halo rows per band (~(th+2)/th traffic vs 9x im2col)
        bands = jnp.stack(
            [lax.dynamic_slice_in_dim(xp, b * th, R, axis=1) for b in range(nb)],
            axis=1)
    block_bytes = (R * Wp * Cin * 2 + 9 * Cin * Cout * 2
                   + th * Wo * Cout * 2 + th * Wo * Cout * 4)
    out = pl.pallas_call(
        partial(_conv3x3_band_kernel, th=th, wo=Wo),
        out_shape=jax.ShapeDtypeStruct((N, nb, th * Wo, Cout), jnp.bfloat16),
        grid=(N, nb),
        in_specs=[
            pl.BlockSpec((None, None, R, Wp, Cin), lambda n, b: (n, b, 0, 0, 0)),
            pl.BlockSpec((3, 3, Cin, Cout), lambda n, b: (0, 0, 0, 0)),
            pl.BlockSpec((1, Cout), lambda n, b: (0, 0)),
        ],
        out_specs=pl.BlockSpec((None, None, th * Wo, Cout),
                               lambda n, b: (n, b, 0, 0)),
        compiler_params=_mosaic_params(block_bytes, ("parallel", "parallel")),
    )(bands, w9, shift)
    return out.reshape(N, Ho, Wo, Cout)


def im2col_3x3(x, stride):
    """ZeroPad2d(1) + 3x3 patch extraction (glue, bf16) -- stride>1 convs only."""
    N, H, W, C = x.shape
    Ho = (H + 2 - 3) // stride + 1
    Wo = (W + 2 - 3) // stride + 1
    xp = jnp.pad(x, ((0, 0), (1, 1), (1, 1), (0, 0)))
    cols = []
    for ky in range(3):
        for kx in range(3):
            cols.append(lax.slice(
                xp,
                (0, ky, kx, 0),
                (N, ky + (Ho - 1) * stride + 1, kx + (Wo - 1) * stride + 1, C),
                (1, stride, stride, 1)))
    patches = jnp.concatenate(cols, axis=-1)           # (N, Ho, Wo, 9*C) bf16
    return patches.reshape(N * Ho * Wo, 9 * C), (N, Ho, Wo)


def conv3x3_bn_relu(x, w9, w_mat, shift, stride):
    """3x3 conv + BN + ReLU.  stride==1 -> halo/band kernel; else im2col+matmul."""
    if stride == 1:
        return conv3x3_s1_bn_relu(x, w9, shift)
    patches, (N, Ho, Wo) = im2col_3x3(x, stride)
    y = matmul_bn_relu(patches, w_mat, shift)
    return y.reshape(N, Ho, Wo, -1)


def conv_transpose_bn_relu(x, w_fused, shift_fused, k, cout):
    """ConvTranspose2d(kernel=stride=k, bias=False) + BN + ReLU; all k*k taps
    fused into one matmul.  w_fused:(Cin, k*k*cout) bf16, shift_fused:(1,k*k*cout)."""
    N, H, W, Cin = x.shape
    y = matmul_bn_relu(x.reshape(N * H * W, Cin), w_fused, shift_fused)
    # (N,H,W,k,k,cout) -> interleave rows/cols (valid because kernel==stride).
    y = y.reshape(N, H, W, k, k, cout).transpose(0, 1, 3, 2, 4, 5)
    return y.reshape(N, H * k, W * k, cout)


def attentional_fusion(x1, x2, w1_eff, w2_eff, b_packed):
    """softmax over the two 1x1-conv+BN attention logits, then blend.  bf16 out."""
    N, H, W, C = x1.shape
    M = N * H * W
    TM, Mp = _choose_m_tile(M, row_bytes=C * 6)
    x1f = x1.reshape(M, C)
    x2f = x2.reshape(M, C)
    if Mp != M:
        x1f = jnp.pad(x1f, ((0, Mp - M), (0, 0)))
        x2f = jnp.pad(x2f, ((0, Mp - M), (0, 0)))
    block_bytes = 3 * TM * C * 2 + 2 * C * 4
    out = pl.pallas_call(
        _fusion_kernel,
        out_shape=jax.ShapeDtypeStruct((Mp, C), jnp.bfloat16),
        grid=(Mp // TM,),
        in_specs=[
            pl.BlockSpec((TM, C), lambda i: (i, 0)),
            pl.BlockSpec((TM, C), lambda i: (i, 0)),
            pl.BlockSpec((1, C), lambda i: (0, 0)),
            pl.BlockSpec((1, C), lambda i: (0, 0)),
            pl.BlockSpec(memory_space=pltpu.MemorySpace.SMEM),
        ],
        out_specs=pl.BlockSpec((TM, C), lambda i: (i, 0)),
        compiler_params=_mosaic_params(block_bytes, ("parallel",)),
    )(x1f, x2f, w1_eff, w2_eff, b_packed)
    out = out[:M] if Mp != M else out
    return out.reshape(N, H, W, C)


# -------------------------------------------------------------- parameters --

def make_bn(key, c, eps=1e-3):
    k1, k2, k3, k4 = jax.random.split(key, 4)
    gamma = jax.random.uniform(k1, (c,), jnp.float32, 0.8, 1.2)
    beta = 0.1 * jax.random.normal(k2, (c,), jnp.float32)
    mean = 0.1 * jax.random.normal(k3, (c,), jnp.float32)
    var = jax.random.uniform(k4, (c,), jnp.float32, 0.5, 1.5)
    scale = gamma / jnp.sqrt(var + eps)
    shift = beta - mean * scale
    return scale, shift


def build_branch_params(key, input_channels, layer_nums, layer_strides,
                        num_filters, upsample_strides, num_up_filters):
    """Raw f32 parameters (used by the reference and by the kernel-prep step)."""
    params = {'blocks': [], 'deblocks': []}
    c_in_list = [input_channels] + list(num_filters[:-1])
    for idx in range(len(layer_nums)):
        convs = []
        cin, cout = c_in_list[idx], num_filters[idx]
        for j in range(layer_nums[idx] + 1):          # first conv + layer_nums extras
            key, kw, kb = jax.random.split(key, 3)
            ci = cin if j == 0 else cout
            w = jax.random.normal(kw, (3, 3, ci, cout), jnp.float32) / jnp.sqrt(9.0 * ci)
            scale, shift = make_bn(kb, cout)
            stride = layer_strides[idx] if j == 0 else 1
            convs.append((w, scale, shift, stride))
        params['blocks'].append(convs)
        k = upsample_strides[idx]
        cu = num_up_filters[idx]
        key, kw, kb = jax.random.split(key, 3)
        w_taps = jax.random.normal(kw, (k, k, cout, cu), jnp.float32) / jnp.sqrt(float(cout))
        scale, shift = make_bn(kb, cu)
        params['deblocks'].append((w_taps, scale, shift, k))
    return params


def prepare_branch_kernel_params(bparams):
    """Host-side fold of BN scale into weights, bf16 cast, ConvTranspose tap fusion."""
    out = {'blocks': [], 'deblocks': []}
    for convs in bparams['blocks']:
        kb = []
        for (w, scale, shift, stride) in convs:
            cout = w.shape[-1]
            w9 = (w * scale.reshape(1, 1, 1, -1)).astype(jnp.bfloat16)   # (3,3,Ci,Co)
            w_mat = w9.reshape(-1, cout)                                 # (9*Ci, Co)
            kb.append((w9, w_mat, shift.reshape(1, -1).astype(jnp.float32), stride))
        out['blocks'].append(kb)
    for (w_taps, scale, shift, k) in bparams['deblocks']:
        cin, cout = w_taps.shape[2], w_taps.shape[3]
        w_eff = w_taps * scale.reshape(1, 1, 1, -1)                      # (k,k,Ci,Co)
        w_fused = jnp.transpose(w_eff, (2, 0, 1, 3)).reshape(cin, k * k * cout)
        w_fused = w_fused.astype(jnp.bfloat16)
        shift_fused = jnp.tile(shift.reshape(1, -1), (1, k * k)).astype(jnp.float32)
        out['deblocks'].append((w_fused, shift_fused, k, cout))
    return out


def build_fusion_params(key, c):
    k1, kb1, k2, kb2 = jax.random.split(key, 4)
    w1 = jax.random.normal(k1, (c,), jnp.float32) / jnp.sqrt(float(c))
    s1, sh1 = make_bn(kb1, 1)
    w2 = jax.random.normal(k2, (c,), jnp.float32) / jnp.sqrt(float(c))
    s2, sh2 = make_bn(kb2, 1)
    return {
        'w1': (w1 * s1[0]).reshape(1, c).astype(jnp.float32),
        'w2': (w2 * s2[0]).reshape(1, c).astype(jnp.float32),
        'b': jnp.stack([sh1[0], sh2[0]]).astype(jnp.float32),
    }


# ---------------------------------------------------------------- forward --

def branch_forward(x, kparams):
    ups = []
    for block, deb in zip(kparams['blocks'], kparams['deblocks']):
        for (w9, w_mat, shift, stride) in block:
            x = conv3x3_bn_relu(x, w9, w_mat, shift, stride)
        w_fused, shift_fused, k, cout = deb
        ups.append(conv_transpose_bn_relu(x, w_fused, shift_fused, k, cout))
    return jnp.concatenate(ups, axis=-1) if len(ups) > 1 else ups[0]


def base_bev_backbone_forward(data_dict, kparams):
    x1 = jnp.transpose(data_dict['spatial_features'], (0, 2, 3, 1)).astype(jnp.bfloat16)
    x2 = jnp.transpose(data_dict['semantic_features'], (0, 2, 3, 1)).astype(jnp.bfloat16)
    f1 = branch_forward(x1, kparams['branch1'])
    f2 = branch_forward(x2, kparams['branch2'])
    fp = kparams['fusion']
    y = attentional_fusion(f1, f2, fp['w1'], fp['w2'], fp['b'])          # bf16 NHWC
    # back to NCHW, f32 like the PyTorch module output
    data_dict['spatial_features_2d'] = jnp.transpose(y, (0, 3, 1, 2)).astype(jnp.float32)
    return data_dict


# ------------------------------------------------------ pure-JAX reference --
# Mirrors the module math with the same bf16 quantization points so tolerances stay tight.

def ref_conv3x3(x, w, scale, shift, stride):
    w_eff = (w * scale.reshape(1, 1, 1, -1)).astype(jnp.bfloat16)
    y = lax.conv_general_dilated(x, w_eff, (stride, stride), ((1, 1), (1, 1)),
                                 dimension_numbers=('NHWC', 'HWIO', 'NHWC'),
                                 preferred_element_type=jnp.float32)
    return jnp.maximum(y + shift.reshape(1, 1, 1, -1), 0.0).astype(jnp.bfloat16)


def ref_convT(x, w_taps, scale, shift, k):
    N, H, W, Cin = x.shape
    Cout = w_taps.shape[-1]
    out = jnp.zeros((N, H * k, W * k, Cout), jnp.float32)
    for dy in range(k):
        for dx in range(k):
            w_eff = (w_taps[dy, dx] * scale.reshape(1, -1)).astype(jnp.bfloat16)
            t = jnp.einsum('nhwc,cd->nhwd', x, w_eff, preferred_element_type=jnp.float32)
            out = out.at[:, dy::k, dx::k, :].set(t)
    return jnp.maximum(out + shift.reshape(1, 1, 1, -1), 0.0).astype(jnp.bfloat16)


def ref_branch_forward(x, bparams):
    ups = []
    for convs, deb in zip(bparams['blocks'], bparams['deblocks']):
        for (w, scale, shift, stride) in convs:
            x = ref_conv3x3(x, w, scale, shift, stride)
        w_taps, dscale, dshift, k = deb
        ups.append(ref_convT(x, w_taps, dscale, dshift, k))
    return jnp.concatenate(ups, axis=-1) if len(ups) > 1 else ups[0]


def ref_forward(spatial, semantic, raw_params, fusion_params):
    x1 = jnp.transpose(spatial, (0, 2, 3, 1)).astype(jnp.bfloat16)
    x2 = jnp.transpose(semantic, (0, 2, 3, 1)).astype(jnp.bfloat16)
    f1 = ref_branch_forward(x1, raw_params['branch1']).astype(jnp.float32)
    f2 = ref_branch_forward(x2, raw_params['branch2']).astype(jnp.float32)
    fp = fusion_params
    l1 = jnp.sum(f1 * fp['w1'].reshape(1, 1, 1, -1), axis=-1, keepdims=True) + fp['b'][0]
    l2 = jnp.sum(f2 * fp['w2'].reshape(1, 1, 1, -1), axis=-1, keepdims=True) + fp['b'][1]
    aw = jax.nn.softmax(jnp.concatenate([l1, l2], axis=-1), axis=-1)
    y = f1 * aw[..., 0:1] + f2 * aw[..., 1:2]
    return jnp.transpose(y, (0, 3, 1, 2))


# -------------------------------------------------------------------- main --

if __name__ == "__main__":
    # model_cfg (small, synthetic)
    N, CIN, H, W = 2, 4, 16, 16
    LAYER_NUMS = [1, 1]
    LAYER_STRIDES = [1, 2]
    NUM_FILTERS = [16, 32]
    UPSAMPLE_STRIDES = [1, 2]
    NUM_UPSAMPLE_FILTERS = [16, 16]
    C_IN_FUSED = sum(NUM_UPSAMPLE_FILTERS)   # num_bev_features = 32

    root = jax.random.PRNGKey(0)
    kx1, kx2, kb1, kb2, kf = jax.random.split(root, 5)

    spatial = jax.random.normal(kx1, (N, CIN, H, W), jnp.float32)
    semantic = jax.random.normal(kx2, (N, CIN, H, W), jnp.float32)

    raw_params = {
        'branch1': build_branch_params(kb1, CIN, LAYER_NUMS, LAYER_STRIDES,
                                       NUM_FILTERS, UPSAMPLE_STRIDES, NUM_UPSAMPLE_FILTERS),
        'branch2': build_branch_params(kb2, CIN, LAYER_NUMS, LAYER_STRIDES,
                                       NUM_FILTERS, UPSAMPLE_STRIDES, NUM_UPSAMPLE_FILTERS),
    }
    fusion_params = build_fusion_params(kf, C_IN_FUSED)

    kparams = {
        'branch1': prepare_branch_kernel_params(raw_params['branch1']),
        'branch2': prepare_branch_kernel_params(raw_params['branch2']),
        'fusion': fusion_params,
    }

    @jax.jit
    def run(sp, se):
        dd = {'spatial_features': sp, 'semantic_features': se}
        return base_bev_backbone_forward(dd, kparams)['spatial_features_2d']

    y = jax.block_until_ready(run(spatial, semantic))
    assert y.shape == (N, C_IN_FUSED, H, W), y.shape

    y_ref = jax.block_until_ready(ref_forward(spatial, semantic, raw_params, fusion_params))
    max_err = float(jnp.max(jnp.abs(y - y_ref)))
    assert jnp.allclose(y, y_ref, atol=5e-2, rtol=5e-2), max_err

    print("KERNEL_OK")
</pallas_src>

<mosaic_0001>
module attributes {stable_mosaic.version = 11 : i64} {
  func.func @_conv3x3_band_kernel(%arg0: i32, %arg1: i32, %arg2: memref<1x1x18x18x4xbf16, #tpu.memory_space<vmem>>, %arg3: memref<3x3x4x16xbf16, #tpu.memory_space<vmem>>, %arg4: memref<1x16xf32, #tpu.memory_space<vmem>>, %arg5: memref<1x1x256x16xbf16, #tpu.memory_space<vmem>>) attributes {dimension_semantics = [#tpu.dimension_semantics<parallel>, #tpu.dimension_semantics<parallel>], iteration_bounds = array<i64: 2, 1>, scalar_prefetch = 0 : i64, scratch_operands = 0 : i64, tpu.core_type = #tpu.core_type<tc>, window_params = [{transform_indices = @transform_0, window_bounds = array<i64: 1, 1, 18, 18, 4>}, {pipeline_mode = #tpu.pipeline_mode<synchronous>, transform_indices = @transform_1, window_bounds = array<i64: 3, 3, 4, 16>}, {pipeline_mode = #tpu.pipeline_mode<synchronous>, transform_indices = @transform_2, window_bounds = array<i64: 1, 16>}, {transform_indices = @transform_3, window_bounds = array<i64: 1, 1, 256, 16>}]} {
    %cst = arith.constant 0.000000e+00 : f32
    %0 = vector.broadcast %cst : f32 to vector<256x16xf32>
    %c0 = arith.constant 0 : index
    %c0_0 = arith.constant 0 : index
    %c0_1 = arith.constant 0 : index
    %c0_2 = arith.constant 0 : index
    %c0_3 = arith.constant 0 : index
    %1 = vector.load %arg2[%c0, %c0_0, %c0_1, %c0_2, %c0_3] : memref<1x1x18x18x4xbf16, #tpu.memory_space<vmem>>, vector<1x1x16x16x4xbf16>
    %2 = vector.shape_cast %1 : vector<1x1x16x16x4xbf16> to vector<16x16x4xbf16>
    %3 = vector.shape_cast %2 : vector<16x16x4xbf16> to vector<256x4xbf16>
    %c0_4 = arith.constant 0 : index
    %c0_5 = arith.constant 0 : index
    %c0_6 = arith.constant 0 : index
    %c0_7 = arith.constant 0 : index
    %4 = vector.load %arg3[%c0_4, %c0_5, %c0_6, %c0_7] : memref<3x3x4x16xbf16, #tpu.memory_space<vmem>>, vector<1x1x4x16xbf16>
    %5 = vector.shape_cast %4 : vector<1x1x4x16xbf16> to vector<4x16xbf16>
    %cst_8 = arith.constant dense<0.000000e+00> : vector<256x16xf32>
    %6 = tpu.matmul %3, %5, %cst_8 {dimension_numbers = #tpu.dot_dimension_numbers<[1], [0], [0], [1], [0, 0, 1, 1], [], []>} : vector<256x4xbf16>, vector<4x16xbf16>, vector<256x16xf32> -> vector<256x16xf32>
    %7 = arith.addf %0, %6 : vector<256x16xf32>
    %c0_9 = arith.constant 0 : index
    %c0_10 = arith.constant 0 : index
    %c0_11 = arith.constant 0 : index
    %c1 = arith.constant 1 : index
    %c0_12 = arith.constant 0 : index
    %8 = vector.load %arg2[%c0_9, %c0_10, %c0_11, %c1, %c0_12] : memref<1x1x18x18x4xbf16, #tpu.memory_space<vmem>>, vector<1x1x16x16x4xbf16>
    %9 = vector.shape_cast %8 : vector<1x1x16x16x4xbf16> to vector<16x16x4xbf16>
    %10 = vector.shape_cast %9 : vector<16x16x4xbf16> to vector<256x4xbf16>
    %c0_13 = arith.constant 0 : index
    %c1_14 = arith.constant 1 : index
    %c0_15 = arith.constant 0 : index
    %c0_16 = arith.constant 0 : index
    %11 = vector.load %arg3[%c0_13, %c1_14, %c0_15, %c0_16] : memref<3x3x4x16xbf16, #tpu.memory_space<vmem>>, vector<1x1x4x16xbf16>
    %12 = vector.shape_cast %11 : vector<1x1x4x16xbf16> to vector<4x16xbf16>
    %cst_17 = arith.constant dense<0.000000e+00> : vector<256x16xf32>
    %13 = tpu.matmul %10, %12, %cst_17 {dimension_numbers = #tpu.dot_dimension_numbers<[1], [0], [0], [1], [0, 0, 1, 1], [], []>} : vector<256x4xbf16>, vector<4x16xbf16>, vector<256x16xf32> -> vector<256x16xf32>
    %14 = arith.addf %7, %13 : vector<256x16xf32>
    %c0_18 = arith.constant 0 : index
    %c0_19 = arith.constant 0 : index
    %c0_20 = arith.constant 0 : index
    %c2 = arith.constant 2 : index
    %c0_21 = arith.constant 0 : index
    %15 = vector.load %arg2[%c0_18, %c0_19, %c0_20, %c2, %c0_21] : memref<1x1x18x18x4xbf16, #tpu.memory_space<vmem>>, vector<1x1x16x16x4xbf16>
    %16 = vector.shape_cast %15 : vector<1x1x16x16x4xbf16> to vector<16x16x4xbf16>
    %17 = vector.shape_cast %16 : vector<16x16x4xbf16> to vector<256x4xbf16>
    %c0_22 = arith.constant 0 : index
    %c2_23 = arith.constant 2 : index
    %c0_24 = arith.constant 0 : index
    %c0_25 = arith.constant 0 : index
    %18 = vector.load %arg3[%c0_22, %c2_23, %c0_24, %c0_25] : memref<3x3x4x16xbf16, #tpu.memory_space<vmem>>, vector<1x1x4x16xbf16>
    %19 = vector.shape_cast %18 : vector<1x1x4x16xbf16> to vector<4x16xbf16>
    %cst_26 = arith.constant dense<0.000000e+00> : vector<256x16xf32>
    %20 = tpu.matmul %17, %19, %cst_26 {dimension_numbers = #tpu.dot_dimension_numbers<[1], [0], [0], [1], [0, 0, 1, 1], [], []>} : vector<256x4xbf16>, vector<4x16xbf16>, vector<256x16xf32> -> vector<256x16xf32>
    %21 = arith.addf %14, %20 : vector<256x16xf32>
    %c0_27 = arith.constant 0 : index
    %c0_28 = arith.constant 0 : index
    %c1_29 = arith.constant 1 : index
    %c0_30 = arith.constant 0 : index
    %c0_31 = arith.constant 0 : index
    %22 = vector.load %arg2[%c0_27, %c0_28, %c1_29, %c0_30, %c0_31] : memref<1x1x18x18x4xbf16, #tpu.memory_space<vmem>>, vector<1x1x16x16x4xbf16>
    %23 = vector.shape_cast %22 : vector<1x1x16x16x4xbf16> to vector<16x16x4xbf16>
    %24 = vector.shape_cast %23 : vector<16x16x4xbf16> to vector<256x4xbf16>
    %c1_32 = arith.constant 1 : index
    %c0_33 = arith.constant 0 : index
    %c0_34 = arith.constant 0 : index
    %c0_35 = arith.constant 0 : index
    %25 = vector.load %arg3[%c1_32, %c0_33, %c0_34, %c0_35] : memref<3x3x4x16xbf16, #tpu.memory_space<vmem>>, vector<1x1x4x16xbf16>
    %26 = vector.shape_cast %25 : vector<1x1x4x16xbf16> to vector<4x16xbf16>
    %cst_36 = arith.constant dense<0.000000e+00> : vector<256x16xf32>
    %27 = tpu.matmul %24, %26, %cst_36 {dimension_numbers = #tpu.dot_dimension_numbers<[1], [0], [0], [1], [0, 0, 1, 1], [], []>} : vector<256x4xbf16>, vector<4x16xbf16>, vector<256x16xf32> -> vector<256x16xf32>
    %28 = arith.addf %21, %27 : vector<256x16xf32>
    %c0_37 = arith.constant 0 : index
    %c0_38 = arith.constant 0 : index
    %c1_39 = arith.constant 1 : index
    %c1_40 = arith.constant 1 : index
    %c0_41 = arith.constant 0 : index
    %29 = vector.load %arg2[%c0_37, %c0_38, %c1_39, %c1_40, %c0_41] : memref<1x1x18x18x4xbf16, #tpu.memory_space<vmem>>, vector<1x1x16x16x4xbf16>
    %30 = vector.shape_cast %29 : vector<1x1x16x16x4xbf16> to vector<16x16x4xbf16>
    %31 = vector.shape_cast %30 : vector<16x16x4xbf16> to vector<256x4xbf16>
    %c1_42 = arith.constant 1 : index
    %c1_43 = arith.constant 1 : index
    %c0_44 = arith.constant 0 : index
    %c0_45 = arith.constant 0 : index
    %32 = vector.load %arg3[%c1_42, %c1_43, %c0_44, %c0_45] : memref<3x3x4x16xbf16, #tpu.memory_space<vmem>>, vector<1x1x4x16xbf16>
    %33 = vector.shape_cast %32 : vector<1x1x4x16xbf16> to vector<4x16xbf16>
    %cst_46 = arith.constant dense<0.000000e+00> : vector<256x16xf32>
    %34 = tpu.matmul %31, %33, %cst_46 {dimension_numbers = #tpu.dot_dimension_numbers<[1], [0], [0], [1], [0, 0, 1, 1], [], []>} : vector<256x4xbf16>, vector<4x16xbf16>, vector<256x16xf32> -> vector<256x16xf32>
    %35 = arith.addf %28, %34 : vector<256x16xf32>
    %c0_47 = arith.constant 0 : index
    %c0_48 = arith.constant 0 : index
    %c1_49 = arith.constant 1 : index
    %c2_50 = arith.constant 2 : index
    %c0_51 = arith.constant 0 : index
    %36 = vector.load %arg2[%c0_47, %c0_48, %c1_49, %c2_50, %c0_51] : memref<1x1x18x18x4xbf16, #tpu.memory_space<vmem>>, vector<1x1x16x16x4xbf16>
    %37 = vector.shape_cast %36 : vector<1x1x16x16x4xbf16> to vector<16x16x4xbf16>
    %38 = vector.shape_cast %37 : vector<16x16x4xbf16> to vector<256x4xbf16>
    %c1_52 = arith.constant 1 : index
    %c2_53 = arith.constant 2 : index
    %c0_54 = arith.constant 0 : index
    %c0_55 = arith.constant 0 : index
    %39 = vector.load %arg3[%c1_52, %c2_53, %c0_54, %c0_55] : memref<3x3x4x16xbf16, #tpu.memory_space<vmem>>, vector<1x1x4x16xbf16>
    %40 = vector.shape_cast %39 : vector<1x1x4x16xbf16> to vector<4x16xbf16>
    %cst_56 = arith.constant dense<0.000000e+00> : vector<256x16xf32>
    %41 = tpu.matmul %38, %40, %cst_56 {dimension_numbers = #tpu.dot_dimension_numbers<[1], [0], [0], [1], [0, 0, 1, 1], [], []>} : vector<256x4xbf16>, vector<4x16xbf16>, vector<256x16xf32> -> vector<256x16xf32>
    %42 = arith.addf %35, %41 : vector<256x16xf32>
    %c0_57 = arith.constant 0 : index
    %c0_58 = arith.constant 0 : index
    %c2_59 = arith.constant 2 : index
    %c0_60 = arith.constant 0 : index
    %c0_61 = arith.constant 0 : index
    %43 = vector.load %arg2[%c0_57, %c0_58, %c2_59, %c0_60, %c0_61] : memref<1x1x18x18x4xbf16, #tpu.memory_space<vmem>>, vector<1x1x16x16x4xbf16>
    %44 = vector.shape_cast %43 : vector<1x1x16x16x4xbf16> to vector<16x16x4xbf16>
    %45 = vector.shape_cast %44 : vector<16x16x4xbf16> to vector<256x4xbf16>
    %c2_62 = arith.constant 2 : index
    %c0_63 = arith.constant 0 : index
    %c0_64 = arith.constant 0 : index
    %c0_65 = arith.constant 0 : index
    %46 = vector.load %arg3[%c2_62, %c0_63, %c0_64, %c0_65] : memref<3x3x4x16xbf16, #tpu.memory_space<vmem>>, vector<1x1x4x16xbf16>
    %47 = vector.shape_cast %46 : vector<1x1x4x16xbf16> to vector<4x16xbf16>
    %cst_66 = arith.constant dense<0.000000e+00> : vector<256x16xf32>
    %48 = tpu.matmul %45, %47, %cst_66 {dimension_numbers = #tpu.dot_dimension_numbers<[1], [0], [0], [1], [0, 0, 1, 1], [], []>} : vector<256x4xbf16>, vector<4x16xbf16>, vector<256x16xf32> -> vector<256x16xf32>
    %49 = arith.addf %42, %48 : vector<256x16xf32>
    %c0_67 = arith.constant 0 : index
    %c0_68 = arith.constant 0 : index
    %c2_69 = arith.constant 2 : index
    %c1_70 = arith.constant 1 : index
    %c0_71 = arith.constant 0 : index
    %50 = vector.load %arg2[%c0_67, %c0_68, %c2_69, %c1_70, %c0_71] : memref<1x1x18x18x4xbf16, #tpu.memory_space<vmem>>, vector<1x1x16x16x4xbf16>
    %51 = vector.shape_cast %50 : vector<1x1x16x16x4xbf16> to vector<16x16x4xbf16>
    %52 = vector.shape_cast %51 : vector<16x16x4xbf16> to vector<256x4xbf16>
    %c2_72 = arith.constant 2 : index
    %c1_73 = arith.constant 1 : index
    %c0_74 = arith.constant 0 : index
    %c0_75 = arith.constant 0 : index
    %53 = vector.load %arg3[%c2_72, %c1_73, %c0_74, %c0_75] : memref<3x3x4x16xbf16, #tpu.memory_space<vmem>>, vector<1x1x4x16xbf16>
    %54 = vector.shape_cast %53 : vector<1x1x4x16xbf16> to vector<4x16xbf16>
    %cst_76 = arith.constant dense<0.000000e+00> : vector<256x16xf32>
    %55 = tpu.matmul %52, %54, %cst_76 {dimension_numbers = #tpu.dot_dimension_numbers<[1], [0], [0], [1], [0, 0, 1, 1], [], []>} : vector<256x4xbf16>, vector<4x16xbf16>, vector<256x16xf32> -> vector<256x16xf32>
    %56 = arith.addf %49, %55 : vector<256x16xf32>
    %c0_77 = arith.constant 0 : index
    %c0_78 = arith.constant 0 : index
    %c2_79 = arith.constant 2 : index
    %c2_80 = arith.constant 2 : index
    %c0_81 = arith.constant 0 : index
    %57 = vector.load %arg2[%c0_77, %c0_78, %c2_79, %c2_80, %c0_81] : memref<1x1x18x18x4xbf16, #tpu.memory_space<vmem>>, vector<1x1x16x16x4xbf16>
    %58 = vector.shape_cast %57 : vector<1x1x16x16x4xbf16> to vector<16x16x4xbf16>
    %59 = vector.shape_cast %58 : vector<16x16x4xbf16> to vector<256x4xbf16>
    %c2_82 = arith.constant 2 : index
    %c2_83 = arith.constant 2 : index
    %c0_84 = arith.constant 0 : index
    %c0_85 = arith.constant 0 : index
    %60 = vector.load %arg3[%c2_82, %c2_83, %c0_84, %c0_85] : memref<3x3x4x16xbf16, #tpu.memory_space<vmem>>, vector<1x1x4x16xbf16>
    %61 = vector.shape_cast %60 : vector<1x1x4x16xbf16> to vector<4x16xbf16>
    %cst_86 = arith.constant dense<0.000000e+00> : vector<256x16xf32>
    %62 = tpu.matmul %59, %61, %cst_86 {dimension_numbers = #tpu.dot_dimension_numbers<[1], [0], [0], [1], [0, 0, 1, 1], [], []>} : vector<256x4xbf16>, vector<4x16xbf16>, vector<256x16xf32> -> vector<256x16xf32>
    %63 = arith.addf %56, %62 : vector<256x16xf32>
    %c0_87 = arith.constant 0 : index
    %c0_88 = arith.constant 0 : index
    %64 = vector.load %arg4[%c0_87, %c0_88] : memref<1x16xf32, #tpu.memory_space<vmem>>, vector<1x16xf32>
    %65 = vector.broadcast %64 : vector<1x16xf32> to vector<256x16xf32>
    %66 = arith.addf %63, %65 : vector<256x16xf32>
    %cst_89 = arith.constant 0.000000e+00 : f32
    %67 = vector.broadcast %cst_89 : f32 to vector<256x16xf32>
    %68 = arith.maximumf %66, %67 : vector<256x16xf32>
    %69 = arith.truncf %68 : vector<256x16xf32> to vector<256x16xbf16>
    %c0_90 = arith.constant 0 : index
    %c0_91 = arith.constant 0 : index
    %c0_92 = arith.constant 0 : index
    %c0_93 = arith.constant 0 : index
    %70 = vector.load %arg5[%c0_90, %c0_91, %c0_92, %c0_93] : memref<1x1x256x16xbf16, #tpu.memory_space<vmem>>, vector<1x1x256x16xbf16>
    %71 = vector.shape_cast %70 : vector<1x1x256x16xbf16> to vector<256x16xbf16>
    %72 = vector.shape_cast %69 : vector<256x16xbf16> to vector<1x1x256x16xbf16>
    tpu.vector_store %arg5[%c0_90, %c0_91, %c0_92, %c0_93], %72 {strides = array<i32>} : memref<1x1x256x16xbf16, #tpu.memory_space<vmem>>, vector<1x1x256x16xbf16>,
    return
  }
  func.func @transform_0(%arg0: i32, %arg1: i32) -> (i32, i32, i32, i32, i32) {
    %c0_i32 = arith.constant 0 : i32
    %c0_i32_0 = arith.constant 0 : i32
    %c0_i32_1 = arith.constant 0 : i32
    %c0_i32_2 = arith.constant 0 : i32
    return %arg0, %arg1, %c0_i32, %c0_i32_0, %c0_i32_1 : i32, i32, i32, i32, i32
  }
  func.func @transform_1(%arg0: i32, %arg1: i32) -> (i32, i32, i32, i32) {
    %c0_i32 = arith.constant 0 : i32
    %c0_i32_0 = arith.constant 0 : i32
    %c0_i32_1 = arith.constant 0 : i32
    %c0_i32_2 = arith.constant 0 : i32
    %c0_i32_3 = arith.constant 0 : i32
    return %c0_i32, %c0_i32_0, %c0_i32_1, %c0_i32_2 : i32, i32, i32, i32
  }
  func.func @transform_2(%arg0: i32, %arg1: i32) -> (i32, i32) {
    %c0_i32 = arith.constant 0 : i32
    %c0_i32_0 = arith.constant 0 : i32
    %c0_i32_1 = arith.constant 0 : i32
    return %c0_i32, %c0_i32_0 : i32, i32
  }
  func.func @transform_3(%arg0: i32, %arg1: i32) -> (i32, i32, i32, i32) {
    %c0_i32 = arith.constant 0 : i32
    %c0_i32_0 = arith.constant 0 : i32
    %c0_i32_1 = arith.constant 0 : i32
    return %arg0, %arg1, %c0_i32, %c0_i32_0 : i32, i32, i32, i32
  }
}

module attributes {stable_mosaic.version = 11 : i64} {
  func.func @_conv3x3_band_kernel(%arg0: i32, %arg1: i32, %arg2: memref<1x1x18x18x16xbf16, #tpu.memory_space<vmem>>, %arg3: memref<3x3x16x16xbf16, #tpu.memory_space<vmem>>, %arg4: memref<1x16xf32, #tpu.memory_space<vmem>>, %arg5: memref<1x1x256x16xbf16, #tpu.memory_space<vmem>>) attributes {dimension_semantics = [#tpu.dimension_semantics<parallel>, #tpu.dimension_semantics<parallel>], iteration_bounds = array<i64: 2, 1>, scalar_prefetch = 0 : i64, scratch_operands = 0 : i64, tpu.core_type = #tpu.core_type<tc>, window_params = [{transform_indices = @transform_0, window_bounds = array<i64: 1, 1, 18, 18, 16>}, {pipeline_mode = #tpu.pipeline_mode<synchronous>, transform_indices = @transform_1, window_bounds = array<i64: 3, 3, 16, 16>}, {pipeline_mode = #tpu.pipeline_mode<synchronous>, transform_indices = @transform_2, window_bounds = array<i64: 1, 16>}, {transform_indices = @transform_3, window_bounds = array<i64: 1, 1, 256, 16>}]} {
    %cst = arith.constant 0.000000e+00 : f32
    %0 = vector.broadcast %cst : f32 to vector<256x16xf32>
    %c0 = arith.constant 0 : index
    %c0_0 = arith.constant 0 : index
    %c0_1 = arith.constant 0 : index
    %c0_2 = arith.constant 0 : index
    %c0_3 = arith.constant 0 : index
    %1 = vector.load %arg2[%c0, %c0_0, %c0_1, %c0_2, %c0_3] : memref<1x1x18x18x16xbf16, #tpu.memory_space<vmem>>, vector<1x1x16x16x16xbf16>
    %2 = vector.shape_cast %1 : vector<1x1x16x16x16xbf16> to vector<16x16x16xbf16>
    %3 = vector.shape_cast %2 : vector<16x16x16xbf16> to vector<256x16xbf16>
    %c0_4 = arith.constant 0 : index
    %c0_5 = arith.constant 0 : index
    %c0_6 = arith.constant 0 : index
    %c0_7 = arith.constant 0 : index
    %4 = vector.load %arg3[%c0_4, %c0_5, %c0_6, %c0_7] : memref<3x3x16x16xbf16, #tpu.memory_space<vmem>>, vector<1x1x16x16xbf16>
    %5 = vector.shape_cast %4 : vector<1x1x16x16xbf16> to vector<16x16xbf16>
    %cst_8 = arith.constant dense<0.000000e+00> : vector<256x16xf32>
    %6 = tpu.matmul %3, %5, %cst_8 {dimension_numbers = #tpu.dot_dimension_numbers<[1], [0], [0], [1], [0, 0, 1, 1], [], []>} : vector<256x16xbf16>, vector<16x16xbf16>, vector<256x16xf32> -> vector<256x16xf32>
    %7 = arith.addf %0, %6 : vector<256x16xf32>
    %c0_9 = arith.constant 0 : index
    %c0_10 = arith.constant 0 : index
    %c0_11 = arith.constant 0 : index
    %c1 = arith.constant 1 : index
    %c0_12 = arith.constant 0 : index
    %8 = vector.load %arg2[%c0_9, %c0_10, %c0_11, %c1, %c0_12] : memref<1x1x18x18x16xbf16, #tpu.memory_space<vmem>>, vector<1x1x16x16x16xbf16>
    %9 = vector.shape_cast %8 : vector<1x1x16x16x16xbf16> to vector<16x16x16xbf16>
    %10 = vector.shape_cast %9 : vector<16x16x16xbf16> to vector<256x16xbf16>
    %c0_13 = arith.constant 0 : index
    %c1_14 = arith.constant 1 : index
    %c0_15 = arith.constant 0 : index
    %c0_16 = arith.constant 0 : index
    %11 = vector.load %arg3[%c0_13, %c1_14, %c0_15, %c0_16] : memref<3x3x16x16xbf16, #tpu.memory_space<vmem>>, vector<1x1x16x16xbf16>
    %12 = vector.shape_cast %11 : vector<1x1x16x16xbf16> to vector<16x16xbf16>
    %cst_17 = arith.constant dense<0.000000e+00> : vector<256x16xf32>
    %13 = tpu.matmul %10, %12, %cst_17 {dimension_numbers = #tpu.dot_dimension_numbers<[1], [0], [0], [1], [0, 0, 1, 1], [], []>} : vector<256x16xbf16>, vector<16x16xbf16>, vector<256x16xf32> -> vector<256x16xf32>
    %14 = arith.addf %7, %13 : vector<256x16xf32>
    %c0_18 = arith.constant 0 : index
    %c0_19 = arith.constant 0 : index
    %c0_20 = arith.constant 0 : index
    %c2 = arith.constant 2 : index
    %c0_21 = arith.constant 0 : index
    %15 = vector.load %arg2[%c0_18, %c0_19, %c0_20, %c2, %c0_21] : memref<1x1x18x18x16xbf16, #tpu.memory_space<vmem>>, vector<1x1x16x16x16xbf16>
    %16 = vector.shape_cast %15 : vector<1x1x16x16x16xbf16> to vector<16x16x16xbf16>
    %17 = vector.shape_cast %16 : vector<16x16x16xbf16> to vector<256x16xbf16>
    %c0_22 = arith.constant 0 : index
    %c2_23 = arith.constant 2 : index
    %c0_24 = arith.constant 0 : index
    %c0_25 = arith.constant 0 : index
    %18 = vector.load %arg3[%c0_22, %c2_23, %c0_24, %c0_25] : memref<3x3x16x16xbf16, #tpu.memory_space<vmem>>, vector<1x1x16x16xbf16>
    %19 = vector.shape_cast %18 : vector<1x1x16x16xbf16> to vector<16x16xbf16>
    %cst_26 = arith.constant dense<0.000000e+00> : vector<256x16xf32>
    %20 = tpu.matmul %17, %19, %cst_26 {dimension_numbers = #tpu.dot_dimension_numbers<[1], [0], [0], [1], [0, 0, 1, 1], [], []>} : vector<256x16xbf16>, vector<16x16xbf16>, vector<256x16xf32> -> vector<256x16xf32>
    %21 = arith.addf %14, %20 : vector<256x16xf32>
    %c0_27 = arith.constant 0 : index
    %c0_28 = arith.constant 0 : index
    %c1_29 = arith.constant 1 : index
    %c0_30 = arith.constant 0 : index
    %c0_31 = arith.constant 0 : index
    %22 = vector.load %arg2[%c0_27, %c0_28, %c1_29, %c0_30, %c0_31] : memref<1x1x18x18x16xbf16, #tpu.memory_space<vmem>>, vector<1x1x16x16x16xbf16>
    %23 = vector.shape_cast %22 : vector<1x1x16x16x16xbf16> to vector<16x16x16xbf16>
    %24 = vector.shape_cast %23 : vector<16x16x16xbf16> to vector<256x16xbf16>
    %c1_32 = arith.constant 1 : index
    %c0_33 = arith.constant 0 : index
    %c0_34 = arith.constant 0 : index
    %c0_35 = arith.constant 0 : index
    %25 = vector.load %arg3[%c1_32, %c0_33, %c0_34, %c0_35] : memref<3x3x16x16xbf16, #tpu.memory_space<vmem>>, vector<1x1x16x16xbf16>
    %26 = vector.shape_cast %25 : vector<1x1x16x16xbf16> to vector<16x16xbf16>
    %cst_36 = arith.constant dense<0.000000e+00> : vector<256x16xf32>
    %27 = tpu.matmul %24, %26, %cst_36 {dimension_numbers = #tpu.dot_dimension_numbers<[1], [0], [0], [1], [0, 0, 1, 1], [], []>} : vector<256x16xbf16>, vector<16x16xbf16>, vector<256x16xf32> -> vector<256x16xf32>
    %28 = arith.addf %21, %27 : vector<256x16xf32>
    %c0_37 = arith.constant 0 : index
    %c0_38 = arith.constant 0 : index
    %c1_39 = arith.constant 1 : index
    %c1_40 = arith.constant 1 : index
    %c0_41 = arith.constant 0 : index
    %29 = vector.load %arg2[%c0_37, %c0_38, %c1_39, %c1_40, %c0_41] : memref<1x1x18x18x16xbf16, #tpu.memory_space<vmem>>, vector<1x1x16x16x16xbf16>
    %30 = vector.shape_cast %29 : vector<1x1x16x16x16xbf16> to vector<16x16x16xbf16>
    %31 = vector.shape_cast %30 : vector<16x16x16xbf16> to vector<256x16xbf16>
    %c1_42 = arith.constant 1 : index
    %c1_43 = arith.constant 1 : index
    %c0_44 = arith.constant 0 : index
    %c0_45 = arith.constant 0 : index
    %32 = vector.load %arg3[%c1_42, %c1_43, %c0_44, %c0_45] : memref<3x3x16x16xbf16, #tpu.memory_space<vmem>>, vector<1x1x16x16xbf16>
    %33 = vector.shape_cast %32 : vector<1x1x16x16xbf16> to vector<16x16xbf16>
    %cst_46 = arith.constant dense<0.000000e+00> : vector<256x16xf32>
    %34 = tpu.matmul %31, %33, %cst_46 {dimension_numbers = #tpu.dot_dimension_numbers<[1], [0], [0], [1], [0, 0, 1, 1], [], []>} : vector<256x16xbf16>, vector<16x16xbf16>, vector<256x16xf32> -> vector<256x16xf32>
    %35 = arith.addf %28, %34 : vector<256x16xf32>
    %c0_47 = arith.constant 0 : index
    %c0_48 = arith.constant 0 : index
    %c1_49 = arith.constant 1 : index
    %c2_50 = arith.constant 2 : index
    %c0_51 = arith.constant 0 : index
    %36 = vector.load %arg2[%c0_47, %c0_48, %c1_49, %c2_50, %c0_51] : memref<1x1x18x18x16xbf16, #tpu.memory_space<vmem>>, vector<1x1x16x16x16xbf16>
    %37 = vector.shape_cast %36 : vector<1x1x16x16x16xbf16> to vector<16x16x16xbf16>
    %38 = vector.shape_cast %37 : vector<16x16x16xbf16> to vector<256x16xbf16>
    %c1_52 = arith.constant 1 : index
    %c2_53 = arith.constant 2 : index
    %c0_54 = arith.constant 0 : index
    %c0_55 = arith.constant 0 : index
    %39 = vector.load %arg3[%c1_52, %c2_53, %c0_54, %c0_55] : memref<3x3x16x16xbf16, #tpu.memory_space<vmem>>, vector<1x1x16x16xbf16>
    %40 = vector.shape_cast %39 : vector<1x1x16x16xbf16> to vector<16x16xbf16>
    %cst_56 = arith.constant dense<0.000000e+00> : vector<256x16xf32>
    %41 = tpu.matmul %38, %40, %cst_56 {dimension_numbers = #tpu.dot_dimension_numbers<[1], [0], [0], [1], [0, 0, 1, 1], [], []>} : vector<256x16xbf16>, vector<16x16xbf16>, vector<256x16xf32> -> vector<256x16xf32>
    %42 = arith.addf %35, %41 : vector<256x16xf32>
    %c0_57 = arith.constant 0 : index
    %c0_58 = arith.constant 0 : index
    %c2_59 = arith.constant 2 : index
    %c0_60 = arith.constant 0 : index
    %c0_61 = arith.constant 0 : index
    %43 = vector.load %arg2[%c0_57, %c0_58, %c2_59, %c0_60, %c0_61] : memref<1x1x18x18x16xbf16, #tpu.memory_space<vmem>>, vector<1x1x16x16x16xbf16>
    %44 = vector.shape_cast %43 : vector<1x1x16x16x16xbf16> to vector<16x16x16xbf16>
    %45 = vector.shape_cast %44 : vector<16x16x16xbf16> to vector<256x16xbf16>
    %c2_62 = arith.constant 2 : index
    %c0_63 = arith.constant 0 : index
    %c0_64 = arith.constant 0 : index
    %c0_65 = arith.constant 0 : index
    %46 = vector.load %arg3[%c2_62, %c0_63, %c0_64, %c0_65] : memref<3x3x16x16xbf16, #tpu.memory_space<vmem>>, vector<1x1x16x16xbf16>
    %47 = vector.shape_cast %46 : vector<1x1x16x16xbf16> to vector<16x16xbf16>
    %cst_66 = arith.constant dense<0.000000e+00> : vector<256x16xf32>
    %48 = tpu.matmul %45, %47, %cst_66 {dimension_numbers = #tpu.dot_dimension_numbers<[1], [0], [0], [1], [0, 0, 1, 1], [], []>} : vector<256x16xbf16>, vector<16x16xbf16>, vector<256x16xf32> -> vector<256x16xf32>
    %49 = arith.addf %42, %48 : vector<256x16xf32>
    %c0_67 = arith.constant 0 : index
    %c0_68 = arith.constant 0 : index
    %c2_69 = arith.constant 2 : index
    %c1_70 = arith.constant 1 : index
    %c0_71 = arith.constant 0 : index
    %50 = vector.load %arg2[%c0_67, %c0_68, %c2_69, %c1_70, %c0_71] : memref<1x1x18x18x16xbf16, #tpu.memory_space<vmem>>, vector<1x1x16x16x16xbf16>
    %51 = vector.shape_cast %50 : vector<1x1x16x16x16xbf16> to vector<16x16x16xbf16>
    %52 = vector.shape_cast %51 : vector<16x16x16xbf16> to vector<256x16xbf16>
    %c2_72 = arith.constant 2 : index
    %c1_73 = arith.constant 1 : index
    %c0_74 = arith.constant 0 : index
    %c0_75 = arith.constant 0 : index
    %53 = vector.load %arg3[%c2_72, %c1_73, %c0_74, %c0_75] : memref<3x3x16x16xbf16, #tpu.memory_space<vmem>>, vector<1x1x16x16xbf16>
    %54 = vector.shape_cast %53 : vector<1x1x16x16xbf16> to vector<16x16xbf16>
    %cst_76 = arith.constant dense<0.000000e+00> : vector<256x16xf32>
    %55 = tpu.matmul %52, %54, %cst_76 {dimension_numbers = #tpu.dot_dimension_numbers<[1], [0], [0], [1], [0, 0, 1, 1], [], []>} : vector<256x16xbf16>, vector<16x16xbf16>, vector<256x16xf32> -> vector<256x16xf32>
    %56 = arith.addf %49, %55 : vector<256x16xf32>
    %c0_77 = arith.constant 0 : index
    %c0_78 = arith.constant 0 : index
    %c2_79 = arith.constant 2 : index
    %c2_80 = arith.constant 2 : index
    %c0_81 = arith.constant 0 : index
    %57 = vector.load %arg2[%c0_77, %c0_78, %c2_79, %c2_80, %c0_81] : memref<1x1x18x18x16xbf16, #tpu.memory_space<vmem>>, vector<1x1x16x16x16xbf16>
    %58 = vector.shape_cast %57 : vector<1x1x16x16x16xbf16> to vector<16x16x16xbf16>
    %59 = vector.shape_cast %58 : vector<16x16x16xbf16> to vector<256x16xbf16>
    %c2_82 = arith.constant 2 : index
    %c2_83 = arith.constant 2 : index
    %c0_84 = arith.constant 0 : index
    %c0_85 = arith.constant 0 : index
    %60 = vector.load %arg3[%c2_82, %c2_83, %c0_84, %c0_85] : memref<3x3x16x16xbf16, #tpu.memory_space<vmem>>, vector<1x1x16x16xbf16>
    %61 = vector.shape_cast %60 : vector<1x1x16x16xbf16> to vector<16x16xbf16>
    %cst_86 = arith.constant dense<0.000000e+00> : vector<256x16xf32>
    %62 = tpu.matmul %59, %61, %cst_86 {dimension_numbers = #tpu.dot_dimension_numbers<[1], [0], [0], [1], [0, 0, 1, 1], [], []>} : vector<256x16xbf16>, vector<16x16xbf16>, vector<256x16xf32> -> vector<256x16xf32>
    %63 = arith.addf %56, %62 : vector<256x16xf32>
    %c0_87 = arith.constant 0 : index
    %c0_88 = arith.constant 0 : index
    %64 = vector.load %arg4[%c0_87, %c0_88] : memref<1x16xf32, #tpu.memory_space<vmem>>, vector<1x16xf32>
    %65 = vector.broadcast %64 : vector<1x16xf32> to vector<256x16xf32>
    %66 = arith.addf %63, %65 : vector<256x16xf32>
    %cst_89 = arith.constant 0.000000e+00 : f32
    %67 = vector.broadcast %cst_89 : f32 to vector<256x16xf32>
    %68 = arith.maximumf %66, %67 : vector<256x16xf32>
    %69 = arith.truncf %68 : vector<256x16xf32> to vector<256x16xbf16>
    %c0_90 = arith.constant 0 : index
    %c0_91 = arith.constant 0 : index
    %c0_92 = arith.constant 0 : index
    %c0_93 = arith.constant 0 : index
    %70 = vector.load %arg5[%c0_90, %c0_91, %c0_92, %c0_93] : memref<1x1x256x16xbf16, #tpu.memory_space<vmem>>, vector<1x1x256x16xbf16>
    %71 = vector.shape_cast %70 : vector<1x1x256x16xbf16> to vector<256x16xbf16>
    %72 = vector.shape_cast %69 : vector<256x16xbf16> to vector<1x1x256x16xbf16>
    tpu.vector_store %arg5[%c0_90, %c0_91, %c0_92, %c0_93], %72 {strides = array<i32>} : memref<1x1x256x16xbf16, #tpu.memory_space<vmem>>, vector<1x1x256x16xbf16>,
    return
  }
  func.func @transform_0(%arg0: i32, %arg1: i32) -> (i32, i32, i32, i32, i32) {
    %c0_i32 = arith.constant 0 : i32
    %c0_i32_0 = arith.constant 0 : i32
    %c0_i32_1 = arith.constant 0 : i32
    %c0_i32_2 = arith.constant 0 : i32
    return %arg0, %arg1, %c0_i32, %c0_i32_0, %c0_i32_1 : i32, i32, i32, i32, i32
  }
  func.func @transform_1(%arg0: i32, %arg1: i32) -> (i32, i32, i32, i32) {
    %c0_i32 = arith.constant 0 : i32
    %c0_i32_0 = arith.constant 0 : i32
    %c0_i32_1 = arith.constant 0 : i32
    %c0_i32_2 = arith.constant 0 : i32
    %c0_i32_3 = arith.constant 0 : i32
    return %c0_i32, %c0_i32_0, %c0_i32_1, %c0_i32_2 : i32, i32, i32, i32
  }
  func.func @transform_2(%arg0: i32, %arg1: i32) -> (i32, i32) {
    %c0_i32 = arith.constant 0 : i32
    %c0_i32_0 = arith.constant 0 : i32
    %c0_i32_1 = arith.constant 0 : i32
    return %c0_i32, %c0_i32_0 : i32, i32
  }
  func.func @transform_3(%arg0: i32, %arg1: i32) -> (i32, i32, i32, i32) {
    %c0_i32 = arith.constant 0 : i32
    %c0_i32_0 = arith.constant 0 : i32
    %c0_i32_1 = arith.constant 0 : i32
    return %arg0, %arg1, %c0_i32, %c0_i32_0 : i32, i32, i32, i32
  }
}

module attributes {stable_mosaic.version = 11 : i64} {
  func.func @_mm_bn_relu_kernel(%arg0: i32, %arg1: memref<256x16xbf16, #tpu.memory_space<vmem>>, %arg2: memref<16x16xbf16, #tpu.memory_space<vmem>>, %arg3: memref<1x16xf32, #tpu.memory_space<vmem>>, %arg4: memref<256x16xbf16, #tpu.memory_space<vmem>>) attributes {dimension_semantics = [#tpu.dimension_semantics<parallel>], iteration_bounds = array<i64: 2>, scalar_prefetch = 0 : i64, scratch_operands = 0 : i64, tpu.core_type = #tpu.core_type<tc>, window_params = [{transform_indices = @transform_0, window_bounds = array<i64: 256, 16>}, {pipeline_mode = #tpu.pipeline_mode<synchronous>, transform_indices = @transform_1, window_bounds = array<i64: 16, 16>}, {pipeline_mode = #tpu.pipeline_mode<synchronous>, transform_indices = @transform_2, window_bounds = array<i64: 1, 16>}, {transform_indices = @transform_3, window_bounds = array<i64: 256, 16>}]} {
    %c0 = arith.constant 0 : index
    %c0_0 = arith.constant 0 : index
    %0 = vector.load %arg1[%c0, %c0_0] : memref<256x16xbf16, #tpu.memory_space<vmem>>, vector<256x16xbf16>
    %c0_1 = arith.constant 0 : index
    %c0_2 = arith.constant 0 : index
    %1 = vector.load %arg2[%c0_1, %c0_2] : memref<16x16xbf16, #tpu.memory_space<vmem>>, vector<16x16xbf16>
    %cst = arith.constant dense<0.000000e+00> : vector<256x16xf32>
    %2 = tpu.matmul %0, %1, %cst {dimension_numbers = #tpu.dot_dimension_numbers<[1], [0], [0], [1], [0, 0, 1, 1], [], []>} : vector<256x16xbf16>, vector<16x16xbf16>, vector<256x16xf32> -> vector<256x16xf32>
    %c0_3 = arith.constant 0 : index
    %c0_4 = arith.constant 0 : index
    %3 = vector.load %arg3[%c0_3, %c0_4] : memref<1x16xf32, #tpu.memory_space<vmem>>, vector<1x16xf32>
    %4 = vector.broadcast %3 : vector<1x16xf32> to vector<256x16xf32>
    %5 = arith.addf %2, %4 : vector<256x16xf32>
    %cst_5 = arith.constant 0.000000e+00 : f32
    %6 = vector.broadcast %cst_5 : f32 to vector<256x16xf32>
    %7 = arith.maximumf %5, %6 : vector<256x16xf32>
    %8 = arith.truncf %7 : vector<256x16xf32> to vector<256x16xbf16>
    %c0_6 = arith.constant 0 : index
    %c0_7 = arith.constant 0 : index
    %9 = vector.load %arg4[%c0_6, %c0_7] : memref<256x16xbf16, #tpu.memory_space<vmem>>, vector<256x16xbf16>
    tpu.vector_store %arg4[%c0_6, %c0_7], %8 {strides = array<i32>} : memref<256x16xbf16, #tpu.memory_space<vmem>>, vector<256x16xbf16>,
    return
  }
  func.func @transform_0(%arg0: i32) -> (i32, i32) {
    %c0_i32 = arith.constant 0 : i32
    %c0_i32_0 = arith.constant 0 : i32
    return %arg0, %c0_i32 : i32, i32
  }
  func.func @transform_1(%arg0: i32) -> (i32, i32) {
    %c0_i32 = arith.constant 0 : i32
    %c0_i32_0 = arith.constant 0 : i32
    %c0_i32_1 = arith.constant 0 : i32
    return %c0_i32, %c0_i32_0 : i32, i32
  }
  func.func @transform_2(%arg0: i32) -> (i32, i32) {
    %c0_i32 = arith.constant 0 : i32
    %c0_i32_0 = arith.constant 0 : i32
    %c0_i32_1 = arith.constant 0 : i32
    return %c0_i32, %c0_i32_0 : i32, i32
  }
  func.func @transform_3(%arg0: i32) -> (i32, i32) {
    %c0_i32 = arith.constant 0 : i32
    %c0_i32_0 = arith.constant 0 : i32
    return %arg0, %c0_i32 : i32, i32
  }
}

module attributes {stable_mosaic.version = 11 : i64} {
  func.func @_mm_bn_relu_kernel(%arg0: i32, %arg1: memref<64x144xbf16, #tpu.memory_space<vmem>>, %arg2: memref<144x32xbf16, #tpu.memory_space<vmem>>, %arg3: memref<1x32xf32, #tpu.memory_space<vmem>>, %arg4: memref<64x32xbf16, #tpu.memory_space<vmem>>) attributes {dimension_semantics = [#tpu.dimension_semantics<parallel>], iteration_bounds = array<i64: 2>, scalar_prefetch = 0 : i64, scratch_operands = 0 : i64, tpu.core_type = #tpu.core_type<tc>, window_params = [{transform_indices = @transform_0, window_bounds = array<i64: 64, 144>}, {pipeline_mode = #tpu.pipeline_mode<synchronous>, transform_indices = @transform_1, window_bounds = array<i64: 144, 32>}, {pipeline_mode = #tpu.pipeline_mode<synchronous>, transform_indices = @transform_2, window_bounds = array<i64: 1, 32>}, {transform_indices = @transform_3, window_bounds = array<i64: 64, 32>}]} {
    %c0 = arith.constant 0 : index
    %c0_0 = arith.constant 0 : index
    %0 = vector.load %arg1[%c0, %c0_0] : memref<64x144xbf16, #tpu.memory_space<vmem>>, vector<64x144xbf16>
    %c0_1 = arith.constant 0 : index
    %c0_2 = arith.constant 0 : index
    %1 = vector.load %arg2[%c0_1, %c0_2] : memref<144x32xbf16, #tpu.memory_space<vmem>>, vector<144x32xbf16>
    %cst = arith.constant dense<0.000000e+00> : vector<64x32xf32>
    %2 = tpu.matmul %0, %1, %cst {dimension_numbers = #tpu.dot_dimension_numbers<[1], [0], [0], [1], [0, 0, 1, 1], [], []>} : vector<64x144xbf16>, vector<144x32xbf16>, vector<64x32xf32> -> vector<64x32xf32>
    %c0_3 = arith.constant 0 : index
    %c0_4 = arith.constant 0 : index
    %3 = vector.load %arg3[%c0_3, %c0_4] : memref<1x32xf32, #tpu.memory_space<vmem>>, vector<1x32xf32>
    %4 = vector.broadcast %3 : vector<1x32xf32> to vector<64x32xf32>
    %5 = arith.addf %2, %4 : vector<64x32xf32>
    %cst_5 = arith.constant 0.000000e+00 : f32
    %6 = vector.broadcast %cst_5 : f32 to vector<64x32xf32>
    %7 = arith.maximumf %5, %6 : vector<64x32xf32>
    %8 = arith.truncf %7 : vector<64x32xf32> to vector<64x32xbf16>
    %c0_6 = arith.constant 0 : index
    %c0_7 = arith.constant 0 : index
    %9 = vector.load %arg4[%c0_6, %c0_7] : memref<64x32xbf16, #tpu.memory_space<vmem>>, vector<64x32xbf16>
    tpu.vector_store %arg4[%c0_6, %c0_7], %8 {strides = array<i32>} : memref<64x32xbf16, #tpu.memory_space<vmem>>, vector<64x32xbf16>,
    return
  }
  func.func @transform_0(%arg0: i32) -> (i32, i32) {
    %c0_i32 = arith.constant 0 : i32
    %c0_i32_0 = arith.constant 0 : i32
    return %arg0, %c0_i32 : i32, i32
  }
  func.func @transform_1(%arg0: i32) -> (i32, i32) {
    %c0_i32 = arith.constant 0 : i32
    %c0_i32_0 = arith.constant 0 : i32
    %c0_i32_1 = arith.constant 0 : i32
    return %c0_i32, %c0_i32_0 : i32, i32
  }
  func.func @transform_2(%arg0: i32) -> (i32, i32) {
    %c0_i32 = arith.constant 0 : i32
    %c0_i32_0 = arith.constant 0 : i32
    %c0_i32_1 = arith.constant 0 : i32
    return %c0_i32, %c0_i32_0 : i32, i32
  }
  func.func @transform_3(%arg0: i32) -> (i32, i32) {
    %c0_i32 = arith.constant 0 : i32
    %c0_i32_0 = arith.constant 0 : i32
    return %arg0, %c0_i32 : i32, i32
  }
}

module attributes {stable_mosaic.version = 11 : i64} {
  func.func @_mm_bn_relu_kernel(%arg0: i32, %arg1: memref<64x32xbf16, #tpu.memory_space<vmem>>, %arg2: memref<32x64xbf16, #tpu.memory_space<vmem>>, %arg3: memref<1x64xf32, #tpu.memory_space<vmem>>, %arg4: memref<64x64xbf16, #tpu.memory_space<vmem>>) attributes {dimension_semantics = [#tpu.dimension_semantics<parallel>], iteration_bounds = array<i64: 2>, scalar_prefetch = 0 : i64, scratch_operands = 0 : i64, tpu.core_type = #tpu.core_type<tc>, window_params = [{transform_indices = @transform_0, window_bounds = array<i64: 64, 32>}, {pipeline_mode = #tpu.pipeline_mode<synchronous>, transform_indices = @transform_1, window_bounds = array<i64: 32, 64>}, {pipeline_mode = #tpu.pipeline_mode<synchronous>, transform_indices = @transform_2, window_bounds = array<i64: 1, 64>}, {transform_indices = @transform_3, window_bounds = array<i64: 64, 64>}]} {
    %c0 = arith.constant 0 : index
    %c0_0 = arith.constant 0 : index
    %0 = vector.load %arg1[%c0, %c0_0] : memref<64x32xbf16, #tpu.memory_space<vmem>>, vector<64x32xbf16>
    %c0_1 = arith.constant 0 : index
    %c0_2 = arith.constant 0 : index
    %1 = vector.load %arg2[%c0_1, %c0_2] : memref<32x64xbf16, #tpu.memory_space<vmem>>, vector<32x64xbf16>
    %cst = arith.constant dense<0.000000e+00> : vector<64x64xf32>
    %2 = tpu.matmul %0, %1, %cst {dimension_numbers = #tpu.dot_dimension_numbers<[1], [0], [0], [1], [0, 0, 1, 1], [], []>} : vector<64x32xbf16>, vector<32x64xbf16>, vector<64x64xf32> -> vector<64x64xf32>
    %c0_3 = arith.constant 0 : index
    %c0_4 = arith.constant 0 : index
    %3 = vector.load %arg3[%c0_3, %c0_4] : memref<1x64xf32, #tpu.memory_space<vmem>>, vector<1x64xf32>
    %4 = vector.broadcast %3 : vector<1x64xf32> to vector<64x64xf32>
    %5 = arith.addf %2, %4 : vector<64x64xf32>
    %cst_5 = arith.constant 0.000000e+00 : f32
    %6 = vector.broadcast %cst_5 : f32 to vector<64x64xf32>
    %7 = arith.maximumf %5, %6 : vector<64x64xf32>
    %8 = arith.truncf %7 : vector<64x64xf32> to vector<64x64xbf16>
    %c0_6 = arith.constant 0 : index
    %c0_7 = arith.constant 0 : index
    %9 = vector.load %arg4[%c0_6, %c0_7] : memref<64x64xbf16, #tpu.memory_space<vmem>>, vector<64x64xbf16>
    tpu.vector_store %arg4[%c0_6, %c0_7], %8 {strides = array<i32>} : memref<64x64xbf16, #tpu.memory_space<vmem>>, vector<64x64xbf16>,
    return
  }
  func.func @transform_0(%arg0: i32) -> (i32, i32) {
    %c0_i32 = arith.constant 0 : i32
    %c0_i32_0 = arith.constant 0 : i32
    return %arg0, %c0_i32 : i32, i32
  }
  func.func @transform_1(%arg0: i32) -> (i32, i32) {
    %c0_i32 = arith.constant 0 : i32
    %c0_i32_0 = arith.constant 0 : i32
    %c0_i32_1 = arith.constant 0 : i32
    return %c0_i32, %c0_i32_0 : i32, i32
  }
  func.func @transform_2(%arg0: i32) -> (i32, i32) {
    %c0_i32 = arith.constant 0 : i32
    %c0_i32_0 = arith.constant 0 : i32
    %c0_i32_1 = arith.constant 0 : i32
    return %c0_i32, %c0_i32_0 : i32, i32
  }
  func.func @transform_3(%arg0: i32) -> (i32, i32) {
    %c0_i32 = arith.constant 0 : i32
    %c0_i32_0 = arith.constant 0 : i32
    return %arg0, %c0_i32 : i32, i32
  }
}

module attributes {stable_mosaic.version = 11 : i64} {
  func.func @_conv3x3_band_kernel(%arg0: i32, %arg1: i32, %arg2: memref<1x1x10x10x32xbf16, #tpu.memory_space<vmem>>, %arg3: memref<3x3x32x32xbf16, #tpu.memory_space<vmem>>, %arg4: memref<1x32xf32, #tpu.memory_space<vmem>>, %arg5: memref<1x1x64x32xbf16, #tpu.memory_space<vmem>>) attributes {dimension_semantics = [#tpu.dimension_semantics<parallel>, #tpu.dimension_semantics<parallel>], iteration_bounds = array<i64: 2, 1>, scalar_prefetch = 0 : i64, scratch_operands = 0 : i64, tpu.core_type = #tpu.core_type<tc>, window_params = [{transform_indices = @transform_0, window_bounds = array<i64: 1, 1, 10, 10, 32>}, {pipeline_mode = #tpu.pipeline_mode<synchronous>, transform_indices = @transform_1, window_bounds = array<i64: 3, 3, 32, 32>}, {pipeline_mode = #tpu.pipeline_mode<synchronous>, transform_indices = @transform_2, window_bounds = array<i64: 1, 32>}, {transform_indices = @transform_3, window_bounds = array<i64: 1, 1, 64, 32>}]} {
    %cst = arith.constant 0.000000e+00 : f32
    %0 = vector.broadcast %cst : f32 to vector<64x32xf32>
    %c0 = arith.constant 0 : index
    %c0_0 = arith.constant 0 : index
    %c0_1 = arith.constant 0 : index
    %c0_2 = arith.constant 0 : index
    %c0_3 = arith.constant 0 : index
    %1 = vector.load %arg2[%c0, %c0_0, %c0_1, %c0_2, %c0_3] : memref<1x1x10x10x32xbf16, #tpu.memory_space<vmem>>, vector<1x1x8x8x32xbf16>
    %2 = vector.shape_cast %1 : vector<1x1x8x8x32xbf16> to vector<8x8x32xbf16>
    %3 = vector.shape_cast %2 : vector<8x8x32xbf16> to vector<64x32xbf16>
    %c0_4 = arith.constant 0 : index
    %c0_5 = arith.constant 0 : index
    %c0_6 = arith.constant 0 : index
    %c0_7 = arith.constant 0 : index
    %4 = vector.load %arg3[%c0_4, %c0_5, %c0_6, %c0_7] : memref<3x3x32x32xbf16, #tpu.memory_space<vmem>>, vector<1x1x32x32xbf16>
    %5 = vector.shape_cast %4 : vector<1x1x32x32xbf16> to vector<32x32xbf16>
    %cst_8 = arith.constant dense<0.000000e+00> : vector<64x32xf32>
    %6 = tpu.matmul %3, %5, %cst_8 {dimension_numbers = #tpu.dot_dimension_numbers<[1], [0], [0], [1], [0, 0, 1, 1], [], []>} : vector<64x32xbf16>, vector<32x32xbf16>, vector<64x32xf32> -> vector<64x32xf32>
    %7 = arith.addf %0, %6 : vector<64x32xf32>
    %c0_9 = arith.constant 0 : index
    %c0_10 = arith.constant 0 : index
    %c0_11 = arith.constant 0 : index
    %c1 = arith.constant 1 : index
    %c0_12 = arith.constant 0 : index
    %8 = vector.load %arg2[%c0_9, %c0_10, %c0_11, %c1, %c0_12] : memref<1x1x10x10x32xbf16, #tpu.memory_space<vmem>>, vector<1x1x8x8x32xbf16>
    %9 = vector.shape_cast %8 : vector<1x1x8x8x32xbf16> to vector<8x8x32xbf16>
    %10 = vector.shape_cast %9 : vector<8x8x32xbf16> to vector<64x32xbf16>
    %c0_13 = arith.constant 0 : index
    %c1_14 = arith.constant 1 : index
    %c0_15 = arith.constant 0 : index
    %c0_16 = arith.constant 0 : index
    %11 = vector.load %arg3[%c0_13, %c1_14, %c0_15, %c0_16] : memref<3x3x32x32xbf16, #tpu.memory_space<vmem>>, vector<1x1x32x32xbf16>
    %12 = vector.shape_cast %11 : vector<1x1x32x32xbf16> to vector<32x32xbf16>
    %cst_17 = arith.constant dense<0.000000e+00> : vector<64x32xf32>
    %13 = tpu.matmul %10, %12, %cst_17 {dimension_numbers = #tpu.dot_dimension_numbers<[1], [0], [0], [1], [0, 0, 1, 1], [], []>} : vector<64x32xbf16>, vector<32x32xbf16>, vector<64x32xf32> -> vector<64x32xf32>
    %14 = arith.addf %7, %13 : vector<64x32xf32>
    %c0_18 = arith.constant 0 : index
    %c0_19 = arith.constant 0 : index
    %c0_20 = arith.constant 0 : index
    %c2 = arith.constant 2 : index
    %c0_21 = arith.constant 0 : index
    %15 = vector.load %arg2[%c0_18, %c0_19, %c0_20, %c2, %c0_21] : memref<1x1x10x10x32xbf16, #tpu.memory_space<vmem>>, vector<1x1x8x8x32xbf16>
    %16 = vector.shape_cast %15 : vector<1x1x8x8x32xbf16> to vector<8x8x32xbf16>
    %17 = vector.shape_cast %16 : vector<8x8x32xbf16> to vector<64x32xbf16>
    %c0_22 = arith.constant 0 : index
    %c2_23 = arith.constant 2 : index
    %c0_24 = arith.constant 0 : index
    %c0_25 = arith.constant 0 : index
    %18 = vector.load %arg3[%c0_22, %c2_23, %c0_24, %c0_25] : memref<3x3x32x32xbf16, #tpu.memory_space<vmem>>, vector<1x1x32x32xbf16>
    %19 = vector.shape_cast %18 : vector<1x1x32x32xbf16> to vector<32x32xbf16>
    %cst_26 = arith.constant dense<0.000000e+00> : vector<64x32xf32>
    %20 = tpu.matmul %17, %19, %cst_26 {dimension_numbers = #tpu.dot_dimension_numbers<[1], [0], [0], [1], [0, 0, 1, 1], [], []>} : vector<64x32xbf16>, vector<32x32xbf16>, vector<64x32xf32> -> vector<64x32xf32>
    %21 = arith.addf %14, %20 : vector<64x32xf32>
    %c0_27 = arith.constant 0 : index
    %c0_28 = arith.constant 0 : index
    %c1_29 = arith.constant 1 : index
    %c0_30 = arith.constant 0 : index
    %c0_31 = arith.constant 0 : index
    %22 = vector.load %arg2[%c0_27, %c0_28, %c1_29, %c0_30, %c0_31] : memref<1x1x10x10x32xbf16, #tpu.memory_space<vmem>>, vector<1x1x8x8x32xbf16>
    %23 = vector.shape_cast %22 : vector<1x1x8x8x32xbf16> to vector<8x8x32xbf16>
    %24 = vector.shape_cast %23 : vector<8x8x32xbf16> to vector<64x32xbf16>
    %c1_32 = arith.constant 1 : index
    %c0_33 = arith.constant 0 : index
    %c0_34 = arith.constant 0 : index
    %c0_35 = arith.constant 0 : index
    %25 = vector.load %arg3[%c1_32, %c0_33, %c0_34, %c0_35] : memref<3x3x32x32xbf16, #tpu.memory_space<vmem>>, vector<1x1x32x32xbf16>
    %26 = vector.shape_cast %25 : vector<1x1x32x32xbf16> to vector<32x32xbf16>
    %cst_36 = arith.constant dense<0.000000e+00> : vector<64x32xf32>
    %27 = tpu.matmul %24, %26, %cst_36 {dimension_numbers = #tpu.dot_dimension_numbers<[1], [0], [0], [1], [0, 0, 1, 1], [], []>} : vector<64x32xbf16>, vector<32x32xbf16>, vector<64x32xf32> -> vector<64x32xf32>
    %28 = arith.addf %21, %27 : vector<64x32xf32>
    %c0_37 = arith.constant 0 : index
    %c0_38 = arith.constant 0 : index
    %c1_39 = arith.constant 1 : index
    %c1_40 = arith.constant 1 : index
    %c0_41 = arith.constant 0 : index
    %29 = vector.load %arg2[%c0_37, %c0_38, %c1_39, %c1_40, %c0_41] : memref<1x1x10x10x32xbf16, #tpu.memory_space<vmem>>, vector<1x1x8x8x32xbf16>
    %30 = vector.shape_cast %29 : vector<1x1x8x8x32xbf16> to vector<8x8x32xbf16>
    %31 = vector.shape_cast %30 : vector<8x8x32xbf16> to vector<64x32xbf16>
    %c1_42 = arith.constant 1 : index
    %c1_43 = arith.constant 1 : index
    %c0_44 = arith.constant 0 : index
    %c0_45 = arith.constant 0 : index
    %32 = vector.load %arg3[%c1_42, %c1_43, %c0_44, %c0_45] : memref<3x3x32x32xbf16, #tpu.memory_space<vmem>>, vector<1x1x32x32xbf16>
    %33 = vector.shape_cast %32 : vector<1x1x32x32xbf16> to vector<32x32xbf16>
    %cst_46 = arith.constant dense<0.000000e+00> : vector<64x32xf32>
    %34 = tpu.matmul %31, %33, %cst_46 {dimension_numbers = #tpu.dot_dimension_numbers<[1], [0], [0], [1], [0, 0, 1, 1], [], []>} : vector<64x32xbf16>, vector<32x32xbf16>, vector<64x32xf32> -> vector<64x32xf32>
    %35 = arith.addf %28, %34 : vector<64x32xf32>
    %c0_47 = arith.constant 0 : index
    %c0_48 = arith.constant 0 : index
    %c1_49 = arith.constant 1 : index
    %c2_50 = arith.constant 2 : index
    %c0_51 = arith.constant 0 : index
    %36 = vector.load %arg2[%c0_47, %c0_48, %c1_49, %c2_50, %c0_51] : memref<1x1x10x10x32xbf16, #tpu.memory_space<vmem>>, vector<1x1x8x8x32xbf16>
    %37 = vector.shape_cast %36 : vector<1x1x8x8x32xbf16> to vector<8x8x32xbf16>
    %38 = vector.shape_cast %37 : vector<8x8x32xbf16> to vector<64x32xbf16>
    %c1_52 = arith.constant 1 : index
    %c2_53 = arith.constant 2 : index
    %c0_54 = arith.constant 0 : index
    %c0_55 = arith.constant 0 : index
    %39 = vector.load %arg3[%c1_52, %c2_53, %c0_54, %c0_55] : memref<3x3x32x32xbf16, #tpu.memory_space<vmem>>, vector<1x1x32x32xbf16>
    %40 = vector.shape_cast %39 : vector<1x1x32x32xbf16> to vector<32x32xbf16>
    %cst_56 = arith.constant dense<0.000000e+00> : vector<64x32xf32>
    %41 = tpu.matmul %38, %40, %cst_56 {dimension_numbers = #tpu.dot_dimension_numbers<[1], [0], [0], [1], [0, 0, 1, 1], [], []>} : vector<64x32xbf16>, vector<32x32xbf16>, vector<64x32xf32> -> vector<64x32xf32>
    %42 = arith.addf %35, %41 : vector<64x32xf32>
    %c0_57 = arith.constant 0 : index
    %c0_58 = arith.constant 0 : index
    %c2_59 = arith.constant 2 : index
    %c0_60 = arith.constant 0 : index
    %c0_61 = arith.constant 0 : index
    %43 = vector.load %arg2[%c0_57, %c0_58, %c2_59, %c0_60, %c0_61] : memref<1x1x10x10x32xbf16, #tpu.memory_space<vmem>>, vector<1x1x8x8x32xbf16>
    %44 = vector.shape_cast %43 : vector<1x1x8x8x32xbf16> to vector<8x8x32xbf16>
    %45 = vector.shape_cast %44 : vector<8x8x32xbf16> to vector<64x32xbf16>
    %c2_62 = arith.constant 2 : index
    %c0_63 = arith.constant 0 : index
    %c0_64 = arith.constant 0 : index
    %c0_65 = arith.constant 0 : index
    %46 = vector.load %arg3[%c2_62, %c0_63, %c0_64, %c0_65] : memref<3x3x32x32xbf16, #tpu.memory_space<vmem>>, vector<1x1x32x32xbf16>
    %47 = vector.shape_cast %46 : vector<1x1x32x32xbf16> to vector<32x32xbf16>
    %cst_66 = arith.constant dense<0.000000e+00> : vector<64x32xf32>
    %48 = tpu.matmul %45, %47, %cst_66 {dimension_numbers = #tpu.dot_dimension_numbers<[1], [0], [0], [1], [0, 0, 1, 1], [], []>} : vector<64x32xbf16>, vector<32x32xbf16>, vector<64x32xf32> -> vector<64x32xf32>
    %49 = arith.addf %42, %48 : vector<64x32xf32>
    %c0_67 = arith.constant 0 : index
    %c0_68 = arith.constant 0 : index
    %c2_69 = arith.constant 2 : index
    %c1_70 = arith.constant 1 : index
    %c0_71 = arith.constant 0 : index
    %50 = vector.load %arg2[%c0_67, %c0_68, %c2_69, %c1_70, %c0_71] : memref<1x1x10x10x32xbf16, #tpu.memory_space<vmem>>, vector<1x1x8x8x32xbf16>
    %51 = vector.shape_cast %50 : vector<1x1x8x8x32xbf16> to vector<8x8x32xbf16>
    %52 = vector.shape_cast %51 : vector<8x8x32xbf16> to vector<64x32xbf16>
    %c2_72 = arith.constant 2 : index
    %c1_73 = arith.constant 1 : index
    %c0_74 = arith.constant 0 : index
    %c0_75 = arith.constant 0 : index
    %53 = vector.load %arg3[%c2_72, %c1_73, %c0_74, %c0_75] : memref<3x3x32x32xbf16, #tpu.memory_space<vmem>>, vector<1x1x32x32xbf16>
    %54 = vector.shape_cast %53 : vector<1x1x32x32xbf16> to vector<32x32xbf16>
    %cst_76 = arith.constant dense<0.000000e+00> : vector<64x32xf32>
    %55 = tpu.matmul %52, %54, %cst_76 {dimension_numbers = #tpu.dot_dimension_numbers<[1], [0], [0], [1], [0, 0, 1, 1], [], []>} : vector<64x32xbf16>, vector<32x32xbf16>, vector<64x32xf32> -> vector<64x32xf32>
    %56 = arith.addf %49, %55 : vector<64x32xf32>
    %c0_77 = arith.constant 0 : index
    %c0_78 = arith.constant 0 : index
    %c2_79 = arith.constant 2 : index
    %c2_80 = arith.constant 2 : index
    %c0_81 = arith.constant 0 : index
    %57 = vector.load %arg2[%c0_77, %c0_78, %c2_79, %c2_80, %c0_81] : memref<1x1x10x10x32xbf16, #tpu.memory_space<vmem>>, vector<1x1x8x8x32xbf16>
    %58 = vector.shape_cast %57 : vector<1x1x8x8x32xbf16> to vector<8x8x32xbf16>
    %59 = vector.shape_cast %58 : vector<8x8x32xbf16> to vector<64x32xbf16>
    %c2_82 = arith.constant 2 : index
    %c2_83 = arith.constant 2 : index
    %c0_84 = arith.constant 0 : index
    %c0_85 = arith.constant 0 : index
    %60 = vector.load %arg3[%c2_82, %c2_83, %c0_84, %c0_85] : memref<3x3x32x32xbf16, #tpu.memory_space<vmem>>, vector<1x1x32x32xbf16>
    %61 = vector.shape_cast %60 : vector<1x1x32x32xbf16> to vector<32x32xbf16>
    %cst_86 = arith.constant dense<0.000000e+00> : vector<64x32xf32>
    %62 = tpu.matmul %59, %61, %cst_86 {dimension_numbers = #tpu.dot_dimension_numbers<[1], [0], [0], [1], [0, 0, 1, 1], [], []>} : vector<64x32xbf16>, vector<32x32xbf16>, vector<64x32xf32> -> vector<64x32xf32>
    %63 = arith.addf %56, %62 : vector<64x32xf32>
    %c0_87 = arith.constant 0 : index
    %c0_88 = arith.constant 0 : index
    %64 = vector.load %arg4[%c0_87, %c0_88] : memref<1x32xf32, #tpu.memory_space<vmem>>, vector<1x32xf32>
    %65 = vector.broadcast %64 : vector<1x32xf32> to vector<64x32xf32>
    %66 = arith.addf %63, %65 : vector<64x32xf32>
    %cst_89 = arith.constant 0.000000e+00 : f32
    %67 = vector.broadcast %cst_89 : f32 to vector<64x32xf32>
    %68 = arith.maximumf %66, %67 : vector<64x32xf32>
    %69 = arith.truncf %68 : vector<64x32xf32> to vector<64x32xbf16>
    %c0_90 = arith.constant 0 : index
    %c0_91 = arith.constant 0 : index
    %c0_92 = arith.constant 0 : index
    %c0_93 = arith.constant 0 : index
    %70 = vector.load %arg5[%c0_90, %c0_91, %c0_92, %c0_93] : memref<1x1x64x32xbf16, #tpu.memory_space<vmem>>, vector<1x1x64x32xbf16>
    %71 = vector.shape_cast %70 : vector<1x1x64x32xbf16> to vector<64x32xbf16>
    %72 = vector.shape_cast %69 : vector<64x32xbf16> to vector<1x1x64x32xbf16>
    tpu.vector_store %arg5[%c0_90, %c0_91, %c0_92, %c0_93], %72 {strides = array<i32>} : memref<1x1x64x32xbf16, #tpu.memory_space<vmem>>, vector<1x1x64x32xbf16>,
    return
  }
  func.func @transform_0(%arg0: i32, %arg1: i32) -> (i32, i32, i32, i32, i32) {
    %c0_i32 = arith.constant 0 : i32
    %c0_i32_0 = arith.constant 0 : i32
    %c0_i32_1 = arith.constant 0 : i32
    %c0_i32_2 = arith.constant 0 : i32
    return %arg0, %arg1, %c0_i32, %c0_i32_0, %c0_i32_1 : i32, i32, i32, i32, i32
  }
  func.func @transform_1(%arg0: i32, %arg1: i32) -> (i32, i32, i32, i32) {
    %c0_i32 = arith.constant 0 : i32
    %c0_i32_0 = arith.constant 0 : i32
    %c0_i32_1 = arith.constant 0 : i32
    %c0_i32_2 = arith.constant 0 : i32
    %c0_i32_3 = arith.constant 0 : i32
    return %c0_i32, %c0_i32_0, %c0_i32_1, %c0_i32_2 : i32, i32, i32, i32
  }
  func.func @transform_2(%arg0: i32, %arg1: i32) -> (i32, i32) {
    %c0_i32 = arith.constant 0 : i32
    %c0_i32_0 = arith.constant 0 : i32
    %c0_i32_1 = arith.constant 0 : i32
    return %c0_i32, %c0_i32_0 : i32, i32
  }
  func.func @transform_3(%arg0: i32, %arg1: i32) -> (i32, i32, i32, i32) {
    %c0_i32 = arith.constant 0 : i32
    %c0_i32_0 = arith.constant 0 : i32
    %c0_i32_1 = arith.constant 0 : i32
    return %arg0, %arg1, %c0_i32, %c0_i32_0 : i32, i32, i32, i32
  }
}

module attributes {stable_mosaic.version = 11 : i64} {
  func.func @_fusion_kernel(%arg0: i32, %arg1: memref<256x32xbf16, #tpu.memory_space<vmem>>, %arg2: memref<256x32xbf16, #tpu.memory_space<vmem>>, %arg3: memref<1x32xf32, #tpu.memory_space<vmem>>, %arg4: memref<1x32xf32, #tpu.memory_space<vmem>>, %arg5: memref<2xf32, #tpu.memory_space<smem>>, %arg6: memref<256x32xbf16, #tpu.memory_space<vmem>>) attributes {dimension_semantics = [#tpu.dimension_semantics<parallel>], iteration_bounds = array<i64: 2>, scalar_prefetch = 0 : i64, scratch_operands = 0 : i64, tpu.core_type = #tpu.core_type<tc>, window_params = [{transform_indices = @transform_0, window_bounds = array<i64: 256, 32>}, {transform_indices = @transform_1, window_bounds = array<i64: 256, 32>}, {pipeline_mode = #tpu.pipeline_mode<synchronous>, transform_indices = @transform_2, window_bounds = array<i64: 1, 32>}, {pipeline_mode = #tpu.pipeline_mode<synchronous>, transform_indices = @transform_3, window_bounds = array<i64: 1, 32>}, {transform_indices = @transform_4, window_bounds = array<i64: 2>}, {transform_indices = @transform_5, window_bounds = array<i64: 256, 32>}]} {
    %c0 = arith.constant 0 : index
    %c0_0 = arith.constant 0 : index
    %0 = vector.load %arg1[%c0, %c0_0] : memref<256x32xbf16, #tpu.memory_space<vmem>>, vector<256x32xbf16>
    %1 = arith.extf %0 : vector<256x32xbf16> to vector<256x32xf32>
    %c0_1 = arith.constant 0 : index
    %c0_2 = arith.constant 0 : index
    %2 = vector.load %arg2[%c0_1, %c0_2] : memref<256x32xbf16, #tpu.memory_space<vmem>>, vector<256x32xbf16>
    %3 = arith.extf %2 : vector<256x32xbf16> to vector<256x32xf32>
    %c0_3 = arith.constant 0 : index
    %c0_4 = arith.constant 0 : index
    %4 = vector.load %arg3[%c0_3, %c0_4] : memref<1x32xf32, #tpu.memory_space<vmem>>, vector<1x32xf32>
    %5 = vector.broadcast %4 : vector<1x32xf32> to vector<256x32xf32>
    %6 = arith.mulf %1, %5 : vector<256x32xf32>
    %cst = arith.constant dense<0.000000e+00> : vector<256xf32>
    %7 = vector.multi_reduction <add>, %6, %cst [1] : vector<256x32xf32> to vector<256xf32>
    %8 = vector.shape_cast %7 : vector<256xf32> to vector<256x1xf32>
    %c0_5 = arith.constant 0 : index
    %9 = memref.load %arg5[%c0_5] : memref<2xf32, #tpu.memory_space<smem>>
    %10 = vector.broadcast %9 : f32 to vector<256x1xf32>
    %11 = arith.addf %8, %10 : vector<256x1xf32>
    %c0_6 = arith.constant 0 : index
    %c0_7 = arith.constant 0 : index
    %12 = vector.load %arg4[%c0_6, %c0_7] : memref<1x32xf32, #tpu.memory_space<vmem>>, vector<1x32xf32>
    %13 = vector.broadcast %12 : vector<1x32xf32> to vector<256x32xf32>
    %14 = arith.mulf %3, %13 : vector<256x32xf32>
    %cst_8 = arith.constant dense<0.000000e+00> : vector<256xf32>
    %15 = vector.multi_reduction <add>, %14, %cst_8 [1] : vector<256x32xf32> to vector<256xf32>
    %16 = vector.shape_cast %15 : vector<256xf32> to vector<256x1xf32>
    %c1 = arith.constant 1 : index
    %17 = memref.load %arg5[%c1] : memref<2xf32, #tpu.memory_space<smem>>
    %18 = vector.broadcast %17 : f32 to vector<256x1xf32>
    %19 = arith.addf %16, %18 : vector<256x1xf32>
    %20 = arith.maximumf %11, %19 : vector<256x1xf32>
    %21 = arith.subf %11, %20 : vector<256x1xf32>
    %22 = math.exp %21 : vector<256x1xf32>
    %23 = arith.subf %19, %20 : vector<256x1xf32>
    %24 = math.exp %23 : vector<256x1xf32>
    %25 = arith.addf %22, %24 : vector<256x1xf32>
    %26 = tpu.reciprocal %25 {approx = true} : vector<256x1xf32> -> vector<256x1xf32>
    %27 = arith.mulf %22, %26 : vector<256x1xf32>
    %28 = vector.broadcast %27 : vector<256x1xf32> to vector<256x32xf32>
    %29 = arith.mulf %1, %28 : vector<256x32xf32>
    %30 = arith.mulf %24, %26 : vector<256x1xf32>
    %31 = vector.broadcast %30 : vector<256x1xf32> to vector<256x32xf32>
    %32 = arith.mulf %3, %31 : vector<256x32xf32>
    %33 = arith.addf %29, %32 : vector<256x32xf32>
    %34 = arith.truncf %33 : vector<256x32xf32> to vector<256x32xbf16>
    %c0_9 = arith.constant 0 : index
    %c0_10 = arith.constant 0 : index
    %35 = vector.load %arg6[%c0_9, %c0_10] : memref<256x32xbf16, #tpu.memory_space<vmem>>, vector<256x32xbf16>
    tpu.vector_store %arg6[%c0_9, %c0_10], %34 {strides = array<i32>} : memref<256x32xbf16, #tpu.memory_space<vmem>>, vector<256x32xbf16>,
    return
  }
  func.func @transform_0(%arg0: i32) -> (i32, i32) {
    %c0_i32 = arith.constant 0 : i32
    %c0_i32_0 = arith.constant 0 : i32
    return %arg0, %c0_i32 : i32, i32
  }
  func.func @transform_1(%arg0: i32) -> (i32, i32) {
    %c0_i32 = arith.constant 0 : i32
    %c0_i32_0 = arith.constant 0 : i32
    return %arg0, %c0_i32 : i32, i32
  }
  func.func @transform_2(%arg0: i32) -> (i32, i32) {
    %c0_i32 = arith.constant 0 : i32
    %c0_i32_0 = arith.constant 0 : i32
    %c0_i32_1 = arith.constant 0 : i32
    return %c0_i32, %c0_i32_0 : i32, i32
  }
  func.func @transform_3(%arg0: i32) -> (i32, i32) {
    %c0_i32 = arith.constant 0 : i32
    %c0_i32_0 = arith.constant 0 : i32
    %c0_i32_1 = arith.constant 0 : i32
    return %c0_i32, %c0_i32_0 : i32, i32
  }
  func.func @transform_4(%arg0: i32) -> i32 {
    %c0_i32 = arith.constant 0 : i32
    %c0_i32_0 = arith.constant 0 : i32
    return %c0_i32 : i32
  }
  func.func @transform_5(%arg0: i32) -> (i32, i32) {
    %c0_i32 = arith.constant 0 : i32
    %c0_i32_0 = arith.constant 0 : i32
    return %arg0, %c0_i32 : i32, i32
  }
}

</mosaic_0001>

<bundles_post_ra>
// kernel: run.15
= control target key start
LH: loop header
LB: loop body
LE: loop exit
PB: predicated region body
PF: predicated region fallthrough
CT: control target
= control target key end

     0   :  { %s976_s12 = smov 0   ;;  %s1140_s0 = inlined_call_operand.vmem [shape: bf16[512,16], index: 0, kind: input, shape index: {}]   ;;  %s1141_s1 = inlined_call_operand.vmem [shape: bf16[16,16], index: 1, kind: input, shape index: {}]   ;;  %s1142_s2 = inlined_call_operand.vmem [shape: f32[1,16], index: 2, kind: input, shape index: {}]   ;;  %s1143_s3 = inlined_call_operand.vmem [shape: bf16[512,16], index: 3, kind: output, shape index: {}]  }
   0x1 LB: > { %s761_s13 = sadd.s32 4294967295, %s954_s12   ;;  %p765_p0 = scmp.ge.s32.totalorder %s954_s12, 1  ;;  %s954_s12 = sphi %s976_s12, %s13_s12  }
   0x2   : > { %p138_p1 = scmp.lt.s32.totalorder %s954_s12, 3 }
   0x4   : > { %p139_p2 = pnand %p765_p0, %p138_p1 }
   0x5   : > { %v931_v0 = vld [vmem:[%s1141_s1] sm:$0xff] (!%p139_p2)   ;;  %s766_s16 = sshll.u32 (!%p139_p2), %s761_s13, 5  ;;  %vm302_vm0 = vcmask (!%p139_p2), 130048   ;;  %vm672_vm1 = vcmask (!%p139_p2), 125952  }
   0x6   : > { %142 = sbr.rel (%p139_p2) target bundleno = 265 (0x109), region = 32  ;;  %p163_p3 = scmp.lt.s32.totalorder (!%p139_p2), %s766_s16, 63  ;;  %887 = vmatprep.subr.bf16.mxu0 (!%p139_p2), %v931_v0  ;;  %921 = vmatprep.subr.bf16.mxu1 (!%p139_p2), %v931_v0  ;;  %v1032_v17 = vld [vmem:[%s1142_s2] ss:$0 sm:$0xff] (!%p139_p2) }
   0x7   : > { %888 = vmatpush3.bf16.msra.mxu0 (!%p139_p2), %v931_v0  ;;  %922 = vmatpush3.bf16.msra.mxu1 (!%p139_p2), %v931_v0 }
   0xd   : > { %s1145_s16 = smov (!%p163_p3, %s766_s16), 63 }
   0xe   : > { %s767_s17 = sshll.u32 %s1145_s16, 2 }
   0xf   : > { %s995_s20 = scalar_lea.vmem %s1140_s0, %s767_s17  ;;  %s1044_s25 = scalar_lea.vmem %s1143_s3, %s767_s17 }
  0x10   : > { %v932_v1 = vld [vmem:[%s995_s20] sm:$0xff]   ;;  %v934_v3 = vld [vmem:[%s995_s20 + $0x8] sm:$0xff]   ;;  %v936_v5 = vld [vmem:[%s995_s20 + $0x10] sm:$0xff]  }
  0x11   : > { %v933_v2 = vld [vmem:[%s995_s20 + $0x40] sm:$0xff]   ;;  %889 = vmatprep.mubr.msk.bf16.mxu0 %vm302_vm0, %v932_v1  ;;  %v935_v4 = vld [vmem:[%s995_s20 + $0x48] sm:$0xff]   ;;  %v937_v6 = vld [vmem:[%s995_s20 + $0x50] sm:$0xff]  }
  0x12   : > { %905 = vmatprep.mubr.msk.bf16.mxu1 %vm302_vm0, %v933_v2  ;;  %890 = vmatmul.mubr.msk.bf16.vlgmr.msra.gmra.mrb[0].mxu0 %vm302_vm0, %v934_v3  ;;  %v938_v7 = vld [vmem:[%s995_s20 + $0x18] sm:$0xff]   ;;  %v940_v9 = vld [vmem:[%s995_s20 + $0x20] sm:$0xff]   ;;  %v942_v11 = vld [vmem:[%s995_s20 + $0x28] sm:$0xff]  }
  0x13   : > { %906 = vmatmul.mubr.msk.bf16.vlgmr.msra.gmra.mrb[0].mxu1 %vm302_vm0, %v935_v4  ;;  %893 = vmatprep.mubr.msk.bf16.mxu0 %vm302_vm0, %v936_v5  ;;  %v939_v8 = vld [vmem:[%s995_s20 + $0x58] sm:$0xff]   ;;  %v941_v10 = vld [vmem:[%s995_s20 + $0x60] sm:$0xff]   ;;  %v943_v12 = vld [vmem:[%s995_s20 + $0x68] sm:$0xff]  }
  0x14   : > { %909 = vmatprep.mubr.msk.bf16.mxu1 %vm302_vm0, %v937_v6  ;;  %v944_v13 = vld [vmem:[%s995_s20 + $0x30] sm:$0xff]   ;;  %v946_v15 = vld [vmem:[%s995_s20 + $0x38] sm:$0xff]  }
  0x15   : > { %v945_v14 = vld [vmem:[%s995_s20 + $0x70] sm:$0xff]   ;;  %v947_v16 = vld [vmem:[%s995_s20 + $0x78] sm:$0xff]  }
  0x1a   : > { %894 = vmatmul.mubr.msk.bf16.gmra.mrb[4].mxu0 %vm302_vm0, %v938_v7 }
  0x1b   : > { %910 = vmatmul.mubr.msk.bf16.gmra.mrb[4].mxu1 %vm302_vm0, %v939_v8  ;;  %897 = vmatprep.mubr.msk.bf16.mxu0 %vm302_vm0, %v940_v9 }
  0x1c   : > { %913 = vmatprep.mubr.msk.bf16.mxu1 %vm302_vm0, %v941_v10 }
  0x22   : > { %898 = vmatmul.mubr.msk.bf16.gmra.mrb[8].mxu0 %vm302_vm0, %v942_v11 }
  0x23   : > { %914 = vmatmul.mubr.msk.bf16.gmra.mrb[8].mxu1 %vm302_vm0, %v943_v12  ;;  %901 = vmatprep.mubr.msk.bf16.mxu0 %vm302_vm0, %v944_v13 }
  0x24   : > { %917 = vmatprep.mubr.msk.bf16.mxu1 %vm302_vm0, %v945_v14 }
  0x2a   : > { %902 = vmatmul.mubr.msk.bf16.gmra.mrb[12].mxu0 %vm302_vm0, %v946_v15 }
  0x2b   : > { %918 = vmatmul.mubr.msk.bf16.gmra.mrb[12].mxu1 %vm302_vm0, %v947_v16 }
  0xe5   : > { %v891_v18 = vpop.f32.mrb[0].mxu0 }
  0xe6   : > { %v394_v19 = vadd.f32 %v891_v18, %v1032_v17  ;;  %v907_v20 = vpop.f32.mrb[0].mxu1  ;;  %v385_v21 = vpop.f32.mrb[1].mxu0 }
  0xe7   : > { %v458_v22 = vadd.f32 %v907_v20, %v1032_v17  ;;  %v386_v23 = vadd.f32 %v1032_v17, %v385_v21  ;;  %v449_v24 = vpop.f32.mrb[1].mxu1  ;;  %v892_v25 = vpop.f32.mrb[2].mxu0 }
  0xe8   : > { %v514_v26 = vmax.f32 %v394_v19, 0.0  ;;  %v450_v27 = vadd.f32 %v1032_v17, %v449_v24  ;;  %v397_v28 = vadd.f32 %v892_v25, %v1032_v17  ;;  %v908_v29 = vpop.f32.mrb[2].mxu1  ;;  %v388_v30 = vpop.f32.mrb[3].mxu0 }
  0xe9   : > { %v530_v31 = vmax.f32 %v458_v22, 0.0  ;;  %v512_v32 = vmax.f32 %v386_v23, 0.0  ;;  %v461_v33 = vadd.f32 %v908_v29, %v1032_v17  ;;  %v389_v34 = vadd.f32 %v1032_v17, %v388_v30  ;;  %v452_v35 = vpop.f32.mrb[3].mxu1 }
  0xea   : > { %v840_v36 = vpack.c.bf16 %v514_v26, %v514_v26  ;;  %v528_v37 = vmax.f32 %v450_v27, 0.0  ;;  %v515_v38 = vmax.f32 %v397_v28, 0.0  ;;  %v453_v39 = vadd.f32 %v1032_v17, %v452_v35 }
  0xeb   : > { %v856_v40 = vpack.c.bf16 %v530_v31, %v530_v31  ;;  %v838_v41 = vpack.c.bf16 %v512_v32, %v512_v32  ;;  %v531_v42 = vmax.f32 %v461_v33, 0.0  ;;  %v513_v43 = vmax.f32 %v389_v34, 0.0 }
  0xec   : > { %675 = vst.msk [vmem:[%s1044_s25 + $0x8] sm:$0xf] %vm672_vm1, %v840_v36  ;;  %v854_v44 = vpack.c.bf16 %v528_v37, %v528_v37  ;;  %v841_v45 = vpack.c.bf16 %v515_v38, %v515_v38  ;;  %v529_v46 = vmax.f32 %v453_v39, 0.0 }
  0xed   : > { %691 = vst.msk [vmem:[%s1044_s25 + $0x48] sm:$0xf] %vm672_vm1, %v856_v40  ;;  %673 = vst.msk [vmem:[%s1044_s25] sm:$0xf] %vm672_vm1, %v838_v41  ;;  %v857_v47 = vpack.c.bf16 %v531_v42, %v531_v42  ;;  %v839_v48 = vpack.c.bf16 %v513_v43, %v513_v43  ;;  %v895_v49 = vpop.f32.mrb[4].mxu0 }
  0xee   : > { %689 = vst.msk [vmem:[%s1044_s25 + $0x40] sm:$0xf] %vm672_vm1, %v854_v44  ;;  %676 = vst.msk [vmem:[%s1044_s25 + $0xc] sm:$0xf] %vm672_vm1, %v841_v45  ;;  %v855_v50 = vpack.c.bf16 %v529_v46, %v529_v46  ;;  %v410_v51 = vadd.f32 %v895_v49, %v1032_v17  ;;  %v911_v52 = vpop.f32.mrb[4].mxu1  ;;  %v401_v53 = vpop.f32.mrb[5].mxu0 }
  0xef   : > { %692 = vst.msk [vmem:[%s1044_s25 + $0x4c] sm:$0xf] %vm672_vm1, %v857_v47  ;;  %674 = vst.msk [vmem:[%s1044_s25 + $0x4] sm:$0xf] %vm672_vm1, %v839_v48  ;;  %v474_v54 = vadd.f32 %v911_v52, %v1032_v17  ;;  %v402_v55 = vadd.f32 %v1032_v17, %v401_v53  ;;  %v465_v56 = vpop.f32.mrb[5].mxu1  ;;  %v896_v57 = vpop.f32.mrb[6].mxu0 }
  0xf0   : > { %690 = vst.msk [vmem:[%s1044_s25 + $0x44] sm:$0xf] %vm672_vm1, %v855_v50  ;;  %v518_v58 = vmax.f32 %v410_v51, 0.0  ;;  %v466_v59 = vadd.f32 %v1032_v17, %v465_v56  ;;  %v413_v60 = vadd.f32 %v896_v57, %v1032_v17  ;;  %v912_v61 = vpop.f32.mrb[6].mxu1  ;;  %v404_v62 = vpop.f32.mrb[7].mxu0 }
  0xf1   : > { %v534_v63 = vmax.f32 %v474_v54, 0.0  ;;  %v516_v0 = vmax.f32 %v402_v55, 0.0  ;;  %v477_v1 = vadd.f32 %v912_v61, %v1032_v17  ;;  %v405_v2 = vadd.f32 %v1032_v17, %v404_v62  ;;  %v468_v3 = vpop.f32.mrb[7].mxu1 }
  0xf2   : > { %v844_v4 = vpack.c.bf16 %v518_v58, %v518_v58  ;;  %v532_v5 = vmax.f32 %v466_v59, 0.0  ;;  %v519_v6 = vmax.f32 %v413_v60, 0.0  ;;  %v469_v7 = vadd.f32 %v1032_v17, %v468_v3 }
  0xf3   : > { %v860_v8 = vpack.c.bf16 %v534_v63, %v534_v63  ;;  %v842_v9 = vpack.c.bf16 %v516_v0, %v516_v0  ;;  %v535_v10 = vmax.f32 %v477_v1, 0.0  ;;  %v517_v11 = vmax.f32 %v405_v2, 0.0 }
  0xf4   : > { %679 = vst.msk [vmem:[%s1044_s25 + $0x18] sm:$0xf] %vm672_vm1, %v844_v4  ;;  %v858_v12 = vpack.c.bf16 %v532_v5, %v532_v5  ;;  %v845_v13 = vpack.c.bf16 %v519_v6, %v519_v6  ;;  %v533_v14 = vmax.f32 %v469_v7, 0.0 }
  0xf5   : > { %695 = vst.msk [vmem:[%s1044_s25 + $0x58] sm:$0xf] %vm672_vm1, %v860_v8  ;;  %677 = vst.msk [vmem:[%s1044_s25 + $0x10] sm:$0xf] %vm672_vm1, %v842_v9  ;;  %v861_v15 = vpack.c.bf16 %v535_v10, %v535_v10  ;;  %v843_v16 = vpack.c.bf16 %v517_v11, %v517_v11  ;;  %v899_v18 = vpop.f32.mrb[8].mxu0 }
  0xf6   : > { %693 = vst.msk [vmem:[%s1044_s25 + $0x50] sm:$0xf] %vm672_vm1, %v858_v12  ;;  %680 = vst.msk [vmem:[%s1044_s25 + $0x1c] sm:$0xf] %vm672_vm1, %v845_v13  ;;  %v859_v19 = vpack.c.bf16 %v533_v14, %v533_v14  ;;  %v426_v20 = vadd.f32 %v899_v18, %v1032_v17  ;;  %v915_v21 = vpop.f32.mrb[8].mxu1  ;;  %v417_v22 = vpop.f32.mrb[9].mxu0 }
  0xf7   : > { %696 = vst.msk [vmem:[%s1044_s25 + $0x5c] sm:$0xf] %vm672_vm1, %v861_v15  ;;  %678 = vst.msk [vmem:[%s1044_s25 + $0x14] sm:$0xf] %vm672_vm1, %v843_v16  ;;  %v490_v23 = vadd.f32 %v915_v21, %v1032_v17  ;;  %v418_v24 = vadd.f32 %v1032_v17, %v417_v22  ;;  %v481_v25 = vpop.f32.mrb[9].mxu1  ;;  %v900_v26 = vpop.f32.mrb[10].mxu0 }
  0xf8   : > { %694 = vst.msk [vmem:[%s1044_s25 + $0x54] sm:$0xf] %vm672_vm1, %v859_v19  ;;  %v522_v27 = vmax.f32 %v426_v20, 0.0  ;;  %v482_v28 = vadd.f32 %v1032_v17, %v481_v25  ;;  %v429_v29 = vadd.f32 %v900_v26, %v1032_v17  ;;  %v916_v30 = vpop.f32.mrb[10].mxu1  ;;  %v420_v31 = vpop.f32.mrb[11].mxu0 }
  0xf9   : > { %v538_v32 = vmax.f32 %v490_v23, 0.0  ;;  %v520_v33 = vmax.f32 %v418_v24, 0.0  ;;  %v493_v34 = vadd.f32 %v916_v30, %v1032_v17  ;;  %v421_v35 = vadd.f32 %v1032_v17, %v420_v31  ;;  %v484_v36 = vpop.f32.mrb[11].mxu1 }
  0xfa   : > { %v848_v37 = vpack.c.bf16 %v522_v27, %v522_v27  ;;  %v536_v38 = vmax.f32 %v482_v28, 0.0  ;;  %v523_v39 = vmax.f32 %v429_v29, 0.0  ;;  %v485_v40 = vadd.f32 %v1032_v17, %v484_v36 }
  0xfb   : > { %v864_v41 = vpack.c.bf16 %v538_v32, %v538_v32  ;;  %v846_v42 = vpack.c.bf16 %v520_v33, %v520_v33  ;;  %v539_v43 = vmax.f32 %v493_v34, 0.0  ;;  %v521_v44 = vmax.f32 %v421_v35, 0.0 }
  0xfc   : > { %683 = vst.msk [vmem:[%s1044_s25 + $0x28] sm:$0xf] %vm672_vm1, %v848_v37  ;;  %v862_v45 = vpack.c.bf16 %v536_v38, %v536_v38  ;;  %v849_v46 = vpack.c.bf16 %v523_v39, %v523_v39  ;;  %v537_v47 = vmax.f32 %v485_v40, 0.0 }
  0xfd   : > { %699 = vst.msk [vmem:[%s1044_s25 + $0x68] sm:$0xf] %vm672_vm1, %v864_v41  ;;  %681 = vst.msk [vmem:[%s1044_s25 + $0x20] sm:$0xf] %vm672_vm1, %v846_v42  ;;  %v865_v48 = vpack.c.bf16 %v539_v43, %v539_v43  ;;  %v847_v49 = vpack.c.bf16 %v521_v44, %v521_v44  ;;  %v903_v50 = vpop.f32.mrb[12].mxu0 }
  0xfe   : > { %697 = vst.msk [vmem:[%s1044_s25 + $0x60] sm:$0xf] %vm672_vm1, %v862_v45  ;;  %684 = vst.msk [vmem:[%s1044_s25 + $0x2c] sm:$0xf] %vm672_vm1, %v849_v46  ;;  %v863_v51 = vpack.c.bf16 %v537_v47, %v537_v47  ;;  %v442_v52 = vadd.f32 %v903_v50, %v1032_v17  ;;  %v919_v53 = vpop.f32.mrb[12].mxu1  ;;  %v433_v54 = vpop.f32.mrb[13].mxu0 }
  0xff   : > { %700 = vst.msk [vmem:[%s1044_s25 + $0x6c] sm:$0xf] %vm672_vm1, %v865_v48  ;;  %682 = vst.msk [vmem:[%s1044_s25 + $0x24] sm:$0xf] %vm672_vm1, %v847_v49  ;;  %v506_v55 = vadd.f32 %v919_v53, %v1032_v17  ;;  %v434_v56 = vadd.f32 %v1032_v17, %v433_v54  ;;  %v497_v57 = vpop.f32.mrb[13].mxu1  ;;  %v904_v58 = vpop.f32.mrb[14].mxu0 }
 0x100   : > { %698 = vst.msk [vmem:[%s1044_s25 + $0x64] sm:$0xf] %vm672_vm1, %v863_v51  ;;  %v526_v59 = vmax.f32 %v442_v52, 0.0  ;;  %v498_v60 = vadd.f32 %v1032_v17, %v497_v57  ;;  %v445_v61 = vadd.f32 %v904_v58, %v1032_v17  ;;  %v920_v62 = vpop.f32.mrb[14].mxu1  ;;  %v436_v63 = vpop.f32.mrb[15].mxu0 }
 0x101   : > { %v542_v0 = vmax.f32 %v506_v55, 0.0  ;;  %v524_v1 = vmax.f32 %v434_v56, 0.0  ;;  %v509_v2 = vadd.f32 %v920_v62, %v1032_v17  ;;  %v437_v3 = vadd.f32 %v1032_v17, %v436_v63  ;;  %v500_v4 = vpop.f32.mrb[15].mxu1 }
 0x102   : > { %v852_v5 = vpack.c.bf16 %v526_v59, %v526_v59  ;;  %v540_v6 = vmax.f32 %v498_v60, 0.0  ;;  %v527_v7 = vmax.f32 %v445_v61, 0.0  ;;  %v501_v8 = vadd.f32 %v1032_v17, %v500_v4 }
 0x103   : > { %v868_v9 = vpack.c.bf16 %v542_v0, %v542_v0  ;;  %v850_v10 = vpack.c.bf16 %v524_v1, %v524_v1  ;;  %v543_v11 = vmax.f32 %v509_v2, 0.0  ;;  %v525_v12 = vmax.f32 %v437_v3, 0.0 }
 0x104   : > { %687 = vst.msk [vmem:[%s1044_s25 + $0x38] sm:$0xf] %vm672_vm1, %v852_v5  ;;  %v866_v13 = vpack.c.bf16 %v540_v6, %v540_v6  ;;  %v853_v14 = vpack.c.bf16 %v527_v7, %v527_v7  ;;  %v541_v15 = vmax.f32 %v501_v8, 0.0 }
 0x105   : > { %703 = vst.msk [vmem:[%s1044_s25 + $0x78] sm:$0xf] %vm672_vm1, %v868_v9  ;;  %685 = vst.msk [vmem:[%s1044_s25 + $0x30] sm:$0xf] %vm672_vm1, %v850_v10  ;;  %v869_v16 = vpack.c.bf16 %v543_v11, %v543_v11  ;;  %v851_v18 = vpack.c.bf16 %v525_v12, %v525_v12 }
 0x106   : > { %701 = vst.msk [vmem:[%s1044_s25 + $0x70] sm:$0xf] %vm672_vm1, %v866_v13  ;;  %688 = vst.msk [vmem:[%s1044_s25 + $0x3c] sm:$0xf] %vm672_vm1, %v853_v14  ;;  %v867_v17 = vpack.c.bf16 %v541_v15, %v541_v15 }
 0x107   : > { %704 = vst.msk [vmem:[%s1044_s25 + $0x7c] sm:$0xf] %vm672_vm1, %v869_v16  ;;  %686 = vst.msk [vmem:[%s1044_s25 + $0x34] sm:$0xf] %vm672_vm1, %v851_v18 }
 0x108   : > { %702 = vst.msk [vmem:[%s1044_s25 + $0x74] sm:$0xf] %vm672_vm1, %v867_v17 }
 0x109 PF: > { %s13_s12 = sadd.s32 1, %s954_s12  }
 0x10a   : > { %p10_p4 = scmp.ge.s32.totalorder %s13_s12, 4  }
 0x10c   :  { %12 = sbr.rel (!%p10_p4) target bundleno = 1 (0x1), region = 62 }

// kernel: run.16
= control target key start
LH: loop header
LB: loop body
LE: loop exit
PB: predicated region body
PF: predicated region fallthrough
CT: control target
= control target key end

     0   :  { %s612_s12 = smov 0   ;;  %s695_s0 = inlined_call_operand.vmem [shape: bf16[128,144], index: 0, kind: input, shape index: {}]   ;;  %s696_s1 = inlined_call_operand.vmem [shape: bf16[144,32], index: 1, kind: input, shape index: {}]   ;;  %s697_s2 = inlined_call_operand.vmem [shape: f32[1,32], index: 2, kind: input, shape index: {}]   ;;  %s698_s3 = inlined_call_operand.vmem [shape: bf16[128,32], index: 3, kind: output, shape index: {}]  }
   0x1 LB: > { %s484_s13 = sadd.s32 4294967295, %s589_s12   ;;  %p488_p0 = scmp.ge.s32.totalorder %s589_s12, 1  ;;  %s589_s12 = sphi %s612_s12, %s13_s12  }
   0x2   : > { %p139_p1 = scmp.lt.s32.totalorder %s589_s12, 3 }
   0x4   : > { %p140_p2 = pnand %p488_p0, %p139_p1 }
   0x5   : > { %v562_v0 = vld [vmem:[%s696_s1] sm:$0xff] (!%p140_p2)   ;;  %v591_v1 = vmov (!%p140_p2), 0   ;;  %s489_s16 = sshll.u32 (!%p140_p2), %s484_s13, 3  ;;  %v563_v2 = vld [vmem:[%s696_s1 + $0x8] sm:$0xff] (!%p140_p2)   ;;  %v564_v3 = vld [vmem:[%s696_s1 + $0x10] sm:$0xff] (!%p140_p2)   ;;  %vm301_vm0 = vcmask (!%p140_p2), 130048  }
   0x6   : > { %143 = sbr.rel (%p140_p2) target bundleno = 271 (0x10f), region = 32  ;;  %314 = vmatprep.subr.bf16.mxu0 (!%p140_p2), %v591_v1  ;;  %535 = vmatprep.subr.bf16.mxu1 (!%p140_p2), %v591_v1  ;;  %p165_p3 = scmp.lt.s32.totalorder (!%p140_p2), %s489_s16, 15  ;;  %v565_v4 = vld [vmem:[%s696_s1 + $0x18] sm:$0xff] (!%p140_p2)   ;;  %v566_v7 = vld [vmem:[%s696_s1 + $0x20] sm:$0xff] (!%p140_p2)   ;;  %v567_v8 = vld [vmem:[%s696_s1 + $0x28] sm:$0xff] (!%p140_p2)   ;;  %vm419_vm1 = vcmask (!%p140_p2), 257024  }
   0x7   : > { %315 = vmatpush1.bf16.msra.mxu0 (!%p140_p2), %v562_v0  ;;  %544 = vmatpush1.bf16.msra.mxu1 (!%p140_p2), %v562_v0  ;;  %v568_v9 = vld [vmem:[%s696_s1 + $0x30] sm:$0xff] (!%p140_p2)   ;;  %v569_v10 = vld [vmem:[%s696_s1 + $0x38] sm:$0xff] (!%p140_p2)   ;;  %v570_v11 = vld [vmem:[%s696_s1 + $0x40] sm:$0xff] (!%p140_p2)  }
   0x8   : > { %316 = vmatprep.subr.bf16.mxu0 (!%p140_p2), %v591_v1  ;;  %536 = vmatprep.subr.bf16.mxu1 (!%p140_p2), %v591_v1  ;;  %v494_v18 = vld [vmem:[%s697_s2] ss:$0 sm:$0xff] (!%p140_p2) }
   0xb   : > { %317 = vmatpush1.bf16.msra.mxu0 (!%p140_p2), %v563_v2  ;;  %545 = vmatpush1.bf16.msra.mxu1 (!%p140_p2), %v563_v2 }
   0xc   : > { %318 = vmatprep.subr.bf16.mxu0 (!%p140_p2), %v591_v1  ;;  %537 = vmatprep.subr.bf16.mxu1 (!%p140_p2), %v591_v1 }
   0xd   : > { %s700_s16 = smov (!%p165_p3, %s489_s16), 15 }
   0xe   : > { %s526_s21 = sshll.u32 %s700_s16, 3  ;;  %s493_s13 = sshll.u32 %s700_s16, 2 }
   0xf   : > { %s635_s24 = scalar_lea.vmem %s695_s0, %s526_s21  ;;  %319 = vmatpush1.bf16.msra.mxu0 %v564_v3  ;;  %546 = vmatpush1.bf16.msra.mxu1 %v564_v3  ;;  %s674_s17 = scalar_lea.vmem %s698_s3, %s493_s13 }
  0x10   : > { %v573_v5 = vld [vmem:[%s635_s24 + $0x4] ss:$8 sps:$4 sm:$0xff]   ;;  %320 = vmatprep.subr.bf16.mxu0 %v591_v1  ;;  %538 = vmatprep.subr.bf16.mxu1 %v591_v1  ;;  %v571_v12 = vld [vmem:[%s635_s24] ss:$8 sps:$4 sm:$0xff]   ;;  %v577_v14 = vld [vmem:[%s635_s24 + $0x14] ss:$8 sps:$4 sm:$0xff]  }
  0x11   : > { %v576_v6 = vld [vmem:[%s635_s24 + $0x24] ss:$8 sps:$4 sm:$0xff]   ;;  %512 = vmatprep.mubr.msk.bf16.mxu0 %vm301_vm0, %v573_v5  ;;  %v574_v13 = vld [vmem:[%s635_s24 + $0x20] ss:$8 sps:$4 sm:$0xff]   ;;  %v579_v15 = vld [vmem:[%s635_s24 + $0x34] ss:$8 sps:$4 sm:$0xff]  }
  0x12   : > { %514 = vmatprep.mubr.msk.bf16.mxu1 %vm301_vm0, %v576_v6  ;;  %v581_v16 = vld [vmem:[%s635_s24 + $0x10] ss:$8 sps:$4 sm:$0xff]  }
  0x13   : > { %321 = vmatpush1.bf16.msra.mxu0 %v565_v4  ;;  %547 = vmatpush1.bf16.msra.mxu1 %v565_v4  ;;  %v582_v17 = vld [vmem:[%s635_s24 + $0x30] ss:$8 sps:$4 sm:$0xff]  }
  0x14   : > { %322 = vmatprep.subr.bf16.mxu0 %v591_v1  ;;  %539 = vmatprep.subr.bf16.mxu1 %v591_v1 }
  0x17   : > { %323 = vmatpush1.bf16.msra.mxu0 %v566_v7  ;;  %548 = vmatpush1.bf16.msra.mxu1 %v566_v7 }
  0x18   : > { %324 = vmatprep.subr.bf16.mxu0 %v591_v1  ;;  %540 = vmatprep.subr.bf16.mxu1 %v591_v1 }
  0x1b   : > { %325 = vmatpush1.bf16.msra.mxu0 %v567_v8  ;;  %549 = vmatpush1.bf16.msra.mxu1 %v567_v8 }
  0x1c   : > { %326 = vmatprep.subr.bf16.mxu0 %v591_v1  ;;  %541 = vmatprep.subr.bf16.mxu1 %v591_v1 }
  0x1f   : > { %327 = vmatpush1.bf16.msra.mxu0 %v568_v9  ;;  %550 = vmatpush1.bf16.msra.mxu1 %v568_v9 }
  0x20   : > { %328 = vmatprep.subr.bf16.mxu0 %v591_v1  ;;  %542 = vmatprep.subr.bf16.mxu1 %v591_v1 }
  0x23   : > { %329 = vmatpush1.bf16.msra.mxu0 %v569_v10  ;;  %551 = vmatpush1.bf16.msra.mxu1 %v569_v10 }
  0x24   : > { %330 = vmatprep.subr.bf16.mxu0 %v591_v1  ;;  %543 = vmatprep.subr.bf16.mxu1 %v591_v1 }
  0x27   : > { %331 = vmatpush1.bf16.msra.mxu0 %v570_v11  ;;  %552 = vmatpush1.bf16.msra.mxu1 %v570_v11 }
  0x2a   : > { %347 = vmatmul.mubr.bf16.vlgmr.msra.gmra.mrb[0].mxu0 %v571_v12  ;;  %363 = vmatmul.mubr.bf16.vlgmr.msra.gmra.mrb[0].mxu1 %v574_v13 }
  0x2b   : > { %513 = vmatprep.mubr.msk.bf16.mxu0 %vm301_vm0, %v577_v14  ;;  %515 = vmatprep.mubr.msk.bf16.mxu1 %vm301_vm0, %v579_v15 }
  0x32   : > { %355 = vmatmul.mubr.bf16.gmra.mrb[4].mxu0 %v581_v16  ;;  %371 = vmatmul.mubr.bf16.gmra.mrb[4].mxu1 %v582_v17 }
  0xfd   : > { %v348_v19 = vpop.f32.mrb[0].mxu0  ;;  %v364_v20 = vpop.f32.mrb[0].mxu1 }
  0xfe   : > { %v349_v21 = vadd.f32 %v494_v18, %v348_v19  ;;  %v365_v22 = vadd.f32 %v494_v18, %v364_v20  ;;  %v350_v23 = vpop.f32.mrb[1].mxu0  ;;  %v366_v24 = vpop.f32.mrb[1].mxu1 }
  0xff   : > { %v351_v25 = vpop.f32.mrb[2].mxu0  ;;  %v367_v26 = vpop.f32.mrb[2].mxu1 }
 0x100   : > { %v379_v27 = vmax.f32 %v349_v21, 0.0  ;;  %v383_v28 = vmax.f32 %v365_v22, 0.0  ;;  %v352_v29 = vadd.f32 %v494_v18, %v351_v25  ;;  %v368_v30 = vadd.f32 %v494_v18, %v367_v26  ;;  %v353_v31 = vpop.f32.mrb[3].mxu0  ;;  %v369_v32 = vpop.f32.mrb[3].mxu1 }
 0x102   : > { %v527_v33 = vpack.c.bf16 %v379_v27, %v379_v27  ;;  %v531_v34 = vpack.c.bf16 %v383_v28, %v383_v28  ;;  %v380_v35 = vmax.f32 %v352_v29, 0.0  ;;  %v384_v36 = vmax.f32 %v368_v30, 0.0 }
 0x104   : > { %420 = vst.msk [vmem:[%s674_s17] sm:$0xf] %vm419_vm1, %v527_v33  ;;  %424 = vst.msk [vmem:[%s674_s17 + $0x10] sm:$0xf] %vm419_vm1, %v531_v34  ;;  %v528_v37 = vpack.c.bf16 %v380_v35, %v380_v35  ;;  %v532_v38 = vpack.c.bf16 %v384_v36, %v384_v36 }
 0x105   : > { %v356_v39 = vpop.f32.mrb[4].mxu0  ;;  %v372_v40 = vpop.f32.mrb[4].mxu1 }
 0x106   : > { %421 = vst.msk [vmem:[%s674_s17 + $0x4] sm:$0xf] %vm419_vm1, %v528_v37  ;;  %425 = vst.msk [vmem:[%s674_s17 + $0x14] sm:$0xf] %vm419_vm1, %v532_v38  ;;  %v357_v41 = vadd.f32 %v494_v18, %v356_v39  ;;  %v373_v42 = vadd.f32 %v494_v18, %v372_v40  ;;  %v358_v43 = vpop.f32.mrb[5].mxu0  ;;  %v374_v44 = vpop.f32.mrb[5].mxu1 }
 0x107   : > { %v359_v45 = vpop.f32.mrb[6].mxu0  ;;  %v375_v46 = vpop.f32.mrb[6].mxu1 }
 0x108   : > { %v381_v47 = vmax.f32 %v357_v41, 0.0  ;;  %v385_v48 = vmax.f32 %v373_v42, 0.0  ;;  %v360_v49 = vadd.f32 %v494_v18, %v359_v45  ;;  %v376_v50 = vadd.f32 %v494_v18, %v375_v46  ;;  %v361_v51 = vpop.f32.mrb[7].mxu0  ;;  %v377_v52 = vpop.f32.mrb[7].mxu1 }
 0x10a   : > { %v529_v53 = vpack.c.bf16 %v381_v47, %v381_v47  ;;  %v533_v54 = vpack.c.bf16 %v385_v48, %v385_v48  ;;  %v382_v55 = vmax.f32 %v360_v49, 0.0  ;;  %v386_v56 = vmax.f32 %v376_v50, 0.0 }
 0x10c   : > { %422 = vst.msk [vmem:[%s674_s17 + $0x8] sm:$0xf] %vm419_vm1, %v529_v53  ;;  %426 = vst.msk [vmem:[%s674_s17 + $0x18] sm:$0xf] %vm419_vm1, %v533_v54  ;;  %v530_v57 = vpack.c.bf16 %v382_v55, %v382_v55  ;;  %v534_v58 = vpack.c.bf16 %v386_v56, %v386_v56 }
 0x10e   : > { %423 = vst.msk [vmem:[%s674_s17 + $0xc] sm:$0xf] %vm419_vm1, %v530_v57  ;;  %427 = vst.msk [vmem:[%s674_s17 + $0x1c] sm:$0xf] %vm419_vm1, %v534_v58 }
 0x10f PF: > { %s13_s12 = sadd.s32 1, %s589_s12  }
 0x110   : > { %p10_p4 = scmp.ge.s32.totalorder %s13_s12, 4  }
 0x112   :  { %12 = sbr.rel (!%p10_p4) target bundleno = 1 (0x1), region = 62 }

// kernel: run.18
= control target key start
LH: loop header
LB: loop body
LE: loop exit
PB: predicated region body
PF: predicated region fallthrough
CT: control target
= control target key end

     0   :  { %s511_s12 = smov 0   ;;  %s548_s0 = inlined_call_operand.vmem [shape: bf16[128,32], index: 0, kind: input, shape index: {}]   ;;  %s549_s1 = inlined_call_operand.vmem [shape: bf16[32,64], index: 1, kind: input, shape index: {}]   ;;  %s550_s2 = inlined_call_operand.vmem [shape: f32[1,64], index: 2, kind: input, shape index: {}]   ;;  %s551_s3 = inlined_call_operand.vmem [shape: bf16[128,64], index: 3, kind: output, shape index: {}]  }
   0x1 LB: > { %s409_s13 = sadd.s32 4294967295, %s489_s12   ;;  %p413_p0 = scmp.ge.s32.totalorder %s489_s12, 1  ;;  %s489_s12 = sphi %s511_s12, %s13_s12  }
   0x2   : > { %p138_p1 = scmp.lt.s32.totalorder %s489_s12, 3 }
   0x4   : > { %p139_p2 = pnand %p413_p0, %p138_p1 }
   0x5   : > { %v477_v0 = vld [vmem:[%s549_s1] sm:$0xff] (!%p139_p2)   ;;  %s414_s16 = sshll.u32 (!%p139_p2), %s409_s13, 3  ;;  %v478_v1 = vld [vmem:[%s549_s1 + $0x8] sm:$0xff] (!%p139_p2)   ;;  %vm226_vm0 = vcmask (!%p139_p2), 261120   ;;  %vm344_vm1 = vcmask (!%p139_p2), 519168  }
   0x6   : > { %142 = sbr.rel (%p139_p2) target bundleno = 240 (0xf0), region = 32  ;;  %p163_p3 = scmp.lt.s32.totalorder (!%p139_p2), %s414_s16, 15  ;;  %453 = vmatprep.subr.bf16.mxu0 (!%p139_p2), %v477_v0  ;;  %465 = vmatprep.subr.bf16.mxu1 (!%p139_p2), %v477_v0  ;;  %v418_v6 = vld [vmem:[%s550_s2] ss:$0 sm:$0xff] (!%p139_p2) }
   0x7   : > { %454 = vmatpush3.bf16.msra.mxu0 (!%p139_p2), %v477_v0  ;;  %467 = vmatpush3.bf16.msra.mxu1 (!%p139_p2), %v477_v0 }
   0x8   : > { %455 = vmatprep.subr.bf16.mxu0 (!%p139_p2), %v478_v1  ;;  %466 = vmatprep.subr.bf16.mxu1 (!%p139_p2), %v478_v1 }
   0xb   : > { %456 = vmatpush3.bf16.msra.mxu0 (!%p139_p2), %v478_v1  ;;  %468 = vmatpush3.bf16.msra.mxu1 (!%p139_p2), %v478_v1 }
   0xd   : > { %s553_s16 = smov (!%p163_p3, %s414_s16), 15 }
   0xe   : > { %s415_s19 = sshll.u32 %s553_s16, 2 }
   0xf   : > { %s166_s22 = scalar_lea.vmem %s548_s0, %s415_s19  ;;  %s172_s27 = scalar_lea.vmem %s551_s3, %s415_s19 }
  0x10   : > { %v479_v2 = vld [vmem:[%s166_s22] sm:$0xff]   ;;  %v480_v3 = vld [vmem:[%s166_s22 + $0x10] sm:$0xff]   ;;  %v481_v4 = vld [vmem:[%s166_s22 + $0x8] sm:$0xff]  }
  0x11   : > { %457 = vmatprep.mubr.msk.bf16.mxu0 %vm226_vm0, %v479_v2  ;;  %461 = vmatprep.mubr.msk.bf16.mxu1 %vm226_vm0, %v480_v3  ;;  %v482_v5 = vld [vmem:[%s166_s22 + $0x18] sm:$0xff]  }
  0x12   : > { %458 = vmatmul.mubr.msk.bf16.vlgmr.msra.gmra.mrb[0].mxu0 %vm226_vm0, %v481_v4  ;;  %462 = vmatmul.mubr.msk.bf16.vlgmr.msra.gmra.mrb[0].mxu1 %vm226_vm0, %v482_v5 }
  0xe5   : > { %v459_v7 = vpop.f32.mrb[0].mxu0  ;;  %v463_v9 = vpop.f32.mrb[0].mxu1 }
  0xe6   : > { %v282_v8 = vadd.f32 %v459_v7, %v418_v6  ;;  %v273_v10 = vpop.f32.mrb[1].mxu0  ;;  %v298_v11 = vadd.f32 %v463_v9, %v418_v6  ;;  %v289_v13 = vpop.f32.mrb[1].mxu1 }
  0xe7   : > { %v274_v12 = vadd.f32 %v418_v6, %v273_v10  ;;  %v460_v14 = vpop.f32.mrb[2].mxu0  ;;  %v290_v16 = vadd.f32 %v418_v6, %v289_v13  ;;  %v464_v18 = vpop.f32.mrb[2].mxu1 }
  0xe8   : > { %v306_v15 = vmax.f32 %v282_v8, 0.0  ;;  %v285_v17 = vadd.f32 %v460_v14, %v418_v6  ;;  %v276_v19 = vpop.f32.mrb[3].mxu0  ;;  %v310_v20 = vmax.f32 %v298_v11, 0.0  ;;  %v301_v22 = vadd.f32 %v464_v18, %v418_v6  ;;  %v292_v24 = vpop.f32.mrb[3].mxu1 }
  0xe9   : > { %v304_v21 = vmax.f32 %v274_v12, 0.0  ;;  %v277_v23 = vadd.f32 %v418_v6, %v276_v19  ;;  %v308_v26 = vmax.f32 %v290_v16, 0.0  ;;  %v293_v28 = vadd.f32 %v418_v6, %v292_v24 }
  0xea   : > { %v441_v25 = vpack.c.bf16 %v306_v15, %v306_v15  ;;  %v307_v27 = vmax.f32 %v285_v17, 0.0  ;;  %v445_v29 = vpack.c.bf16 %v310_v20, %v310_v20  ;;  %v311_v31 = vmax.f32 %v301_v22, 0.0 }
  0xeb   : > { %v439_v30 = vpack.c.bf16 %v304_v21, %v304_v21  ;;  %v305_v32 = vmax.f32 %v277_v23, 0.0  ;;  %v443_v33 = vpack.c.bf16 %v308_v26, %v308_v26  ;;  %v309_v35 = vmax.f32 %v293_v28, 0.0 }
  0xec   : > { %347 = vst.msk [vmem:[%s172_s27 + $0x8] sm:$0xf] %vm344_vm1, %v441_v25  ;;  %v442_v34 = vpack.c.bf16 %v307_v27, %v307_v27  ;;  %351 = vst.msk [vmem:[%s172_s27 + $0x18] sm:$0xf] %vm344_vm1, %v445_v29  ;;  %v446_v36 = vpack.c.bf16 %v311_v31, %v311_v31 }
  0xed   : > { %345 = vst.msk [vmem:[%s172_s27] sm:$0xf] %vm344_vm1, %v439_v30  ;;  %v440_v37 = vpack.c.bf16 %v305_v32, %v305_v32  ;;  %349 = vst.msk [vmem:[%s172_s27 + $0x10] sm:$0xf] %vm344_vm1, %v443_v33  ;;  %v444_v38 = vpack.c.bf16 %v309_v35, %v309_v35 }
  0xee   : > { %348 = vst.msk [vmem:[%s172_s27 + $0xc] sm:$0xf] %vm344_vm1, %v442_v34  ;;  %352 = vst.msk [vmem:[%s172_s27 + $0x1c] sm:$0xf] %vm344_vm1, %v446_v36 }
  0xef   : > { %346 = vst.msk [vmem:[%s172_s27 + $0x4] sm:$0xf] %vm344_vm1, %v440_v37  ;;  %350 = vst.msk [vmem:[%s172_s27 + $0x14] sm:$0xf] %vm344_vm1, %v444_v38 }
  0xf0 PF: > { %s13_s12 = sadd.s32 1, %s489_s12  }
  0xf1   : > { %p10_p4 = scmp.ge.s32.totalorder %s13_s12, 4  }
  0xf3   :  { %12 = sbr.rel (!%p10_p4) target bundleno = 1 (0x1), region = 62 }

// kernel: run.19
= control target key start
LH: loop header
LB: loop body
LE: loop exit
PB: predicated region body
PF: predicated region fallthrough
CT: control target
= control target key end

     0   :  { %s6604_s12 = smov 0   ;;  %s6606_s13 = smov 0   ;;  %s8459_s0 = inlined_call_operand.vmem [shape: bf16[2,1,18,18,4], index: 0, kind: input, shape index: {}]   ;;  %s8460_s1 = inlined_call_operand.vmem [shape: bf16[3,3,4,16], index: 1, kind: input, shape index: {}]   ;;  %s8461_s2 = inlined_call_operand.vmem [shape: f32[1,16], index: 2, kind: input, shape index: {}]   ;;  %s8462_s3 = inlined_call_operand.vmem [shape: bf16[2,1,256,16], index: 3, kind: output, shape index: {}]  }
   0x1   :  { %s6608_s14 = smov 0  }
   0x2 LB: > { %s25_s15 = sadd.s32 1, %s6578_s13  ;;  %p5095_p0 = scmp.ge.s32.totalorder %s6582_s14, 1  ;;  %s6582_s14 = sphi %s6608_s14, %s13_s14   ;;  %s6578_s13 = sphi %s6606_s13, %s8531_s13   ;;  %s6574_s12 = sphi %s6604_s12, %s8530_s12  }
   0x3   : > { %p27_p1 = scmp.ge.s32.totalorder %s25_s15, 2  ;;  %p157_p2 = scmp.lt.s32.totalorder %s6582_s14, 3 }
   0x5   : > { %s8533_s15 = smov (%p27_p1, %s25_s15), 0  ;;  %p158_p3 = pnand %p5095_p0, %p157_p2 }
   0x7   : > { %161 = sbr.rel (%p158_p3) target bundleno = 590 (0x24e), region = 32 }
   0xe   : > { %v5099_v0 = vld [vmem:[%s8460_s1 + $0x2] sm:$0x3]  ;;  %vm743_vm0 = vcmask 1041408   ;;  %v5326_v1 = vld [vmem:[%s8460_s1 + $0x8] sm:$0x3]  ;;  %p189_p4 = scmp.lt.s32.totalorder %s6574_s12, 1 }
   0xf   : > { %6420 = vmatprep.subr.msk.bf16.mxu1 %vm743_vm0, %v5099_v0  ;;  %6424 = vmatprep.subr.msk.bf16.mxu0 %vm743_vm0, %v5326_v1  ;;  %v745_v2 = vsel %vm743_vm0, %v5099_v0, 0  ;;  %v6632_v3 = vsel %vm743_vm0, %v5326_v1, 0  ;;  %v240_v4 = vld [vmem:[%s8460_s1] sm:$0x3]  ;;  %v5391_v5 = vld [vmem:[%s8460_s1 + $0xa] sm:$0x3] }
  0x10   : > { %8476 = vst [vmem:[#allocation2_spill] sm:$0xff] %v6632_v3  ;;  %5857 = vmatpush3.bf16.msra.mxu1 %v745_v2  ;;  %5993 = vmatpush3.bf16.msra.mxu0 %v6632_v3  ;;  %s8535_s12 = smov (!%p189_p4, %s6574_s12), 1  ;;  %vm257_vm1 = vsmask.f32 3328  ;;  %vm258_vm2 = vsmask.f32 7440 }
  0x11   : > { %6421 = vmatprep.subr.msk.bf16.mxu1 %vm743_vm0, %v240_v4  ;;  %6426 = vmatprep.subr.msk.bf16.mxu0 %vm743_vm0, %v5391_v5  ;;  %s6430_s24 = smul.u32 216, %s8535_s12  ;;  %vm694_vm3 = vcmask 31744   ;;  %v6662_v17 = vsel %vm743_vm0, %v240_v4, 0  ;;  %v6668_v26 = vld [vmem:[%s8460_s1 + $0xc] sm:$0x3]  ;;  %vm6675_vm4 = vmor %vm257_vm1, %vm258_vm2  ;;  %v6681_v37 = vsel %vm743_vm0, %v5391_v5, 0 }
  0x12   : > { %v6685_v41 = vsel %vm743_vm0, %v6668_v26, 0  ;;  %vm1248_vm5 = vcmask 1042432   ;;  %vm1249_vm6 = vcmask 1046532   ;;  %s5670_s21 = sshll.u32 %s8535_s12, 7  ;;  %vm4966_vm8 = vcmask 125952  }
  0x13   : > { %s6649_s27 = scalar_lea.vmem %s8459_s0, %s6430_s24  ;;  %vm6901_vm7 = vmor %vm1248_vm5, %vm1249_vm6  ;;  %s8349_s24 = scalar_lea.vmem %s8462_s3, %s5670_s21 }
  0x14   : > { %v208_v6 = vld [vmem:[%s6649_s27] sm:$0xf]  ;;  %v209_v7 = vld [vmem:[%s6649_s27 + $0x4] sm:$0xf]  ;;  %v241_v8 = vld [vmem:[%s6649_s27 + $0x8] sm:$0x1] }
  0x15   : > { %v261_v9 = vshrl.u32 %v208_v6, 16  ;;  %v264_v10 = vshll.u32 %v208_v6, 16  ;;  %v270_v11 = vshll.u32 %v209_v7, 16  ;;  %v274_v12 = vshrl.u32 %v209_v7, 16  ;;  %v5278_v13 = vld [vmem:[%s6649_s27 + $0xc] sm:$0xf] }
  0x16   : > { %v280_v14 = vshll.u32 %v241_v8, 16  ;;  %v6656_v15 = vld [vmem:[%s6649_s27 + $0x10] sm:$0xf]  ;;  %v6659_v16 = vld [vmem:[%s6649_s27 + $0x14] sm:$0x1]  ;;  %v2065_v23 = vshrl.u32 %v5278_v13, 16 }
  0x17   : > { %v263_v18 = vrot.slane %v261_v9, 4  ;;  %v266_v19 = vrot.slane %v264_v10, 5  ;;  %v272_v20 = vrot.slane %v270_v11, 5  ;;  %v276_v21 = vrot.slane %v274_v12, 4  ;;  %v210_v31 = vld [vmem:[%s6649_s27 + $0xc] sm:$0xf] }
  0x18   : > { %v282_v22 = vrot.slane %v280_v14, 5  ;;  %v2068_v24 = vshll.u32 %v5278_v13, 16  ;;  %v2074_v25 = vshll.u32 %v6656_v15, 16  ;;  %v2078_v29 = vshrl.u32 %v6656_v15, 16  ;;  %v211_v36 = vld [vmem:[%s6649_s27 + $0x10] sm:$0xf] }
  0x19   : > { %v267_v27 = vor.u32 %v266_v19, %v263_v18  ;;  %v277_v28 = vor.u32 %v276_v21, %v272_v20  ;;  %v2084_v30 = vshll.u32 %v6659_v16, 16  ;;  %v2067_v33 = vrot.slane %v2065_v23, 4  ;;  %v242_v44 = vld [vmem:[%s6649_s27 + $0x14] sm:$0x1]  ;;  %v5281_v55 = vld [vmem:[%s6649_s27 + $0x18] sm:$0xf] }
  0x1a   : > { %v2070_v34 = vrot.slane %v2068_v24, 5  ;;  %v2076_v35 = vrot.slane %v2074_v25, 5  ;;  %v2080_v40 = vrot.slane %v2078_v29, 4  ;;  %v285_v45 = vshrl.u32 %v210_v31, 16  ;;  %v6694_v60 = vld [vmem:[%s6649_s27 + $0x1c] sm:$0xf] }
  0x1b   : > { %v268_v38 = vrot.slane %v267_v27, 4  ;;  %v278_v39 = vrot.slane %v277_v28, 4  ;;  %v2086_v43 = vrot.slane %v2084_v30, 5  ;;  %v288_v46 = vshll.u32 %v210_v31, 16  ;;  %v6702_v1 = vld [vmem:[%s6649_s27 + $0x20] sm:$0x1] }
  0x1c   : > { %v2071_v42 = vor.u32 %v2070_v34, %v2067_v33  ;;  %v2081_v49 = vor.u32 %v2080_v40, %v2076_v35  ;;  %v294_v50 = vshll.u32 %v211_v36, 16  ;;  %v287_v53 = vrot.slane %v285_v45, 4  ;;  %v212_v18 = vld [vmem:[%s6649_s27 + $0x18] sm:$0xf]  ;;  %v213_v23 = vld [vmem:[%s6649_s27 + $0x1c] sm:$0xf] }
  0x1d   : > { %v273_v47 = vsel %vm6675_vm4, %v268_v38, %v272_v20  ;;  %v283_v48 = vsel %vm6675_vm4, %v278_v39, %v282_v22  ;;  %v290_v54 = vrot.slane %v288_v46, 5  ;;  %v298_v58 = vshrl.u32 %v211_v36, 16  ;;  %v243_v31 = vld [vmem:[%s6649_s27 + $0x20] sm:$0x1]  ;;  %v5284_v40 = vld [vmem:[%s6649_s27 + $0x24] sm:$0xf] }
  0x1e   : > { %v5100_v51 = vcombine.low %v273_v47, %v283_v48  ;;  %v2072_v52 = vrot.slane %v2071_v42, 4  ;;  %v2082_v56 = vrot.slane %v2081_v49, 4  ;;  %v296_v57 = vrot.slane %v294_v50, 5  ;;  %v6725_v46 = vld [vmem:[%s6649_s27 + $0x28] sm:$0xf] }
  0x1f   : > { %v304_v59 = vshll.u32 %v242_v44, 16  ;;  %v2808_v62 = vrot.slane %v6656_v15, 5  ;;  %v2811_v63 = vrot.slane %v6659_v16, 5  ;;  %v291_v0 = vor.u32 %v290_v54, %v287_v53  ;;  %v6734_v54 = vld [vmem:[%s6649_s27 + $0x2c] sm:$0x1] }
  0x20   : > { %5858 = vmatprep.mubr.msk.bf16.mxu1 %vm694_vm3, %v5100_v51  ;;  %v2077_v61 = vsel %vm6675_vm4, %v2072_v52, %v2076_v35  ;;  %v2087_v2 = vsel %vm6675_vm4, %v2082_v56, %v2086_v43  ;;  %v300_v4 = vrot.slane %v298_v58, 4  ;;  %v2089_v6 = vshrl.u32 %v5281_v55, 16  ;;  %v5180_v51 = vld [vmem:[%s8460_s1 + $0x4] sm:$0x3]  ;;  %v6934_v16 = vld [vmem:[%s6649_s27 + $0x7c] sm:$0xf] }
  0x21   : > { %v306_v5 = vrot.slane %v304_v59, 5  ;;  %v5327_v7 = vcombine.low %v2077_v61, %v2087_v2  ;;  %v292_v8 = vrot.slane %v291_v0, 4  ;;  %v2092_v9 = vshll.u32 %v5281_v55, 16  ;;  %v214_v0 = vld [vmem:[%s6649_s27 + $0x24] sm:$0xf] }
  0x22   : > { %v2098_v10 = vshll.u32 %v6694_v60, 16  ;;  %v301_v11 = vor.u32 %v300_v4, %v296_v57  ;;  %v2091_v12 = vrot.slane %v2089_v6, 4  ;;  %v2102_v13 = vshrl.u32 %v6694_v60, 16 }
  0x23   : > { %v2108_v14 = vshll.u32 %v6702_v1, 16  ;;  %5994 = vmatprep.mubr.msk.bf16.mxu0 %vm694_vm3, %v5327_v7  ;;  %v297_v19 = vsel %vm6675_vm4, %v292_v8, %v296_v57  ;;  %v2094_v20 = vrot.slane %v2092_v9, 5  ;;  %v2815_v22 = vrot.slane %v6694_v60, 5  ;;  %v215_v7 = vld [vmem:[%s6649_s27 + $0x28] sm:$0xf] }
  0x24   : > { %v2100_v21 = vrot.slane %v2098_v10, 5  ;;  %v302_v24 = vrot.slane %v301_v11, 4  ;;  %v2104_v25 = vrot.slane %v2102_v13, 4  ;;  %v2818_v28 = vrot.slane %v6702_v1, 5  ;;  %v244_v13 = vld [vmem:[%s6649_s27 + $0x2c] sm:$0x1] }
  0x25   : > { %v2110_v27 = vrot.slane %v2108_v14, 5  ;;  %v2095_v29 = vor.u32 %v2094_v20, %v2091_v12  ;;  %v6718_v30 = vrot.slane %v2815_v22, 4  ;;  %v309_v33 = vshrl.u32 %v212_v18, 16 }
  0x26   : > { %v312_v34 = vshll.u32 %v212_v18, 16  ;;  %v307_v35 = vsel %vm6675_vm4, %v302_v24, %v306_v5  ;;  %v2105_v36 = vor.u32 %v2104_v25, %v2100_v21  ;;  %v318_v38 = vshll.u32 %v213_v23, 16  ;;  %v5287_v24 = vld [vmem:[%s6649_s27 + $0x30] sm:$0xf] }
  0x27   : > { %v322_v39 = vshrl.u32 %v213_v23, 16  ;;  %v5101_v42 = vcombine.low %v297_v19, %v307_v35  ;;  %v2096_v43 = vrot.slane %v2095_v29, 4  ;;  %v311_v44 = vrot.slane %v309_v33, 4  ;;  %v6754_v33 = vld [vmem:[%s6649_s27 + $0x34] sm:$0xf] }
  0x28   : > { %v314_v45 = vrot.slane %v312_v34, 5  ;;  %v2106_v47 = vrot.slane %v2105_v36, 4  ;;  %v320_v48 = vrot.slane %v318_v38, 5  ;;  %v328_v50 = vshll.u32 %v243_v31, 16 }
  0x29   : > { %v324_v49 = vrot.slane %v322_v39, 4  ;;  %5859 = vmatmul.mubr.msk.bf16.vlgmr.msra.gmra.mrb[0].mxu1 %vm694_vm3, %v5101_v42  ;;  %v2101_v52 = vsel %vm6675_vm4, %v2096_v43, %v2100_v21  ;;  %v2113_v55 = vshrl.u32 %v5284_v40, 16  ;;  %v2116_v56 = vshll.u32 %v5284_v40, 16  ;;  %v6762_v40 = vld [vmem:[%s6649_s27 + $0x38] sm:$0x1] }
  0x2a   : > { %v315_v53 = vor.u32 %v314_v45, %v311_v44  ;;  %5891 = vmatpush3.bf16.msra.mxu1 %v6662_v17  ;;  %v2111_v57 = vsel %vm6675_vm4, %v2106_v47, %v2110_v27  ;;  %v330_v59 = vrot.slane %v328_v50, 5  ;;  %v2122_v61 = vshll.u32 %v6725_v46, 16 }
  0x2b   : > { %v325_v58 = vor.u32 %v324_v49, %v320_v48  ;;  %v5328_v2 = vcombine.low %v2101_v52, %v2111_v57  ;;  %v2115_v5 = vrot.slane %v2113_v55, 4  ;;  %v2118_v6 = vrot.slane %v2116_v56, 5  ;;  %6422 = vmatprep.subr.msk.bf16.mxu1 %vm743_vm0, %v5180_v51  ;;  %v216_v52 = vld [vmem:[%s6649_s27 + $0x30] sm:$0xf] }
  0x2c   : > { %v316_v4 = vrot.slane %v315_v53, 4  ;;  %v2124_v9 = vrot.slane %v2122_v61, 5  ;;  %v2126_v17 = vshrl.u32 %v6725_v46, 16  ;;  %v2132_v10 = vshll.u32 %v6734_v54, 16 }
  0x2d   : > { %v326_v8 = vrot.slane %v325_v58, 4  ;;  %5995 = vmatmul.mubr.msk.bf16.vlgmr.msra.gmra.mrb[0].mxu0 %vm694_vm3, %v5328_v2  ;;  %v2119_v12 = vor.u32 %v2118_v6, %v2115_v5  ;;  %v333_v14 = vshrl.u32 %v214_v0, 16  ;;  %v336_v18 = vshll.u32 %v214_v0, 16  ;;  %v217_v58 = vld [vmem:[%s6649_s27 + $0x34] sm:$0xf] }
  0x2e   : > { %v321_v11 = vsel %vm6675_vm4, %v316_v4, %v320_v48  ;;  %6027 = vmatpush3.bf16.msra.mxu0 %v6681_v37  ;;  %v2128_v20 = vrot.slane %v2126_v17, 4  ;;  %v2134_v21 = vrot.slane %v2132_v10, 5  ;;  %v342_v23 = vshll.u32 %v215_v7, 16  ;;  %v245_v4 = vld [vmem:[%s6649_s27 + $0x38] sm:$0x1] }
  0x2f   : > { %v331_v19 = vsel %vm6675_vm4, %v326_v8, %v330_v59  ;;  %v2120_v27 = vrot.slane %v2119_v12, 4  ;;  %v335_v29 = vrot.slane %v333_v14, 4  ;;  %v338_v31 = vrot.slane %v336_v18, 5  ;;  %6427 = vmatprep.subr.msk.bf16.mxu0 %vm743_vm0, %v6668_v26  ;;  %v5290_v12 = vld [vmem:[%s6649_s27 + $0x3c] sm:$0xf] }
  0x30   : > { %v5102_v25 = vcombine.low %v321_v11, %v331_v19  ;;  %v2129_v34 = vor.u32 %v2128_v20, %v2124_v9  ;;  %v344_v35 = vrot.slane %v342_v23, 5  ;;  %v346_v37 = vshrl.u32 %v215_v7, 16  ;;  %v6779_v20 = vld [vmem:[%s6649_s27 + $0x40] sm:$0xf] }
  0x31   : > { %v352_v36 = vshll.u32 %v244_v13, 16  ;;  %v2125_v38 = vsel %vm6675_vm4, %v2120_v27, %v2124_v9  ;;  %v339_v39 = vor.u32 %v338_v31, %v335_v29  ;;  %v2137_v42 = vshrl.u32 %v5287_v24, 16 }
  0x32   : > { %5862 = vmatprep.mubr.msk.bf16.mxu1 %vm694_vm3, %v5102_v25  ;;  %v2140_v43 = vshll.u32 %v5287_v24, 16  ;;  %v2130_v44 = vrot.slane %v2129_v34, 4  ;;  %v348_v45 = vrot.slane %v346_v37, 4  ;;  %v2146_v26 = vshll.u32 %v6754_v33, 16  ;;  %v6784_v34 = vld [vmem:[%s6649_s27 + $0x44] sm:$0x1] }
  0x33   : > { %v354_v47 = vrot.slane %v352_v36, 5  ;;  %v340_v48 = vrot.slane %v339_v39, 4  ;;  %v2139_v49 = vrot.slane %v2137_v42, 4  ;;  %v2150_v51 = vshrl.u32 %v6754_v33, 16  ;;  %v218_v42 = vld [vmem:[%s6649_s27 + $0x3c] sm:$0xf] }
  0x34   : > { %v2142_v50 = vrot.slane %v2140_v43, 5  ;;  %v2135_v53 = vsel %vm6675_vm4, %v2130_v44, %v2134_v21  ;;  %v349_v55 = vor.u32 %v348_v45, %v344_v35  ;;  %v2148_v56 = vrot.slane %v2146_v26, 5  ;;  %v219_v26 = vld [vmem:[%s6649_s27 + $0x40] sm:$0xf] }
  0x35   : > { %v2156_v57 = vshll.u32 %v6762_v40, 16  ;;  %v5329_v59 = vcombine.low %v2125_v38, %v2135_v53  ;;  %v345_v61 = vsel %vm6675_vm4, %v340_v48, %v344_v35  ;;  %v2152_v2 = vrot.slane %v2150_v51, 4 }
  0x36   : > { %v2143_v0 = vor.u32 %v2142_v50, %v2139_v49  ;;  %v350_v5 = vrot.slane %v349_v55, 4  ;;  %v357_v7 = vshrl.u32 %v216_v52, 16  ;;  %v360_v8 = vshll.u32 %v216_v52, 16 }
  0x37   : > { %v2158_v6 = vrot.slane %v2156_v57, 5  ;;  %5998 = vmatprep.mubr.msk.bf16.mxu0 %vm694_vm3, %v5329_v59  ;;  %v2153_v17 = vor.u32 %v2152_v2, %v2148_v56  ;;  %v366_v10 = vshll.u32 %v217_v58, 16  ;;  %v370_v11 = vshrl.u32 %v217_v58, 16  ;;  %v5293_v2 = vld [vmem:[%s6649_s27 + $0x48] sm:$0xf] }
  0x38   : > { %v2144_v9 = vrot.slane %v2143_v0, 4  ;;  %v355_v13 = vsel %vm6675_vm4, %v350_v5, %v354_v47  ;;  %v359_v14 = vrot.slane %v357_v7, 4  ;;  %v362_v18 = vrot.slane %v360_v8, 5  ;;  %v6802_v8 = vld [vmem:[%s6649_s27 + $0x4c] sm:$0xf] }
  0x39   : > { %v376_v19 = vshll.u32 %v245_v4, 16  ;;  %v5103_v21 = vcombine.low %v345_v61, %v355_v13  ;;  %v2154_v24 = vrot.slane %v2153_v17, 4  ;;  %v368_v25 = vrot.slane %v366_v10, 5  ;;  %v246_v61 = vld [vmem:[%s6649_s27 + $0x44] sm:$0x1] }
  0x3a   : > { %v2149_v23 = vsel %vm6675_vm4, %v2144_v9, %v2148_v56  ;;  %v363_v27 = vor.u32 %v362_v18, %v359_v14  ;;  %v372_v29 = vrot.slane %v370_v11, 4  ;;  %v2161_v35 = vshrl.u32 %v5290_v12, 16 }
  0x3b   : > { %v378_v31 = vrot.slane %v376_v19, 5  ;;  %5863 = vmatmul.mubr.msk.bf16.gmra.mrb[4].mxu1 %vm694_vm3, %v5103_v21  ;;  %v2159_v37 = vsel %vm6675_vm4, %v2154_v24, %v2158_v6  ;;  %v2164_v36 = vshll.u32 %v5290_v12, 16  ;;  %v2170_v38 = vshll.u32 %v6779_v20, 16 }
  0x3c   : > { %v2174_v39 = vshrl.u32 %v6779_v20, 16  ;;  %v5330_v43 = vcombine.low %v2149_v23, %v2159_v37  ;;  %v364_v44 = vrot.slane %v363_v27, 4  ;;  %v373_v45 = vor.u32 %v372_v29, %v368_v25  ;;  %v6810_v23 = vld [vmem:[%s6649_s27 + $0x50] sm:$0x1]  ;;  %v6814_v27 = vld [vmem:[%s6649_s27 + $0x48] sm:$0xf] }
  0x3d   : > { %v2163_v47 = vrot.slane %v2161_v35, 4  ;;  %v2166_v48 = vrot.slane %v2164_v36, 5  ;;  %v2172_v49 = vrot.slane %v2170_v38, 5  ;;  %v2180_v51 = vshll.u32 %v6784_v34, 16  ;;  %v6817_v36 = vld [vmem:[%s6649_s27 + $0x4c] sm:$0xf] }
  0x3e   : > { %v2176_v50 = vrot.slane %v2174_v39, 4  ;;  %5999 = vmatmul.mubr.msk.bf16.gmra.mrb[4].mxu0 %vm694_vm3, %v5330_v43  ;;  %v369_v52 = vsel %vm6675_vm4, %v364_v44, %v368_v25  ;;  %v374_v53 = vrot.slane %v373_v45, 4  ;;  %v381_v55 = vshrl.u32 %v218_v42, 16 }
  0x3f   : > { %v384_v56 = vshll.u32 %v218_v42, 16  ;;  %v2167_v57 = vor.u32 %v2166_v48, %v2163_v47  ;;  %v2182_v59 = vrot.slane %v2180_v51, 5  ;;  %v390_v0 = vshll.u32 %v219_v26, 16 }
  0x40   : > { %v2177_v58 = vor.u32 %v2176_v50, %v2172_v49  ;;  %v379_v4 = vsel %vm6675_vm4, %v374_v53, %v378_v31  ;;  %v383_v5 = vrot.slane %v381_v55, 4  ;;  %v394_v7 = vshrl.u32 %v219_v26, 16  ;;  %v247_v26 = vld [vmem:[%s6649_s27 + $0x50] sm:$0x1]  ;;  %v5296_v53 = vld [vmem:[%s6649_s27 + $0x54] sm:$0xf] }
  0x41   : > { %v386_v6 = vrot.slane %v384_v56, 5  ;;  %v5104_v9 = vcombine.low %v369_v52, %v379_v4  ;;  %v2168_v17 = vrot.slane %v2167_v57, 4  ;;  %v392_v11 = vrot.slane %v390_v0, 5  ;;  %v6833_v4 = vld [vmem:[%s6649_s27 + $0x58] sm:$0xf] }
  0x42   : > { %v2178_v10 = vrot.slane %v2177_v58, 4  ;;  %v396_v13 = vrot.slane %v394_v7, 4  ;;  %v400_v14 = vshll.u32 %v246_v61, 16  ;;  %v2185_v18 = vshrl.u32 %v5293_v2, 16 }
  0x43   : > { %v387_v12 = vor.u32 %v386_v6, %v383_v5  ;;  %5866 = vmatprep.mubr.msk.bf16.mxu1 %vm694_vm3, %v5104_v9  ;;  %v2173_v19 = vsel %vm6675_vm4, %v2168_v17, %v2172_v49  ;;  %v2188_v24 = vshll.u32 %v5293_v2, 16  ;;  %v2194_v25 = vshll.u32 %v6802_v8, 16 }
  0x44   : > { %v2183_v21 = vsel %vm6675_vm4, %v2178_v10, %v2182_v59  ;;  %v397_v35 = vor.u32 %v396_v13, %v392_v11  ;;  %v402_v37 = vrot.slane %v400_v14, 5  ;;  %v2187_v38 = vrot.slane %v2185_v18, 4 }
  0x45   : > { %v5331_v29 = vcombine.low %v2173_v19, %v2183_v21  ;;  %v388_v31 = vrot.slane %v387_v12, 4  ;;  %v2190_v39 = vrot.slane %v2188_v24, 5  ;;  %v2196_v42 = vrot.slane %v2194_v25, 5  ;;  %v6839_v12 = vld [vmem:[%s6649_s27 + $0x5c] sm:$0x1] }
  0x46   : > { %v2198_v43 = vshrl.u32 %v6802_v8, 16  ;;  %v398_v45 = vrot.slane %v397_v35, 4  ;;  %v2204_v47 = vshll.u32 %v6810_v23, 16  ;;  %v405_v48 = vshrl.u32 %v6814_v27, 16  ;;  %v6843_v24 = vld [vmem:[%s6649_s27 + $0x54] sm:$0xf] }
  0x47   : > { %6002 = vmatprep.mubr.msk.bf16.mxu0 %vm694_vm3, %v5331_v29  ;;  %v393_v44 = vsel %vm6675_vm4, %v388_v31, %v392_v11  ;;  %v2191_v49 = vor.u32 %v2190_v39, %v2187_v38  ;;  %v408_v51 = vshll.u32 %v6814_v27, 16  ;;  %v414_v52 = vshll.u32 %v6817_v36, 16 }
  0x48   : > { %v2200_v50 = vrot.slane %v2198_v43, 4  ;;  %v403_v55 = vsel %vm6675_vm4, %v398_v45, %v402_v37  ;;  %v2206_v56 = vrot.slane %v2204_v47, 5  ;;  %v407_v57 = vrot.slane %v405_v48, 4  ;;  %v6849_v37 = vld [vmem:[%s6649_s27 + $0x58] sm:$0xf] }
  0x49   : > { %v418_v58 = vshrl.u32 %v6817_v36, 16  ;;  %v5105_v59 = vcombine.low %v393_v44, %v403_v55  ;;  %v2192_v61 = vrot.slane %v2191_v49, 4  ;;  %v410_v2 = vrot.slane %v408_v51, 5 }
  0x4a   : > { %v2201_v0 = vor.u32 %v2200_v50, %v2196_v42  ;;  %v416_v5 = vrot.slane %v414_v52, 5  ;;  %v424_v7 = vshll.u32 %v247_v26, 16  ;;  %v2209_v9 = vshrl.u32 %v5296_v53, 16  ;;  %v248_v26 = vld [vmem:[%s6649_s27 + $0x5c] sm:$0x1] }
  0x4b   : > { %v420_v6 = vrot.slane %v418_v58, 4  ;;  %5867 = vmatmul.mubr.msk.bf16.gmra.mrb[8].mxu1 %vm694_vm3, %v5105_v59  ;;  %v2197_v17 = vsel %vm6675_vm4, %v2192_v61, %v2196_v42  ;;  %v411_v11 = vor.u32 %v410_v2, %v407_v57  ;;  %v2212_v13 = vshll.u32 %v5296_v53, 16  ;;  %v5299_v53 = vld [vmem:[%s6649_s27 + $0x60] sm:$0xf]  ;;  %v6863_v59 = vld [vmem:[%s6649_s27 + $0x64] sm:$0xf] }
  0x4c   : > { %v2202_v10 = vrot.slane %v2201_v0, 4  ;;  %v426_v18 = vrot.slane %v424_v7, 5  ;;  %v2211_v19 = vrot.slane %v2209_v9, 4  ;;  %v2218_v21 = vshll.u32 %v6833_v4, 16  ;;  %v6870_v9 = vld [vmem:[%s6649_s27 + $0x68] sm:$0x1] }
  0x4d   : > { %v421_v14 = vor.u32 %v420_v6, %v416_v5  ;;  %v412_v29 = vrot.slane %v411_v11, 4  ;;  %v2214_v31 = vrot.slane %v2212_v13, 5  ;;  %v2222_v35 = vshrl.u32 %v6833_v4, 16 }
  0x4e   : > { %v2207_v25 = vsel %vm6675_vm4, %v2202_v10, %v2206_v56  ;;  %v2220_v42 = vrot.slane %v2218_v21, 5  ;;  %v2228_v43 = vshll.u32 %v6839_v12, 16  ;;  %v429_v48 = vshrl.u32 %v6843_v24, 16 }
  0x4f   : > { %v5332_v38 = vcombine.low %v2197_v17, %v2207_v25  ;;  %v422_v39 = vrot.slane %v421_v14, 4  ;;  %v417_v44 = vsel %vm6675_vm4, %v412_v29, %v416_v5  ;;  %v2215_v45 = vor.u32 %v2214_v31, %v2211_v19  ;;  %v6874_v19 = vld [vmem:[%s6649_s27 + $0x60] sm:$0xf] }
  0x50   : > { %v2224_v47 = vrot.slane %v2222_v35, 4  ;;  %v2230_v50 = vrot.slane %v2228_v43, 5  ;;  %v432_v51 = vshll.u32 %v6843_v24, 16  ;;  %v438_v52 = vshll.u32 %v6849_v37, 16  ;;  %v6880_v35 = vld [vmem:[%s6649_s27 + $0x64] sm:$0xf] }
  0x51   : > { %6003 = vmatmul.mubr.msk.bf16.gmra.mrb[8].mxu0 %vm694_vm3, %v5332_v38  ;;  %v427_v49 = vsel %vm6675_vm4, %v422_v39, %v426_v18  ;;  %v2216_v56 = vrot.slane %v2215_v45, 4  ;;  %v431_v58 = vrot.slane %v429_v48, 4  ;;  %v442_v2 = vshrl.u32 %v6849_v37, 16 }
  0x52   : > { %v5106_v55 = vcombine.low %v417_v44, %v427_v49  ;;  %v2225_v57 = vor.u32 %v2224_v47, %v2220_v42  ;;  %v434_v61 = vrot.slane %v432_v51, 5  ;;  %v440_v0 = vrot.slane %v438_v52, 5 }
  0x53   : > { %v448_v5 = vshll.u32 %v248_v26, 16  ;;  %v2221_v6 = vsel %vm6675_vm4, %v2216_v56, %v2220_v42  ;;  %v2233_v17 = vshrl.u32 %v5299_v53, 16  ;;  %v2236_v10 = vshll.u32 %v5299_v53, 16 }
  0x54   : > { %5870 = vmatprep.mubr.msk.bf16.mxu1 %vm694_vm3, %v5106_v55  ;;  %v2226_v7 = vrot.slane %v2225_v57, 4  ;;  %v435_v11 = vor.u32 %v434_v61, %v431_v58  ;;  %v444_v13 = vrot.slane %v442_v2, 4  ;;  %v2242_v18 = vshll.u32 %v6863_v59, 16  ;;  %v5359_v58 = vld [vmem:[%s6649_s27 + $0xc] sm:$0xe] }
  0x55   : > { %v450_v14 = vrot.slane %v448_v5, 5  ;;  %v2235_v25 = vrot.slane %v2233_v17, 4  ;;  %v2238_v29 = vrot.slane %v2236_v10, 5  ;;  %v2246_v31 = vshrl.u32 %v6863_v59, 16 }
  0x56   : > { %v2231_v21 = vsel %vm6675_vm4, %v2226_v7, %v2230_v50  ;;  %v436_v39 = vrot.slane %v435_v11, 4  ;;  %v445_v42 = vor.u32 %v444_v13, %v440_v0  ;;  %v2244_v43 = vrot.slane %v2242_v18, 5  ;;  %v249_v50 = vld [vmem:[%s6649_s27 + $0x68] sm:$0x1] }
  0x57   : > { %v5333_v38 = vcombine.low %v2221_v6, %v2231_v21  ;;  %v2239_v44 = vor.u32 %v2238_v29, %v2235_v25  ;;  %v2248_v45 = vrot.slane %v2246_v31, 4  ;;  %v2252_v47 = vshll.u32 %v6870_v9, 16  ;;  %v6908_v29 = vld [vmem:[%s6649_s27 + $0x70] sm:$0xf] }
  0x58   : > { %v453_v26 = vshrl.u32 %v6874_v19, 16  ;;  %v441_v48 = vsel %vm6675_vm4, %v436_v39, %v440_v0  ;;  %v446_v49 = vrot.slane %v445_v42, 4  ;;  %v456_v51 = vshll.u32 %v6874_v19, 16  ;;  %v6895_v0 = vld [vmem:[%s6649_s27 + $0x6c] sm:$0xf] }
  0x59   : > { %6006 = vmatprep.mubr.msk.bf16.mxu0 %vm694_vm3, %v5333_v38  ;;  %v462_v52 = vshll.u32 %v6880_v35, 16  ;;  %v2240_v53 = vrot.slane %v2239_v44, 4  ;;  %v2249_v55 = vor.u32 %v2248_v45, %v2244_v43  ;;  %v2254_v56 = vrot.slane %v2252_v47, 5 }
  0x5a   : > { %v455_v57 = vrot.slane %v453_v26, 4  ;;  %v451_v61 = vsel %vm6675_vm4, %v446_v49, %v450_v14  ;;  %v458_v2 = vrot.slane %v456_v51, 5  ;;  %v466_v6 = vshrl.u32 %v6880_v35, 16  ;;  %v250_v26 = vld [vmem:[%s6649_s27 + $0x74] sm:$0x1] }
  0x5b   : > { %v464_v5 = vrot.slane %v462_v52, 5  ;;  %v5107_v7 = vcombine.low %v441_v48, %v451_v61  ;;  %v2245_v17 = vsel %vm6675_vm4, %v2240_v53, %v2244_v43  ;;  %v2250_v10 = vrot.slane %v2249_v55, 4  ;;  %v5360_v48 = vld [vmem:[%s6649_s27 + $0x18] sm:$0xe] }
  0x5c   : > { %v472_v11 = vshll.u32 %v249_v50, 16  ;;  %v459_v14 = vor.u32 %v458_v2, %v455_v57  ;;  %v468_v18 = vrot.slane %v466_v6, 4  ;;  %v5375_v21 = vrot.slane %v5359_v58, 9  ;;  %v6927_v53 = vld [vmem:[%s6649_s27 + $0x78] sm:$0xf] }
  0x5d   : > { %v2810_v25 = vrot.slane %v2808_v62, 4  ;;  %5871 = vmatmul.mubr.msk.bf16.gmra.mrb[12].mxu1 %vm694_vm3, %v5107_v7  ;;  %v2255_v31 = vsel %vm6675_vm4, %v2250_v10, %v2254_v56  ;;  %v477_v39 = vshrl.u32 %v6895_v0, 16  ;;  %v480_v42 = vshll.u32 %v6895_v0, 16  ;;  %v251_v57 = vld [vmem:[%s6649_s27 + $0x80] sm:$0x1] }
  0x5e   : > { %v474_v38 = vrot.slane %v472_v11, 5  ;;  %v5334_v43 = vcombine.low %v2245_v17, %v2255_v31  ;;  %v460_v44 = vrot.slane %v459_v14, 4  ;;  %v469_v45 = vor.u32 %v468_v18, %v464_v5  ;;  %v5361_v10 = vld [vmem:[%s6649_s27 + $0x24] sm:$0xe] }
  0x5f   : > { %v2809_v47 = vsel %vm6901_vm7, %v5375_v21, %v2808_v62  ;;  %v2812_v49 = vsel %vm6901_vm7, %v2810_v25, %v2811_v63  ;;  %v479_v50 = vrot.slane %v477_v39, 4  ;;  %v482_v51 = vrot.slane %v480_v42, 5  ;;  %v6953_v39 = vld [vmem:[%s6649_s27 + $0x84] sm:$0xf] }
  0x60   : > { %v486_v52 = vshll.u32 %v6908_v29, 16  ;;  %6007 = vmatmul.mubr.msk.bf16.gmra.mrb[12].mxu0 %vm694_vm3, %v5334_v43  ;;  %v465_v15 = vsel %vm6675_vm4, %v460_v44, %v464_v5  ;;  %v470_v62 = vrot.slane %v469_v45, 4  ;;  %v5392_v55 = vcombine.low %v2809_v47, %v2812_v49  ;;  %v6961_v43 = vld [vmem:[%s6649_s27 + $0x88] sm:$0xf] }
  0x61   : > { %v490_v56 = vshrl.u32 %v6908_v29, 16  ;;  %v483_v63 = vor.u32 %v482_v51, %v479_v50  ;;  %v496_v61 = vshll.u32 %v250_v26, 16  ;;  %v5376_v2 = vrot.slane %v5360_v48, 9 }
  0x62   : > { %v488_v58 = vrot.slane %v486_v52, 5  ;;  %v475_v6 = vsel %vm6675_vm4, %v470_v62, %v474_v38  ;;  %6028 = vmatprep.mubr.msk.bf16.mxu0 %vm694_vm3, %v5392_v55  ;;  %v2819_v5 = vsel %vm6901_vm7, %v6718_v30, %v2818_v28  ;;  %v501_v17 = vshrl.u32 %v6927_v53, 16  ;;  %v252_v52 = vld [vmem:[%s6649_s27 + $0x8c] sm:$0x1] }
  0x63   : > { %v492_v7 = vrot.slane %v490_v56, 4  ;;  %v5108_v11 = vcombine.low %v465_v15, %v475_v6  ;;  %v484_v14 = vrot.slane %v483_v63, 4  ;;  %v498_v18 = vrot.slane %v496_v61, 5 }
  0x64   : > { %v2816_v21 = vsel %vm6901_vm7, %v5376_v2, %v2815_v22  ;;  %v503_v38 = vrot.slane %v501_v17, 4  ;;  %v504_v1 = vshll.u32 %v6927_v53, 16  ;;  %v510_v30 = vshll.u32 %v6934_v16, 16  ;;  %v6966_v22 = vld [vmem:[%s8460_s1 + $0xe] sm:$0x3] }
  0x65   : > { %v493_v25 = vor.u32 %v492_v7, %v488_v58  ;;  %v5393_v31 = vcombine.low %v2816_v21, %v2819_v5  ;;  %5874 = vmatprep.mubr.msk.bf16.mxu1 %vm694_vm3, %v5108_v11  ;;  %v489_v28 = vsel %vm6675_vm4, %v484_v14, %v488_v58  ;;  %v514_v60 = vshrl.u32 %v6934_v16, 16  ;;  %v6985_v5 = vld [vmem:[%s6649_s27 + $0x90] sm:$0xf] }
  0x66   : > { %v520_v42 = vshll.u32 %v251_v57, 16  ;;  %v506_v45 = vrot.slane %v504_v1, 5  ;;  %v5377_v47 = vrot.slane %v5361_v10, 9  ;;  %v2822_v26 = vrot.slane %v6725_v46, 5  ;;  %v5362_v57 = vld [vmem:[%s6649_s27 + $0x30] sm:$0xe] }
  0x67   : > { %v494_v44 = vrot.slane %v493_v25, 4  ;;  %v512_v48 = vrot.slane %v510_v30, 5  ;;  %v516_v49 = vrot.slane %v514_v60, 4  ;;  %v2825_v51 = vrot.slane %v6734_v54, 5  ;;  %v6997_v30 = vld [vmem:[%s6649_s27 + $0x94] sm:$0xf] }
  0x68   : > { %v522_v50 = vrot.slane %v520_v42, 5  ;;  %6029 = vmatmul.mubr.msk.bf16.vlgmr.msra.gmra.mrb[0].mxu0 %vm694_vm3, %v5393_v31  ;;  %v507_v62 = vor.u32 %v506_v45, %v503_v38  ;;  %v2823_v55 = vsel %vm6901_vm7, %v5377_v47, %v2822_v26  ;;  %v2824_v56 = vrot.slane %v2822_v26, 4  ;;  %v253_v60 = vld [vmem:[%s6649_s27 + $0x98] sm:$0x1]  ;;  %v5363_v26 = vld [vmem:[%s6649_s27 + $0x3c] sm:$0xe] }
  0x69   : > { %v499_v15 = vsel %vm6675_vm4, %v494_v44, %v498_v18  ;;  %6061 = vmatpush3.bf16.msra.mxu0 %v6685_v41  ;;  %v517_v46 = vor.u32 %v516_v49, %v512_v48  ;;  %v525_v58 = vshrl.u32 %v6953_v39, 16  ;;  %v528_v54 = vshll.u32 %v6953_v39, 16 }
  0x6a   : > { %v5109_v63 = vcombine.low %v489_v28, %v499_v15  ;;  %v508_v61 = vrot.slane %v507_v62, 4  ;;  %v2826_v2 = vsel %vm6901_vm7, %v2824_v56, %v2825_v51  ;;  %v534_v6 = vshll.u32 %v6961_v43, 16  ;;  %6428 = vmatprep.subr.msk.bf16.mxu0 %vm743_vm0, %v6966_v22 }
  0x6b   : > { %v538_v7 = vshrl.u32 %v6961_v43, 16  ;;  %v518_v41 = vrot.slane %v517_v46, 4  ;;  %v5394_v17 = vcombine.low %v2823_v55, %v2826_v2  ;;  %v527_v10 = vrot.slane %v525_v58, 4  ;;  %v7017_v46 = vld [vmem:[%s6649_s27 + $0xa0] sm:$0xf] }
  0x6c   : > { %5875 = vmatmul.mubr.msk.bf16.gmra.mrb[16].mxu1 %vm694_vm3, %v5109_v63  ;;  %v530_v11 = vrot.slane %v528_v54, 5  ;;  %v513_v14 = vsel %vm6675_vm4, %v508_v61, %v512_v48  ;;  %v536_v18 = vrot.slane %v534_v6, 5  ;;  %v544_v25 = vshll.u32 %v252_v52, 16  ;;  %v7006_v52 = vld [vmem:[%s6649_s27 + $0x9c] sm:$0xf] }
  0x6d   : > { %v540_v21 = vrot.slane %v538_v7, 4  ;;  %v523_v31 = vsel %vm6675_vm4, %v518_v41, %v522_v50  ;;  %6032 = vmatprep.mubr.msk.bf16.mxu0 %vm694_vm3, %v5394_v17  ;;  %v5378_v1 = vrot.slane %v5362_v57, 9  ;;  %v2829_v28 = vrot.slane %v6754_v33, 5 }
  0x6e   : > { %v531_v38 = vor.u32 %v530_v11, %v527_v10  ;;  %v5110_v42 = vcombine.low %v513_v14, %v523_v31  ;;  %v546_v45 = vrot.slane %v544_v25, 5  ;;  %v2832_v47 = vrot.slane %v6762_v40, 5  ;;  %v254_v10 = vld [vmem:[%s6649_s27 + $0xa4] sm:$0x1]  ;;  %v5364_v11 = vld [vmem:[%s6649_s27 + $0x48] sm:$0xe] }
  0x6f   : > { %v541_v44 = vor.u32 %v540_v21, %v536_v18  ;;  %v2830_v49 = vsel %vm6901_vm7, %v5378_v1, %v2829_v28  ;;  %v2831_v50 = vrot.slane %v2829_v28, 4  ;;  %v549_v51 = vshrl.u32 %v6985_v5, 16 }
  0x70   : > { %v532_v48 = vrot.slane %v531_v38, 4  ;;  %5878 = vmatprep.mubr.msk.bf16.mxu1 %vm694_vm3, %v5110_v42  ;;  %v552_v15 = vshll.u32 %v6985_v5, 16  ;;  %v558_v62 = vshll.u32 %v6997_v30, 16  ;;  %v562_v40 = vshrl.u32 %v6997_v30, 16 }
  0x71   : > { %v542_v33 = vrot.slane %v541_v44, 4  ;;  %v2833_v56 = vsel %vm6901_vm7, %v2831_v50, %v2832_v47  ;;  %v551_v57 = vrot.slane %v549_v51, 4  ;;  %v568_v63 = vshll.u32 %v253_v60, 16 }
  0x72   : > { %v537_v55 = vsel %vm6675_vm4, %v532_v48, %v536_v18  ;;  %v5395_v54 = vcombine.low %v2830_v49, %v2833_v56  ;;  %v554_v61 = vrot.slane %v552_v15, 5  ;;  %v560_v2 = vrot.slane %v558_v62, 5  ;;  %v7043_v56 = vld [vmem:[%s6649_s27 + $0xac] sm:$0xf] }
  0x73   : > { %v547_v58 = vsel %vm6675_vm4, %v542_v33, %v546_v45  ;;  %v564_v7 = vrot.slane %v562_v40, 4  ;;  %v570_v41 = vrot.slane %v568_v63, 5  ;;  %v5379_v17 = vrot.slane %v5363_v26, 9  ;;  %v7038_v33 = vld [vmem:[%s6649_s27 + $0xa8] sm:$0xf] }
  0x74   : > { %v5111_v6 = vcombine.low %v537_v55, %v547_v58  ;;  %6033 = vmatmul.mubr.msk.bf16.gmra.mrb[4].mxu0 %vm694_vm3, %v5395_v54  ;;  %v555_v14 = vor.u32 %v554_v61, %v551_v57  ;;  %v2836_v18 = vrot.slane %v6779_v20, 5  ;;  %v2839_v21 = vrot.slane %v6784_v34, 5  ;;  %v255_v61 = vld [vmem:[%s6649_s27 + $0xb0] sm:$0x1] }
  0x75   : > { %v573_v25 = vshrl.u32 %v7006_v52, 16  ;;  %v565_v31 = vor.u32 %v564_v7, %v560_v2  ;;  %v576_v38 = vshll.u32 %v7006_v52, 16  ;;  %v582_v1 = vshll.u32 %v7017_v46, 16 }
  0x76   : > { %5879 = vmatmul.mubr.msk.bf16.gmra.mrb[20].mxu1 %vm694_vm3, %v5111_v6  ;;  %v586_v28 = vshrl.u32 %v7017_v46, 16  ;;  %v556_v60 = vrot.slane %v555_v14, 4  ;;  %v2837_v42 = vsel %vm6901_vm7, %v5379_v17, %v2836_v18  ;;  %v2838_v20 = vrot.slane %v2836_v18, 4  ;;  %v7058_v14 = vld [vmem:[%s6649_s27 + $0xb4] sm:$0xf] }
  0x77   : > { %v575_v44 = vrot.slane %v573_v25, 4  ;;  %v566_v34 = vrot.slane %v565_v31, 4  ;;  %v578_v45 = vrot.slane %v576_v38, 5  ;;  %v584_v47 = vrot.slane %v582_v1, 5 }
  0x78   : > { %v588_v26 = vrot.slane %v586_v28, 4  ;;  %v561_v48 = vsel %vm6675_vm4, %v556_v60, %v560_v2  ;;  %v2840_v49 = vsel %vm6901_vm7, %v2838_v20, %v2839_v21  ;;  %v592_v50 = vshll.u32 %v254_v10, 16  ;;  %v5365_v2 = vld [vmem:[%s6649_s27 + $0x54] sm:$0xe] }
  0x79   : > { %v5380_v51 = vrot.slane %v5364_v11, 9  ;;  %v571_v15 = vsel %vm6675_vm4, %v566_v34, %v570_v41  ;;  %v5396_v62 = vcombine.low %v2837_v42, %v2840_v49  ;;  %v579_v40 = vor.u32 %v578_v45, %v575_v44  ;;  %v7067_v42 = vld [vmem:[%s6649_s27 + $0xb8] sm:$0xf]  ;;  %v256_v49 = vld [vmem:[%s6649_s27 + $0xbc] sm:$0x1] }
  0x7a   : > { %v589_v55 = vor.u32 %v588_v26, %v584_v47  ;;  %v5112_v57 = vcombine.low %v561_v48, %v571_v15  ;;  %v594_v63 = vrot.slane %v592_v50, 5  ;;  %v2843_v58 = vrot.slane %v6802_v8, 5 }
  0x7b   : > { %v2846_v54 = vrot.slane %v6810_v23, 5  ;;  %6036 = vmatprep.mubr.msk.bf16.mxu0 %vm694_vm3, %v5396_v62  ;;  %v580_v6 = vrot.slane %v579_v40, 4  ;;  %v597_v41 = vshrl.u32 %v7038_v33, 16  ;;  %v600_v17 = vshll.u32 %v7038_v33, 16 }
  0x7c   : > { %v590_v7 = vrot.slane %v589_v55, 4  ;;  %5882 = vmatprep.mubr.msk.bf16.mxu1 %vm694_vm3, %v5112_v57  ;;  %v2844_v10 = vsel %vm6901_vm7, %v5380_v51, %v2843_v58  ;;  %v2845_v11 = vrot.slane %v2843_v58, 4  ;;  %v606_v8 = vshll.u32 %v7043_v56, 16  ;;  %v5366_v55 = vld [vmem:[%s6649_s27 + $0x60] sm:$0xe] }
  0x7d   : > { %v610_v23 = vshrl.u32 %v7043_v56, 16  ;;  %v585_v18 = vsel %vm6675_vm4, %v580_v6, %v584_v47  ;;  %v599_v25 = vrot.slane %v597_v41, 4  ;;  %v602_v31 = vrot.slane %v600_v17, 5  ;;  %v5367_v6 = vld [vmem:[%s6649_s27 + $0x6c] sm:$0xe] }
  0x7e   : > { %v595_v21 = vsel %vm6675_vm4, %v590_v7, %v594_v63  ;;  %v2847_v1 = vsel %vm6901_vm7, %v2845_v11, %v2846_v54  ;;  %v608_v28 = vrot.slane %v606_v8, 5  ;;  %v616_v34 = vshll.u32 %v255_v61, 16  ;;  %v5303_v11 = vld [vmem:[%s6649_s27 + $0x70] sm:$0xf]  ;;  %v5304_v8 = vld [vmem:[%s6649_s27 + $0x74] sm:$0x1] }
  0x7f   : > { %v5113_v38 = vcombine.low %v585_v18, %v595_v21  ;;  %v612_v60 = vrot.slane %v610_v23, 4  ;;  %v5397_v20 = vcombine.low %v2844_v10, %v2847_v1  ;;  %v603_v44 = vor.u32 %v602_v31, %v599_v25 }
  0x80   : > { %v5381_v45 = vrot.slane %v5365_v2, 9  ;;  %v2850_v26 = vrot.slane %v6833_v4, 5  ;;  %v2853_v48 = vrot.slane %v6839_v12, 5  ;;  %v621_v50 = vshrl.u32 %v7058_v14, 16 }
  0x81   : > { %5883 = vmatmul.mubr.msk.bf16.gmra.mrb[24].mxu1 %vm694_vm3, %v5113_v38  ;;  %v613_v47 = vor.u32 %v612_v60, %v608_v28  ;;  %6037 = vmatmul.mubr.msk.bf16.gmra.mrb[8].mxu0 %vm694_vm3, %v5397_v20  ;;  %v604_v51 = vrot.slane %v603_v44, 4  ;;  %v618_v15 = vrot.slane %v616_v34, 5  ;;  %v624_v62 = vshll.u32 %v7058_v14, 16 }
  0x82   : > { %v630_v40 = vshll.u32 %v7067_v42, 16  ;;  %v2851_v4 = vsel %vm6901_vm7, %v5381_v45, %v2850_v26  ;;  %v2852_v12 = vrot.slane %v2850_v26, 4  ;;  %v623_v63 = vrot.slane %v621_v50, 4 }
  0x83   : > { %v614_v57 = vrot.slane %v613_v47, 4  ;;  %v609_v58 = vsel %vm6675_vm4, %v604_v51, %v608_v28  ;;  %v626_v54 = vrot.slane %v624_v62, 5  ;;  %v634_v2 = vshrl.u32 %v7067_v42, 16  ;;  %v5368_v47 = vld [vmem:[%s6649_s27 + $0x78] sm:$0xe] }
  0x84   : > { %v632_v61 = vrot.slane %v630_v40, 5  ;;  %v2854_v41 = vsel %vm6901_vm7, %v2852_v12, %v2853_v48  ;;  %v640_v17 = vshll.u32 %v256_v49, 16  ;;  %v5382_v10 = vrot.slane %v5366_v55, 9  ;;  %v6503_v51 = vld [vmem:[%s6649_s27] sm:$0xf] }
  0x85   : > { %v619_v7 = vsel %vm6675_vm4, %v614_v57, %v618_v15  ;;  %v5398_v18 = vcombine.low %v2851_v4, %v2854_v41  ;;  %v627_v21 = vor.u32 %v626_v54, %v623_v63  ;;  %v636_v25 = vrot.slane %v634_v2, 4  ;;  %v7105_v15 = vld [vmem:[%s6649_s27 + $0x4] sm:$0xf]  ;;  %v7109_v40 = vld [vmem:[%s6649_s27 + $0x7c] sm:$0xf] }
  0x86   : > { %v5114_v23 = vcombine.low %v609_v58, %v619_v7  ;;  %v642_v31 = vrot.slane %v640_v17, 5  ;;  %v2857_v38 = vrot.slane %v6863_v59, 5  ;;  %v2860_v1 = vrot.slane %v6870_v9, 5  ;;  %v7112_v55 = vld [vmem:[%s6649_s27 + $0x80] sm:$0x1] }
  0x87   : > { %v5383_v28 = vrot.slane %v5367_v6, 9  ;;  %6040 = vmatprep.mubr.msk.bf16.mxu0 %vm694_vm3, %v5398_v18  ;;  %v628_v60 = vrot.slane %v627_v21, 4  ;;  %v637_v20 = vor.u32 %v636_v25, %v632_v61  ;;  %v2864_v44 = vrot.slane %v5303_v11, 5  ;;  %v5309_v57 = vld [vmem:[%s6649_s27 + $0x88] sm:$0xf] }
  0x88   : > { %5886 = vmatprep.mubr.msk.bf16.mxu1 %vm694_vm3, %v5114_v23  ;;  %v2867_v34 = vrot.slane %v5304_v8, 5  ;;  %v2858_v45 = vsel %vm6901_vm7, %v5382_v10, %v2857_v38  ;;  %v2859_v59 = vrot.slane %v2857_v38, 4  ;;  %v5132_v62 = vcombine.low %v6503_v51, %v7105_v15  ;;  %v5310_v54 = vld [vmem:[%s6649_s27 + $0x8c] sm:$0x1]  ;;  %v5312_v17 = vld [vmem:[%s6649_s27 + $0x94] sm:$0xf] }
  0x89   : > { %v633_v9 = vsel %vm6675_vm4, %v628_v60, %v632_v61  ;;  %v638_v26 = vrot.slane %v637_v20, 4  ;;  %v2865_v48 = vsel %vm6901_vm7, %v5383_v28, %v2864_v44  ;;  %v2866_v49 = vrot.slane %v2864_v44, 4  ;;  %v5369_v61 = vld [vmem:[%s6649_s27 + $0x84] sm:$0xe]  ;;  %v5370_v23 = vld [vmem:[%s6649_s27 + $0x90] sm:$0xe] }
  0x8a   : > { %v2861_v50 = vsel %vm6901_vm7, %v2859_v59, %v2860_v1  ;;  %v5384_v58 = vrot.slane %v5368_v47, 9  ;;  %v2871_v7 = vrot.slane %v7109_v40, 5  ;;  %v2874_v41 = vrot.slane %v7112_v55, 5  ;;  %v5313_v25 = vld [vmem:[%s6649_s27 + $0x98] sm:$0x1] }
  0x8b   : > { %v643_v4 = vsel %vm6675_vm4, %v638_v26, %v642_v31  ;;  %v5399_v12 = vcombine.low %v2858_v45, %v2861_v50  ;;  %v2868_v63 = vsel %vm6901_vm7, %v2866_v49, %v2867_v34  ;;  %v5385_v10 = vrot.slane %v5369_v61, 9  ;;  %v5315_v31 = vld [vmem:[%s6649_s27 + $0xa0] sm:$0xf]  ;;  %v5316_v60 = vld [vmem:[%s6649_s27 + $0xa4] sm:$0x1] }
  0x8c   : > { %v5115_v2 = vcombine.low %v633_v9, %v643_v4  ;;  %v5400_v6 = vcombine.low %v2865_v48, %v2868_v63  ;;  %v2878_v11 = vrot.slane %v5309_v57, 5  ;;  %v2881_v8 = vrot.slane %v5310_v54, 5  ;;  %v5371_v20 = vld [vmem:[%s6649_s27 + $0x9c] sm:$0xe]  ;;  %v6505_v44 = vld [vmem:[%s6649_s27 + $0xc] sm:$0xf] }
  0x8d   : > { %6041 = vmatmul.mubr.msk.bf16.gmra.mrb[12].mxu0 %vm694_vm3, %v5399_v12  ;;  %v2872_v18 = vsel %vm6901_vm7, %v5384_v58, %v2871_v7  ;;  %v2873_v21 = vrot.slane %v2871_v7, 4  ;;  %v2885_v28 = vrot.slane %v5312_v17, 5  ;;  %v7139_v34 = vld [vmem:[%s6649_s27 + $0x10] sm:$0xf]  ;;  %v6507_v47 = vld [vmem:[%s6649_s27 + $0x18] sm:$0xf] }
  0x8e   : > { %5887 = vmatmul.mubr.msk.bf16.gmra.mrb[28].mxu1 %vm694_vm3, %v5115_v2  ;;  %6044 = vmatprep.mubr.msk.bf16.mxu0 %vm694_vm3, %v5400_v6  ;;  %v2879_v38 = vsel %vm6901_vm7, %v5385_v10, %v2878_v11  ;;  %v2880_v1 = vrot.slane %v2878_v11, 4  ;;  %v5133_v45 = vcombine.low %v6505_v44, %v7139_v34  ;;  %v7146_v9 = vld [vmem:[%s6649_s27 + $0x1c] sm:$0xf]  ;;  %v5386_v48 = vrot.slane %v5370_v23, 9  ;;  %v5318_v57 = vld [vmem:[%s6649_s27 + $0xac] sm:$0xf] }
  0x8f   : > { %5892 = vmatprep.mubr.msk.bf16.mxu1 %vm694_vm3, %v5132_v62  ;;  %v2875_v59 = vsel %vm6901_vm7, %v2873_v21, %v2874_v41  ;;  %v5134_v26 = vcombine.low %v6507_v47, %v7146_v9  ;;  %v2887_v51 = vrot.slane %v2885_v28, 4  ;;  %v2888_v62 = vrot.slane %v5313_v25, 5  ;;  %v6509_v54 = vld [vmem:[%s8460_s1 + $0x4] sm:$0x3]  ;;  %v5321_v2 = vld [vmem:[%s6649_s27 + $0xb8] sm:$0xf] }
  0x90   : > { %v5401_v49 = vcombine.low %v2872_v18, %v2875_v59  ;;  %v2882_v50 = vsel %vm6901_vm7, %v2880_v1, %v2881_v8  ;;  %v5387_v12 = vrot.slane %v5371_v20, 9  ;;  %v2892_v63 = vrot.slane %v5315_v31, 5  ;;  %v7161_v7 = vld [vmem:[%s8460_s1 + $0x6] sm:$0x3]  ;;  %v5319_v10 = vld [vmem:[%s6649_s27 + $0xb0] sm:$0x1] }
  0x91   : > { %v5402_v4 = vcombine.low %v2879_v38, %v2882_v50  ;;  %v2895_v58 = vrot.slane %v5316_v60, 5  ;;  %v1462_v61 = vsel %vm743_vm0, %v6509_v54, 0  ;;  %v2886_v41 = vsel %vm6901_vm7, %v5386_v48, %v2885_v28  ;;  %v5372_v11 = vld [vmem:[%s6649_s27 + $0xa8] sm:$0xe]  ;;  %v5322_v25 = vld [vmem:[%s6649_s27 + $0xbc] sm:$0x1] }
  0x92   : > { %v2894_v6 = vrot.slane %v2892_v63, 4  ;;  %v2889_v17 = vsel %vm6901_vm7, %v2887_v51, %v2888_v62  ;;  %v2899_v8 = vrot.slane %v5318_v57, 5  ;;  %v2893_v23 = vsel %vm6901_vm7, %v5387_v12, %v2892_v63  ;;  %v5373_v31 = vld [vmem:[%s6649_s27 + $0xb4] sm:$0xe]  ;;  %v6510_v38 = vld [vmem:[%s6649_s27 + $0x24] sm:$0xf] }
  0x93   : > { %v2906_v21 = vrot.slane %v5321_v2, 5  ;;  %v7182_v1 = vld [vmem:[%s6649_s27 + $0x28] sm:$0xf]  ;;  %v5403_v60 = vcombine.low %v2886_v41, %v2889_v17  ;;  %v5388_v44 = vrot.slane %v5372_v11, 9  ;;  %v2902_v59 = vrot.slane %v5319_v10, 5 }
  0x94   : > { %v2896_v18 = vsel %vm6901_vm7, %v2894_v6, %v2895_v58  ;;  %v5135_v28 = vcombine.low %v6510_v38, %v7182_v1  ;;  %v6512_v47 = vld [vmem:[%s6649_s27 + $0x30] sm:$0xf]  ;;  %v2909_v51 = vrot.slane %v5322_v25, 5  ;;  %v5324_v62 = vld [vmem:[%s6649_s27 + $0xc4] sm:$0xf]  ;;  %v2294_v25 = vshrl.u32 %v7109_v40, 16 }
  0x95   : > { %6045 = vmatmul.mubr.msk.bf16.gmra.mrb[16].mxu0 %vm694_vm3, %v5401_v49  ;;  %v5404_v20 = vcombine.low %v2893_v23, %v2896_v18  ;;  %v5389_v49 = vrot.slane %v5373_v31, 9  ;;  %v2908_v50 = vrot.slane %v2906_v21, 4  ;;  %v2900_v57 = vsel %vm6901_vm7, %v5388_v44, %v2899_v8  ;;  %v5374_v12 = vld [vmem:[%s6649_s27 + $0xc0] sm:$0xe]  ;;  %v6514_v41 = vld [vmem:[%s6649_s27 + $0x3c] sm:$0xf] }
  0x96   : > { %5893 = vmatmul.mubr.msk.bf16.vlgmr.msra.gmra.mrb[0].mxu1 %vm694_vm3, %v5133_v45  ;;  %6048 = vmatprep.mubr.msk.bf16.mxu0 %vm694_vm3, %v5402_v4  ;;  %v2901_v45 = vrot.slane %v2899_v8, 4  ;;  %v2913_v63 = vrot.slane %v5324_v62, 5  ;;  %v5390_v6 = vrot.slane %v5374_v12, 9  ;;  %v7207_v17 = vld [vmem:[%s6649_s27 + $0x40] sm:$0xf]  ;;  %v5138_v18 = vcombine.low %v6814_v27, %v6817_v36  ;;  %v6466_v62 = vld [vmem:[%s6649_s27 + $0x24] sm:$0xff]  }
  0x97   : > { %5925 = vmatpush3.bf16.msra.mxu1 %v1462_v61  ;;  %5896 = vmatprep.mubr.msk.bf16.mxu1 %vm694_vm3, %v5134_v26  ;;  %v7187_v26 = vld [vmem:[%s6649_s27 + $0x34] sm:$0xf]  ;;  %v2907_v58 = vsel %vm6901_vm7, %v5389_v49, %v2906_v21  ;;  %v2910_v54 = vsel %vm6901_vm7, %v2908_v50, %v2909_v51  ;;  %v5325_v61 = vld [vmem:[%s6649_s27 + $0xc8] sm:$0x1]  ;;  %v5137_v10 = vcombine.low %v6514_v41, %v7207_v17  ;;  %v2290_v21 = vshll.u32 %v7109_v40, 16 }
  0x98   : > { %6423 = vmatprep.subr.msk.bf16.mxu1 %vm743_vm0, %v7161_v7  ;;  %v5136_v48 = vcombine.low %v6512_v47, %v7187_v26  ;;  %v2903_v4 = vsel %vm6901_vm7, %v2901_v45, %v2902_v59  ;;  %v5406_v11 = vcombine.low %v2907_v58, %v2910_v54  ;;  %v2915_v8 = vrot.slane %v2913_v63, 4  ;;  %v1200_v45 = vld [vmem:[%s6649_s27] sm:$0xe]  ;;  %v1201_v59 = vld [vmem:[%s6649_s27 + $0xc] sm:$0xe] }
  0x99   : > { %v5405_v2 = vcombine.low %v2900_v57, %v2903_v4  ;;  %v2916_v23 = vrot.slane %v5325_v61, 5  ;;  %v2914_v31 = vsel %vm6901_vm7, %v5390_v6, %v2913_v63  ;;  %v7222_v27 = vrot.slane %v2290_v21, 5  ;;  %v1204_v41 = vld [vmem:[%s6649_s27 + $0x30] sm:$0xe] }
  0x9a   : > { %v2296_v36 = vrot.slane %v2294_v25, 4  ;;  %v5140_v44 = vcombine.low %v6874_v19, %v6880_v35  ;;  %v2300_v47 = vshll.u32 %v7112_v55, 16  ;;  %v5164_v19 = vrot.slane %v1200_v45, 9 }
  0x9b   : > { %v2917_v38 = vsel %vm6901_vm7, %v2915_v8, %v2916_v23  ;;  %8481 = vst [vmem:[#allocation3_spill] sm:$0xff] %v7222_v27  ;;  %v5165_v35 = vrot.slane %v1201_v59, 9  ;;  %v1267_v4 = vrot.slane %v7146_v9, 5  ;;  %v1274_v12 = vrot.slane %v7182_v1, 5  ;;  %v1205_v8 = vld [vmem:[%s6649_s27 + $0x3c] sm:$0xe] }
  0x9c   : > { %v5407_v40 = vcombine.low %v2914_v31, %v2917_v38  ;;  %v2297_v49 = vor.u32 %v2296_v36, %v7222_v27  ;;  %v7242_v51 = vrot.slane %v2300_v47, 5  ;;  %v5141_v58 = vcombine.low %v6895_v0, %v6908_v29  ;;  %v1206_v31 = vld [vmem:[%s6649_s27 + $0x48] sm:$0xe]  ;;  %v6520_v59 = vld [vmem:[%s6649_s27 + $0x38] sm:$0x1] }
  0x9d   : > { %6049 = vmatmul.mubr.msk.bf16.gmra.mrb[20].mxu0 %vm694_vm3, %v5403_v60  ;;  %v5139_v60 = vcombine.low %v6843_v24, %v6849_v37  ;;  %v6517_v24 = vld [vmem:[%s6649_s27 + $0x14] sm:$0x1]  ;;  %v4102_v54 = vsel %vm743_vm0, %v6966_v22, 0  ;;  %v5142_v61 = vcombine.low %v6927_v53, %v6934_v16  ;;  %v5143_v6 = vcombine.low %v6953_v39, %v6961_v43  ;;  %v6518_v16 = vld [vmem:[%s6649_s27 + $0x20] sm:$0x1] }
  0x9e   : > { %5897 = vmatmul.mubr.msk.bf16.gmra.mrb[4].mxu1 %vm694_vm3, %v5135_v28  ;;  %6052 = vmatprep.mubr.msk.bf16.mxu0 %vm694_vm3, %v5404_v20  ;;  %v1260_v28 = vrot.slane %v7139_v34, 5  ;;  %v6464_v20 = vld [vmem:[%s6649_s27 + $0x18] sm:$0xff]   ;;  %v6516_v34 = vld [vmem:[%s6649_s27 + $0x8] sm:$0x1]  ;;  %v1263_v37 = vrot.slane %v6517_v24, 5  ;;  %8482 = vst [vmem:[#allocation4_spill] sm:$0xff] %v7242_v51  ;;  %v5144_v9 = vcombine.low %v6985_v5, %v6997_v30 }
  0x9f   : > { %5900 = vmatprep.mubr.msk.bf16.mxu1 %vm694_vm3, %v5136_v48  ;;  %v1253_v48 = vrot.slane %v7105_v15, 5  ;;  %v1256_v50 = vrot.slane %v6516_v34, 5  ;;  %v1202_v15 = vld [vmem:[%s6649_s27 + $0x18] sm:$0xe]  ;;  %v7247_v63 = vrot.slane %v2297_v49, 4  ;;  %v1270_v22 = vrot.slane %v6518_v16, 5 }
  0xa0   : > { %v1262_v55 = vrot.slane %v1260_v28, 4  ;;  %v5166_v1 = vrot.slane %v1202_v15, 9  ;;  %v7269_v29 = vsel %vm6901_vm7, %v5165_v35, %v1260_v28  ;;  %v1276_v25 = vrot.slane %v1274_v12, 4  ;;  %v5489_v24 = vld [vmem:[%s6649_s27 + $0x18] sm:$0xf] }
  0xa1   : > { %v1255_v57 = vrot.slane %v1253_v48, 4  ;;  %8483 = vst [vmem:[#allocation5_spill] sm:$0xff] %v7247_v63  ;;  %v7265_v0 = vsel %vm6901_vm7, %v5164_v19, %v1253_v48  ;;  %v1284_v47 = vrot.slane %v6520_v59, 5  ;;  %v7306_v49 = vsel %vm743_vm0, %v7161_v7, 0  ;;  %v5490_v7 = vld [vmem:[%s6649_s27 + $0x1c] sm:$0xf] }
  0xa2   : > { %v7273_v53 = vsel %vm6901_vm7, %v1262_v55, %v1263_v37  ;;  %v7310_v34 = vsel %vm6901_vm7, %v5166_v1, %v1267_v4  ;;  %v6470_v37 = vld [vmem:[%s6649_s27 + $0x3c] sm:$0xff]   ;;  %v5169_v35 = vrot.slane %v1205_v8, 9  ;;  %v6521_v55 = vld [vmem:[%s6649_s27 + $0x44] sm:$0x1]  ;;  %v3623_v8 = vshll.u32 %v5489_v24, 16 }
  0xa3   : > { %v7284_v23 = vsel %vm6901_vm7, %v1255_v57, %v1256_v50  ;;  %v1207_v50 = vld [vmem:[%s6649_s27 + $0x54] sm:$0xe]  ;;  %v1291_v15 = vrot.slane %v6521_v55, 5  ;;  %v5493_v39 = vld [vmem:[%s6649_s27 + $0x28] sm:$0xf] }
  0xa4   : > { %v6528_v5 = vld [vmem:[%s6649_s27 + $0x70] sm:$0xf] }
  0xa5   : > { %6053 = vmatmul.mubr.msk.bf16.gmra.mrb[24].mxu0 %vm694_vm3, %v5405_v2  ;;  %v1203_v2 = vld [vmem:[%s6649_s27 + $0x24] sm:$0xe]  ;;  %v1316_v30 = vrot.slane %v6528_v5, 5 }
  0xa6   : > { %5901 = vmatmul.mubr.msk.bf16.gmra.mrb[8].mxu1 %vm694_vm3, %v5137_v10  ;;  %6056 = vmatprep.mubr.msk.bf16.mxu0 %vm694_vm3, %v5406_v11  ;;  %v1281_v10 = vrot.slane %v7187_v26, 5  ;;  %v6468_v11 = vld [vmem:[%s6649_s27 + $0x30] sm:$0xff]   ;;  %v5167_v21 = vrot.slane %v1203_v2, 9 }
  0xa7   : > { %5904 = vmatprep.mubr.msk.bf16.mxu1 %vm694_vm3, %v5138_v18  ;;  %v7280_v26 = vld [vmem:[%s8460_s1 + $0x10] sm:$0x3]  ;;  %v1269_v18 = vrot.slane %v1267_v4, 4  ;;  %v1318_v48 = vrot.slane %v1316_v30, 4 }
  0xa8   : > { %v1283_v45 = vrot.slane %v1281_v10, 4  ;;  %v7317_v19 = vsel %vm6901_vm7, %v5167_v21, %v1274_v12  ;;  %v3633_v21 = vshrl.u32 %v5490_v7, 16 }
  0xa9   : > { %v7326_v4 = vsel %vm6901_vm7, %v1269_v18, %v1270_v22  ;;  %v3620_v22 = vshrl.u32 %v5489_v24, 16  ;;  %v3629_v18 = vshll.u32 %v5490_v7, 16  ;;  %v5492_v24 = vld [vmem:[%s6649_s27 + $0x24] sm:$0xf] }
  0xaa   : > { %v7339_v1 = vsel %vm6901_vm7, %v1283_v45, %v1284_v47 }
  0xab   : > { %v3622_v43 = vrot.slane %v3620_v22, 4  ;;  %v7381_v7 = vrot.slane %v3629_v18, 5  ;;  %v3647_v22 = vshll.u32 %v5492_v24, 16  ;;  %v3657_v18 = vshrl.u32 %v5493_v39, 16 }
  0xad   : > { %6057 = vmatmul.mubr.msk.bf16.gmra.mrb[28].mxu0 %vm694_vm3, %v5407_v40  ;;  %v6519_v40 = vld [vmem:[%s6649_s27 + $0x2c] sm:$0x1]  ;;  %v3649_v27 = vrot.slane %v3647_v22, 5 }
  0xae   : > { %5905 = vmatmul.mubr.msk.bf16.gmra.mrb[12].mxu1 %vm694_vm3, %v5139_v60  ;;  %6062 = vmatprep.mubr.msk.bf16.mxu0 %vm694_vm3, %v6464_v20  ;;  %v1277_v28 = vrot.slane %v6519_v40, 5  ;;  %v1288_v60 = vrot.slane %v7207_v17, 5  ;;  %v6524_v40 = vld [vmem:[%s6649_s27 + $0x50] sm:$0x1]  ;;  %v6529_v17 = vld [vmem:[%s6649_s27 + $0x74] sm:$0x1] }
  0xaf   : > { %5908 = vmatprep.mubr.msk.bf16.mxu1 %vm694_vm3, %v5140_v44  ;;  %v5168_v44 = vrot.slane %v1204_v41, 9  ;;  %v5171_v41 = vrot.slane %v1207_v50, 9  ;;  %v1208_v50 = vld [vmem:[%s6649_s27 + $0x60] sm:$0xe]  ;;  %v5494_v20 = vld [vmem:[%s6649_s27 + $0x2c] sm:$0x1] }
  0xb0   : > { %v1290_v12 = vrot.slane %v1288_v60, 4  ;;  %v7352_v45 = vsel %vm6901_vm7, %v5169_v35, %v1288_v60  ;;  %v6525_v35 = vld [vmem:[%s6649_s27 + $0x5c] sm:$0x1] }
  0xb1   : > { %v7335_v2 = vsel %vm6901_vm7, %v5168_v44, %v1281_v10  ;;  %v1305_v55 = vrot.slane %v6525_v35, 5  ;;  %v1209_v35 = vld [vmem:[%s6649_s27 + $0x6c] sm:$0xe] }
  0xb2   : > { %v7356_v59 = vsel %vm6901_vm7, %v1290_v12, %v1291_v15  ;;  %v6526_v15 = vld [vmem:[%s6649_s27 + $0x64] sm:$0xf]  ;;  %v3635_v12 = vrot.slane %v3633_v21, 4  ;;  %v5173_v5 = vrot.slane %v1209_v35, 9 }
  0xb3   : > { %v6476_v21 = vld [vmem:[%s6649_s27 + $0x60] sm:$0xff]  }
  0xb5   : > { %6063 = vmatmul.mubr.msk.bf16.vlgmr.msra.gmra.mrb[0].mxu0 %vm694_vm3, %v6466_v62  ;;  %v6522_v62 = vld [vmem:[%s6649_s27 + $0x4c] sm:$0xf] }
  0xb6   : > { %5909 = vmatmul.mubr.msk.bf16.gmra.mrb[16].mxu1 %vm694_vm3, %v5141_v58  ;;  %6095 = vmatpush3.bf16.msra.mxu0 %v4102_v54  ;;  %v1295_v57 = vrot.slane %v6522_v62, 5  ;;  %v7330_v58 = vsel %vm6901_vm7, %v1276_v25, %v1277_v28  ;;  %v5170_v54 = vrot.slane %v1206_v31, 9  ;;  %v1298_v28 = vrot.slane %v6524_v40, 5 }
  0xb7   : > { %5912 = vmatprep.mubr.msk.bf16.mxu1 %vm694_vm3, %v5142_v61  ;;  %6066 = vmatprep.mubr.msk.bf16.mxu0 %vm694_vm3, %v6468_v11  ;;  %v6472_v61 = vld [vmem:[%s6649_s27 + $0x48] sm:$0xff]   ;;  %v6523_v11 = vld [vmem:[%s6649_s27 + $0x58] sm:$0xf]  ;;  %v1309_v62 = vrot.slane %v6526_v15, 5  ;;  %v5496_v15 = vld [vmem:[%s6649_s27 + $0x34] sm:$0xf] }
  0xb8   : > { %6429 = vmatprep.subr.msk.bf16.mxu0 %vm743_vm0, %v7280_v26  ;;  %v1302_v16 = vrot.slane %v6523_v11, 5  ;;  %v1297_v31 = vrot.slane %v1295_v57, 4  ;;  %v7360_v47 = vsel %vm6901_vm7, %v5170_v54, %v1295_v57  ;;  %v5491_v57 = vld [vmem:[%s6649_s27 + $0x20] sm:$0x1]  ;;  %v5495_v54 = vld [vmem:[%s6649_s27 + $0x30] sm:$0xf] }
  0xb9   : > { %v5172_v11 = vrot.slane %v1208_v50, 9  ;;  %v3671_v50 = vshll.u32 %v5495_v54, 16  ;;  %v3639_v25 = vshll.u32 %v5491_v57, 16  ;;  %v3677_v36 = vshll.u32 %v5496_v15, 16 }
  0xba   : > { %v7371_v60 = vsel %vm6901_vm7, %v5171_v41, %v1302_v16  ;;  %v7387_v41 = vsel %vm6901_vm7, %v1297_v31, %v1298_v28  ;;  %v1311_v31 = vrot.slane %v1309_v62, 4  ;;  %v3668_v28 = vshrl.u32 %v5495_v54, 16 }
  0xbb   : > { %v7429_v35 = vrot.slane %v3677_v36, 5 }
  0xbd   : > { %6067 = vmatmul.mubr.msk.bf16.gmra.mrb[4].mxu0 %vm694_vm3, %v6470_v37  ;;  %v1304_v37 = vrot.slane %v1302_v16, 4  ;;  %v6527_v16 = vld [vmem:[%s6649_s27 + $0x68] sm:$0x1] }
  0xbe   : > { %5913 = vmatmul.mubr.msk.bf16.gmra.mrb[20].mxu1 %vm694_vm3, %v5143_v6  ;;  %6070 = vmatprep.mubr.msk.bf16.mxu0 %vm694_vm3, %v6472_v61  ;;  %v3625_v6 = vrot.slane %v3623_v8, 5  ;;  %v6474_v61 = vld [vmem:[%s6649_s27 + $0x54] sm:$0xff]   ;;  %v1312_v40 = vrot.slane %v6527_v16, 5  ;;  %v3653_v8 = vshll.u32 %v5493_v39, 16  ;;  %v3636_v16 = vor.u32 %v3635_v12, %v7381_v7 }
  0xbf   : > { %5916 = vmatprep.mubr.msk.bf16.mxu1 %vm694_vm3, %v5144_v9  ;;  %v3644_v9 = vshrl.u32 %v5492_v24, 16  ;;  %v7396_v44 = vsel %vm6901_vm7, %v1304_v37, %v1305_v55  ;;  %v1319_v24 = vrot.slane %v6529_v17, 5  ;;  %v3681_v39 = vshrl.u32 %v5496_v15, 16 }
  0xc0   : > { %v3626_v10 = vor.u32 %v3625_v6, %v3622_v43  ;;  %v7402_v37 = vrot.slane %v3653_v8, 5  ;;  %v3659_v55 = vrot.slane %v3657_v18, 4  ;;  %v8484_v43 = vcombine.low %v7006_v52, %v7017_v46  ;;  %v6530_v8 = vld [vmem:[%s6649_s27 + $0x7c] sm:$0xf]  ;;  %v7438_v18 = vld [vmem:[%s6649_s27 + $0x38] sm:$0x1] }
  0xc1   : > { %v3646_v38 = vrot.slane %v3644_v9, 4  ;;  %v7411_v17 = vsel %vm6901_vm7, %v5172_v11, %v1309_v62  ;;  %v7415_v57 = vsel %vm6901_vm7, %v1311_v31, %v1312_v40  ;;  %v3670_v6 = vrot.slane %v3668_v28, 4  ;;  %8486 = vst [vmem:[#allocation6_spill] sm:$0xff] %v7438_v18 }
  0xc2   : > { %v3673_v12 = vrot.slane %v3671_v50, 5  ;;  %v8485_v52 = vcombine.low %v7038_v33, %v7043_v56  ;;  %v3627_v46 = vrot.slane %v3626_v10, 4  ;;  %v3637_v54 = vrot.slane %v3636_v16, 4  ;;  %v6478_v33 = vld [vmem:[%s6649_s27 + $0x6c] sm:$0xff]   ;;  %v1211_v16 = vld [vmem:[%s6649_s27 + $0x84] sm:$0xe] }
  0xc3   : > { %v3663_v62 = vshll.u32 %v5494_v20, 16  ;;  %v7423_v11 = vsel %vm6901_vm7, %v5173_v5, %v1316_v30  ;;  %v7427_v40 = vsel %vm6901_vm7, %v1318_v48, %v1319_v24  ;;  %v3683_v9 = vrot.slane %v3681_v39, 4  ;;  %v6479_v48 = vld [vmem:[%s6649_s27 + $0x78] sm:$0xff]  }
  0xc4   : > { %v3650_v10 = vor.u32 %v3649_v27, %v3646_v38  ;;  %v3660_v20 = vor.u32 %v3659_v55, %v7402_v37  ;;  %v1323_v30 = vrot.slane %v6530_v8, 5  ;;  %v3674_v38 = vor.u32 %v3673_v12, %v3670_v6  ;;  %v5498_v5 = vld [vmem:[%s6649_s27 + $0x3c] sm:$0xf] }
  0xc5   : > { %6071 = vmatmul.mubr.msk.bf16.gmra.mrb[8].mxu0 %vm694_vm3, %v6474_v61  ;;  %v3641_v61 = vrot.slane %v3639_v25, 5  ;;  %v1210_v25 = vld [vmem:[%s6649_s27 + $0x78] sm:$0xe]  ;;  %v7454_v50 = vrot.slane %v3663_v62, 5  ;;  %v3684_v39 = vor.u32 %v3683_v9, %v7429_v35  ;;  %v3687_v55 = vshll.u32 %v7438_v18, 16 }
  0xc6   : > { %5917 = vmatmul.mubr.msk.bf16.gmra.mrb[24].mxu1 %vm694_vm3, %v8484_v43  ;;  %6074 = vmatprep.mubr.msk.bf16.mxu0 %vm694_vm3, %v6476_v21  ;;  %v3632_v21 = vsel %vm6675_vm4, %v3627_v46, %v7381_v7  ;;  %v5174_v24 = vrot.slane %v1210_v25, 9  ;;  %v6531_v43 = vld [vmem:[%s6649_s27 + $0x88] sm:$0xf]  ;;  %v7462_v7 = vld [vmem:[%s6649_s27 + $0x40] sm:$0xf]  ;;  %v3651_v12 = vrot.slane %v3650_v10, 4  ;;  %v8488_v62 = vcombine.low %v7058_v14, %v7067_v42 }
  0xc7   : > { %5920 = vmatprep.mubr.msk.bf16.mxu1 %vm694_vm3, %v8485_v52  ;;  %v3642_v31 = vsel %vm6675_vm4, %v3637_v54, %v3641_v61  ;;  %v1330_v6 = vrot.slane %v6531_v43, 5  ;;  %8487 = vst [vmem:[#allocation7_spill] sm:$0xff] %v7462_v7  ;;  %v3661_v52 = vrot.slane %v3660_v20, 4  ;;  %v1325_v46 = vrot.slane %v1323_v30, 4  ;;  %v6532_v54 = vld [vmem:[%s6649_s27 + $0x80] sm:$0x1] }
  0xc8   : > { %v1326_v61 = vrot.slane %v6532_v54, 5  ;;  %v3675_v9 = vrot.slane %v3674_v38, 4  ;;  %v5175_v25 = vrot.slane %v1211_v16, 9  ;;  %v3692_v8 = vshrl.u32 %v5498_v5, 16  ;;  %v6480_v10 = vld [vmem:[%s6649_s27 + $0x84] sm:$0xff]  }
  0xc9   : > { %v3695_v43 = vshll.u32 %v5498_v5, 16  ;;  %v7476_v20 = vcombine.low %v3632_v21, %v3642_v31  ;;  %v7480_v14 = vsel %vm743_vm0, %v7280_v26, 0  ;;  %v3705_v38 = vshrl.u32 %v7462_v7, 16  ;;  %v6481_v21 = vld [vmem:[%s6649_s27 + $0x90] sm:$0xff]   ;;  %v6537_v18 = vld [vmem:[%s6649_s27 + $0xa0] sm:$0xf] }
  0xca   : > { %v3685_v16 = vrot.slane %v3684_v39, 4  ;;  %v3689_v5 = vrot.slane %v3687_v55, 5  ;;  %v1332_v54 = vrot.slane %v1330_v6, 4  ;;  %v3656_v31 = vsel %vm6675_vm4, %v3651_v12, %v7402_v37 }
  0xcb   : > { %v3666_v26 = vsel %vm6675_vm4, %v3661_v52, %v7454_v50  ;;  %v7495_v39 = vsel %vm6901_vm7, %v5174_v24, %v1323_v30  ;;  %v7499_v55 = vsel %vm6901_vm7, %v1325_v46, %v1326_v61  ;;  %v3680_v37 = vsel %vm6675_vm4, %v3675_v9, %v7429_v35  ;;  %v5504_v30 = vld [vmem:[%s6649_s27 + $0x54] sm:$0xf]  ;;  %v7516_v24 = vld [vmem:[%s6649_s27 + $0x58] sm:$0xf]  ;;  %v7521_v61 = vld [vmem:[%s6649_s27 + $0x90] sm:$0xe] }
  0xcc   : > { %v7512_v12 = vsel %vm6901_vm7, %v5175_v25, %v1330_v6  ;;  %v3694_v50 = vrot.slane %v3692_v8, 4  ;;  %v3697_v52 = vrot.slane %v3695_v43, 5  ;;  %v3707_v46 = vrot.slane %v3705_v38, 4 }
  0xcd   : > { %6075 = vmatmul.mubr.msk.bf16.gmra.mrb[12].mxu0 %vm694_vm3, %v6478_v33  ;;  %v8489_v33 = vcombine.low %v7265_v0, %v7284_v23  ;;  %v6533_v0 = vld [vmem:[%s6649_s27 + $0x8c] sm:$0x1]  ;;  %v3690_v36 = vsel %vm6675_vm4, %v3685_v16, %v3689_v5  ;;  %v3740_v25 = vshrl.u32 %v5504_v30, 16  ;;  %v3743_v8 = vshll.u32 %v5504_v30, 16 }
  0xce   : > { %5921 = vmatmul.mubr.msk.bf16.gmra.mrb[28].mxu1 %vm694_vm3, %v8488_v62  ;;  %6078 = vmatprep.mubr.msk.bf16.mxu0 %vm694_vm3, %v6479_v48  ;;  %v3701_v48 = vshll.u32 %v7462_v7, 16  ;;  %v1333_v23 = vrot.slane %v6533_v0, 5  ;;  %v5501_v62 = vld [vmem:[%s6649_s27 + $0x48] sm:$0xf]  ;;  %v7505_v0 = vld [vmem:[%s6649_s27 + $0x4c] sm:$0xf]  ;;  %v8491_v38 = vcombine.low %v7269_v29, %v7273_v53  ;;  %v7539_v16 = vcombine.low %v3656_v31, %v3666_v26 }
  0xcf   : > { %5926 = vmatprep.mubr.msk.bf16.mxu1 %vm694_vm3, %v8489_v33  ;;  %v7502_v33 = vld [vmem:[%s6649_s27 + $0x44] sm:$0x1]  ;;  %v3716_v27 = vshrl.u32 %v5501_v62, 16  ;;  %v3719_v15 = vshll.u32 %v5501_v62, 16  ;;  %v3725_v6 = vshll.u32 %v7505_v0, 16  ;;  %v3729_v9 = vshrl.u32 %v7505_v0, 16 }
  0xd0   : > { %8490 = vst [vmem:[#allocation8_spill] sm:$0xff] %v7502_v33  ;;  %v7518_v28 = vrot.slane %v3701_v48, 5  ;;  %v7527_v35 = vsel %vm6901_vm7, %v1332_v54, %v1333_v23  ;;  %v3749_v43 = vshll.u32 %v7516_v24, 16  ;;  %v3753_v48 = vshrl.u32 %v7516_v24, 16  ;;  %v5507_v31 = vld [vmem:[%s6649_s27 + $0x60] sm:$0xf] }
  0xd1   : > { %v3711_v5 = vshll.u32 %v7502_v33, 16  ;;  %v5176_v54 = vrot.slane %v7521_v61, 9  ;;  %v8492_v23 = vcombine.low %v7310_v34, %v7326_v4  ;;  %v7550_v29 = vcombine.low %v3680_v37, %v3690_v36  ;;  %v6482_v26 = vld [vmem:[%s6649_s27 + $0x9c] sm:$0xff]   ;;  %v6483_v30 = vld [vmem:[%s6649_s27 + $0xa8] sm:$0xff]  }
  0xd2   : > { %v3698_v53 = vor.u32 %v3697_v52, %v3694_v50  ;;  %v3718_v62 = vrot.slane %v3716_v27, 4  ;;  %v7561_v34 = vrot.slane %v3725_v6, 5  ;;  %v3731_v4 = vrot.slane %v3729_v9, 4  ;;  %v6534_v36 = vld [vmem:[%s8460_s1 + $0x8] sm:$0x3] }
  0xd3   : > { %v3742_v27 = vrot.slane %v3740_v25, 4  ;;  %v3745_v37 = vrot.slane %v3743_v8, 5  ;;  %v7570_v50 = vrot.slane %v3749_v43, 5  ;;  %v3755_v52 = vrot.slane %v3753_v48, 4  ;;  %v6535_v6 = vld [vmem:[%s6649_s27 + $0x94] sm:$0xf] }
  0xd4   : > { %v7576_v9 = vld [vmem:[%s6649_s27 + $0x64] sm:$0xf]  ;;  %v3764_v61 = vshrl.u32 %v5507_v31, 16  ;;  %v7578_v22 = vrot.slane %v3698_v53, 4  ;;  %v1344_v25 = vrot.slane %v6537_v18, 5  ;;  %v3732_v43 = vor.u32 %v3731_v4, %v7561_v34 }
  0xd5   : > { %6079 = vmatmul.mubr.msk.bf16.gmra.mrb[16].mxu0 %vm694_vm3, %v6480_v10  ;;  %8493 = vst [vmem:[#allocation9_spill] sm:$0xff] %v7576_v9  ;;  %v3767_v10 = vshll.u32 %v5507_v31, 16  ;;  %v3746_v31 = vor.u32 %v3745_v37, %v3742_v27  ;;  %v3756_v53 = vor.u32 %v3755_v52, %v7570_v50  ;;  %v8494_v18 = vcombine.low %v7317_v19, %v7330_v58  ;;  %v6484_v37 = vld [vmem:[%s6649_s27 + $0xb4] sm:$0xff]  }
  0xd6   : > { %5927 = vmatmul.mubr.msk.bf16.vlgmr.msra.gmra.mrb[0].mxu1 %vm694_vm3, %v8491_v38  ;;  %6082 = vmatprep.mubr.msk.bf16.mxu0 %vm694_vm3, %v6481_v21  ;;  %v3721_v21 = vrot.slane %v3719_v15, 5  ;;  %v7559_v38 = vld [vmem:[%s6649_s27 + $0x50] sm:$0x1]  ;;  %v7568_v15 = vld [vmem:[%s6649_s27 + $0x5c] sm:$0x1]  ;;  %v8495_v27 = vcombine.low %v7335_v2, %v7339_v1  ;;  %v1346_v52 = vrot.slane %v1344_v25, 4 }
  0xd7   : > { %5959 = vmatpush3.bf16.msra.mxu1 %v7306_v49  ;;  %5930 = vmatprep.mubr.msk.bf16.mxu1 %vm694_vm3, %v8492_v23  ;;  %v3708_v49 = vor.u32 %v3707_v46, %v7518_v28  ;;  %v7572_v46 = vrot.slane %v3711_v5, 5  ;;  %v1337_v23 = vrot.slane %v6535_v6, 5  ;;  %v3735_v48 = vshll.u32 %v7559_v38, 16  ;;  %v1213_v5 = vld [vmem:[%s6649_s27 + $0x9c] sm:$0xe] }
  0xd8   : > { %6425 = vmatprep.subr.msk.bf16.mxu1 %vm743_vm0, %v6534_v36  ;;  %v6536_v36 = vld [vmem:[%s6649_s27 + $0x98] sm:$0x1]  ;;  %v3722_v7 = vor.u32 %v3721_v21, %v3718_v62  ;;  %v3759_v6 = vshll.u32 %v7568_v15, 16  ;;  %v3777_v62 = vshrl.u32 %v7576_v9, 16  ;;  %v3769_v4 = vrot.slane %v3767_v10, 5 }
  0xd9   : > { %v1340_v33 = vrot.slane %v6536_v36, 5  ;;  %v3709_v8 = vrot.slane %v3708_v49, 4  ;;  %v3773_v36 = vshll.u32 %v7576_v9, 16  ;;  %v7597_v21 = vsel %vm6901_vm7, %v5176_v54, %v1337_v23  ;;  %v7608_v2 = vld [vmem:[%s6649_s27 + $0x68] sm:$0x1] }
  0xda   : > { %v3766_v49 = vrot.slane %v3764_v61, 4  ;;  %v3723_v19 = vrot.slane %v3722_v7, 4  ;;  %v5177_v58 = vrot.slane %v1213_v5, 9  ;;  %v3733_v3 = vrot.slane %v3732_v43, 4  ;;  %8496 = vst [vmem:[#allocation10_spill] sm:$0xff] %v7608_v2  ;;  %v6485_v5 = vld [vmem:[%s6649_s27 + $0xc0] sm:$0xff]  }
  0xdb   : > { %v3737_v54 = vrot.slane %v3735_v48, 5  ;;  %v3761_v63 = vrot.slane %v3759_v6, 5  ;;  %v1351_v61 = vrot.slane %v7043_v56, 5  ;;  %v3747_v10 = vrot.slane %v3746_v31, 4  ;;  %v1215_v31 = vld [vmem:[%s6649_s27 + $0xb4] sm:$0xe] }
  0xdc   : > { %v3757_v51 = vrot.slane %v3756_v53, 4  ;;  %v7610_v1 = vrot.slane %v3773_v36, 5  ;;  %v3779_v7 = vrot.slane %v3777_v62, 4  ;;  %v3704_v43 = vsel %vm6675_vm4, %v7578_v22, %v7518_v28  ;;  %v6539_v62 = vld [vmem:[%s6649_s27 + $0xb0] sm:$0x1] }
  0xdd   : > { %6083 = vmatmul.mubr.msk.bf16.gmra.mrb[20].mxu0 %vm694_vm3, %v6482_v26  ;;  %v1339_v26 = vrot.slane %v1337_v23, 4  ;;  %v1214_v23 = vld [vmem:[%s6649_s27 + $0xa8] sm:$0xe]  ;;  %v3714_v48 = vsel %vm6675_vm4, %v3709_v8, %v7572_v46  ;;  %v3770_v6 = vor.u32 %v3769_v4, %v3766_v49  ;;  %v3728_v53 = vsel %vm6675_vm4, %v3723_v19, %v7561_v34  ;;  %v5510_v46 = vld [vmem:[%s6649_s27 + $0x6c] sm:$0xf] }
  0xde   : > { %5931 = vmatmul.mubr.msk.bf16.gmra.mrb[4].mxu1 %vm694_vm3, %v8494_v18  ;;  %6086 = vmatprep.mubr.msk.bf16.mxu0 %vm694_vm3, %v6483_v30  ;;  %v6538_v18 = vld [vmem:[%s6649_s27 + $0xa4] sm:$0x1]  ;;  %v7630_v36 = vsel %vm6901_vm7, %v5177_v58, %v1344_v25  ;;  %v5178_v28 = vrot.slane %v1214_v23, 9  ;;  %v1353_v8 = vrot.slane %v1351_v61, 4  ;;  %v3783_v49 = vshll.u32 %v7608_v2, 16 }
  0xdf   : > { %5934 = vmatprep.mubr.msk.bf16.mxu1 %vm694_vm3, %v8495_v27  ;;  %v1347_v30 = vrot.slane %v6538_v18, 5  ;;  %v7622_v56 = vsel %vm6901_vm7, %v1339_v26, %v1340_v33  ;;  %v3738_v33 = vsel %vm6675_vm4, %v3733_v3, %v3737_v54  ;;  %v1354_v26 = vrot.slane %v6539_v62, 5  ;;  %v5513_v18 = vld [vmem:[%s6649_s27 + $0x78] sm:$0xf]  ;;  %v7685_v54 = vld [vmem:[%s6649_s27 + $0xbc] sm:$0x1] }
  0xe0   : > { %v3752_v34 = vsel %vm6675_vm4, %v3747_v10, %v7570_v50  ;;  %v3762_v25 = vsel %vm6675_vm4, %v3757_v51, %v3761_v63  ;;  %v3780_v4 = vor.u32 %v3779_v7, %v7610_v1  ;;  %v5179_v27 = vrot.slane %v1215_v31, 9  ;;  %v7659_v51 = vld [vmem:[%s6649_s27 + $0x70] sm:$0xf]  ;;  %v7689_v10 = vld [vmem:[%s6649_s27 + $0x7c] sm:$0xf] }
  0xe1   : > { %v7634_v22 = vsel %vm6901_vm7, %v1346_v52, %v1347_v30  ;;  %v8498_v3 = vcombine.low %v7352_v45, %v7356_v59  ;;  %v7655_v19 = vrot.slane %v3770_v6, 4  ;;  %v1358_v50 = vrot.slane %v7067_v42, 5  ;;  %8499 = vst [vmem:[#allocation12_spill] sm:$0xff] %v7659_v51  ;;  %8501 = vst [vmem:[#allocation13_spill] sm:$0xff] %v7689_v10  ;;  %v5516_v7 = vld [vmem:[%s6649_s27 + $0x84] sm:$0xf] }
  0xe2   : > { %8497 = vst [vmem:[#allocation11_spill] sm:$0xff] %v7634_v22  ;;  %v3788_v63 = vshrl.u32 %v5510_v46, 16  ;;  %v8500_v45 = vcombine.low %v7360_v47, %v7387_v41  ;;  %v7667_v58 = vcombine.low %v3728_v53, %v3738_v33  ;;  %v7673_v42 = vsel %vm6901_vm7, %v5178_v28, %v1351_v61  ;;  %v6486_v61 = vld [vmem:[%s6649_s27 + $0xcc] sm:$0xff]   ;;  %v7701_v31 = vld [vmem:[%s6649_s27 + $0x88] sm:$0xf] }
  0xe3   : > { %v7676_v30 = vcombine.low %v3752_v34, %v3762_v25  ;;  %v7680_v47 = vsel %vm6901_vm7, %v1353_v8, %v1354_v26  ;;  %v7682_v41 = vrot.slane %v3783_v49, 5  ;;  %v3797_v6 = vshll.u32 %v7659_v51, 16  ;;  %8502 = vst [vmem:[#allocation14_spill] sm:$0xff] %v7701_v31  ;;  %v5519_v62 = vld [vmem:[%s6649_s27 + $0x90] sm:$0xf] }
  0xe4   : > { %v7707_v28 = vrot.slane %v1358_v50, 4  ;;  %v7709_v33 = vrot.slane %v3788_v63, 4  ;;  %v3801_v8 = vshrl.u32 %v7659_v51, 16  ;;  %v3812_v26 = vshrl.u32 %v5513_v18, 16  ;;  %v7716_v25 = vld [vmem:[%s6649_s27 + $0x94] sm:$0xf] }
  0xe5   : > { %6087 = vmatmul.mubr.msk.bf16.gmra.mrb[24].mxu0 %vm694_vm3, %v6484_v37  ;;  %v7653_v37 = vcombine.low %v3704_v43, %v3714_v48  ;;  %v7697_v43 = vsel %vm6901_vm7, %v5179_v27, %v1358_v50  ;;  %v3791_v48 = vshll.u32 %v5510_v46, 16  ;;  %v3815_v49 = vshll.u32 %v5513_v18, 16  ;;  %8503 = vst [vmem:[#allocation15_spill] sm:$0xff] %v7716_v25  ;;  %v7754_v2 = vld [vmem:[%s6649_s27 + $0x8c] sm:$0x1] }
  0xe6   : > { %5935 = vmatmul.mubr.msk.bf16.gmra.mrb[8].mxu1 %vm694_vm3, %v8498_v3  ;;  %6090 = vmatprep.mubr.msk.bf16.mxu0 %vm694_vm3, %v6485_v5  ;;  %v7693_v5 = vrot.slane %v3780_v4, 4  ;;  %v3821_v46 = vshll.u32 %v7689_v10, 16  ;;  %v3825_v34 = vshrl.u32 %v7689_v10, 16  ;;  %v3836_v4 = vshrl.u32 %v5516_v7, 16 }
  0xe7   : > { %5938 = vmatprep.mubr.msk.bf16.mxu1 %vm694_vm3, %v8500_v45  ;;  %v3839_v27 = vshll.u32 %v5516_v7, 16  ;;  %v3845_v3 = vshll.u32 %v7701_v31, 16  ;;  %v3849_v50 = vshrl.u32 %v7701_v31, 16  ;;  %v7726_v45 = vld [vmem:[%s6649_s27 + $0x74] sm:$0x1]  ;;  %v3793_v18 = vrot.slane %v3791_v48, 5 }
  0xe8   : > { %v3860_v52 = vshrl.u32 %v5519_v62, 16  ;;  %v3863_v53 = vshll.u32 %v5519_v62, 16  ;;  %v8504_v7 = vcombine.low %v7371_v60, %v7396_v44  ;;  %v3803_v59 = vrot.slane %v3801_v8, 4  ;;  %v5522_v48 = vld [vmem:[%s6649_s27 + $0x9c] sm:$0xf] }
  0xe9   : > { %v3869_v63 = vshll.u32 %v7716_v25, 16  ;;  %v3873_v23 = vshrl.u32 %v7716_v25, 16  ;;  %v8505_v62 = vcombine.low %v7411_v17, %v7415_v57  ;;  %v7744_v44 = vld [vmem:[%s6649_s27 + $0x80] sm:$0x1]  ;;  %v3814_v60 = vrot.slane %v3812_v26, 4 }
  0xea   : > { %8506 = vst [vmem:[#allocation16_spill] sm:$0xff] %v7744_v44  ;;  %v3838_v31 = vrot.slane %v3836_v4, 4  ;;  %v3841_v8 = vrot.slane %v3839_v27, 5  ;;  %v7748_v10 = vrot.slane %v3845_v3, 5  ;;  %v3851_v51 = vrot.slane %v3849_v50, 4 }
  0xeb   : > { %v7751_v25 = vld [vmem:[%s6649_s27 + $0xa0] sm:$0xf]  ;;  %v3862_v17 = vrot.slane %v3860_v52, 4  ;;  %v3865_v57 = vrot.slane %v3863_v53, 5  ;;  %v3887_v9 = vshll.u32 %v5522_v48, 16  ;;  %v3794_v26 = vor.u32 %v3793_v18, %v7709_v33 }
  0xec   : > { %v3831_v27 = vshll.u32 %v7744_v44, 16  ;;  %v7763_v3 = vld [vmem:[%s6649_s27 + $0x98] sm:$0x1]  ;;  %v3893_v50 = vshll.u32 %v7751_v25, 16  ;;  %v3897_v52 = vshrl.u32 %v7751_v25, 16  ;;  %v3842_v22 = vor.u32 %v3841_v8, %v3838_v31 }
  0xed   : > { %6091 = vmatmul.mubr.msk.bf16.gmra.mrb[28].mxu0 %vm694_vm3, %v6486_v61  ;;  %v7734_v61 = vrot.slane %v3797_v6, 5  ;;  %v3827_v6 = vrot.slane %v3825_v34, 4  ;;  %v3875_v34 = vrot.slane %v3873_v23, 4  ;;  %v3855_v33 = vshll.u32 %v7754_v2, 16 }
  0xee   : > { %5939 = vmatmul.mubr.msk.bf16.gmra.mrb[12].mxu1 %vm694_vm3, %v8504_v7  ;;  %6096 = vmatprep.mubr.msk.bf16.mxu0 %vm694_vm3, %v7476_v20  ;;  %v3817_v7 = vrot.slane %v3815_v49, 5  ;;  %v7746_v20 = vrot.slane %v3821_v46, 5  ;;  %v3807_v49 = vshll.u32 %v7726_v45, 16  ;;  %v7758_v46 = vrot.slane %v3869_v63, 5 }
  0xef   : > { %5942 = vmatprep.mubr.msk.bf16.mxu1 %vm694_vm3, %v8505_v62  ;;  %v3884_v62 = vshrl.u32 %v5522_v48, 16  ;;  %v3804_v4 = vor.u32 %v3803_v59, %v7734_v61  ;;  %v3852_v23 = vor.u32 %v3851_v51, %v7748_v10  ;;  %v3866_v59 = vor.u32 %v3865_v57, %v3862_v17  ;;  %v7796_v57 = vld [vmem:[%s6649_s27 + $0xa4] sm:$0x1] }
  0xf0   : > { %v3818_v53 = vor.u32 %v3817_v7, %v3814_v60  ;;  %v3828_v48 = vor.u32 %v3827_v6, %v7746_v20  ;;  %v3889_v18 = vrot.slane %v3887_v9, 5  ;;  %v8507_v44 = vcombine.low %v7423_v11, %v7427_v40 }
  0xf1   : > { %v3886_v63 = vrot.slane %v3884_v62, 4  ;;  %v8508_v31 = vrot.slane %v7685_v54, 5  ;;  %v3809_v51 = vrot.slane %v3807_v49, 5  ;;  %v3876_v60 = vor.u32 %v3875_v34, %v7758_v46  ;;  %v7799_v34 = vld [vmem:[%s6649_s27 + $0xac] sm:$0xf] }
  0xf2   : > { %v3879_v9 = vshll.u32 %v7763_v3, 16  ;;  %v8509_v11 = vcombine.low %v7495_v39, %v7499_v55  ;;  %v3795_v40 = vrot.slane %v3794_v26, 4  ;;  %v7792_v54 = vrot.slane %v3893_v50, 5 }
  0xf3   : > { %v3819_v7 = vrot.slane %v3818_v53, 4  ;;  %v3829_v6 = vrot.slane %v3828_v48, 4  ;;  %v3833_v8 = vrot.slane %v3831_v27, 5  ;;  %v3857_v17 = vrot.slane %v3855_v33, 5  ;;  %v7809_v48 = vld [vmem:[%s6649_s27 + $0xb0] sm:$0x1] }
  0xf4   : > { %v3843_v39 = vrot.slane %v3842_v22, 4  ;;  %v3853_v55 = vrot.slane %v3852_v23, 4  ;;  %v3867_v62 = vrot.slane %v3866_v59, 4  ;;  %v3890_v49 = vor.u32 %v3889_v18, %v3886_v63 }
  0xf5   : > { %6097 = vmatmul.mubr.msk.bf16.vlgmr.msra.gmra.mrb[0].mxu0 %vm694_vm3, %v7539_v16  ;;  %v7782_v16 = vsel %vm6901_vm7, %v7707_v28, %v8508_v31  ;;  %v3899_v28 = vrot.slane %v3897_v52, 4  ;;  %v3881_v26 = vrot.slane %v3879_v9, 5  ;;  %v3800_v52 = vsel %vm6675_vm4, %v3795_v40, %v7734_v61 }
  0xf6   : > { %5943 = vmatmul.mubr.msk.bf16.gmra.mrb[16].mxu1 %vm694_vm3, %v8507_v44  ;;  %6129 = vmatpush3.bf16.msra.mxu0 %v7480_v14  ;;  %v3805_v14 = vrot.slane %v3804_v4, 4  ;;  %v5525_v44 = vld [vmem:[%s6649_s27 + $0xa8] sm:$0xf]  ;;  %v3903_v22 = vshll.u32 %v7796_v57, 16  ;;  %v3824_v33 = vsel %vm6675_vm4, %v3819_v7, %v7746_v20  ;;  %v3834_v23 = vsel %vm6675_vm4, %v3829_v6, %v3833_v8 }
  0xf7   : > { %5946 = vmatprep.mubr.msk.bf16.mxu1 %vm694_vm3, %v8509_v11  ;;  %6100 = vmatprep.mubr.msk.bf16.mxu0 %vm694_vm3, %v7550_v29  ;;  %v3877_v29 = vrot.slane %v3876_v60, 4  ;;  %v3908_v4 = vshrl.u32 %v5525_v44, 16  ;;  %v3911_v50 = vshll.u32 %v5525_v44, 16  ;;  %v3900_v53 = vor.u32 %v3899_v28, %v7792_v54  ;;  %v5574_v11 = vld [vmem:[%s6649_s27 + $0x48] sm:$0xe] }
  0xf8   : > { %v3810_v27 = vsel %vm6675_vm4, %v3805_v14, %v3809_v51  ;;  %v3917_v59 = vshll.u32 %v7799_v34, 16  ;;  %v3921_v61 = vshrl.u32 %v7799_v34, 16  ;;  %v3848_v63 = vsel %vm6675_vm4, %v3843_v39, %v7748_v10  ;;  %v7874_v39 = vld [vmem:[%s6649_s27 + $0xb8] sm:$0xf] }
  0xf9   : > { %v3858_v18 = vsel %vm6675_vm4, %v3853_v55, %v3857_v17  ;;  %v3872_v20 = vsel %vm6675_vm4, %v3867_v62, %v7758_v46  ;;  %v3891_v31 = vrot.slane %v3890_v49, 4  ;;  %v8510_v51 = vcombine.low %v7512_v12, %v7527_v35 }
  0xfa   : > { %v3910_v10 = vrot.slane %v3908_v4, 4  ;;  %v3913_v60 = vrot.slane %v3911_v50, 5  ;;  %v3927_v9 = vshll.u32 %v7809_v48, 16  ;;  %v8511_v46 = vcombine.low %v7597_v21, %v7622_v56  ;;  %v5528_v21 = vld [vmem:[%s6649_s27 + $0xb4] sm:$0xf] }
  0xfb   : > { %v5195_v12 = vcombine.low %v7673_v42, %v7680_v47  ;;  %v8512_v35 = vsel %vm6675_vm4, %v7693_v5, %v7682_v41  ;;  %v3901_v14 = vrot.slane %v3900_v53, 4  ;;  %v3905_v28 = vrot.slane %v3903_v22, 5  ;;  %v5576_v4 = vld [vmem:[%s6649_s27 + $0x60] sm:$0xe]  ;;  %v5577_v53 = vld [vmem:[%s6649_s27 + $0x6c] sm:$0xe] }
  0xfc   : > { %v5196_v56 = vcombine.low %v7697_v43, %v7782_v16  ;;  %v7857_v44 = vcombine.low %v3800_v52, %v3810_v27  ;;  %v7859_v42 = vrot.slane %v3917_v59, 5  ;;  %v3923_v47 = vrot.slane %v3921_v61, 4  ;;  %v8521_v16 = vld [vmem:[#allocation4_spill] sm:$0xff] }
  0xfd   : > { %6101 = vmatmul.mubr.msk.bf16.gmra.mrb[4].mxu0 %vm694_vm3, %v7653_v37  ;;  %v3882_v37 = vsel %vm6675_vm4, %v3877_v29, %v3881_v26  ;;  %v7861_v41 = vcombine.low %v3824_v33, %v3834_v23  ;;  %v7863_v5 = vcombine.low %v3848_v63, %v3858_v18  ;;  %v3896_v6 = vsel %vm6675_vm4, %v3891_v31, %v7792_v54  ;;  %v8514_v23 = vld [vmem:[#allocation11_spill] sm:$0xff]  ;;  %v5531_v63 = vld [vmem:[%s6649_s27 + $0xc0] sm:$0xf]  ;;  %v8516_v18 = vld [vmem:[#allocation9_spill] sm:$0xff] }
  0xfe   : > { %5947 = vmatmul.mubr.msk.bf16.gmra.mrb[20].mxu1 %vm694_vm3, %v8510_v51  ;;  %6104 = vmatprep.mubr.msk.bf16.mxu0 %vm694_vm3, %v7667_v58  ;;  %v8513_v58 = vsel %vm6675_vm4, %v7655_v19, %v7610_v1  ;;  %v7865_v7 = vcombine.low %v3872_v20, %v3882_v37  ;;  %v5590_v1 = vrot.slane %v5574_v11, 9  ;;  %v5575_v19 = vld [vmem:[%s6649_s27 + $0x54] sm:$0xe]  ;;  %v3914_v8 = vor.u32 %v3913_v60, %v3910_v10  ;;  %v8517_v31 = vld [vmem:[#allocation10_spill] sm:$0xff] }
  0xff   : > { %5950 = vmatprep.mubr.msk.bf16.mxu1 %vm694_vm3, %v8511_v46  ;;  %v5544_v40 = vcombine.low %v8513_v58, %v8512_v35  ;;  %v7871_v17 = vrot.slane %v3927_v9, 5  ;;  %v3932_v55 = vshrl.u32 %v5528_v21, 16  ;;  %v3906_v62 = vsel %vm6675_vm4, %v3901_v14, %v3905_v28  ;;  %v8518_v9 = vld [vmem:[#allocation12_spill] sm:$0xff]  ;;  %v7923_v35 = vld [vmem:[%s6649_s27 + $0xbc] sm:$0x1] }
 0x100   : > { %v3935_v49 = vshll.u32 %v5528_v21, 16  ;;  %v4391_v29 = vrot.slane %v7505_v0, 5  ;;  %v4394_v26 = vrot.slane %v7559_v38, 5  ;;  %v3924_v50 = vor.u32 %v3923_v47, %v7859_v42  ;;  %v7926_v58 = vld [vmem:[%s6649_s27 + $0xc4] sm:$0xf] }
 0x101   : > { %v5591_v52 = vrot.slane %v5575_v19, 9  ;;  %v4398_v54 = vrot.slane %v7516_v24, 5  ;;  %v4401_v27 = vrot.slane %v7568_v15, 5  ;;  %v3941_v22 = vshll.u32 %v7874_v39, 16  ;;  %v5578_v19 = vld [vmem:[%s6649_s27 + $0x78] sm:$0xe] }
 0x102   : > { %v3945_v33 = vshrl.u32 %v7874_v39, 16  ;;  %v7891_v0 = vsel %vm6901_vm7, %v5590_v1, %v4391_v29  ;;  %v4393_v38 = vrot.slane %v4391_v29, 4  ;;  %v8515_v59 = vcombine.low %v7630_v36, %v8514_v23  ;;  %v8519_v23 = vld [vmem:[#allocation13_spill] sm:$0xff] }
 0x103   : > { %v7898_v24 = vcombine.low %v3896_v6, %v3906_v62  ;;  %v7902_v15 = vsel %vm6901_vm7, %v5591_v52, %v4398_v54  ;;  %v5592_v61 = vrot.slane %v5576_v4, 9  ;;  %v4405_v20 = vrot.slane %v8516_v18, 5  ;;  %v6487_v6 = vld [vmem:[%s6649_s27 + $0xc] sm:$0xff]  }
 0x104   : > { %v7908_v36 = vsel %vm6901_vm7, %v4393_v38, %v4394_v26  ;;  %v4408_v51 = vrot.slane %v8517_v31, 5  ;;  %v5593_v37 = vrot.slane %v5577_v53, 9  ;;  %v4412_v11 = vrot.slane %v8518_v9, 5 }
 0x105   : > { %6105 = vmatmul.mubr.msk.bf16.gmra.mrb[8].mxu0 %vm694_vm3, %v7676_v30  ;;  %v4400_v30 = vrot.slane %v4398_v54, 4  ;;  %v5607_v10 = vcombine.low %v7891_v0, %v7908_v36  ;;  %v4415_v46 = vrot.slane %v7726_v45, 5  ;;  %v7932_v14 = vsel %vm6901_vm7, %v5592_v61, %v4405_v20 }
 0x106   : > { %5951 = vmatmul.mubr.msk.bf16.gmra.mrb[24].mxu1 %vm694_vm3, %v8515_v59  ;;  %6108 = vmatprep.mubr.msk.bf16.mxu0 %vm694_vm3, %v5544_v40  ;;  %v4407_v28 = vrot.slane %v4405_v20, 4  ;;  %v7934_v21 = vrot.slane %v3932_v55, 4  ;;  %v3956_v47 = vshrl.u32 %v5531_v63, 16  ;;  %v7938_v45 = vsel %vm6901_vm7, %v5593_v37, %v4412_v11  ;;  %v5305_v55 = vld [vmem:[%s6649_s27 + $0x78] sm:$0xf]  ;;  %v8520_v59 = vld [vmem:[#allocation16_spill] sm:$0xff] }
 0x107   : > { %5954 = vmatprep.mubr.msk.bf16.mxu1 %vm694_vm3, %v5195_v12  ;;  %v7916_v60 = vsel %vm6901_vm7, %v4400_v30, %v4401_v27  ;;  %v7920_v12 = vrot.slane %v3914_v8, 4  ;;  %v4414_v1 = vrot.slane %v4412_v11, 4  ;;  %v7942_v8 = vrot.slane %v3924_v50, 4 }
 0x108   : > { %v5608_v40 = vcombine.low %v7902_v15, %v7916_v60  ;;  %v7944_v62 = vrot.slane %v3935_v49, 5  ;;  %v3959_v29 = vshll.u32 %v5531_v63, 16  ;;  %v7948_v26 = vsel %vm6901_vm7, %v4407_v28, %v4408_v51  ;;  %v8523_v28 = vld [vmem:[#allocation14_spill] sm:$0xff] }
 0x109   : > { %v7951_v4 = vrot.slane %v3941_v22, 5  ;;  %v7953_v52 = vrot.slane %v3945_v33, 4  ;;  %v5609_v54 = vcombine.low %v7932_v14, %v7948_v26  ;;  %v7959_v27 = vsel %vm6901_vm7, %v4414_v1, %v4415_v46  ;;  %v5579_v33 = vld [vmem:[%s6649_s27 + $0x84] sm:$0xe]  ;;  %v6488_v1 = vld [vmem:[%s6649_s27 + $0x18] sm:$0xff]  }
 0x10a   : > { %v3951_v49 = vshll.u32 %v7923_v35, 16  ;;  %v3965_v50 = vshll.u32 %v7926_v58, 16  ;;  %v5610_v53 = vcombine.low %v7938_v45, %v7959_v27  ;;  %v5594_v22 = vrot.slane %v5578_v19, 9  ;;  %v6550_v60 = vld [vmem:[%s6649_s27 + $0xa0] sm:$0xf] }
 0x10b   : > { %v3958_v38 = vrot.slane %v3956_v47, 4  ;;  %v4422_v30 = vrot.slane %v8520_v59, 5  ;;  %v2281_v61 = vshrl.u32 %v5305_v55, 16  ;;  %v3961_v63 = vrot.slane %v3959_v29, 5  ;;  %v5534_v29 = vld [vmem:[%s6649_s27 + $0xcc] sm:$0xf] }
 0x10c   : > { %v3969_v18 = vshrl.u32 %v7926_v58, 16  ;;  %v2284_v43 = vshll.u32 %v5305_v55, 16  ;;  %v5595_v37 = vrot.slane %v5579_v33, 9  ;;  %v3920_v9 = vsel %vm6675_vm4, %v7920_v12, %v7859_v42  ;;  %v8002_v55 = vld [vmem:[%s6649_s27 + $0xd0] sm:$0xf] }
 0x10d   : > { %6109 = vmatmul.mubr.msk.bf16.gmra.mrb[12].mxu0 %vm694_vm3, %v7857_v44  ;;  %v4419_v44 = vrot.slane %v8519_v23, 5  ;;  %v2283_v51 = vrot.slane %v2281_v61, 4  ;;  %v3938_v11 = vor.u32 %v7944_v62, %v7934_v21  ;;  %v4426_v47 = vrot.slane %v8523_v28, 5  ;;  %v6489_v21 = vld [vmem:[%s6649_s27 + $0x24] sm:$0xff]   ;;  %v6554_v27 = vld [vmem:[%s6649_s27 + $0xac] sm:$0xf] }
 0x10e   : > { %5955 = vmatmul.mubr.msk.bf16.gmra.mrb[28].mxu1 %vm694_vm3, %v5196_v56  ;;  %6112 = vmatprep.mubr.msk.bf16.mxu0 %vm694_vm3, %v7861_v41  ;;  %v8522_v56 = vld [vmem:[#allocation5_spill] sm:$0xff]  ;;  %v2286_v46 = vrot.slane %v2284_v43, 5  ;;  %v3930_v19 = vsel %vm6675_vm4, %v7942_v8, %v7871_v17  ;;  %v4429_v12 = vrot.slane %v7754_v2, 5  ;;  %v8010_v62 = vrot.slane %v3965_v50, 5  ;;  %v5580_v8 = vld [vmem:[%s6649_s27 + $0x90] sm:$0xe] }
 0x10f   : > { %5960 = vmatprep.mubr.msk.bf16.mxu1 %vm694_vm3, %v6487_v6  ;;  %v2303_v41 = vsel %vm6675_vm4, %v8522_v56, %v8521_v16  ;;  %v7984_v20 = vsel %vm6901_vm7, %v5594_v22, %v4419_v44  ;;  %v4421_v31 = vrot.slane %v4419_v44, 4  ;;  %v3948_v6 = vor.u32 %v7953_v52, %v7951_v4  ;;  %v8016_v52 = vld [vmem:[%s6649_s27 + $0xc8] sm:$0x1]  ;;  %v8525_v16 = vld [vmem:[#allocation2_spill] sm:$0xff] }
 0x110   : > { %v3971_v22 = vrot.slane %v3969_v18, 4  ;;  %v2287_v17 = vor.u32 %v2286_v46, %v2283_v51  ;;  %v3953_v23 = vrot.slane %v3951_v49, 5  ;;  %v3962_v44 = vor.u32 %v3961_v63, %v3958_v38  ;;  %v8526_v51 = vld [vmem:[#allocation3_spill] sm:$0xff] }
 0x111   : > { %v8006_v42 = vsel %vm6901_vm7, %v4421_v31, %v4422_v30  ;;  %v8020_v59 = vsel %vm6901_vm7, %v5595_v37, %v4426_v47  ;;  %v4428_v30 = vrot.slane %v4426_v47, 4  ;;  %v3980_v2 = vshrl.u32 %v5534_v29, 16 }
 0x112   : > { %v5611_v33 = vcombine.low %v7984_v20, %v8006_v42  ;;  %v3983_v50 = vshll.u32 %v5534_v29, 16  ;;  %v3989_v61 = vshll.u32 %v8002_v55, 16  ;;  %v2288_v18 = vrot.slane %v2287_v17, 4  ;;  %v6490_v29 = vld [vmem:[%s6649_s27 + $0x30] sm:$0xff]  }
 0x113   : > { %v3993_v49 = vshrl.u32 %v8002_v55, 16  ;;  %v8031_v38 = vsel %vm6901_vm7, %v4428_v30, %v4429_v12  ;;  %v5596_v63 = vrot.slane %v5580_v8, 9  ;;  %v3972_v56 = vor.u32 %v3971_v22, %v8010_v62 }
 0x114   : > { %v3975_v31 = vshll.u32 %v8016_v52, 16  ;;  %v5612_v37 = vcombine.low %v8020_v59, %v8031_v38  ;;  %v5550_v46 = vcombine.low %v3920_v9, %v3930_v19  ;;  %v3939_v28 = vrot.slane %v3938_v11, 4  ;;  %v5581_v11 = vld [vmem:[%s6649_s27 + $0x9c] sm:$0xe] }
 0x115   : > { %6113 = vmatmul.mubr.msk.bf16.gmra.mrb[16].mxu0 %vm694_vm3, %v7863_v5  ;;  %v8524_v5 = vld [vmem:[#allocation15_spill] sm:$0xff]  ;;  %v3949_v47 = vrot.slane %v3948_v6, 4  ;;  %v3963_v12 = vrot.slane %v3962_v44, 4  ;;  %v4436_v8 = vrot.slane %v7763_v3, 5  ;;  %v3982_v30 = vrot.slane %v3980_v2, 4  ;;  %v6491_v19 = vld [vmem:[%s6649_s27 + $0x3c] sm:$0xff]  }
 0x116   : > { %5961 = vmatmul.mubr.msk.bf16.vlgmr.msra.gmra.mrb[0].mxu1 %vm694_vm3, %v6488_v1  ;;  %6116 = vmatprep.mubr.msk.bf16.mxu0 %vm694_vm3, %v7865_v7  ;;  %v4433_v43 = vrot.slane %v8524_v5, 5  ;;  %v2293_v7 = vsel %vm6675_vm4, %v2288_v18, %v8526_v51  ;;  %v3985_v18 = vrot.slane %v3983_v50, 5  ;;  %v8054_v5 = vrot.slane %v3989_v61, 5 }
 0x117   : > { %6163 = vmatpush3.bf16.msra.mxu1 %v8525_v16  ;;  %5964 = vmatprep.mubr.msk.bf16.mxu1 %vm694_vm3, %v6489_v21  ;;  %v8043_v1 = vcombine.low %v2293_v7, %v2303_v41  ;;  %v8047_v21 = vld [vmem:[%s6649_s27 + $0xd4] sm:$0x1]  ;;  %v3995_v9 = vrot.slane %v3993_v49, 4  ;;  %v3973_v41 = vrot.slane %v3972_v56, 4  ;;  %v3977_v6 = vrot.slane %v3975_v31, 5 }
 0x118   : > { %v8051_v22 = vsel %vm6901_vm7, %v5596_v63, %v4433_v43  ;;  %v4435_v17 = vrot.slane %v4433_v43, 4  ;;  %v3944_v63 = vsel %vm6675_vm4, %v3939_v28, %v7951_v4  ;;  %v3954_v2 = vsel %vm6675_vm4, %v3949_v47, %v3953_v23  ;;  %v6541_v16 = vld [vmem:[%s6649_s27 + $0x1c] sm:$0xf]  ;;  %v5582_v28 = vld [vmem:[%s6649_s27 + $0xa8] sm:$0xe] }
 0x119   : > { %v3999_v50 = vshll.u32 %v8047_v21, 16  ;;  %v5597_v61 = vrot.slane %v5581_v11, 9  ;;  %v4440_v49 = vrot.slane %v7751_v25, 5  ;;  %v3968_v4 = vsel %vm6675_vm4, %v3963_v12, %v8010_v62  ;;  %v5570_v62 = vld [vmem:[%s6649_s27 + $0x18] sm:$0xe]  ;;  %v6492_v47 = vld [vmem:[%s6649_s27 + $0x48] sm:$0xff]  }
 0x11a   : > { %v8060_v44 = vsel %vm6901_vm7, %v4435_v17, %v4436_v8  ;;  %v3996_v43 = vor.u32 %v3995_v9, %v8054_v5  ;;  %v4443_v23 = vrot.slane %v7796_v57, 5  ;;  %v3978_v25 = vsel %vm6675_vm4, %v3973_v41, %v3977_v6  ;;  %v6542_v11 = vld [vmem:[%s6649_s27 + $0x20] sm:$0x1] }
 0x11b   : > { %v5613_v3 = vcombine.low %v8051_v22, %v8060_v44  ;;  %v4363_v56 = vrot.slane %v6541_v16, 5  ;;  %v8086_v31 = vsel %vm6901_vm7, %v5597_v61, %v4440_v49  ;;  %v4442_v51 = vrot.slane %v4440_v49, 4  ;;  %v5583_v49 = vld [vmem:[%s6649_s27 + $0xb4] sm:$0xe] }
 0x11c   : > { %v5551_v7 = vcombine.low %v3944_v63, %v3954_v2  ;;  %v3997_v17 = vrot.slane %v3996_v43, 4  ;;  %v5598_v41 = vrot.slane %v5582_v28, 9  ;;  %v4447_v6 = vrot.slane %v7799_v34, 5  ;;  %v5571_v2 = vld [vmem:[%s6649_s27 + $0x24] sm:$0xe] }
 0x11d   : > { %6117 = vmatmul.mubr.msk.bf16.gmra.mrb[20].mxu0 %vm694_vm3, %v7898_v24  ;;  %v3986_v24 = vor.u32 %v3985_v18, %v3982_v30  ;;  %v8091_v57 = vsel %vm6901_vm7, %v4442_v51, %v4443_v23  ;;  %v6493_v30 = vld [vmem:[%s6649_s27 + $0x54] sm:$0xff]   ;;  %v5586_v18 = vrot.slane %v5570_v62, 9  ;;  %v4365_v9 = vrot.slane %v4363_v56, 4  ;;  %v6545_v28 = vld [vmem:[%s6649_s27 + $0x2c] sm:$0x1] }
 0x11e   : > { %5965 = vmatmul.mubr.msk.bf16.gmra.mrb[4].mxu1 %vm694_vm3, %v6490_v29  ;;  %6120 = vmatprep.mubr.msk.bf16.mxu0 %vm694_vm3, %v5550_v46  ;;  %v4001_v46 = vrot.slane %v3999_v50, 5  ;;  %v5552_v29 = vcombine.low %v3968_v4, %v3978_v25  ;;  %v5614_v8 = vcombine.low %v8086_v31, %v8091_v57  ;;  %v4450_v63 = vrot.slane %v7809_v48, 5  ;;  %v6543_v50 = vld [vmem:[%s6649_s27 + $0x28] sm:$0xf]  ;;  %v5572_v25 = vld [vmem:[%s6649_s27 + $0x30] sm:$0xe] }
 0x11f   : > { %5968 = vmatprep.mubr.msk.bf16.mxu1 %vm694_vm3, %v6491_v19  ;;  %v3987_v12 = vrot.slane %v3986_v24, 4  ;;  %v4366_v19 = vrot.slane %v6542_v11, 5  ;;  %v4370_v61 = vrot.slane %v6543_v50, 5  ;;  %v8114_v48 = vsel %vm6901_vm7, %v5598_v41, %v4447_v6  ;;  %v6495_v11 = vld [vmem:[%s6649_s27 + $0x6c] sm:$0xff]   ;;  %v8527_v41 = vld [vmem:[#allocation6_spill] sm:$0xff] }
 0x120   : > { %v4002_v34 = vsel %vm6675_vm4, %v3997_v17, %v4001_v46  ;;  %v4449_v24 = vrot.slane %v4447_v6, 4  ;;  %v4364_v43 = vsel %vm6901_vm7, %v5586_v18, %v4363_v56  ;;  %v5587_v51 = vrot.slane %v5571_v2, 9  ;;  %v5584_v50 = vld [vmem:[%s6649_s27 + $0xc0] sm:$0xe]  ;;  %v6559_v31 = vld [vmem:[%s6649_s27 + $0xc8] sm:$0x1] }
 0x121   : > { %v3992_v4 = vsel %vm6675_vm4, %v3987_v12, %v8054_v5  ;;  %v4367_v23 = vsel %vm6901_vm7, %v4365_v9, %v4366_v19  ;;  %v6544_v5 = vld [vmem:[%s6649_s27 + $0x34] sm:$0xf]  ;;  %v6494_v12 = vld [vmem:[%s6649_s27 + $0x60] sm:$0xff]   ;;  %v5588_v18 = vrot.slane %v5572_v25, 9  ;;  %v4457_v9 = vrot.slane %v7923_v35, 5 }
 0x122   : > { %v4377_v16 = vrot.slane %v6544_v5, 5  ;;  %v8125_v62 = vsel %vm6901_vm7, %v4449_v24, %v4450_v63  ;;  %v5553_v46 = vcombine.low %v3992_v4, %v4002_v34  ;;  %v5603_v17 = vcombine.low %v4364_v43, %v4367_v23  ;;  %v5573_v24 = vld [vmem:[%s6649_s27 + $0x3c] sm:$0xe] }
 0x123   : > { %v5615_v56 = vcombine.low %v8114_v48, %v8125_v62  ;;  %v4380_v6 = vrot.slane %v8527_v41, 5  ;;  %v4371_v35 = vsel %vm6901_vm7, %v5587_v51, %v4370_v61  ;;  %v5600_v5 = vrot.slane %v5584_v50, 9 }
 0x124   : > { %v4379_v19 = vrot.slane %v4377_v16, 4  ;;  %v4378_v23 = vsel %vm6901_vm7, %v5588_v18, %v4377_v16  ;;  %v4464_v51 = vrot.slane %v8016_v52, 5  ;;  %v2444_v57 = vshll.u32 %v6559_v31, 16 }
 0x125   : > { %6121 = vmatmul.mubr.msk.bf16.gmra.mrb[24].mxu0 %vm694_vm3, %v5551_v7  ;;  %v5599_v7 = vrot.slane %v5583_v49, 9 }
 0x126   : > { %5969 = vmatmul.mubr.msk.bf16.gmra.mrb[8].mxu1 %vm694_vm3, %v6492_v47  ;;  %6124 = vmatprep.mubr.msk.bf16.mxu0 %vm694_vm3, %v5552_v29  ;;  %v4373_v47 = vrot.slane %v6545_v28, 5  ;;  %v4454_v29 = vrot.slane %v7874_v39, 5  ;;  %v8528_v39 = vld [vmem:[#allocation7_spill] sm:$0xff]  ;;  %v4381_v25 = vsel %vm6901_vm7, %v4379_v19, %v4380_v6  ;;  %v5589_v28 = vrot.slane %v5573_v24, 9 }
 0x127   : > { %5972 = vmatprep.mubr.msk.bf16.mxu1 %vm694_vm3, %v6493_v30  ;;  %v4372_v30 = vrot.slane %v4370_v61, 4  ;;  %v4384_v49 = vrot.slane %v8528_v39, 5  ;;  %v4461_v61 = vrot.slane %v7926_v58, 5  ;;  %v6546_v39 = vld [vmem:[%s6649_s27 + $0x70] sm:$0xf]  ;;  %v4468_v24 = vrot.slane %v8002_v55, 5 }
 0x128   : > { %v8137_v63 = vsel %vm6901_vm7, %v5599_v7, %v4454_v29  ;;  %v4456_v2 = vrot.slane %v4454_v29, 4  ;;  %v5302_v7 = vld [vmem:[%s6649_s27 + $0x6c] sm:$0xf]  ;;  %v8529_v29 = vld [vmem:[#allocation8_spill] sm:$0xff] }
 0x129   : > { %v4374_v34 = vsel %vm6901_vm7, %v4372_v30, %v4373_v47  ;;  %v4386_v47 = vrot.slane %v4384_v49, 4  ;;  %v6496_v30 = vld [vmem:[%s6649_s27 + $0x78] sm:$0xff]   ;;  %v8168_v16 = vsel %vm6901_vm7, %v5600_v5, %v4461_v61  ;;  %v4463_v18 = vrot.slane %v4461_v61, 4 }
 0x12a   : > { %v8144_v4 = vsel %vm6901_vm7, %v4456_v2, %v4457_v9  ;;  %v5605_v9 = vcombine.low %v4378_v23, %v4381_v25  ;;  %v2257_v19 = vshrl.u32 %v5302_v7, 16  ;;  %v2260_v41 = vshll.u32 %v5302_v7, 16 }
 0x12b   : > { %v5616_v43 = vcombine.low %v8137_v63, %v8144_v4  ;;  %v8173_v58 = vsel %vm6901_vm7, %v4463_v18, %v4464_v51  ;;  %v4385_v6 = vsel %vm6901_vm7, %v5589_v28, %v4384_v49  ;;  %v4471_v49 = vrot.slane %v8047_v21, 5  ;;  %v6498_v51 = vld [vmem:[%s6649_s27 + $0x90] sm:$0xff]   ;;  %v6499_v21 = vld [vmem:[%s6649_s27 + $0x9c] sm:$0xff]  }
 0x12c   : > { %v5617_v50 = vcombine.low %v8168_v16, %v8173_v58  ;;  %v2259_v23 = vrot.slane %v2257_v19, 4  ;;  %v2262_v25 = vrot.slane %v2260_v41, 5  ;;  %v4470_v7 = vrot.slane %v4468_v24, 4 }
 0x12d   : > { %6125 = vmatmul.mubr.msk.bf16.gmra.mrb[28].mxu0 %vm694_vm3, %v5553_v46  ;;  %v5604_v46 = vcombine.low %v4371_v35, %v4374_v34  ;;  %v2266_v35 = vshll.u32 %v6546_v39, 16  ;;  %v2270_v34 = vshrl.u32 %v6546_v39, 16 }
 0x12e   : > { %5973 = vmatmul.mubr.msk.bf16.gmra.mrb[12].mxu1 %vm694_vm3, %v6494_v12  ;;  %6130 = vmatprep.mubr.msk.bf16.mxu0 %vm694_vm3, %v5603_v17  ;;  %v4387_v12 = vrot.slane %v8529_v29, 5  ;;  %v5585_v17 = vld [vmem:[%s6649_s27 + $0xcc] sm:$0xe]  ;;  %v8195_v55 = vsel %vm6901_vm7, %v4470_v7, %v4471_v49 }
 0x12f   : > { %5976 = vmatprep.mubr.msk.bf16.mxu1 %vm694_vm3, %v6495_v11  ;;  %v6497_v11 = vld [vmem:[%s6649_s27 + $0x84] sm:$0xff]   ;;  %v5601_v52 = vrot.slane %v5585_v17, 9  ;;  %v2272_v28 = vrot.slane %v2270_v34, 4  ;;  %v6547_v17 = vld [vmem:[%s6649_s27 + $0x74] sm:$0x1] }
 0x130   : > { %v4388_v2 = vsel %vm6901_vm7, %v4386_v47, %v4387_v12  ;;  %v5308_v47 = vld [vmem:[%s6649_s27 + $0x84] sm:$0xf]  ;;  %v2263_v12 = vor.u32 %v2262_v25, %v2259_v23  ;;  %v6501_v34 = vld [vmem:[%s6649_s27 + $0xb4] sm:$0xff]  }
 0x131   : > { %v8190_v5 = vsel %vm6901_vm7, %v5601_v52, %v4468_v24  ;;  %v5606_v61 = vcombine.low %v4385_v6, %v4388_v2  ;;  %v2308_v18 = vshll.u32 %v5308_v47, 16  ;;  %v5311_v6 = vld [vmem:[%s6649_s27 + $0x90] sm:$0xf]  ;;  %v6500_v2 = vld [vmem:[%s6649_s27 + $0xa8] sm:$0xff]  }
 0x132   : > { %v5618_v29 = vcombine.low %v8190_v5, %v8195_v55  ;;  %v2264_v52 = vrot.slane %v2263_v12, 4  ;;  %v2329_v23 = vshrl.u32 %v5311_v6, 16  ;;  %v2332_v25 = vshll.u32 %v5311_v6, 16 }
 0x133   : > { %v2362_v12 = vshll.u32 %v6550_v60, 16 }
 0x134   : > { %v2334_v14 = vrot.slane %v2332_v25, 5  ;;  %v6553_v25 = vld [vmem:[%s6649_s27 + $0xa4] sm:$0x1] }
 0x135   : > { %6131 = vmatmul.mubr.msk.bf16.vlgmr.msra.gmra.mrb[0].mxu0 %vm694_vm3, %v5604_v46  ;;  %v2268_v46 = vrot.slane %v2266_v35, 5  ;;  %v5314_v35 = vld [vmem:[%s6649_s27 + $0x9c] sm:$0xf]  ;;  %v8237_v6 = vrot.slane %v2362_v12, 5 }
 0x136   : > { %5977 = vmatmul.mubr.msk.bf16.gmra.mrb[16].mxu1 %vm694_vm3, %v6496_v30  ;;  %6134 = vmatprep.mubr.msk.bf16.mxu0 %vm694_vm3, %v5605_v9  ;;  %v2276_v30 = vshll.u32 %v6547_v17, 16  ;;  %v2305_v9 = vshrl.u32 %v5308_v47, 16  ;;  %v2356_v47 = vshll.u32 %v5314_v35, 16  ;;  %v6551_v17 = vld [vmem:[%s6649_s27 + $0x8c] sm:$0x1] }
 0x137   : > { %5980 = vmatprep.mubr.msk.bf16.mxu1 %vm694_vm3, %v6497_v11  ;;  %v2273_v13 = vor.u32 %v2272_v28, %v2268_v46  ;;  %v6548_v11 = vld [vmem:[%s6649_s27 + $0x88] sm:$0xf]  ;;  %v2269_v7 = vsel %vm6675_vm4, %v2264_v52, %v2268_v46 }
 0x138   : > { %v2314_v19 = vshll.u32 %v6548_v11, 16  ;;  %v2318_v41 = vshrl.u32 %v6548_v11, 16  ;;  %v2278_v0 = vrot.slane %v2276_v30, 5  ;;  %v2307_v36 = vrot.slane %v2305_v9, 4 }
 0x139   : > { %v2274_v39 = vrot.slane %v2273_v13, 4  ;;  %v2324_v30 = vshll.u32 %v6551_v17, 16  ;;  %v2331_v9 = vrot.slane %v2329_v23, 4  ;;  %v2358_v11 = vrot.slane %v2356_v47, 5 }
 0x13a   : > { %v8214_v24 = vrot.slane %v2314_v19, 5  ;;  %v2320_v49 = vrot.slane %v2318_v41, 4  ;;  %v6502_v19 = vld [vmem:[%s6649_s27 + $0xc0] sm:$0xff]  }
 0x13b   : > { %v2279_v46 = vsel %vm6675_vm4, %v2274_v39, %v2278_v0  ;;  %v5317_v39 = vld [vmem:[%s6649_s27 + $0xa8] sm:$0xf] }
 0x13c   : > { %v2321_v13 = vor.u32 %v2320_v49, %v8214_v24  ;;  %v5335_v41 = vcombine.low %v2269_v7, %v2279_v46  ;;  %v2372_v7 = vshll.u32 %v6553_v25, 16  ;;  %v2380_v45 = vshll.u32 %v5317_v39, 16 }
 0x13d   : > { %6135 = vmatmul.mubr.msk.bf16.gmra.mrb[4].mxu0 %vm694_vm3, %v5606_v61  ;;  %v6549_v61 = vld [vmem:[%s6649_s27 + $0x94] sm:$0xf] }
 0x13e   : > { %5981 = vmatmul.mubr.msk.bf16.gmra.mrb[20].mxu1 %vm694_vm3, %v6498_v51  ;;  %6138 = vmatprep.mubr.msk.bf16.mxu0 %vm694_vm3, %v5607_v10  ;;  %v2310_v10 = vrot.slane %v2308_v18, 5  ;;  %v2338_v51 = vshll.u32 %v6549_v61, 16  ;;  %v2342_v28 = vshrl.u32 %v6549_v61, 16  ;;  %v2322_v0 = vrot.slane %v2321_v13, 4 }
 0x13f   : > { %5984 = vmatprep.mubr.msk.bf16.mxu1 %vm694_vm3, %v6499_v21  ;;  %v2353_v21 = vshrl.u32 %v5314_v35, 16  ;;  %v6552_v35 = vld [vmem:[%s6649_s27 + $0x98] sm:$0x1]  ;;  %v2377_v61 = vshrl.u32 %v5317_v39, 16  ;;  %v5323_v39 = vld [vmem:[%s6649_s27 + $0xc0] sm:$0xf] }
 0x140   : > { %v2311_v15 = vor.u32 %v2310_v10, %v2307_v36  ;;  %v8234_v26 = vrot.slane %v2338_v51, 5  ;;  %v2326_v36 = vrot.slane %v2324_v30, 5  ;;  %v2335_v10 = vor.u32 %v2334_v14, %v2331_v9  ;;  %v5320_v51 = vld [vmem:[%s6649_s27 + $0xb4] sm:$0xf] }
 0x141   : > { %v2355_v18 = vrot.slane %v2353_v21, 4  ;;  %v2390_v21 = vshrl.u32 %v6554_v27, 16  ;;  %v2401_v20 = vshrl.u32 %v5320_v51, 16  ;;  %v2404_v42 = vshll.u32 %v5320_v51, 16 }
 0x142   : > { %v2312_v52 = vrot.slane %v2311_v15, 4  ;;  %v2327_v46 = vsel %vm6675_vm4, %v2322_v0, %v2326_v36  ;;  %v2336_v15 = vrot.slane %v2335_v10, 4  ;;  %v2374_v30 = vrot.slane %v2372_v7, 5 }
 0x143   : > { %v2359_v23 = vor.u32 %v2358_v11, %v2355_v18  ;;  %v2379_v9 = vrot.slane %v2377_v61, 4  ;;  %v2392_v11 = vrot.slane %v2390_v21, 4  ;;  %v6558_v61 = vld [vmem:[%s6649_s27 + $0xbc] sm:$0x1] }
 0x144   : > { %v2317_v47 = vsel %vm6675_vm4, %v2312_v52, %v8214_v24  ;;  %v2341_v0 = vsel %vm6675_vm4, %v2336_v15, %v8234_v26  ;;  %v2420_v22 = vshll.u32 %v6558_v61, 16 }
 0x145   : > { %6139 = vmatmul.mubr.msk.bf16.gmra.mrb[8].mxu0 %vm694_vm3, %v5608_v40  ;;  %v2366_v40 = vshrl.u32 %v6550_v60, 16  ;;  %v2360_v17 = vrot.slane %v2359_v23, 4  ;;  %v5337_v24 = vcombine.low %v2317_v47, %v2327_v46 }
 0x146   : > { %5985 = vmatmul.mubr.msk.bf16.gmra.mrb[24].mxu1 %vm694_vm3, %v6500_v2  ;;  %6142 = vmatprep.mubr.msk.bf16.mxu0 %vm694_vm3, %v5609_v54  ;;  %v2344_v54 = vrot.slane %v2342_v28, 4 }
 0x147   : > { %5988 = vmatprep.mubr.msk.bf16.mxu1 %vm694_vm3, %v6501_v34  ;;  %v2368_v2 = vrot.slane %v2366_v40, 4  ;;  %v2348_v34 = vshll.u32 %v6552_v35, 16  ;;  %v2365_v10 = vsel %vm6675_vm4, %v2360_v17, %v8237_v6  ;;  %v2446_v17 = vrot.slane %v2444_v57, 5 }
 0x148   : > { %v2345_v49 = vor.u32 %v2344_v54, %v8234_v26  ;;  %v2382_v54 = vrot.slane %v2380_v45, 5  ;;  %v6556_v26 = vld [vmem:[%s6649_s27 + $0xb0] sm:$0x1] }
 0x149   : > { %v2369_v28 = vor.u32 %v2368_v2, %v8237_v6  ;;  %v2350_v60 = vrot.slane %v2348_v34, 5  ;;  %v2396_v35 = vshll.u32 %v6556_v26, 16  ;;  %v2425_v34 = vshrl.u32 %v5323_v39, 16 }
 0x14a   : > { %v2346_v13 = vrot.slane %v2345_v49, 4  ;;  %v2383_v38 = vor.u32 %v2382_v54, %v2379_v9  ;;  %v2428_v6 = vshll.u32 %v5323_v39, 16  ;;  %v6557_v49 = vld [vmem:[%s6649_s27 + $0xc4] sm:$0xf] }
 0x14b   : > { %v2370_v14 = vrot.slane %v2369_v28, 4  ;;  %v2434_v23 = vshll.u32 %v6557_v49, 16  ;;  %v2438_v25 = vshrl.u32 %v6557_v49, 16  ;;  %v2398_v45 = vrot.slane %v2396_v35, 5 }
 0x14c   : > { %v2351_v36 = vsel %vm6675_vm4, %v2346_v13, %v2350_v60  ;;  %v2384_v51 = vrot.slane %v2383_v38, 4  ;;  %v2422_v60 = vrot.slane %v2420_v22, 5 }
 0x14d   : > { %6143 = vmatmul.mubr.msk.bf16.gmra.mrb[12].mxu0 %vm694_vm3, %v5610_v53  ;;  %v2386_v53 = vshll.u32 %v6554_v27, 16  ;;  %v2375_v59 = vsel %vm6675_vm4, %v2370_v14, %v2374_v30  ;;  %v5338_v44 = vcombine.low %v2341_v0, %v2351_v36  ;;  %v2427_v27 = vrot.slane %v2425_v34, 4 }
 0x14e   : > { %5989 = vmatmul.mubr.msk.bf16.gmra.mrb[28].mxu1 %vm694_vm3, %v6502_v19  ;;  %6146 = vmatprep.mubr.msk.bf16.mxu0 %vm694_vm3, %v5611_v33  ;;  %v6555_v33 = vld [vmem:[%s6649_s27 + $0xb8] sm:$0xf]  ;;  %v2403_v19 = vrot.slane %v2401_v20, 4  ;;  %v2436_v21 = vrot.slane %v2434_v23, 5  ;;  %v2440_v47 = vrot.slane %v2438_v25, 4 }
 0x14f   : > { %6010 = vmatprep.mubr.msk.bf16.mxu1 %vm694_vm3, %v5335_v41  ;;  %v2410_v12 = vshll.u32 %v6555_v33, 16  ;;  %v2414_v40 = vshrl.u32 %v6555_v33, 16  ;;  %v2388_v18 = vrot.slane %v2386_v53, 5  ;;  %v2406_v41 = vrot.slane %v2404_v42, 5 }
 0x150   : > { %v2430_v53 = vrot.slane %v2428_v6, 5 }
 0x151   : > { %v2412_v52 = vrot.slane %v2410_v12, 5  ;;  %v2416_v2 = vrot.slane %v2414_v40, 4  ;;  %v2389_v20 = vsel %vm6675_vm4, %v2384_v51, %v2388_v18  ;;  %v2441_v12 = vor.u32 %v2440_v47, %v2436_v21 }
 0x152   : > { %v2431_v33 = vor.u32 %v2430_v53, %v2427_v27 }
 0x153   : > { %v2417_v7 = vor.u32 %v2416_v2, %v2412_v52  ;;  %v2442_v13 = vrot.slane %v2441_v12, 4  ;;  %v8340_v2 = vld [vmem:[%s8461_s2] ss:$0 sm:$0xff] }
 0x154   : > { %v2432_v40 = vrot.slane %v2431_v33, 4 }
 0x155   : > { %6147 = vmatmul.mubr.msk.bf16.gmra.mrb[16].mxu0 %vm694_vm3, %v5612_v37  ;;  %v2393_v37 = vor.u32 %v2392_v11, %v2388_v18  ;;  %v2418_v15 = vrot.slane %v2417_v7, 4  ;;  %v2447_v9 = vsel %vm6675_vm4, %v2442_v13, %v2446_v17 }
 0x156   : > { %6011 = vmatmul.mubr.msk.bf16.vlgmr.msra.gmra.mrb[16].mxu1 %vm694_vm3, %v8043_v1  ;;  %6150 = vmatprep.mubr.msk.bf16.mxu0 %vm694_vm3, %v5613_v3  ;;  %v2407_v1 = vor.u32 %v2406_v41, %v2403_v19  ;;  %v5339_v3 = vcombine.low %v2365_v10, %v2375_v59  ;;  %v2437_v30 = vsel %vm6675_vm4, %v2432_v40, %v2436_v21 }
 0x157   : > { %6014 = vmatprep.mubr.msk.bf16.mxu1 %vm694_vm3, %v5337_v24  ;;  %v2394_v28 = vrot.slane %v2393_v37, 4  ;;  %v2423_v48 = vsel %vm6675_vm4, %v2418_v15, %v2422_v60  ;;  %v5342_v14 = vcombine.low %v2437_v30, %v2447_v9 }
 0x158   : > { %v2408_v46 = vrot.slane %v2407_v1, 4 }
 0x159   : > { %v2399_v42 = vsel %vm6675_vm4, %v2394_v28, %v2398_v45 }
 0x15a   : > { %v5340_v62 = vcombine.low %v2389_v20, %v2399_v42 }
 0x15d   : > { %6151 = vmatmul.mubr.msk.bf16.gmra.mrb[20].mxu0 %vm694_vm3, %v5614_v8  ;;  %v2413_v8 = vsel %vm6675_vm4, %v2408_v46, %v2412_v52 }
 0x15e   : > { %6015 = vmatmul.mubr.msk.bf16.gmra.mrb[20].mxu1 %vm694_vm3, %v5338_v44  ;;  %6154 = vmatprep.mubr.msk.bf16.mxu0 %vm694_vm3, %v5615_v56  ;;  %v5341_v56 = vcombine.low %v2413_v8, %v2423_v48 }
 0x15f   : > { %6018 = vmatprep.mubr.msk.bf16.mxu1 %vm694_vm3, %v5339_v3 }
 0x165   : > { %6155 = vmatmul.mubr.msk.bf16.gmra.mrb[24].mxu0 %vm694_vm3, %v5616_v43 }
 0x166   : > { %6019 = vmatmul.mubr.msk.bf16.gmra.mrb[24].mxu1 %vm694_vm3, %v5340_v62  ;;  %6158 = vmatprep.mubr.msk.bf16.mxu0 %vm694_vm3, %v5617_v50 }
 0x167   : > { %6022 = vmatprep.mubr.msk.bf16.mxu1 %vm694_vm3, %v5341_v56 }
 0x16d   : > { %6159 = vmatmul.mubr.msk.bf16.gmra.mrb[28].mxu0 %vm694_vm3, %v5618_v29 }
 0x16e   : > { %6023 = vmatmul.mubr.msk.bf16.gmra.mrb[28].mxu1 %vm694_vm3, %v5342_v14 }
 0x1e9   : > { %v5962_v63 = vpop.f32.mrb[0].mxu1 }
 0x1ea   : > { %v1857_v4 = vpop.f32.mrb[1].mxu1 }
 0x1eb   : > { %v5963_v43 = vpop.f32.mrb[2].mxu1 }
 0x1ec   : > { %v1860_v16 = vpop.f32.mrb[3].mxu1 }
 0x1f1   : > { %v5966_v58 = vpop.f32.mrb[4].mxu1 }
 0x1f2   : > { %v1873_v50 = vpop.f32.mrb[5].mxu1 }
 0x1f3   : > { %v5967_v54 = vpop.f32.mrb[6].mxu1 }
 0x1f4   : > { %v1876_v18 = vpop.f32.mrb[7].mxu1 }
 0x1f9   : > { %v5970_v11 = vpop.f32.mrb[8].mxu1 }
 0x1fa   : > { %v1889_v32 = vpop.f32.mrb[9].mxu1 }
 0x1fb   : > { %v8325_v24 = vpop.f32.mrb[10].mxu1 }
 0x1fc   : > { %v8327_v19 = vpop.f32.mrb[11].mxu1 }
 0x201   : > { %v8329_v5 = vpop.f32.mrb[12].mxu1 }
 0x202   : > { %v8331_v55 = vpop.f32.mrb[13].mxu1 }
 0x203   : > { %v8333_v29 = vpop.f32.mrb[14].mxu1 }
 0x204   : > { %v8335_v41 = vpop.f32.mrb[15].mxu1 }
 0x208   : > { %v6132_v52 = vpop.f32.mrb[0].mxu0 }
 0x209   : > { %v6164_v39 = vadd.f32 %v6132_v52, %v5962_v63  ;;  %v4608_v0 = vpop.f32.mrb[1].mxu0 }
 0x20a   : > { %v6165_v36 = vadd.f32 %v4608_v0, %v1857_v4  ;;  %v6133_v10 = vpop.f32.mrb[2].mxu0 }
 0x20b   : > { %v4776_v59 = vadd.f32 %v6164_v39, %v8340_v2  ;;  %v6166_v38 = vadd.f32 %v6133_v10, %v5963_v43  ;;  %v4611_v37 = vpop.f32.mrb[3].mxu0 }
 0x20c   : > { %v4774_v26 = vadd.f32 %v6165_v36, %v8340_v2  ;;  %v6167_v35 = vadd.f32 %v4611_v37, %v1860_v16 }
 0x20d   : > { %v4808_v34 = vmax.f32 %v4776_v59, 0.0  ;;  %v4777_v6 = vadd.f32 %v6166_v38, %v8340_v2 }
 0x20e   : > { %v4806_v49 = vmax.f32 %v4774_v26, 0.0  ;;  %v4775_v23 = vadd.f32 %v6167_v35, %v8340_v2 }
 0x20f   : > { %v5673_v25 = vpack.c.bf16 %v4808_v34, %v4808_v34  ;;  %v4809_v1 = vmax.f32 %v4777_v6, 0.0 }
 0x210   : > { %v5671_v7 = vpack.c.bf16 %v4806_v49, %v4806_v49  ;;  %v4807_v61 = vmax.f32 %v4775_v23, 0.0  ;;  %v6136_v22 = vpop.f32.mrb[4].mxu0 }
 0x211   : > { %4969 = vst.msk [vmem:[%s8349_s24 + $0x8] sm:$0xf] %vm4966_vm8, %v5673_v25  ;;  %v5674_v44 = vpack.c.bf16 %v4809_v1, %v4809_v1  ;;  %v6168_v3 = vadd.f32 %v6136_v22, %v5966_v58  ;;  %v4624_v51 = vpop.f32.mrb[5].mxu0 }
 0x212   : > { %4967 = vst.msk [vmem:[%s8349_s24] sm:$0xf] %vm4966_vm8, %v5671_v7  ;;  %v5672_v28 = vpack.c.bf16 %v4807_v61, %v4807_v61  ;;  %v6169_v45 = vadd.f32 %v4624_v51, %v1873_v50  ;;  %v6137_v27 = vpop.f32.mrb[6].mxu0 }
 0x213   : > { %4970 = vst.msk [vmem:[%s8349_s24 + $0xc] sm:$0xf] %vm4966_vm8, %v5674_v44  ;;  %v4780_v53 = vadd.f32 %v6168_v3, %v8340_v2  ;;  %v6170_v21 = vadd.f32 %v6137_v27, %v5967_v54  ;;  %v4627_v47 = vpop.f32.mrb[7].mxu0 }
 0x214   : > { %4968 = vst.msk [vmem:[%s8349_s24 + $0x4] sm:$0xf] %vm4966_vm8, %v5672_v28  ;;  %v4778_v46 = vadd.f32 %v6169_v45, %v8340_v2  ;;  %v6171_v15 = vadd.f32 %v4627_v47, %v1876_v18 }
 0x215   : > { %v4812_v60 = vmax.f32 %v4780_v53, 0.0  ;;  %v4781_v20 = vadd.f32 %v6170_v21, %v8340_v2 }
 0x216   : > { %v4810_v42 = vmax.f32 %v4778_v46, 0.0  ;;  %v4779_v33 = vadd.f32 %v6171_v15, %v8340_v2 }
 0x217   : > { %v5677_v12 = vpack.c.bf16 %v4812_v60, %v4812_v60  ;;  %v4813_v31 = vmax.f32 %v4781_v20, 0.0 }
 0x218   : > { %v5675_v57 = vpack.c.bf16 %v4810_v42, %v4810_v42  ;;  %v4811_v8 = vmax.f32 %v4779_v33, 0.0  ;;  %v6140_v48 = vpop.f32.mrb[8].mxu0 }
 0x219   : > { %4973 = vst.msk [vmem:[%s8349_s24 + $0x18] sm:$0xf] %vm4966_vm8, %v5677_v12  ;;  %v5678_v62 = vpack.c.bf16 %v4813_v31, %v4813_v31  ;;  %v6172_v56 = vadd.f32 %v6140_v48, %v5970_v11  ;;  %v4640_v40 = vpop.f32.mrb[9].mxu0 }
 0x21a   : > { %4971 = vst.msk [vmem:[%s8349_s24 + $0x10] sm:$0xf] %vm4966_vm8, %v5675_v57  ;;  %v5676_v13 = vpack.c.bf16 %v4811_v8, %v4811_v8  ;;  %v6173_v17 = vadd.f32 %v4640_v40, %v1889_v32  ;;  %v6141_v30 = vpop.f32.mrb[10].mxu0 }
 0x21b   : > { %4974 = vst.msk [vmem:[%s8349_s24 + $0x1c] sm:$0xf] %vm4966_vm8, %v5678_v62  ;;  %v4784_v9 = vadd.f32 %v6172_v56, %v8340_v2  ;;  %v6174_v14 = vadd.f32 %v6141_v30, %v8325_v24  ;;  %v4643_v63 = vpop.f32.mrb[11].mxu0 }
 0x21c   : > { %4972 = vst.msk [vmem:[%s8349_s24 + $0x14] sm:$0xf] %vm4966_vm8, %v5676_v13  ;;  %v4782_v4 = vadd.f32 %v6173_v17, %v8340_v2  ;;  %v6175_v43 = vadd.f32 %v4643_v63, %v8327_v19 }
 0x21d   : > { %v4816_v16 = vmax.f32 %v4784_v9, 0.0  ;;  %v4785_v58 = vadd.f32 %v6174_v14, %v8340_v2 }
 0x21e   : > { %v4814_v50 = vmax.f32 %v4782_v4, 0.0  ;;  %v4783_v54 = vadd.f32 %v6175_v43, %v8340_v2 }
 0x21f   : > { %v5681_v18 = vpack.c.bf16 %v4816_v16, %v4816_v16  ;;  %v4817_v11 = vmax.f32 %v4785_v58, 0.0 }
 0x220   : > { %v5679_v32 = vpack.c.bf16 %v4814_v50, %v4814_v50  ;;  %v4815_v24 = vmax.f32 %v4783_v54, 0.0  ;;  %v6144_v52 = vpop.f32.mrb[12].mxu0 }
 0x221   : > { %4977 = vst.msk [vmem:[%s8349_s24 + $0x28] sm:$0xf] %vm4966_vm8, %v5681_v18  ;;  %v5682_v39 = vpack.c.bf16 %v4817_v11, %v4817_v11  ;;  %v6176_v0 = vadd.f32 %v6144_v52, %v8329_v5  ;;  %v4656_v36 = vpop.f32.mrb[13].mxu0 }
 0x222   : > { %4975 = vst.msk [vmem:[%s8349_s24 + $0x20] sm:$0xf] %vm4966_vm8, %v5679_v32  ;;  %v5680_v19 = vpack.c.bf16 %v4815_v24, %v4815_v24  ;;  %v6177_v10 = vadd.f32 %v4656_v36, %v8331_v55  ;;  %v6145_v59 = vpop.f32.mrb[14].mxu0 }
 0x223   : > { %4978 = vst.msk [vmem:[%s8349_s24 + $0x2c] sm:$0xf] %vm4966_vm8, %v5682_v39  ;;  %v4788_v38 = vadd.f32 %v6176_v0, %v8340_v2  ;;  %v6178_v37 = vadd.f32 %v6145_v59, %v8333_v29  ;;  %v4659_v26 = vpop.f32.mrb[15].mxu0 }
 0x224   : > { %4976 = vst.msk [vmem:[%s8349_s24 + $0x24] sm:$0xf] %vm4966_vm8, %v5680_v19  ;;  %v4786_v5 = vadd.f32 %v6177_v10, %v8340_v2  ;;  %v6179_v35 = vadd.f32 %v4659_v26, %v8335_v41 }
 0x225   : > { %v4820_v34 = vmax.f32 %v4788_v38, 0.0  ;;  %v4789_v6 = vadd.f32 %v6178_v37, %v8340_v2 }
 0x226   : > { %v4818_v55 = vmax.f32 %v4786_v5, 0.0  ;;  %v4787_v49 = vadd.f32 %v6179_v35, %v8340_v2 }
 0x227   : > { %v5685_v23 = vpack.c.bf16 %v4820_v34, %v4820_v34  ;;  %v4821_v25 = vmax.f32 %v4789_v6, 0.0 }
 0x228   : > { %v5683_v1 = vpack.c.bf16 %v4818_v55, %v4818_v55  ;;  %v4819_v29 = vmax.f32 %v4787_v49, 0.0  ;;  %v6148_v7 = vpop.f32.mrb[16].mxu0 }
 0x229   : > { %4981 = vst.msk [vmem:[%s8349_s24 + $0x38] sm:$0xf] %vm4966_vm8, %v5685_v23  ;;  %v5686_v61 = vpack.c.bf16 %v4821_v25, %v4821_v25  ;;  %v6012_v22 = vpop.f32.mrb[16].mxu1  ;;  %v4672_v44 = vpop.f32.mrb[17].mxu0 }
 0x22a   : > { %4979 = vst.msk [vmem:[%s8349_s24 + $0x30] sm:$0xf] %vm4966_vm8, %v5683_v1  ;;  %v5684_v41 = vpack.c.bf16 %v4819_v29, %v4819_v29  ;;  %v6180_v3 = vadd.f32 %v6148_v7, %v6012_v22  ;;  %v2647_v51 = vpop.f32.mrb[17].mxu1  ;;  %v6149_v28 = vpop.f32.mrb[18].mxu0 }
 0x22b   : > { %4982 = vst.msk [vmem:[%s8349_s24 + $0x3c] sm:$0xf] %vm4966_vm8, %v5686_v61  ;;  %v6181_v45 = vadd.f32 %v4672_v44, %v2647_v51  ;;  %v6013_v27 = vpop.f32.mrb[18].mxu1  ;;  %v4675_v53 = vpop.f32.mrb[19].mxu0 }
 0x22c   : > { %4980 = vst.msk [vmem:[%s8349_s24 + $0x34] sm:$0xf] %vm4966_vm8, %v5684_v41  ;;  %v4792_v21 = vadd.f32 %v6180_v3, %v8340_v2  ;;  %v6182_v47 = vadd.f32 %v6149_v28, %v6013_v27  ;;  %v2650_v46 = vpop.f32.mrb[19].mxu1 }
 0x22d   : > { %v4790_v15 = vadd.f32 %v6181_v45, %v8340_v2  ;;  %v6183_v60 = vadd.f32 %v4675_v53, %v2650_v46 }
 0x22e   : > { %v4824_v20 = vmax.f32 %v4792_v21, 0.0  ;;  %v4793_v42 = vadd.f32 %v6182_v47, %v8340_v2 }
 0x22f   : > { %v4822_v33 = vmax.f32 %v4790_v15, 0.0  ;;  %v4791_v12 = vadd.f32 %v6183_v60, %v8340_v2 }
 0x230   : > { %v5689_v31 = vpack.c.bf16 %v4824_v20, %v4824_v20  ;;  %v4825_v57 = vmax.f32 %v4793_v42, 0.0  ;;  %v6152_v8 = vpop.f32.mrb[20].mxu0 }
 0x231   : > { %v5687_v48 = vpack.c.bf16 %v4822_v33, %v4822_v33  ;;  %v4823_v62 = vmax.f32 %v4791_v12, 0.0  ;;  %v6016_v56 = vpop.f32.mrb[20].mxu1  ;;  %v4688_v40 = vpop.f32.mrb[21].mxu0 }
 0x232   : > { %4985 = vst.msk [vmem:[%s8349_s24 + $0x48] sm:$0xf] %vm4966_vm8, %v5689_v31  ;;  %v5690_v13 = vpack.c.bf16 %v4825_v57, %v4825_v57  ;;  %v6184_v17 = vadd.f32 %v6152_v8, %v6016_v56  ;;  %v2663_v30 = vpop.f32.mrb[21].mxu1  ;;  %v6153_v9 = vpop.f32.mrb[22].mxu0 }
 0x233   : > { %4983 = vst.msk [vmem:[%s8349_s24 + $0x40] sm:$0xf] %vm4966_vm8, %v5687_v48  ;;  %v5688_v14 = vpack.c.bf16 %v4823_v62, %v4823_v62  ;;  %v6185_v63 = vadd.f32 %v4688_v40, %v2663_v30  ;;  %v6017_v4 = vpop.f32.mrb[22].mxu1  ;;  %v4691_v43 = vpop.f32.mrb[23].mxu0 }
 0x234   : > { %4986 = vst.msk [vmem:[%s8349_s24 + $0x4c] sm:$0xf] %vm4966_vm8, %v5690_v13  ;;  %v4796_v16 = vadd.f32 %v6184_v17, %v8340_v2  ;;  %v6186_v58 = vadd.f32 %v6153_v9, %v6017_v4  ;;  %v2666_v50 = vpop.f32.mrb[23].mxu1 }
 0x235   : > { %4984 = vst.msk [vmem:[%s8349_s24 + $0x44] sm:$0xf] %vm4966_vm8, %v5688_v14  ;;  %v4794_v54 = vadd.f32 %v6185_v63, %v8340_v2  ;;  %v6187_v18 = vadd.f32 %v4691_v43, %v2666_v50 }
 0x236   : > { %v4828_v11 = vmax.f32 %v4796_v16, 0.0  ;;  %v4797_v32 = vadd.f32 %v6186_v58, %v8340_v2 }
 0x237   : > { %v4826_v24 = vmax.f32 %v4794_v54, 0.0  ;;  %v4795_v52 = vadd.f32 %v6187_v18, %v8340_v2 }
 0x238   : > { %v5693_v39 = vpack.c.bf16 %v4828_v11, %v4828_v11  ;;  %v4829_v0 = vmax.f32 %v4797_v32, 0.0  ;;  %v6156_v36 = vpop.f32.mrb[24].mxu0 }
 0x239   : > { %v5691_v19 = vpack.c.bf16 %v4826_v24, %v4826_v24  ;;  %v4827_v10 = vmax.f32 %v4795_v52, 0.0  ;;  %v6020_v59 = vpop.f32.mrb[24].mxu1  ;;  %v4704_v38 = vpop.f32.mrb[25].mxu0 }
 0x23a   : > { %4989 = vst.msk [vmem:[%s8349_s24 + $0x58] sm:$0xf] %vm4966_vm8, %v5693_v39  ;;  %v5694_v37 = vpack.c.bf16 %v4829_v0, %v4829_v0  ;;  %v6188_v26 = vadd.f32 %v6156_v36, %v6020_v59  ;;  %v2679_v5 = vpop.f32.mrb[25].mxu1  ;;  %v6157_v35 = vpop.f32.mrb[26].mxu0 }
 0x23b   : > { %4987 = vst.msk [vmem:[%s8349_s24 + $0x50] sm:$0xf] %vm4966_vm8, %v5691_v19  ;;  %v5692_v34 = vpack.c.bf16 %v4827_v10, %v4827_v10  ;;  %v6189_v6 = vadd.f32 %v4704_v38, %v2679_v5  ;;  %v6021_v55 = vpop.f32.mrb[26].mxu1  ;;  %v4707_v49 = vpop.f32.mrb[27].mxu0 }
 0x23c   : > { %4990 = vst.msk [vmem:[%s8349_s24 + $0x5c] sm:$0xf] %vm4966_vm8, %v5694_v37  ;;  %v4800_v23 = vadd.f32 %v6188_v26, %v8340_v2  ;;  %v6190_v25 = vadd.f32 %v6157_v35, %v6021_v55  ;;  %v2682_v1 = vpop.f32.mrb[27].mxu1 }
 0x23d   : > { %4988 = vst.msk [vmem:[%s8349_s24 + $0x54] sm:$0xf] %vm4966_vm8, %v5692_v34  ;;  %v4798_v29 = vadd.f32 %v6189_v6, %v8340_v2  ;;  %v6191_v7 = vadd.f32 %v4707_v49, %v2682_v1 }
 0x23e   : > { %v4832_v61 = vmax.f32 %v4800_v23, 0.0  ;;  %v4801_v22 = vadd.f32 %v6190_v25, %v8340_v2 }
 0x23f   : > { %v4830_v44 = vmax.f32 %v4798_v29, 0.0  ;;  %v4799_v41 = vadd.f32 %v6191_v7, %v8340_v2 }
 0x240   : > { %v5697_v3 = vpack.c.bf16 %v4832_v61, %v4832_v61  ;;  %v4833_v51 = vmax.f32 %v4801_v22, 0.0  ;;  %v6160_v28 = vpop.f32.mrb[28].mxu0 }
 0x241   : > { %v5695_v45 = vpack.c.bf16 %v4830_v44, %v4830_v44  ;;  %v4831_v27 = vmax.f32 %v4799_v41, 0.0  ;;  %v6024_v53 = vpop.f32.mrb[28].mxu1  ;;  %v4720_v21 = vpop.f32.mrb[29].mxu0 }
 0x242   : > { %4993 = vst.msk [vmem:[%s8349_s24 + $0x68] sm:$0xf] %vm4966_vm8, %v5697_v3  ;;  %v5698_v47 = vpack.c.bf16 %v4833_v51, %v4833_v51  ;;  %v6192_v46 = vadd.f32 %v6160_v28, %v6024_v53  ;;  %v2695_v15 = vpop.f32.mrb[29].mxu1  ;;  %v6161_v60 = vpop.f32.mrb[30].mxu0 }
 0x243   : > { %4991 = vst.msk [vmem:[%s8349_s24 + $0x60] sm:$0xf] %vm4966_vm8, %v5695_v45  ;;  %v5696_v20 = vpack.c.bf16 %v4831_v27, %v4831_v27  ;;  %v6193_v42 = vadd.f32 %v4720_v21, %v2695_v15  ;;  %v6025_v33 = vpop.f32.mrb[30].mxu1  ;;  %v4723_v12 = vpop.f32.mrb[31].mxu0 }
 0x244   : > { %4994 = vst.msk [vmem:[%s8349_s24 + $0x6c] sm:$0xf] %vm4966_vm8, %v5698_v47  ;;  %v4804_v31 = vadd.f32 %v6192_v46, %v8340_v2  ;;  %v6194_v57 = vadd.f32 %v6161_v60, %v6025_v33  ;;  %v2698_v8 = vpop.f32.mrb[31].mxu1 }
 0x245   : > { %4992 = vst.msk [vmem:[%s8349_s24 + $0x64] sm:$0xf] %vm4966_vm8, %v5696_v20  ;;  %v4802_v48 = vadd.f32 %v6193_v42, %v8340_v2  ;;  %v6195_v62 = vadd.f32 %v4723_v12, %v2698_v8 }
 0x246   : > { %v4836_v56 = vmax.f32 %v4804_v31, 0.0  ;;  %v4805_v40 = vadd.f32 %v6194_v57, %v8340_v2 }
 0x247   : > { %v4834_v13 = vmax.f32 %v4802_v48, 0.0  ;;  %v4803_v17 = vadd.f32 %v6195_v62, %v8340_v2 }
 0x248   : > { %v5701_v30 = vpack.c.bf16 %v4836_v56, %v4836_v56  ;;  %v4837_v9 = vmax.f32 %v4805_v40, 0.0 }
 0x249   : > { %v5699_v14 = vpack.c.bf16 %v4834_v13, %v4834_v13  ;;  %v4835_v63 = vmax.f32 %v4803_v17, 0.0 }
 0x24a   : > { %4997 = vst.msk [vmem:[%s8349_s24 + $0x78] sm:$0xf] %vm4966_vm8, %v5701_v30  ;;  %v5702_v4 = vpack.c.bf16 %v4837_v9, %v4837_v9 }
 0x24b   : > { %4995 = vst.msk [vmem:[%s8349_s24 + $0x70] sm:$0xf] %vm4966_vm8, %v5699_v14  ;;  %v5700_v43 = vpack.c.bf16 %v4835_v63, %v4835_v63 }
 0x24c   : > { %4998 = vst.msk [vmem:[%s8349_s24 + $0x7c] sm:$0xf] %vm4966_vm8, %v5702_v4 }
 0x24d   : > { %4996 = vst.msk [vmem:[%s8349_s24 + $0x74] sm:$0xf] %vm4966_vm8, %v5700_v43 }
 0x24e PF: > { %s13_s14 = sadd.s32 1, %s6582_s14   ;;  %s8530_s12 = smov %s6578_s13 }
 0x24f   : > { %p10_p5 = scmp.ge.s32.totalorder %s13_s14, 4   ;;  %s8531_s13 = smov %s8533_s15 }
 0x251   :  { %12 = sbr.rel (!%p10_p5) target bundleno = 2 (0x2), region = 72 }

// kernel: run.20
= control target key start
LH: loop header
LB: loop body
LE: loop exit
PB: predicated region body
PF: predicated region fallthrough
CT: control target
= control target key end

     0   :  { %s6657_s12 = smov 0   ;;  %s6659_s13 = smov 0   ;;  %s8491_s0 = inlined_call_operand.vmem [shape: bf16[2,1,18,18,16], index: 0, kind: input, shape index: {}]   ;;  %s8492_s1 = inlined_call_operand.vmem [shape: bf16[3,3,16,16], index: 1, kind: input, shape index: {}]   ;;  %s8493_s2 = inlined_call_operand.vmem [shape: f32[1,16], index: 2, kind: input, shape index: {}]   ;;  %s8494_s3 = inlined_call_operand.vmem [shape: bf16[2,1,256,16], index: 3, kind: output, shape index: {}]  }
   0x1   :  { %s6661_s14 = smov 0  }
   0x2 LB: > { %s25_s15 = sadd.s32 1, %s6631_s13  ;;  %p5130_p0 = scmp.ge.s32.totalorder %s6635_s14, 1  ;;  %s6635_s14 = sphi %s6661_s14, %s13_s14   ;;  %s6631_s13 = sphi %s6659_s13, %s8560_s13   ;;  %s6627_s12 = sphi %s6657_s12, %s8559_s12  }
   0x3   : > { %p27_p1 = scmp.ge.s32.totalorder %s25_s15, 2  ;;  %p157_p2 = scmp.lt.s32.totalorder %s6635_s14, 3 }
   0x5   : > { %s8562_s15 = smov (%p27_p1, %s25_s15), 0  ;;  %p158_p3 = pnand %p5130_p0, %p157_p2 }
   0x7   : > { %161 = sbr.rel (%p158_p3) target bundleno = 590 (0x24e), region = 32 }
   0xe   : > { %v6497_v0 = vld [vmem:[%s8492_s1 + $0x8] sm:$0xff]   ;;  %p189_p4 = scmp.lt.s32.totalorder %s6627_s12, 1  ;;  %v6498_v1 = vld [vmem:[%s8492_s1 + $0x20] sm:$0xff]   ;;  %vm258_vm0 = vsmask.f32 3328  ;;  %vm702_vm3 = vcmask 130048  }
   0xf   : > { %5908 = vmatprep.subr.bf16.mxu1 %v6497_v0  ;;  %v6686_v2 = vld [vmem:[%s8492_s1] sm:$0xff]   ;;  %6044 = vmatprep.subr.bf16.mxu0 %v6498_v1  ;;  %v6693_v3 = vld [vmem:[%s8492_s1 + $0x28] sm:$0xff]   ;;  %vm259_vm1 = vsmask.f32 7440  ;;  %vm1255_vm4 = vcmask 1042432   ;;  %vm1256_vm5 = vcmask 1046532  }
  0x10   : > { %s8564_s12 = smov (!%p189_p4, %s6627_s12), 1  ;;  %5909 = vmatpush3.bf16.msra.mxu1 %v6497_v0  ;;  %6045 = vmatpush3.bf16.msra.mxu0 %v6498_v1  ;;  %vm6717_vm2 = vmor %vm258_vm0, %vm259_vm1  ;;  %vm5001_vm7 = vcmask 125952  }
  0x11   : > { %s6472_s22 = smul.u32 216, %s8564_s12  ;;  %5942 = vmatprep.subr.bf16.mxu1 %v6686_v2  ;;  %6078 = vmatprep.subr.bf16.mxu0 %v6693_v3  ;;  %vm6939_vm6 = vmor %vm1255_vm4, %vm1256_vm5  ;;  %s5722_s21 = sshll.u32 %s8564_s12, 7 }
  0x12   : > { %s8381_s24 = scalar_lea.vmem %s8494_s3, %s5722_s21 }
  0x13   : > { %s6698_s27 = scalar_lea.vmem %s8491_s0, %s6472_s22 }
  0x14   : > { %v208_v4 = vld [vmem:[%s6698_s27] sm:$0xf]  ;;  %v209_v5 = vld [vmem:[%s6698_s27 + $0x4] sm:$0xf]  ;;  %v242_v6 = vld [vmem:[%s6698_s27 + $0x8] sm:$0x1] }
  0x15   : > { %v262_v7 = vshrl.u32 %v208_v4, 16  ;;  %v265_v8 = vshll.u32 %v208_v4, 16  ;;  %v271_v9 = vshll.u32 %v209_v5, 16  ;;  %v275_v10 = vshrl.u32 %v209_v5, 16  ;;  %v5320_v11 = vld [vmem:[%s6698_s27 + $0xc] sm:$0xf] }
  0x16   : > { %v281_v12 = vshll.u32 %v242_v6, 16  ;;  %v6706_v13 = vld [vmem:[%s6698_s27 + $0x10] sm:$0xf]  ;;  %v6709_v14 = vld [vmem:[%s6698_s27 + $0x14] sm:$0x1]  ;;  %v2080_v20 = vshrl.u32 %v5320_v11, 16 }
  0x17   : > { %v264_v15 = vrot.slane %v262_v7, 4  ;;  %v267_v16 = vrot.slane %v265_v8, 5  ;;  %v273_v17 = vrot.slane %v271_v9, 5  ;;  %v277_v18 = vrot.slane %v275_v10, 4  ;;  %v210_v27 = vld [vmem:[%s6698_s27 + $0xc] sm:$0xf] }
  0x18   : > { %v283_v19 = vrot.slane %v281_v12, 5  ;;  %v2083_v21 = vshll.u32 %v5320_v11, 16  ;;  %v2089_v22 = vshll.u32 %v6706_v13, 16  ;;  %v2093_v25 = vshrl.u32 %v6706_v13, 16  ;;  %v211_v32 = vld [vmem:[%s6698_s27 + $0x10] sm:$0xf] }
  0x19   : > { %v268_v23 = vor.u32 %v267_v16, %v264_v15  ;;  %v278_v24 = vor.u32 %v277_v18, %v273_v17  ;;  %v2099_v26 = vshll.u32 %v6709_v14, 16  ;;  %v2082_v29 = vrot.slane %v2080_v20, 4  ;;  %v243_v38 = vld [vmem:[%s6698_s27 + $0x14] sm:$0x1]  ;;  %v5323_v49 = vld [vmem:[%s6698_s27 + $0x18] sm:$0xf] }
  0x1a   : > { %v2085_v30 = vrot.slane %v2083_v21, 5  ;;  %v2091_v31 = vrot.slane %v2089_v22, 5  ;;  %v2095_v35 = vrot.slane %v2093_v25, 4  ;;  %v286_v39 = vshrl.u32 %v210_v27, 16  ;;  %v6729_v54 = vld [vmem:[%s6698_s27 + $0x1c] sm:$0xf] }
  0x1b   : > { %v269_v33 = vrot.slane %v268_v23, 4  ;;  %v279_v34 = vrot.slane %v278_v24, 4  ;;  %v2101_v37 = vrot.slane %v2099_v26, 5  ;;  %v289_v40 = vshll.u32 %v210_v27, 16  ;;  %v6737_v59 = vld [vmem:[%s6698_s27 + $0x20] sm:$0x1] }
  0x1c   : > { %v2086_v36 = vor.u32 %v2085_v30, %v2082_v29  ;;  %v2096_v43 = vor.u32 %v2095_v35, %v2091_v31  ;;  %v295_v44 = vshll.u32 %v211_v32, 16  ;;  %v288_v47 = vrot.slane %v286_v39, 4  ;;  %v212_v10 = vld [vmem:[%s6698_s27 + $0x18] sm:$0xf]  ;;  %v244_v24 = vld [vmem:[%s6698_s27 + $0x20] sm:$0x1] }
  0x1d   : > { %v274_v41 = vsel %vm6717_vm2, %v269_v33, %v273_v17  ;;  %v284_v42 = vsel %vm6717_vm2, %v279_v34, %v283_v19  ;;  %v291_v48 = vrot.slane %v289_v40, 5  ;;  %v299_v52 = vshrl.u32 %v211_v32, 16  ;;  %v213_v17 = vld [vmem:[%s6698_s27 + $0x1c] sm:$0xf]  ;;  %v5326_v32 = vld [vmem:[%s6698_s27 + $0x24] sm:$0xf] }
  0x1e   : > { %v5136_v45 = vcombine.low %v274_v41, %v284_v42  ;;  %v2087_v46 = vrot.slane %v2086_v36, 4  ;;  %v2097_v50 = vrot.slane %v2096_v43, 4  ;;  %v297_v51 = vrot.slane %v295_v44, 5 }
  0x1f   : > { %v305_v53 = vshll.u32 %v243_v38, 16  ;;  %v2827_v56 = vrot.slane %v6706_v13, 5  ;;  %v2830_v57 = vrot.slane %v6709_v14, 5  ;;  %v292_v58 = vor.u32 %v291_v48, %v288_v47  ;;  %v6503_v38 = vld [vmem:[%s8492_s1 + $0x10] sm:$0xff]   ;;  %v6972_v14 = vld [vmem:[%s6698_s27 + $0x7c] sm:$0xf] }
  0x20   : > { %5910 = vmatprep.mubr.msk.bf16.mxu1 %vm702_vm3, %v5136_v45  ;;  %v2092_v55 = vsel %vm6717_vm2, %v2087_v46, %v2091_v31  ;;  %v2102_v60 = vsel %vm6717_vm2, %v2097_v50, %v2101_v37  ;;  %v301_v61 = vrot.slane %v299_v52, 4  ;;  %v2104_v63 = vshrl.u32 %v5323_v49, 16  ;;  %v6760_v37 = vld [vmem:[%s6698_s27 + $0x28] sm:$0xf]  ;;  %v6769_v45 = vld [vmem:[%s6698_s27 + $0x2c] sm:$0x1] }
  0x21   : > { %v307_v62 = vrot.slane %v305_v53, 5  ;;  %v5370_v0 = vcombine.low %v2092_v55, %v2102_v60  ;;  %v293_v1 = vrot.slane %v292_v58, 4  ;;  %v2107_v4 = vshll.u32 %v5323_v49, 16  ;;  %v214_v52 = vld [vmem:[%s6698_s27 + $0x24] sm:$0xf] }
  0x22   : > { %v2113_v5 = vshll.u32 %v6729_v54, 16  ;;  %v302_v6 = vor.u32 %v301_v61, %v297_v51  ;;  %v2106_v7 = vrot.slane %v2104_v63, 4  ;;  %v2117_v8 = vshrl.u32 %v6729_v54, 16  ;;  %v215_v61 = vld [vmem:[%s6698_s27 + $0x28] sm:$0xf] }
  0x23   : > { %v2123_v9 = vshll.u32 %v6737_v59, 16  ;;  %6046 = vmatprep.mubr.msk.bf16.mxu0 %vm702_vm3, %v5370_v0  ;;  %v298_v11 = vsel %vm6717_vm2, %v293_v1, %v297_v51  ;;  %v2109_v12 = vrot.slane %v2107_v4, 5  ;;  %v2834_v16 = vrot.slane %v6729_v54, 5 }
  0x24   : > { %v2115_v15 = vrot.slane %v2113_v5, 5  ;;  %v303_v18 = vrot.slane %v302_v6, 4  ;;  %v2119_v19 = vrot.slane %v2117_v8, 4  ;;  %v2837_v21 = vrot.slane %v6737_v59, 5  ;;  %v245_v6 = vld [vmem:[%s6698_s27 + $0x2c] sm:$0x1] }
  0x25   : > { %v2125_v20 = vrot.slane %v2123_v9, 5  ;;  %v2110_v22 = vor.u32 %v2109_v12, %v2106_v7  ;;  %v6753_v23 = vrot.slane %v2834_v16, 4  ;;  %v310_v25 = vshrl.u32 %v212_v10, 16 }
  0x26   : > { %v313_v26 = vshll.u32 %v212_v10, 16  ;;  %v308_v27 = vsel %vm6717_vm2, %v303_v18, %v307_v62  ;;  %v2120_v29 = vor.u32 %v2119_v19, %v2115_v15  ;;  %v319_v30 = vshll.u32 %v213_v17, 16  ;;  %v6780_v62 = vld [vmem:[%s8492_s1 + $0x30] sm:$0xff]  }
  0x27   : > { %v323_v31 = vshrl.u32 %v213_v17, 16  ;;  %v5137_v33 = vcombine.low %v298_v11, %v308_v27  ;;  %v2111_v34 = vrot.slane %v2110_v22, 4  ;;  %v312_v35 = vrot.slane %v310_v25, 4  ;;  %v6793_v22 = vld [vmem:[%s6698_s27 + $0x34] sm:$0xf] }
  0x28   : > { %v315_v36 = vrot.slane %v313_v26, 5  ;;  %v2121_v39 = vrot.slane %v2120_v29, 4  ;;  %v321_v40 = vrot.slane %v319_v30, 5  ;;  %v329_v42 = vshll.u32 %v244_v24, 16  ;;  %v6800_v30 = vld [vmem:[%s6698_s27 + $0x38] sm:$0x1] }
  0x29   : > { %v325_v41 = vrot.slane %v323_v31, 4  ;;  %5911 = vmatmul.mubr.msk.bf16.vlgmr.msra.gmra.mrb[0].mxu1 %vm702_vm3, %v5137_v33  ;;  %v2116_v43 = vsel %vm6717_vm2, %v2111_v34, %v2115_v15  ;;  %v2128_v46 = vshrl.u32 %v5326_v32, 16  ;;  %v2131_v47 = vshll.u32 %v5326_v32, 16  ;;  %v5329_v15 = vld [vmem:[%s6698_s27 + $0x30] sm:$0xf] }
  0x2a   : > { %v316_v44 = vor.u32 %v315_v36, %v312_v35  ;;  %5943 = vmatpush3.bf16.msra.mxu1 %v6686_v2  ;;  %v2126_v48 = vsel %vm6717_vm2, %v2121_v39, %v2125_v20  ;;  %v331_v50 = vrot.slane %v329_v42, 5  ;;  %v2137_v51 = vshll.u32 %v6760_v37, 16  ;;  %v216_v42 = vld [vmem:[%s6698_s27 + $0x30] sm:$0xf] }
  0x2b   : > { %v326_v49 = vor.u32 %v325_v41, %v321_v40  ;;  %v5371_v53 = vcombine.low %v2116_v43, %v2126_v48  ;;  %v2130_v58 = vrot.slane %v2128_v46, 4  ;;  %v2133_v60 = vrot.slane %v2131_v47, 5  ;;  %5976 = vmatprep.subr.bf16.mxu1 %v6503_v38  ;;  %v217_v48 = vld [vmem:[%s6698_s27 + $0x34] sm:$0xf] }
  0x2c   : > { %v317_v55 = vrot.slane %v316_v44, 4  ;;  %v2139_v63 = vrot.slane %v2137_v51, 5  ;;  %v2141_v0 = vshrl.u32 %v6760_v37, 16  ;;  %v2147_v1 = vshll.u32 %v6769_v45, 16 }
  0x2d   : > { %v327_v2 = vrot.slane %v326_v49, 4  ;;  %6047 = vmatmul.mubr.msk.bf16.vlgmr.msra.gmra.mrb[0].mxu0 %vm702_vm3, %v5371_v53  ;;  %v2134_v5 = vor.u32 %v2133_v60, %v2130_v58  ;;  %v334_v7 = vshrl.u32 %v214_v52, 16  ;;  %v337_v8 = vshll.u32 %v214_v52, 16  ;;  %v246_v53 = vld [vmem:[%s6698_s27 + $0x38] sm:$0x1] }
  0x2e   : > { %v322_v4 = vsel %vm6717_vm2, %v317_v55, %v321_v40  ;;  %6079 = vmatpush3.bf16.msra.mxu0 %v6693_v3  ;;  %v2143_v10 = vrot.slane %v2141_v0, 4  ;;  %v2149_v11 = vrot.slane %v2147_v1, 5  ;;  %v343_v12 = vshll.u32 %v215_v61, 16 }
  0x2f   : > { %v332_v9 = vsel %vm6717_vm2, %v327_v2, %v331_v50  ;;  %v2135_v18 = vrot.slane %v2134_v5, 4  ;;  %v336_v19 = vrot.slane %v334_v7, 4  ;;  %v339_v20 = vrot.slane %v337_v8, 5  ;;  %6112 = vmatprep.subr.bf16.mxu0 %v6780_v62 }
  0x30   : > { %v5138_v17 = vcombine.low %v322_v4, %v332_v9  ;;  %v2144_v24 = vor.u32 %v2143_v10, %v2139_v63  ;;  %v345_v25 = vrot.slane %v343_v12, 5  ;;  %v347_v26 = vshrl.u32 %v215_v61, 16  ;;  %v5332_v4 = vld [vmem:[%s6698_s27 + $0x3c] sm:$0xf]  ;;  %v6817_v9 = vld [vmem:[%s6698_s27 + $0x40] sm:$0xf] }
  0x31   : > { %v353_v3 = vshll.u32 %v245_v6, 16  ;;  %v2140_v27 = vsel %vm6717_vm2, %v2135_v18, %v2139_v63  ;;  %v340_v29 = vor.u32 %v339_v20, %v336_v19  ;;  %v2152_v31 = vshrl.u32 %v5329_v15, 16  ;;  %v6822_v20 = vld [vmem:[%s6698_s27 + $0x44] sm:$0x1] }
  0x32   : > { %5914 = vmatprep.mubr.msk.bf16.mxu1 %vm702_vm3, %v5138_v17  ;;  %v2155_v32 = vshll.u32 %v5329_v15, 16  ;;  %v2145_v33 = vrot.slane %v2144_v24, 4  ;;  %v349_v34 = vrot.slane %v347_v26, 4  ;;  %v2161_v36 = vshll.u32 %v6793_v22, 16 }
  0x33   : > { %v355_v35 = vrot.slane %v353_v3, 5  ;;  %v341_v38 = vrot.slane %v340_v29, 4  ;;  %v2154_v39 = vrot.slane %v2152_v31, 4  ;;  %v2165_v41 = vshrl.u32 %v6793_v22, 16  ;;  %v218_v29 = vld [vmem:[%s6698_s27 + $0x3c] sm:$0xf] }
  0x34   : > { %v2157_v40 = vrot.slane %v2155_v32, 5  ;;  %v2150_v43 = vsel %vm6717_vm2, %v2145_v33, %v2149_v11  ;;  %v350_v44 = vor.u32 %v349_v34, %v345_v25  ;;  %v2163_v46 = vrot.slane %v2161_v36, 5 }
  0x35   : > { %v2171_v47 = vshll.u32 %v6800_v30, 16  ;;  %v5372_v49 = vcombine.low %v2140_v27, %v2150_v43  ;;  %v346_v50 = vsel %vm6717_vm2, %v341_v38, %v345_v25  ;;  %v2167_v52 = vrot.slane %v2165_v41, 4 }
  0x36   : > { %v2158_v51 = vor.u32 %v2157_v40, %v2154_v39  ;;  %v351_v55 = vrot.slane %v350_v44, 4  ;;  %v358_v60 = vshrl.u32 %v216_v42, 16  ;;  %v361_v61 = vshll.u32 %v216_v42, 16 }
  0x37   : > { %v2173_v58 = vrot.slane %v2171_v47, 5  ;;  %6050 = vmatprep.mubr.msk.bf16.mxu0 %vm702_vm3, %v5372_v49  ;;  %v2168_v63 = vor.u32 %v2167_v52, %v2163_v46  ;;  %v367_v0 = vshll.u32 %v217_v48, 16  ;;  %v371_v1 = vshrl.u32 %v217_v48, 16  ;;  %v247_v49 = vld [vmem:[%s6698_s27 + $0x44] sm:$0x1] }
  0x38   : > { %v2159_v2 = vrot.slane %v2158_v51, 4  ;;  %v356_v5 = vsel %vm6717_vm2, %v351_v55, %v355_v35  ;;  %v360_v6 = vrot.slane %v358_v60, 4  ;;  %v363_v7 = vrot.slane %v361_v61, 5  ;;  %v219_v35 = vld [vmem:[%s6698_s27 + $0x40] sm:$0xf] }
  0x39   : > { %v377_v8 = vshll.u32 %v246_v53, 16  ;;  %v5139_v10 = vcombine.low %v346_v50, %v356_v5  ;;  %v2169_v12 = vrot.slane %v2168_v63, 4  ;;  %v369_v15 = vrot.slane %v367_v0, 5  ;;  %v5335_v51 = vld [vmem:[%s6698_s27 + $0x48] sm:$0xf] }
  0x3a   : > { %v2164_v11 = vsel %vm6717_vm2, %v2159_v2, %v2163_v46  ;;  %v364_v17 = vor.u32 %v363_v7, %v360_v6  ;;  %v373_v18 = vrot.slane %v371_v1, 4  ;;  %v2176_v24 = vshrl.u32 %v5332_v4, 16  ;;  %v6840_v60 = vld [vmem:[%s6698_s27 + $0x4c] sm:$0xf] }
  0x3b   : > { %v379_v19 = vrot.slane %v377_v8, 5  ;;  %5915 = vmatmul.mubr.msk.bf16.gmra.mrb[4].mxu1 %vm702_vm3, %v5139_v10  ;;  %v2174_v25 = vsel %vm6717_vm2, %v2169_v12, %v2173_v58  ;;  %v2179_v26 = vshll.u32 %v5332_v4, 16  ;;  %v2185_v3 = vshll.u32 %v6817_v9, 16  ;;  %v6848_v10 = vld [vmem:[%s6698_s27 + $0x50] sm:$0x1] }
  0x3c   : > { %v2189_v27 = vshrl.u32 %v6817_v9, 16  ;;  %v5373_v31 = vcombine.low %v2164_v11, %v2174_v25  ;;  %v365_v32 = vrot.slane %v364_v17, 4  ;;  %v374_v33 = vor.u32 %v373_v18, %v369_v15  ;;  %v6855_v25 = vld [vmem:[%s6698_s27 + $0x4c] sm:$0xf] }
  0x3d   : > { %v2178_v34 = vrot.slane %v2176_v24, 4  ;;  %v2181_v36 = vrot.slane %v2179_v26, 5  ;;  %v2187_v38 = vrot.slane %v2185_v3, 5  ;;  %v2195_v40 = vshll.u32 %v6822_v20, 16 }
  0x3e   : > { %v2191_v39 = vrot.slane %v2189_v27, 4  ;;  %6051 = vmatmul.mubr.msk.bf16.gmra.mrb[4].mxu0 %vm702_vm3, %v5373_v31  ;;  %v370_v41 = vsel %vm6717_vm2, %v365_v32, %v369_v15  ;;  %v375_v42 = vrot.slane %v374_v33, 4  ;;  %v382_v43 = vshrl.u32 %v218_v29, 16  ;;  %v6852_v15 = vld [vmem:[%s6698_s27 + $0x48] sm:$0xf] }
  0x3f   : > { %v385_v44 = vshll.u32 %v218_v29, 16  ;;  %v2182_v46 = vor.u32 %v2181_v36, %v2178_v34  ;;  %v2197_v48 = vrot.slane %v2195_v40, 5  ;;  %v391_v50 = vshll.u32 %v219_v35, 16  ;;  %v248_v34 = vld [vmem:[%s6698_s27 + $0x50] sm:$0x1] }
  0x40   : > { %v2192_v47 = vor.u32 %v2191_v39, %v2187_v38  ;;  %v380_v52 = vsel %vm6717_vm2, %v375_v42, %v379_v19  ;;  %v384_v53 = vrot.slane %v382_v43, 4  ;;  %v395_v58 = vshrl.u32 %v219_v35, 16 }
  0x41   : > { %v387_v55 = vrot.slane %v385_v44, 5  ;;  %v5140_v61 = vcombine.low %v370_v41, %v380_v52  ;;  %v2183_v2 = vrot.slane %v2182_v46, 4  ;;  %v393_v0 = vrot.slane %v391_v50, 5  ;;  %v5338_v41 = vld [vmem:[%s6698_s27 + $0x54] sm:$0xf] }
  0x42   : > { %v2193_v63 = vrot.slane %v2192_v47, 4  ;;  %v397_v4 = vrot.slane %v395_v58, 4  ;;  %v401_v5 = vshll.u32 %v247_v49, 16  ;;  %v2200_v6 = vshrl.u32 %v5335_v51, 16 }
  0x43   : > { %v388_v1 = vor.u32 %v387_v55, %v384_v53  ;;  %5918 = vmatprep.mubr.msk.bf16.mxu1 %vm702_vm3, %v5140_v61  ;;  %v2188_v7 = vsel %vm6717_vm2, %v2183_v2, %v2187_v38  ;;  %v2203_v11 = vshll.u32 %v5335_v51, 16  ;;  %v2209_v12 = vshll.u32 %v6840_v60, 16  ;;  %v6871_v51 = vld [vmem:[%s6698_s27 + $0x58] sm:$0xf] }
  0x44   : > { %v2198_v8 = vsel %vm6717_vm2, %v2193_v63, %v2197_v48  ;;  %v398_v19 = vor.u32 %v397_v4, %v393_v0  ;;  %v403_v24 = vrot.slane %v401_v5, 5  ;;  %v2202_v26 = vrot.slane %v2200_v6, 4 }
  0x45   : > { %v5374_v17 = vcombine.low %v2188_v7, %v2198_v8  ;;  %v389_v18 = vrot.slane %v388_v1, 4  ;;  %v2205_v3 = vrot.slane %v2203_v11, 5  ;;  %v2211_v27 = vrot.slane %v2209_v12, 5  ;;  %v6881_v8 = vld [vmem:[%s6698_s27 + $0x54] sm:$0xf] }
  0x46   : > { %v2213_v29 = vshrl.u32 %v6840_v60, 16  ;;  %v399_v32 = vrot.slane %v398_v19, 4  ;;  %v2219_v33 = vshll.u32 %v6848_v10, 16  ;;  %v406_v35 = vshrl.u32 %v6852_v15, 16  ;;  %v6887_v19 = vld [vmem:[%s6698_s27 + $0x58] sm:$0xf] }
  0x47   : > { %6054 = vmatprep.mubr.msk.bf16.mxu0 %vm702_vm3, %v5374_v17  ;;  %v394_v31 = vsel %vm6717_vm2, %v389_v18, %v393_v0  ;;  %v2206_v36 = vor.u32 %v2205_v3, %v2202_v26  ;;  %v409_v39 = vshll.u32 %v6852_v15, 16  ;;  %v415_v40 = vshll.u32 %v6855_v25, 16  ;;  %v6877_v0 = vld [vmem:[%s6698_s27 + $0x5c] sm:$0x1] }
  0x48   : > { %v2215_v38 = vrot.slane %v2213_v29, 4  ;;  %v404_v42 = vsel %vm6717_vm2, %v399_v32, %v403_v24  ;;  %v2221_v43 = vrot.slane %v2219_v33, 5  ;;  %v408_v44 = vrot.slane %v406_v35, 4  ;;  %v249_v33 = vld [vmem:[%s6698_s27 + $0x5c] sm:$0x1] }
  0x49   : > { %v419_v46 = vshrl.u32 %v6855_v25, 16  ;;  %v5141_v47 = vcombine.low %v394_v31, %v404_v42  ;;  %v2207_v48 = vrot.slane %v2206_v36, 4  ;;  %v411_v50 = vrot.slane %v409_v39, 5 }
  0x4a   : > { %v2216_v49 = vor.u32 %v2215_v38, %v2211_v27  ;;  %v417_v52 = vrot.slane %v415_v40, 5  ;;  %v425_v55 = vshll.u32 %v248_v34, 16  ;;  %v2224_v58 = vshrl.u32 %v5338_v41, 16  ;;  %v5341_v40 = vld [vmem:[%s6698_s27 + $0x60] sm:$0xf] }
  0x4b   : > { %v421_v53 = vrot.slane %v419_v46, 4  ;;  %5919 = vmatmul.mubr.msk.bf16.gmra.mrb[8].mxu1 %vm702_vm3, %v5141_v47  ;;  %v2212_v61 = vsel %vm6717_vm2, %v2207_v48, %v2211_v27  ;;  %v412_v63 = vor.u32 %v411_v50, %v408_v44  ;;  %v2227_v1 = vshll.u32 %v5338_v41, 16  ;;  %v6901_v46 = vld [vmem:[%s6698_s27 + $0x64] sm:$0xf] }
  0x4c   : > { %v2217_v2 = vrot.slane %v2216_v49, 4  ;;  %v427_v5 = vrot.slane %v425_v55, 5  ;;  %v2226_v6 = vrot.slane %v2224_v58, 4  ;;  %v2233_v7 = vshll.u32 %v6871_v51, 16  ;;  %v6908_v55 = vld [vmem:[%s6698_s27 + $0x68] sm:$0x1] }
  0x4d   : > { %v422_v4 = vor.u32 %v421_v53, %v417_v52  ;;  %v413_v12 = vrot.slane %v412_v63, 4  ;;  %v2229_v17 = vrot.slane %v2227_v1, 5  ;;  %v2237_v18 = vshrl.u32 %v6871_v51, 16 }
  0x4e   : > { %v2222_v11 = vsel %vm6717_vm2, %v2217_v2, %v2221_v43  ;;  %v2235_v3 = vrot.slane %v2233_v7, 5  ;;  %v2243_v27 = vshll.u32 %v6877_v0, 16  ;;  %v430_v34 = vshrl.u32 %v6881_v8, 16 }
  0x4f   : > { %v5375_v24 = vcombine.low %v2212_v61, %v2222_v11  ;;  %v423_v26 = vrot.slane %v422_v4, 4  ;;  %v418_v29 = vsel %vm6717_vm2, %v413_v12, %v417_v52  ;;  %v2230_v31 = vor.u32 %v2229_v17, %v2226_v6  ;;  %v6918_v17 = vld [vmem:[%s6698_s27 + $0x64] sm:$0xf] }
  0x50   : > { %v2239_v32 = vrot.slane %v2237_v18, 4  ;;  %v2245_v36 = vrot.slane %v2243_v27, 5  ;;  %v433_v38 = vshll.u32 %v6881_v8, 16  ;;  %v439_v39 = vshll.u32 %v6887_v19, 16 }
  0x51   : > { %6055 = vmatmul.mubr.msk.bf16.gmra.mrb[8].mxu0 %vm702_vm3, %v5375_v24  ;;  %v428_v35 = vsel %vm6717_vm2, %v423_v26, %v427_v5  ;;  %v2231_v42 = vrot.slane %v2230_v31, 4  ;;  %v432_v44 = vrot.slane %v430_v34, 4  ;;  %v443_v49 = vshrl.u32 %v6887_v19, 16  ;;  %v6912_v5 = vld [vmem:[%s6698_s27 + $0x60] sm:$0xf] }
  0x52   : > { %v5142_v41 = vcombine.low %v418_v29, %v428_v35  ;;  %v2240_v43 = vor.u32 %v2239_v32, %v2235_v3  ;;  %v435_v47 = vrot.slane %v433_v38, 5  ;;  %v441_v48 = vrot.slane %v439_v39, 5  ;;  %v250_v35 = vld [vmem:[%s6698_s27 + $0x68] sm:$0x1] }
  0x53   : > { %v449_v50 = vshll.u32 %v249_v33, 16  ;;  %v2236_v52 = vsel %vm6717_vm2, %v2231_v42, %v2235_v3  ;;  %v2248_v58 = vshrl.u32 %v5341_v40, 16  ;;  %v2251_v61 = vshll.u32 %v5341_v40, 16 }
  0x54   : > { %5922 = vmatprep.mubr.msk.bf16.mxu1 %vm702_vm3, %v5142_v41  ;;  %v2241_v53 = vrot.slane %v2240_v43, 4  ;;  %v436_v2 = vor.u32 %v435_v47, %v432_v44  ;;  %v445_v63 = vrot.slane %v443_v49, 4  ;;  %v2257_v4 = vshll.u32 %v6901_v46, 16  ;;  %v5403_v43 = vld [vmem:[%s6698_s27 + $0xc] sm:$0xe] }
  0x55   : > { %v451_v1 = vrot.slane %v449_v50, 5  ;;  %v2250_v7 = vrot.slane %v2248_v58, 4  ;;  %v2253_v11 = vrot.slane %v2251_v61, 5  ;;  %v2261_v12 = vshrl.u32 %v6901_v46, 16 }
  0x56   : > { %v2246_v6 = vsel %vm6717_vm2, %v2241_v53, %v2245_v36  ;;  %v437_v24 = vrot.slane %v436_v2, 4  ;;  %v446_v26 = vor.u32 %v445_v63, %v441_v48  ;;  %v2259_v3 = vrot.slane %v2257_v4, 5 }
  0x57   : > { %v5376_v18 = vcombine.low %v2236_v52, %v2246_v6  ;;  %v2254_v27 = vor.u32 %v2253_v11, %v2250_v7  ;;  %v2263_v29 = vrot.slane %v2261_v12, 4  ;;  %v2267_v31 = vshll.u32 %v6908_v55, 16  ;;  %v6946_v7 = vld [vmem:[%s6698_s27 + $0x70] sm:$0xf] }
  0x58   : > { %v454_v32 = vshrl.u32 %v6912_v5, 16  ;;  %v442_v33 = vsel %vm6717_vm2, %v437_v24, %v441_v48  ;;  %v447_v34 = vrot.slane %v446_v26, 4  ;;  %v457_v36 = vshll.u32 %v6912_v5, 16  ;;  %v6933_v48 = vld [vmem:[%s6698_s27 + $0x6c] sm:$0xf] }
  0x59   : > { %6058 = vmatprep.mubr.msk.bf16.mxu0 %vm702_vm3, %v5376_v18  ;;  %v463_v38 = vshll.u32 %v6918_v17, 16  ;;  %v2255_v39 = vrot.slane %v2254_v27, 4  ;;  %v2264_v40 = vor.u32 %v2263_v29, %v2259_v3  ;;  %v2269_v41 = vrot.slane %v2267_v31, 5  ;;  %v251_v31 = vld [vmem:[%s6698_s27 + $0x74] sm:$0x1] }
  0x5a   : > { %v456_v42 = vrot.slane %v454_v32, 4  ;;  %v452_v44 = vsel %vm6717_vm2, %v447_v34, %v451_v1  ;;  %v459_v47 = vrot.slane %v457_v36, 5  ;;  %v467_v50 = vshrl.u32 %v6918_v17, 16  ;;  %v5404_v32 = vld [vmem:[%s6698_s27 + $0x18] sm:$0xe] }
  0x5b   : > { %v465_v49 = vrot.slane %v463_v38, 5  ;;  %v5143_v52 = vcombine.low %v442_v33, %v452_v44  ;;  %v2260_v53 = vsel %vm6717_vm2, %v2255_v39, %v2259_v3  ;;  %v2265_v58 = vrot.slane %v2264_v40, 4  ;;  %v6965_v38 = vld [vmem:[%s6698_s27 + $0x78] sm:$0xf] }
  0x5c   : > { %v473_v61 = vshll.u32 %v250_v35, 16  ;;  %v460_v63 = vor.u32 %v459_v47, %v456_v42  ;;  %v469_v1 = vrot.slane %v467_v50, 4  ;;  %v5419_v4 = vrot.slane %v5403_v43, 9  ;;  %v5405_v47 = vld [vmem:[%s6698_s27 + $0x24] sm:$0xe] }
  0x5d   : > { %v2829_v6 = vrot.slane %v2827_v56, 4  ;;  %5923 = vmatmul.mubr.msk.bf16.gmra.mrb[12].mxu1 %vm702_vm3, %v5143_v52  ;;  %v2270_v11 = vsel %vm6717_vm2, %v2265_v58, %v2269_v41  ;;  %v478_v18 = vshrl.u32 %v6933_v48, 16  ;;  %v481_v24 = vshll.u32 %v6933_v48, 16  ;;  %v252_v41 = vld [vmem:[%s6698_s27 + $0x80] sm:$0x1] }
  0x5e   : > { %v475_v12 = vrot.slane %v473_v61, 5  ;;  %v5377_v26 = vcombine.low %v2260_v53, %v2270_v11  ;;  %v461_v3 = vrot.slane %v460_v63, 4  ;;  %v470_v27 = vor.u32 %v469_v1, %v465_v49 }
  0x5f   : > { %v2828_v29 = vsel %vm6939_vm6, %v5419_v4, %v2827_v56  ;;  %v2831_v33 = vsel %vm6939_vm6, %v2829_v6, %v2830_v57  ;;  %v480_v34 = vrot.slane %v478_v18, 4  ;;  %v483_v35 = vrot.slane %v481_v24, 5  ;;  %v6999_v24 = vld [vmem:[%s6698_s27 + $0x88] sm:$0xf] }
  0x60   : > { %v487_v36 = vshll.u32 %v6946_v7, 16  ;;  %6059 = vmatmul.mubr.msk.bf16.gmra.mrb[12].mxu0 %vm702_vm3, %v5377_v26  ;;  %v466_v13 = vsel %vm6717_vm2, %v461_v3, %v465_v49  ;;  %v471_v56 = vrot.slane %v470_v27, 4  ;;  %v5437_v39 = vcombine.low %v2828_v29, %v2831_v33 }
  0x61   : > { %v491_v40 = vshrl.u32 %v6946_v7, 16  ;;  %v484_v57 = vor.u32 %v483_v35, %v480_v34  ;;  %v497_v43 = vshll.u32 %v251_v31, 16  ;;  %v5420_v44 = vrot.slane %v5404_v32, 9  ;;  %v253_v35 = vld [vmem:[%s6698_s27 + $0x8c] sm:$0x1] }
  0x62   : > { %v489_v42 = vrot.slane %v487_v36, 5  ;;  %v476_v50 = vsel %vm6717_vm2, %v471_v56, %v475_v12  ;;  %6080 = vmatprep.mubr.msk.bf16.mxu0 %vm702_vm3, %v5437_v39  ;;  %v2838_v49 = vsel %vm6939_vm6, %v6753_v23, %v2837_v21  ;;  %v502_v53 = vshrl.u32 %v6965_v38, 16  ;;  %v6991_v12 = vld [vmem:[%s6698_s27 + $0x84] sm:$0xf] }
  0x63   : > { %v493_v52 = vrot.slane %v491_v40, 4  ;;  %v5144_v58 = vcombine.low %v466_v13, %v476_v50  ;;  %v485_v61 = vrot.slane %v484_v57, 4  ;;  %v499_v63 = vrot.slane %v497_v43, 5  ;;  %v5406_v40 = vld [vmem:[%s6698_s27 + $0x30] sm:$0xe] }
  0x64   : > { %v2835_v1 = vsel %vm6939_vm6, %v5420_v44, %v2834_v16  ;;  %v504_v11 = vrot.slane %v502_v53, 4  ;;  %v505_v59 = vshll.u32 %v6965_v38, 16  ;;  %v511_v23 = vshll.u32 %v6972_v14, 16  ;;  %v7004_v16 = vld [vmem:[%s8492_s1 + $0x38] sm:$0xff]   ;;  %v7023_v50 = vld [vmem:[%s6698_s27 + $0x90] sm:$0xf] }
  0x65   : > { %v494_v4 = vor.u32 %v493_v52, %v489_v42  ;;  %v5438_v6 = vcombine.low %v2835_v1, %v2838_v49  ;;  %5926 = vmatprep.mubr.msk.bf16.mxu1 %vm702_vm3, %v5144_v58  ;;  %v490_v21 = vsel %vm6717_vm2, %v485_v61, %v489_v42  ;;  %v515_v54 = vshrl.u32 %v6972_v14, 16  ;;  %v7028_v58 = vld [vmem:[%s6698_s27 + $0x94] sm:$0xf] }
  0x66   : > { %v521_v18 = vshll.u32 %v252_v41, 16  ;;  %v507_v3 = vrot.slane %v505_v59, 5  ;;  %v5421_v27 = vrot.slane %v5405_v47, 9  ;;  %v2841_v29 = vrot.slane %v6760_v37, 5 }
  0x67   : > { %v495_v26 = vrot.slane %v494_v4, 4  ;;  %v513_v31 = vrot.slane %v511_v23, 5  ;;  %v517_v32 = vrot.slane %v515_v54, 4  ;;  %v2844_v34 = vrot.slane %v6769_v45, 5  ;;  %v254_v23 = vld [vmem:[%s6698_s27 + $0x98] sm:$0x1] }
  0x68   : > { %v523_v33 = vrot.slane %v521_v18, 5  ;;  %6081 = vmatmul.mubr.msk.bf16.vlgmr.msra.gmra.mrb[0].mxu0 %vm702_vm3, %v5438_v6  ;;  %v508_v13 = vor.u32 %v507_v3, %v504_v11  ;;  %v2842_v56 = vsel %vm6939_vm6, %v5421_v27, %v2841_v29  ;;  %v2843_v39 = vrot.slane %v2841_v29, 4  ;;  %v5407_v27 = vld [vmem:[%s6698_s27 + $0x3c] sm:$0xe] }
  0x69   : > { %v500_v36 = vsel %vm6717_vm2, %v495_v26, %v499_v63  ;;  %6113 = vmatpush3.bf16.msra.mxu0 %v6780_v62  ;;  %v518_v37 = vor.u32 %v517_v32, %v513_v31  ;;  %v526_v45 = vshrl.u32 %v6991_v12, 16  ;;  %v529_v57 = vshll.u32 %v6991_v12, 16 }
  0x6a   : > { %v5145_v41 = vcombine.low %v490_v21, %v500_v36  ;;  %v509_v42 = vrot.slane %v508_v13, 4  ;;  %v2845_v43 = vsel %vm6939_vm6, %v2843_v39, %v2844_v34  ;;  %v535_v44 = vshll.u32 %v6999_v24, 16  ;;  %6146 = vmatprep.subr.bf16.mxu0 %v7004_v16 }
  0x6b   : > { %v539_v47 = vshrl.u32 %v6999_v24, 16  ;;  %v519_v62 = vrot.slane %v518_v37, 4  ;;  %v5439_v52 = vcombine.low %v2842_v56, %v2845_v43  ;;  %v528_v49 = vrot.slane %v526_v45, 4 }
  0x6c   : > { %5927 = vmatmul.mubr.msk.bf16.gmra.mrb[16].mxu1 %vm702_vm3, %v5145_v41  ;;  %v531_v53 = vrot.slane %v529_v57, 5  ;;  %v514_v61 = vsel %vm6717_vm2, %v509_v42, %v513_v31  ;;  %v537_v63 = vrot.slane %v535_v44, 5  ;;  %v545_v4 = vshll.u32 %v253_v35, 16  ;;  %v7056_v42 = vld [vmem:[%s6698_s27 + $0xa0] sm:$0xf] }
  0x6d   : > { %v541_v1 = vrot.slane %v539_v47, 4  ;;  %v524_v6 = vsel %vm6717_vm2, %v519_v62, %v523_v33  ;;  %6084 = vmatprep.mubr.msk.bf16.mxu0 %vm702_vm3, %v5439_v52  ;;  %v5422_v59 = vrot.slane %v5406_v40, 9  ;;  %v2848_v21 = vrot.slane %v6793_v22, 5  ;;  %v7051_v40 = vld [vmem:[%s6698_s27 + $0x9c] sm:$0xf] }
  0x6e   : > { %v532_v11 = vor.u32 %v531_v53, %v528_v49  ;;  %v5146_v54 = vcombine.low %v514_v61, %v524_v6  ;;  %v547_v26 = vrot.slane %v545_v4, 5  ;;  %v2851_v3 = vrot.slane %v6800_v30, 5  ;;  %v255_v52 = vld [vmem:[%s6698_s27 + $0xa4] sm:$0x1] }
  0x6f   : > { %v542_v18 = vor.u32 %v541_v1, %v537_v63  ;;  %v2849_v31 = vsel %vm6939_vm6, %v5422_v59, %v2848_v21  ;;  %v2850_v32 = vrot.slane %v2848_v21, 4  ;;  %v550_v33 = vshrl.u32 %v7023_v50, 16  ;;  %v5408_v59 = vld [vmem:[%s6698_s27 + $0x48] sm:$0xe] }
  0x70   : > { %v533_v29 = vrot.slane %v532_v11, 4  ;;  %5930 = vmatprep.mubr.msk.bf16.mxu1 %vm702_vm3, %v5146_v54  ;;  %v553_v22 = vshll.u32 %v7023_v50, 16  ;;  %v559_v35 = vshll.u32 %v7028_v58, 16  ;;  %v563_v36 = vshrl.u32 %v7028_v58, 16 }
  0x71   : > { %v543_v34 = vrot.slane %v542_v18, 4  ;;  %v2852_v13 = vsel %vm6939_vm6, %v2850_v32, %v2851_v3  ;;  %v552_v56 = vrot.slane %v550_v33, 4  ;;  %v569_v39 = vshll.u32 %v254_v23, 16  ;;  %v7075_v33 = vld [vmem:[%s6698_s27 + $0xa8] sm:$0xf] }
  0x72   : > { %v538_v30 = vsel %vm6717_vm2, %v533_v29, %v537_v63  ;;  %v5440_v37 = vcombine.low %v2849_v31, %v2852_v13  ;;  %v555_v45 = vrot.slane %v553_v22, 5  ;;  %v561_v57 = vrot.slane %v559_v35, 5 }
  0x73   : > { %v548_v41 = vsel %vm6717_vm2, %v543_v34, %v547_v26  ;;  %v565_v44 = vrot.slane %v563_v36, 4  ;;  %v571_v47 = vrot.slane %v569_v39, 5  ;;  %v5423_v62 = vrot.slane %v5407_v27, 9 }
  0x74   : > { %v5147_v43 = vcombine.low %v538_v30, %v548_v41  ;;  %6085 = vmatmul.mubr.msk.bf16.gmra.mrb[4].mxu0 %vm702_vm3, %v5440_v37  ;;  %v556_v49 = vor.u32 %v555_v45, %v552_v56  ;;  %v2855_v53 = vrot.slane %v6817_v9, 5  ;;  %v2858_v61 = vrot.slane %v6822_v20, 5  ;;  %v7080_v30 = vld [vmem:[%s6698_s27 + $0xac] sm:$0xf]  ;;  %v256_v37 = vld [vmem:[%s6698_s27 + $0xb0] sm:$0x1] }
  0x75   : > { %v574_v63 = vshrl.u32 %v7051_v40, 16  ;;  %v566_v1 = vor.u32 %v565_v44, %v561_v57  ;;  %v577_v4 = vshll.u32 %v7051_v40, 16  ;;  %v583_v6 = vshll.u32 %v7056_v42, 16  ;;  %v5409_v45 = vld [vmem:[%s6698_s27 + $0x54] sm:$0xe] }
  0x76   : > { %5931 = vmatmul.mubr.msk.bf16.gmra.mrb[20].mxu1 %vm702_vm3, %v5147_v43  ;;  %v587_v11 = vshrl.u32 %v7056_v42, 16  ;;  %v557_v21 = vrot.slane %v556_v49, 4  ;;  %v2856_v23 = vsel %vm6939_vm6, %v5423_v62, %v2855_v53  ;;  %v2857_v9 = vrot.slane %v2855_v53, 4  ;;  %v7090_v62 = vld [vmem:[%s6698_s27 + $0xb4] sm:$0xf] }
  0x77   : > { %v576_v20 = vrot.slane %v574_v63, 4  ;;  %v567_v54 = vrot.slane %v566_v1, 4  ;;  %v579_v18 = vrot.slane %v577_v4, 5  ;;  %v585_v26 = vrot.slane %v583_v6, 5  ;;  %v7102_v4 = vld [vmem:[%s6698_s27 + $0xb8] sm:$0xf] }
  0x78   : > { %v589_v3 = vrot.slane %v587_v11, 4  ;;  %v562_v27 = vsel %vm6717_vm2, %v557_v21, %v561_v57  ;;  %v2859_v29 = vsel %vm6939_vm6, %v2857_v9, %v2858_v61  ;;  %v593_v31 = vshll.u32 %v255_v52, 16 }
  0x79   : > { %v5424_v32 = vrot.slane %v5408_v59, 9  ;;  %v572_v34 = vsel %vm6717_vm2, %v567_v54, %v571_v47  ;;  %v5441_v22 = vcombine.low %v2856_v23, %v2859_v29  ;;  %v580_v35 = vor.u32 %v579_v18, %v576_v20  ;;  %v257_v18 = vld [vmem:[%s6698_s27 + $0xbc] sm:$0x1] }
  0x7a   : > { %v590_v36 = vor.u32 %v589_v3, %v585_v26  ;;  %v5148_v13 = vcombine.low %v562_v27, %v572_v34  ;;  %v595_v56 = vrot.slane %v593_v31, 5  ;;  %v2862_v39 = vrot.slane %v6840_v60, 5  ;;  %v5410_v31 = vld [vmem:[%s6698_s27 + $0x60] sm:$0xe] }
  0x7b   : > { %v2865_v41 = vrot.slane %v6848_v10, 5  ;;  %6088 = vmatprep.mubr.msk.bf16.mxu0 %vm702_vm3, %v5441_v22  ;;  %v581_v57 = vrot.slane %v580_v35, 4  ;;  %v598_v44 = vshrl.u32 %v7075_v33, 16  ;;  %v601_v47 = vshll.u32 %v7075_v33, 16 }
  0x7c   : > { %v591_v43 = vrot.slane %v590_v36, 4  ;;  %5934 = vmatprep.mubr.msk.bf16.mxu1 %vm702_vm3, %v5148_v13  ;;  %v2863_v60 = vsel %vm6939_vm6, %v5424_v32, %v2862_v39  ;;  %v2864_v52 = vrot.slane %v2862_v39, 4  ;;  %v607_v10 = vshll.u32 %v7080_v30, 16  ;;  %v5411_v36 = vld [vmem:[%s6698_s27 + $0x6c] sm:$0xe] }
  0x7d   : > { %v611_v49 = vshrl.u32 %v7080_v30, 16  ;;  %v586_v53 = vsel %vm6717_vm2, %v581_v57, %v585_v26  ;;  %v600_v63 = vrot.slane %v598_v44, 4  ;;  %v603_v1 = vrot.slane %v601_v47, 5 }
  0x7e   : > { %v596_v61 = vsel %vm6717_vm2, %v591_v43, %v595_v56  ;;  %v2866_v11 = vsel %vm6939_vm6, %v2864_v52, %v2865_v41  ;;  %v609_v59 = vrot.slane %v607_v10, 5  ;;  %v617_v20 = vshll.u32 %v256_v37, 16  ;;  %v5346_v52 = vld [vmem:[%s6698_s27 + $0x74] sm:$0x1] }
  0x7f   : > { %v5149_v6 = vcombine.low %v586_v53, %v596_v61  ;;  %v613_v21 = vrot.slane %v611_v49, 4  ;;  %v5442_v23 = vcombine.low %v2863_v60, %v2866_v11  ;;  %v604_v9 = vor.u32 %v603_v1, %v600_v63  ;;  %v5345_v60 = vld [vmem:[%s6698_s27 + $0x70] sm:$0xf] }
  0x80   : > { %v5425_v54 = vrot.slane %v5409_v45, 9  ;;  %v2869_v3 = vrot.slane %v6871_v51, 5  ;;  %v2872_v27 = vrot.slane %v6877_v0, 5  ;;  %v622_v29 = vshrl.u32 %v7090_v62, 16 }
  0x81   : > { %5935 = vmatmul.mubr.msk.bf16.gmra.mrb[24].mxu1 %vm702_vm3, %v5149_v6  ;;  %v614_v26 = vor.u32 %v613_v21, %v609_v59  ;;  %6089 = vmatmul.mubr.msk.bf16.gmra.mrb[8].mxu0 %vm702_vm3, %v5442_v23  ;;  %v605_v32 = vrot.slane %v604_v9, 4  ;;  %v619_v34 = vrot.slane %v617_v20, 5  ;;  %v625_v22 = vshll.u32 %v7090_v62, 16 }
  0x82   : > { %v631_v35 = vshll.u32 %v7102_v4, 16  ;;  %v2870_v51 = vsel %vm6939_vm6, %v5425_v54, %v2869_v3  ;;  %v2871_v56 = vrot.slane %v2869_v3, 4  ;;  %v624_v0 = vrot.slane %v622_v29, 4  ;;  %v5412_v54 = vld [vmem:[%s6698_s27 + $0x78] sm:$0xe] }
  0x83   : > { %v615_v13 = vrot.slane %v614_v26, 4  ;;  %v610_v39 = vsel %vm6717_vm2, %v605_v32, %v609_v59  ;;  %v627_v41 = vrot.slane %v625_v22, 5  ;;  %v635_v45 = vshrl.u32 %v7102_v4, 16  ;;  %v6554_v29 = vld [vmem:[%s6698_s27] sm:$0xf] }
  0x84   : > { %v633_v37 = vrot.slane %v631_v35, 5  ;;  %v2873_v43 = vsel %vm6939_vm6, %v2871_v56, %v2872_v27  ;;  %v641_v44 = vshll.u32 %v257_v18, 16  ;;  %v5426_v47 = vrot.slane %v5410_v31, 9  ;;  %v7142_v31 = vld [vmem:[%s6698_s27 + $0x4] sm:$0xf] }
  0x85   : > { %v620_v57 = vsel %vm6717_vm2, %v615_v13, %v619_v34  ;;  %v5443_v49 = vcombine.low %v2870_v51, %v2873_v43  ;;  %v628_v53 = vor.u32 %v627_v41, %v624_v0  ;;  %v637_v61 = vrot.slane %v635_v45, 4  ;;  %v7146_v34 = vld [vmem:[%s6698_s27 + $0x7c] sm:$0xf]  ;;  %v7149_v22 = vld [vmem:[%s6698_s27 + $0x80] sm:$0x1] }
  0x86   : > { %v5150_v10 = vcombine.low %v610_v39, %v620_v57  ;;  %v643_v63 = vrot.slane %v641_v44, 5  ;;  %v2876_v1 = vrot.slane %v6901_v46, 5  ;;  %v2879_v6 = vrot.slane %v6908_v55, 5  ;;  %v5413_v35 = vld [vmem:[%s6698_s27 + $0x84] sm:$0xe] }
  0x87   : > { %v5427_v11 = vrot.slane %v5411_v36, 9  ;;  %6092 = vmatprep.mubr.msk.bf16.mxu0 %vm702_vm3, %v5443_v49  ;;  %v629_v59 = vrot.slane %v628_v53, 4  ;;  %v638_v21 = vor.u32 %v637_v61, %v633_v37  ;;  %v2883_v23 = vrot.slane %v5345_v60, 5  ;;  %v5351_v0 = vld [vmem:[%s6698_s27 + $0x88] sm:$0xf] }
  0x88   : > { %5938 = vmatprep.mubr.msk.bf16.mxu1 %vm702_vm3, %v5150_v10  ;;  %v2886_v9 = vrot.slane %v5346_v52, 5  ;;  %v2877_v20 = vsel %vm6939_vm6, %v5426_v47, %v2876_v1  ;;  %v2878_v46 = vrot.slane %v2876_v1, 4  ;;  %v5169_v32 = vcombine.low %v6554_v29, %v7142_v31  ;;  %v5352_v39 = vld [vmem:[%s6698_s27 + $0x8c] sm:$0x1]  ;;  %v5354_v45 = vld [vmem:[%s6698_s27 + $0x94] sm:$0xf] }
  0x89   : > { %v634_v55 = vsel %vm6717_vm2, %v629_v59, %v633_v37  ;;  %v639_v18 = vrot.slane %v638_v21, 4  ;;  %v2884_v26 = vsel %vm6939_vm6, %v5427_v11, %v2883_v23  ;;  %v2885_v3 = vrot.slane %v2883_v23, 4  ;;  %v5355_v52 = vld [vmem:[%s6698_s27 + $0x98] sm:$0x1]  ;;  %v5414_v10 = vld [vmem:[%s6698_s27 + $0x90] sm:$0xe] }
  0x8a   : > { %v2880_v27 = vsel %vm6939_vm6, %v2878_v46, %v2879_v6  ;;  %v5428_v56 = vrot.slane %v5412_v54, 9  ;;  %v2890_v57 = vrot.slane %v7146_v34, 5  ;;  %v2893_v43 = vrot.slane %v7149_v22, 5  ;;  %v5358_v11 = vld [vmem:[%s6698_s27 + $0xa4] sm:$0x1] }
  0x8b   : > { %v644_v36 = vsel %vm6717_vm2, %v639_v18, %v643_v63  ;;  %v5444_v13 = vcombine.low %v2877_v20, %v2880_v27  ;;  %v2887_v51 = vsel %vm6939_vm6, %v2885_v3, %v2886_v9  ;;  %v5429_v44 = vrot.slane %v5413_v35, 9  ;;  %v5357_v63 = vld [vmem:[%s6698_s27 + $0xa0] sm:$0xf]  ;;  %v5415_v59 = vld [vmem:[%s6698_s27 + $0x9c] sm:$0xe] }
  0x8c   : > { %v5151_v41 = vcombine.low %v634_v55, %v644_v36  ;;  %v5445_v37 = vcombine.low %v2884_v26, %v2887_v51  ;;  %v2897_v47 = vrot.slane %v5351_v0, 5  ;;  %v2900_v60 = vrot.slane %v5352_v39, 5  ;;  %v6556_v21 = vld [vmem:[%s6698_s27 + $0xc] sm:$0xf]  ;;  %v7176_v23 = vld [vmem:[%s6698_s27 + $0x10] sm:$0xf] }
  0x8d   : > { %6093 = vmatmul.mubr.msk.bf16.gmra.mrb[12].mxu0 %vm702_vm3, %v5444_v13  ;;  %v2891_v49 = vsel %vm6939_vm6, %v5428_v56, %v2890_v57  ;;  %v2892_v53 = vrot.slane %v2890_v57, 4  ;;  %v2904_v61 = vrot.slane %v5354_v45, 5  ;;  %v5170_v9 = vcombine.low %v6556_v21, %v7176_v23  ;;  %v6558_v27 = vld [vmem:[%s6698_s27 + $0x18] sm:$0xf]  ;;  %v7185_v29 = vld [vmem:[%s6698_s27 + $0x1c] sm:$0xf] }
  0x8e   : > { %5939 = vmatmul.mubr.msk.bf16.gmra.mrb[28].mxu1 %vm702_vm3, %v5151_v41  ;;  %6096 = vmatprep.mubr.msk.bf16.mxu0 %vm702_vm3, %v5445_v37  ;;  %v2898_v1 = vsel %vm6939_vm6, %v5429_v44, %v2897_v47  ;;  %v2899_v6 = vrot.slane %v2897_v47, 4  ;;  %v5430_v46 = vrot.slane %v5414_v10, 9  ;;  %v2907_v54 = vrot.slane %v5355_v52, 5  ;;  %v5360_v51 = vld [vmem:[%s6698_s27 + $0xac] sm:$0xf]  ;;  %v7193_v39 = vld [vmem:[%s8492_s1 + $0x18] sm:$0xff]  }
  0x8f   : > { %5944 = vmatprep.mubr.msk.bf16.mxu1 %vm702_vm3, %v5169_v32  ;;  %v2894_v20 = vsel %vm6939_vm6, %v2892_v53, %v2893_v43  ;;  %v2906_v26 = vrot.slane %v2904_v61, 4  ;;  %v2911_v3 = vrot.slane %v5357_v63, 5  ;;  %v5171_v32 = vcombine.low %v6558_v27, %v7185_v29  ;;  %v5363_v0 = vld [vmem:[%s6698_s27 + $0xb8] sm:$0xf]  ;;  %v6560_v57 = vld [vmem:[%s8492_s1 + $0x10] sm:$0xff]  }
  0x90   : > { %v5446_v55 = vcombine.low %v2891_v49, %v2894_v20  ;;  %v2901_v18 = vsel %vm6939_vm6, %v2899_v6, %v2900_v60  ;;  %v5431_v36 = vrot.slane %v5415_v59, 9  ;;  %v2914_v13 = vrot.slane %v5358_v11, 5  ;;  %v5361_v47 = vld [vmem:[%s6698_s27 + $0xb0] sm:$0x1]  ;;  %v5416_v60 = vld [vmem:[%s6698_s27 + $0xa8] sm:$0xe] }
  0x91   : > { %v5447_v35 = vcombine.low %v2898_v1, %v2901_v18  ;;  %v2913_v56 = vrot.slane %v2911_v3, 4  ;;  %v2905_v41 = vsel %vm6939_vm6, %v5430_v46, %v2904_v61  ;;  %v2908_v37 = vsel %vm6939_vm6, %v2906_v26, %v2907_v54  ;;  %v5364_v10 = vld [vmem:[%s6698_s27 + $0xbc] sm:$0x1]  ;;  %v5417_v49 = vld [vmem:[%s6698_s27 + $0xb4] sm:$0xe] }
  0x92   : > { %v2918_v45 = vrot.slane %v5360_v51, 5  ;;  %v2912_v43 = vsel %vm6939_vm6, %v5431_v36, %v2911_v3  ;;  %v2925_v52 = vrot.slane %v5363_v0, 5  ;;  %v6561_v53 = vld [vmem:[%s6698_s27 + $0x24] sm:$0xf]  ;;  %v7217_v61 = vld [vmem:[%s6698_s27 + $0x28] sm:$0xf]  ;;  %v5448_v1 = vcombine.low %v2905_v41, %v2908_v37 }
  0x93   : > { %v2915_v44 = vsel %vm6939_vm6, %v2913_v56, %v2914_v13  ;;  %v5172_v63 = vcombine.low %v6561_v53, %v7217_v61  ;;  %v5366_v6 = vld [vmem:[%s6698_s27 + $0xc4] sm:$0xf]  ;;  %v5432_v59 = vrot.slane %v5416_v60, 9  ;;  %v6563_v20 = vld [vmem:[%s6698_s27 + $0x30] sm:$0xf]  ;;  %v2928_v26 = vrot.slane %v5364_v10, 5 }
  0x94   : > { %v5449_v11 = vcombine.low %v2912_v43, %v2915_v44  ;;  %v2920_v21 = vrot.slane %v2918_v45, 4  ;;  %v7223_v46 = vld [vmem:[%s6698_s27 + $0x34] sm:$0xf]  ;;  %v2927_v18 = vrot.slane %v2925_v52, 4  ;;  %v5367_v13 = vld [vmem:[%s6698_s27 + $0xc8] sm:$0x1] }
  0x95   : > { %6097 = vmatmul.mubr.msk.bf16.gmra.mrb[16].mxu0 %vm702_vm3, %v5446_v55  ;;  %v5173_v54 = vcombine.low %v6563_v20, %v7223_v46  ;;  %v5433_v55 = vrot.slane %v5417_v49, 9  ;;  %v2919_v3 = vsel %vm6939_vm6, %v5432_v59, %v2918_v45  ;;  %v5418_v51 = vld [vmem:[%s6698_s27 + $0xc0] sm:$0xe]  ;;  %v6565_v56 = vld [vmem:[%s6698_s27 + $0x3c] sm:$0xf]  ;;  %v2935_v44 = vrot.slane %v5367_v13, 5 }
  0x96   : > { %5945 = vmatmul.mubr.msk.bf16.vlgmr.msra.gmra.mrb[0].mxu1 %vm702_vm3, %v5170_v9  ;;  %6100 = vmatprep.mubr.msk.bf16.mxu0 %vm702_vm3, %v5447_v35  ;;  %v2921_v9 = vrot.slane %v5361_v47, 5  ;;  %v2929_v36 = vsel %vm6939_vm6, %v2927_v18, %v2928_v26  ;;  %v7242_v0 = vld [vmem:[%s6698_s27 + $0x40] sm:$0xf]  ;;  %v5175_v47 = vcombine.low %v6852_v15, %v6855_v25  ;;  %v2305_v10 = vshll.u32 %v7146_v34, 16  ;;  %v6512_v53 = vld [vmem:[%s6698_s27 + $0x18] sm:$0xff]  }
  0x97   : > { %5977 = vmatpush3.bf16.msra.mxu1 %v6560_v57  ;;  %5948 = vmatprep.mubr.msk.bf16.mxu1 %vm702_vm3, %v5171_v32  ;;  %v2932_v32 = vrot.slane %v5366_v6, 5  ;;  %v2926_v35 = vsel %vm6939_vm6, %v5433_v55, %v2925_v52  ;;  %v5174_v41 = vcombine.low %v6565_v56, %v7242_v0  ;;  %v5434_v57 = vrot.slane %v5418_v51, 9 }
  0x98   : > { %6010 = vmatprep.subr.bf16.mxu1 %v7193_v39  ;;  %v2922_v27 = vsel %vm6939_vm6, %v2920_v21, %v2921_v9  ;;  %v5451_v45 = vcombine.low %v2926_v35, %v2929_v36  ;;  %v2309_v15 = vshrl.u32 %v7146_v34, 16  ;;  %v5176_v49 = vcombine.low %v6881_v8, %v6887_v19  ;;  %v1207_v8 = vld [vmem:[%s6698_s27] sm:$0xe]  ;;  %v1208_v19 = vld [vmem:[%s6698_s27 + $0xc] sm:$0xe] }
  0x99   : > { %v5450_v37 = vcombine.low %v2919_v3, %v2922_v27  ;;  %v2934_v43 = vrot.slane %v2932_v32, 4  ;;  %v2933_v60 = vsel %vm6939_vm6, %v5434_v57, %v2932_v32  ;;  %v1267_v21 = vrot.slane %v7176_v23, 5  ;;  %v1209_v34 = vld [vmem:[%s6698_s27 + $0x18] sm:$0xe]  ;;  %v6515_v27 = vld [vmem:[%s6698_s27 + $0x24] sm:$0xff]   ;;  %v6517_v32 = vld [vmem:[%s6698_s27 + $0x30] sm:$0xff]  }
  0x9a   : > { %v2311_v6 = vrot.slane %v2309_v15, 4  ;;  %v2315_v9 = vshll.u32 %v7149_v22, 16  ;;  %v1260_v23 = vrot.slane %v7142_v31, 5  ;;  %v1274_v20 = vrot.slane %v7185_v29, 5  ;;  %v1211_v36 = vld [vmem:[%s6698_s27 + $0x30] sm:$0xe] }
  0x9b   : > { %v2936_v52 = vsel %vm6939_vm6, %v2934_v43, %v2935_v44  ;;  %v5178_v18 = vcombine.low %v6933_v48, %v6946_v7  ;;  %v1281_v26 = vrot.slane %v7217_v61, 5  ;;  %v1288_v3 = vrot.slane %v7223_v46, 5  ;;  %v6569_v48 = vld [vmem:[%s6698_s27 + $0x20] sm:$0x1]  ;;  %v6570_v57 = vld [vmem:[%s6698_s27 + $0x2c] sm:$0x1] }
  0x9c   : > { %v5452_v25 = vcombine.low %v2933_v60, %v2936_v52  ;;  %v5179_v22 = vcombine.low %v6965_v38, %v6972_v14  ;;  %v5180_v31 = vcombine.low %v6991_v12, %v6999_v24  ;;  %v5202_v29 = vrot.slane %v1207_v8, 9  ;;  %v7294_v46 = vld [vmem:[%s8492_s1 + $0x40] sm:$0xff]  }
  0x9d   : > { %6101 = vmatmul.mubr.msk.bf16.gmra.mrb[20].mxu0 %vm702_vm3, %v5448_v1  ;;  %v7262_v1 = vrot.slane %v2305_v10, 5  ;;  %v5203_v35 = vrot.slane %v1208_v19, 9  ;;  %v1269_v13 = vrot.slane %v1267_v21, 4  ;;  %v5204_v51 = vrot.slane %v1209_v34, 9  ;;  %v6571_v10 = vld [vmem:[%s6698_s27 + $0x38] sm:$0x1] }
  0x9e   : > { %5949 = vmatmul.mubr.msk.bf16.gmra.mrb[4].mxu1 %vm702_vm3, %v5172_v63  ;;  %6104 = vmatprep.mubr.msk.bf16.mxu0 %vm702_vm3, %v5449_v11  ;;  %v5177_v63 = vcombine.low %v6912_v5, %v6918_v17  ;;  %v6567_v11 = vld [vmem:[%s6698_s27 + $0x8] sm:$0x1]  ;;  %v6568_v5 = vld [vmem:[%s6698_s27 + $0x14] sm:$0x1]  ;;  %v1277_v7 = vrot.slane %v6569_v48, 5  ;;  %v5181_v38 = vcombine.low %v7023_v50, %v7028_v58  ;;  %v5182_v14 = vcombine.low %v7051_v40, %v7056_v42 }
  0x9f   : > { %5952 = vmatprep.mubr.msk.bf16.mxu1 %vm702_vm3, %v5173_v54  ;;  %8511 = vst [vmem:[#allocation2_spill] sm:$0xff] %v7262_v1  ;;  %v1263_v59 = vrot.slane %v6567_v11, 5  ;;  %v1270_v17 = vrot.slane %v6568_v5, 5  ;;  %v1210_v54 = vld [vmem:[%s6698_s27 + $0x24] sm:$0xe]  ;;  %v2312_v55 = vor.u32 %v2311_v6, %v7262_v1  ;;  %v1262_v56 = vrot.slane %v1260_v23, 4 }
  0xa0   : > { %v5205_v61 = vrot.slane %v1210_v54, 9  ;;  %v1284_v43 = vrot.slane %v6570_v57, 5  ;;  %v5206_v44 = vrot.slane %v1211_v36, 9  ;;  %v5183_v60 = vcombine.low %v7075_v33, %v7080_v30  ;;  %v1213_v6 = vld [vmem:[%s6698_s27 + $0x48] sm:$0xe]  ;;  %v6523_v58 = vld [vmem:[%s6698_s27 + $0x54] sm:$0xff]  }
  0xa1   : > { %v7307_v52 = vsel %vm6939_vm6, %v5202_v29, %v1260_v23  ;;  %v1291_v15 = vrot.slane %v6571_v10, 5  ;;  %v7328_v11 = vrot.slane %v2312_v55, 4  ;;  %v5537_v34 = vld [vmem:[%s6698_s27 + $0x18] sm:$0xf]  ;;  %v6521_v5 = vld [vmem:[%s6698_s27 + $0x48] sm:$0xff]  }
  0xa2   : > { %v7343_v19 = vsel %vm6939_vm6, %v5205_v61, %v1281_v26  ;;  %v6572_v23 = vld [vmem:[%s6698_s27 + $0x44] sm:$0x1]  ;;  %v1214_v55 = vld [vmem:[%s6698_s27 + $0x54] sm:$0xe]  ;;  %v3650_v48 = vshll.u32 %v5537_v34, 16 }
  0xa3   : > { %8513 = vst [vmem:[#allocation4_spill] sm:$0xff] %v7328_v11  ;;  %v5209_v10 = vrot.slane %v1214_v55, 9  ;;  %v5543_v55 = vld [vmem:[%s6698_s27 + $0x30] sm:$0xf]  ;;  %v5544_v50 = vld [vmem:[%s6698_s27 + $0x34] sm:$0xf] }
  0xa4   : > { %v3652_v24 = vrot.slane %v3650_v48, 5 }
  0xa5   : > { %6105 = vmatmul.mubr.msk.bf16.gmra.mrb[24].mxu0 %vm702_vm3, %v5450_v37  ;;  %v1212_v37 = vld [vmem:[%s6698_s27 + $0x3c] sm:$0xe] }
  0xa6   : > { %5953 = vmatmul.mubr.msk.bf16.gmra.mrb[8].mxu1 %vm702_vm3, %v5174_v41  ;;  %6108 = vmatprep.mubr.msk.bf16.mxu0 %vm702_vm3, %v5451_v45  ;;  %v1276_v41 = vrot.slane %v1274_v20, 4  ;;  %v1283_v45 = vrot.slane %v1281_v26, 4 }
  0xa7   : > { %5956 = vmatprep.mubr.msk.bf16.mxu1 %vm702_vm3, %v5175_v47  ;;  %v1290_v47 = vrot.slane %v1288_v3, 4 }
  0xa8   : > { %v7339_v8 = vsel %vm6939_vm6, %v1276_v41, %v1277_v7  ;;  %v7358_v26 = vsel %vm6939_vm6, %v1283_v45, %v1284_v43  ;;  %v6574_v45 = vld [vmem:[%s6698_s27 + $0x50] sm:$0x1]  ;;  %v3704_v41 = vshll.u32 %v5544_v50, 16 }
  0xa9   : > { %v1305_v57 = vrot.slane %v6574_v45, 5  ;;  %v8521_v11 = vcombine.low %v7343_v19, %v7358_v26 }
  0xad   : > { %6109 = vmatmul.mubr.msk.bf16.gmra.mrb[28].mxu0 %vm702_vm3, %v5452_v25  ;;  %v1295_v25 = vrot.slane %v7242_v0, 5  ;;  %v7325_v0 = vsel %vm6939_vm6, %v5204_v51, %v1274_v20  ;;  %v1298_v20 = vrot.slane %v6572_v23, 5  ;;  %v3647_v51 = vshrl.u32 %v5537_v34, 16  ;;  %v7402_v34 = vld [vmem:[%s6698_s27 + $0x5c] sm:$0x1] }
  0xae   : > { %5957 = vmatmul.mubr.msk.bf16.gmra.mrb[12].mxu1 %vm702_vm3, %v5176_v49  ;;  %6114 = vmatprep.mubr.msk.bf16.mxu0 %vm702_vm3, %v6512_v53  ;;  %v7311_v49 = vrot.slane %v2315_v9, 5  ;;  %v7317_v53 = vsel %vm6939_vm6, %v5203_v35, %v1267_v21  ;;  %v7335_v21 = vsel %vm6939_vm6, %v1262_v56, %v1263_v59  ;;  %v5207_v9 = vrot.slane %v1212_v37, 9  ;;  %v6573_v59 = vld [vmem:[%s6698_s27 + $0x4c] sm:$0xf] }
  0xaf   : > { %5960 = vmatprep.mubr.msk.bf16.mxu1 %vm702_vm3, %v5177_v63  ;;  %v7321_v63 = vsel %vm6939_vm6, %v1269_v13, %v1270_v17  ;;  %v7349_v17 = vsel %vm6939_vm6, %v5206_v44, %v1288_v3  ;;  %v1302_v54 = vrot.slane %v6573_v59, 5  ;;  %v1297_v3 = vrot.slane %v1295_v25, 4  ;;  %v7373_v13 = vld [vmem:[%s6698_s27 + $0x60] sm:$0xe] }
  0xb0   : > { %8512 = vst [vmem:[#allocation3_spill] sm:$0xff] %v7311_v49  ;;  %v7383_v43 = vsel %vm6939_vm6, %v5207_v9, %v1295_v25  ;;  %v6575_v25 = vld [vmem:[%s6698_s27 + $0x58] sm:$0xf]  ;;  %v1312_v9 = vrot.slane %v7402_v34, 5  ;;  %v5210_v23 = vrot.slane %v7373_v13, 9  ;;  %v3649_v12 = vrot.slane %v3647_v51, 4 }
  0xb1   : > { %v1304_v37 = vrot.slane %v1302_v54, 4  ;;  %v7387_v44 = vsel %vm6939_vm6, %v1297_v3, %v1298_v20  ;;  %v6577_v20 = vld [vmem:[%s6698_s27 + $0x64] sm:$0xf]  ;;  %v6578_v34 = vld [vmem:[%s6698_s27 + $0x70] sm:$0xf]  ;;  %v3708_v56 = vshrl.u32 %v5544_v50, 16 }
  0xb2   : > { %v1316_v59 = vrot.slane %v6577_v20, 5  ;;  %v1323_v20 = vrot.slane %v6578_v34, 5  ;;  %v5542_v34 = vld [vmem:[%s6698_s27 + $0x2c] sm:$0x1] }
  0xb3   : > { %v7419_v3 = vsel %vm6939_vm6, %v1304_v37, %v1305_v57  ;;  %v3695_v37 = vshrl.u32 %v5543_v55, 16  ;;  %v3698_v57 = vshll.u32 %v5543_v55, 16 }
  0xb4   : > { %v1318_v36 = vrot.slane %v1316_v59, 4 }
  0xb5   : > { %6115 = vmatmul.mubr.msk.bf16.vlgmr.msra.gmra.mrb[0].mxu0 %vm702_vm3, %v6515_v27  ;;  %v7362_v27 = vsel %vm6939_vm6, %v1290_v47, %v1291_v15  ;;  %v5539_v15 = vld [vmem:[%s6698_s27 + $0x20] sm:$0x1]  ;;  %v3700_v50 = vrot.slane %v3698_v57, 5  ;;  %v6529_v57 = vld [vmem:[%s6698_s27 + $0x78] sm:$0xff]  }
  0xb6   : > { %5961 = vmatmul.mubr.msk.bf16.gmra.mrb[16].mxu1 %vm702_vm3, %v5178_v18  ;;  %6147 = vmatpush3.bf16.msra.mxu0 %v7004_v16  ;;  %v6519_v16 = vld [vmem:[%s6698_s27 + $0x3c] sm:$0xff]   ;;  %v3666_v48 = vshll.u32 %v5539_v15, 16 }
  0xb7   : > { %5964 = vmatprep.mubr.msk.bf16.mxu1 %vm702_vm3, %v5179_v22  ;;  %6118 = vmatprep.mubr.msk.bf16.mxu0 %vm702_vm3, %v6517_v32  ;;  %v5538_v18 = vld [vmem:[%s6698_s27 + $0x1c] sm:$0xf]  ;;  %v5208_v22 = vrot.slane %v1213_v6, 9  ;;  %v5540_v6 = vld [vmem:[%s6698_s27 + $0x24] sm:$0xf] }
  0xb8   : > { %6180 = vmatprep.subr.bf16.mxu0 %v7294_v46  ;;  %v3656_v7 = vshll.u32 %v5538_v18, 16  ;;  %v3660_v61 = vshrl.u32 %v5538_v18, 16  ;;  %v3674_v13 = vshll.u32 %v5540_v6, 16  ;;  %v3653_v18 = vor.u32 %v3652_v24, %v3649_v12 }
  0xb9   : > { %v7391_v47 = vsel %vm6939_vm6, %v5208_v22, %v1302_v54  ;;  %v5541_v54 = vld [vmem:[%s6698_s27 + $0x28] sm:$0xf]  ;;  %v3671_v22 = vshrl.u32 %v5540_v6, 16  ;;  %v1325_v24 = vrot.slane %v1323_v20, 4 }
  0xba   : > { %v3676_v29 = vrot.slane %v3674_v13, 5  ;;  %v3697_v13 = vrot.slane %v3695_v37, 4  ;;  %v3654_v40 = vrot.slane %v3653_v18, 4 }
  0xbb   : > { %v3673_v15 = vrot.slane %v3671_v22, 4  ;;  %v5545_v22 = vld [vmem:[%s6698_s27 + $0x38] sm:$0x1] }
  0xbc   : > { %v3714_v37 = vshll.u32 %v5545_v22, 16 }
  0xbd   : > { %6119 = vmatmul.mubr.msk.bf16.gmra.mrb[4].mxu0 %vm702_vm3, %v6519_v16  ;;  %v1309_v16 = vrot.slane %v6575_v25, 5  ;;  %v1216_v25 = vld [vmem:[%s6698_s27 + $0x6c] sm:$0xe] }
  0xbe   : > { %5965 = vmatmul.mubr.msk.bf16.gmra.mrb[20].mxu1 %vm702_vm3, %v5180_v31  ;;  %6122 = vmatprep.mubr.msk.bf16.mxu0 %vm702_vm3, %v6521_v5  ;;  %v7412_v31 = vrot.slane %v3656_v7, 5  ;;  %v3662_v5 = vrot.slane %v3660_v61, 4  ;;  %v3680_v7 = vshll.u32 %v5541_v54, 16  ;;  %v3684_v61 = vshrl.u32 %v5541_v54, 16 }
  0xbf   : > { %5968 = vmatprep.mubr.msk.bf16.mxu1 %vm702_vm3, %v5181_v38  ;;  %v6525_v38 = vld [vmem:[%s6698_s27 + $0x60] sm:$0xff]   ;;  %v7426_v51 = vsel %vm6939_vm6, %v5209_v10, %v1309_v16  ;;  %v1311_v45 = vrot.slane %v1309_v16, 4  ;;  %v6579_v10 = vld [vmem:[%s6698_s27 + $0x68] sm:$0x1]  ;;  %v7433_v16 = vrot.slane %v3666_v48, 5  ;;  %v5211_v54 = vrot.slane %v1216_v25, 9 }
  0xc0   : > { %v3663_v6 = vor.u32 %v3662_v5, %v7412_v31  ;;  %v1319_v35 = vrot.slane %v6579_v10, 5  ;;  %v7436_v32 = vrot.slane %v3680_v7, 5  ;;  %v3686_v12 = vrot.slane %v3684_v61, 4  ;;  %v6580_v5 = vld [vmem:[%s6698_s27 + $0x74] sm:$0x1]  ;;  %v6527_v25 = vld [vmem:[%s6698_s27 + $0x6c] sm:$0xff]  }
  0xc1   : > { %v1326_v55 = vrot.slane %v6580_v5, 5  ;;  %v7455_v48 = vsel %vm6939_vm6, %v5210_v23, %v1316_v59  ;;  %v3677_v7 = vor.u32 %v3676_v29, %v3673_v15  ;;  %v3690_v61 = vshll.u32 %v5542_v34, 16  ;;  %v6582_v10 = vld [vmem:[%s6698_s27 + $0x88] sm:$0xf] }
  0xc2   : > { %v3664_v42 = vrot.slane %v3663_v6, 4  ;;  %v7460_v33 = vsel %vm6939_vm6, %v1311_v45, %v1312_v9  ;;  %v7468_v23 = vsel %vm6939_vm6, %v1318_v36, %v1319_v35  ;;  %v7472_v29 = vsel %vm6939_vm6, %v5211_v54, %v1323_v20  ;;  %v1218_v45 = vld [vmem:[%s6698_s27 + $0x84] sm:$0xe]  ;;  %v5546_v20 = vld [vmem:[%s6698_s27 + $0x3c] sm:$0xf] }
  0xc3   : > { %v7476_v9 = vsel %vm6939_vm6, %v1325_v24, %v1326_v55  ;;  %v3701_v59 = vor.u32 %v3700_v50, %v3697_v13  ;;  %v3659_v6 = vsel %vm6717_vm2, %v3654_v40, %v7412_v31  ;;  %v1337_v15 = vrot.slane %v6582_v10, 5  ;;  %v6583_v24 = vld [vmem:[%s6698_s27 + $0x80] sm:$0x1] }
  0xc4   : > { %v3669_v35 = vsel %vm6717_vm2, %v3664_v42, %v7433_v16  ;;  %v3678_v54 = vrot.slane %v3677_v7, 4  ;;  %v3692_v34 = vrot.slane %v3690_v61, 5  ;;  %v1333_v5 = vrot.slane %v6583_v24, 5  ;;  %v7490_v55 = vld [vmem:[%s6698_s27 + $0x40] sm:$0xf] }
  0xc5   : > { %6123 = vmatmul.mubr.msk.bf16.gmra.mrb[8].mxu0 %vm702_vm3, %v6523_v58  ;;  %v3710_v58 = vrot.slane %v3708_v56, 4  ;;  %v1217_v56 = vld [vmem:[%s6698_s27 + $0x78] sm:$0xe]  ;;  %8514 = vst [vmem:[#allocation5_spill] sm:$0xff] %v7490_v55  ;;  %v3716_v13 = vrot.slane %v3714_v37, 5  ;;  %v5213_v16 = vrot.slane %v1218_v45, 9  ;;  %v8515_v50 = vcombine.low %v7090_v62, %v7102_v4 }
  0xc6   : > { %5969 = vmatmul.mubr.msk.bf16.gmra.mrb[24].mxu1 %vm702_vm3, %v5182_v14  ;;  %6126 = vmatprep.mubr.msk.bf16.mxu0 %vm702_vm3, %v6525_v38  ;;  %v7449_v14 = vrot.slane %v3704_v41, 5  ;;  %v6581_v41 = vld [vmem:[%s6698_s27 + $0x7c] sm:$0xf]  ;;  %v3702_v40 = vrot.slane %v3701_v59, 4  ;;  %v6584_v42 = vld [vmem:[%s6698_s27 + $0x8c] sm:$0x1]  ;;  %v3683_v45 = vsel %vm6717_vm2, %v3678_v54, %v7436_v32 }
  0xc7   : > { %5972 = vmatprep.mubr.msk.bf16.mxu1 %vm702_vm3, %v5183_v60  ;;  %v3687_v60 = vor.u32 %v3686_v12, %v7436_v32  ;;  %v1330_v18 = vrot.slane %v6581_v41, 5  ;;  %v5212_v12 = vrot.slane %v1217_v56, 9  ;;  %v3719_v7 = vshrl.u32 %v5546_v20, 16  ;;  %v6530_v41 = vld [vmem:[%s6698_s27 + $0x84] sm:$0xff]   ;;  %v6531_v59 = vld [vmem:[%s6698_s27 + $0x90] sm:$0xff]  }
  0xc8   : > { %v3711_v36 = vor.u32 %v3710_v58, %v7449_v14  ;;  %v1340_v58 = vrot.slane %v6584_v42, 5  ;;  %v3722_v61 = vshll.u32 %v5546_v20, 16  ;;  %v1339_v56 = vrot.slane %v1337_v15, 4  ;;  %v7530_v20 = vld [vmem:[%s6698_s27 + $0x4c] sm:$0xf] }
  0xc9   : > { %v3688_v31 = vrot.slane %v3687_v60, 4  ;;  %v1332_v22 = vrot.slane %v1330_v18, 4  ;;  %v3728_v62 = vshll.u32 %v7490_v55, 16  ;;  %v3732_v4 = vshrl.u32 %v7490_v55, 16  ;;  %v7608_v37 = vld [vmem:[%s6698_s27 + $0x5c] sm:$0x1] }
  0xca   : > { %v3712_v60 = vrot.slane %v3711_v36, 4  ;;  %v7522_v10 = vsel %vm6939_vm6, %v5212_v12, %v1330_v18  ;;  %v3707_v24 = vsel %vm6717_vm2, %v3702_v40, %v7449_v14  ;;  %v7537_v32 = vsel %vm6939_vm6, %v5213_v16, %v1337_v15  ;;  %v7541_v18 = vld [vmem:[%s6698_s27 + $0x58] sm:$0xf]  ;;  %v7555_v40 = vld [vmem:[%s6698_s27 + $0x90] sm:$0xe] }
  0xcb   : > { %v3693_v36 = vsel %vm6717_vm2, %v3688_v31, %v3692_v34  ;;  %v3721_v54 = vrot.slane %v3719_v7, 4  ;;  %v3724_v34 = vrot.slane %v3722_v61, 5  ;;  %v5552_v31 = vld [vmem:[%s6698_s27 + $0x54] sm:$0xf]  ;;  %v3734_v14 = vrot.slane %v3732_v4, 4 }
  0xcc   : > { %v3717_v12 = vsel %vm6717_vm2, %v3712_v60, %v3716_v13  ;;  %v3752_v42 = vshll.u32 %v7530_v20, 16  ;;  %v3756_v7 = vshrl.u32 %v7530_v20, 16  ;;  %v3767_v13 = vshrl.u32 %v5552_v31, 16  ;;  %v1220_v38 = vld [vmem:[%s6698_s27 + $0x9c] sm:$0xe] }
  0xcd   : > { %6127 = vmatmul.mubr.msk.bf16.gmra.mrb[12].mxu0 %vm702_vm3, %v6527_v25  ;;  %v8516_v25 = vcombine.low %v7307_v52, %v7335_v21  ;;  %v7510_v52 = vcombine.low %v3659_v6, %v3669_v35  ;;  %v7526_v6 = vsel %vm6939_vm6, %v1332_v22, %v1333_v5  ;;  %v5549_v35 = vld [vmem:[%s6698_s27 + $0x48] sm:$0xf]  ;;  %v7547_v5 = vsel %vm6939_vm6, %v1339_v56, %v1340_v58  ;;  %v7550_v22 = vld [vmem:[%s6698_s27 + $0x44] sm:$0x1] }
  0xce   : > { %5973 = vmatmul.mubr.msk.bf16.gmra.mrb[28].mxu1 %vm702_vm3, %v8515_v50  ;;  %6130 = vmatprep.mubr.msk.bf16.mxu0 %vm702_vm3, %v6529_v57  ;;  %8517 = vst [vmem:[#allocation6_spill] sm:$0xff] %v7550_v22  ;;  %v7552_v50 = vrot.slane %v3728_v62, 5  ;;  %v3743_v15 = vshrl.u32 %v5549_v35, 16  ;;  %v3746_v16 = vshll.u32 %v5549_v35, 16  ;;  %v3770_v61 = vshll.u32 %v5552_v31, 16 }
  0xcf   : > { %5978 = vmatprep.mubr.msk.bf16.mxu1 %vm702_vm3, %v8516_v25  ;;  %v3776_v58 = vshll.u32 %v7541_v18, 16  ;;  %v3780_v25 = vshrl.u32 %v7541_v18, 16  ;;  %v8518_v60 = vcombine.low %v7317_v53, %v7321_v63  ;;  %v7567_v56 = vcombine.low %v3683_v45, %v3693_v36  ;;  %v7584_v35 = vld [vmem:[%s6698_s27 + $0x50] sm:$0x1]  ;;  %v6587_v62 = vld [vmem:[%s6698_s27 + $0x98] sm:$0x1] }
  0xd0   : > { %v7571_v4 = vcombine.low %v3707_v24, %v3717_v12  ;;  %v8519_v53 = vcombine.low %v7325_v0, %v7339_v8  ;;  %v3735_v45 = vor.u32 %v3734_v14, %v7552_v50  ;;  %v5555_v24 = vld [vmem:[%s6698_s27 + $0x60] sm:$0xf]  ;;  %v3745_v31 = vrot.slane %v3743_v15, 4  ;;  %v7590_v8 = vld [vmem:[%s6698_s27 + $0x64] sm:$0xf]  ;;  %v6533_v14 = vld [vmem:[%s6698_s27 + $0xa8] sm:$0xff]  }
  0xd1   : > { %v7587_v12 = vrot.slane %v3752_v42, 5  ;;  %v3758_v0 = vrot.slane %v3756_v7, 4  ;;  %v3772_v15 = vrot.slane %v3770_v61, 5  ;;  %v6586_v7 = vld [vmem:[%s6698_s27 + $0x94] sm:$0xf]  ;;  %v1347_v21 = vrot.slane %v6587_v62, 5 }
  0xd2   : > { %v1344_v63 = vrot.slane %v6586_v7, 5  ;;  %v3762_v57 = vshll.u32 %v7584_v35, 16  ;;  %v3791_v36 = vshrl.u32 %v5555_v24, 16  ;;  %v3804_v61 = vshrl.u32 %v7590_v8, 16  ;;  %v6588_v7 = vld [vmem:[%s6698_s27 + $0xa0] sm:$0xf] }
  0xd3   : > { %v1351_v55 = vrot.slane %v6588_v7, 5  ;;  %v3736_v62 = vrot.slane %v3735_v45, 4  ;;  %v1358_v45 = vrot.slane %v7080_v30, 5  ;;  %v7635_v7 = vld [vmem:[%s6698_s27 + $0x68] sm:$0x1]  ;;  %v6534_v30 = vld [vmem:[%s6698_s27 + $0xb4] sm:$0xff]  }
  0xd4   : > { %v3793_v19 = vrot.slane %v3791_v36, 4  ;;  %8523 = vst [vmem:[#allocation8_spill] sm:$0xff] %v7635_v7  ;;  %v6535_v36 = vld [vmem:[%s6698_s27 + $0xc0] sm:$0xff]  }
  0xd5   : > { %6131 = vmatmul.mubr.msk.bf16.gmra.mrb[16].mxu0 %vm702_vm3, %v6530_v41  ;;  %v3738_v41 = vshll.u32 %v7550_v22, 16  ;;  %v3794_v22 = vshll.u32 %v5555_v24, 16  ;;  %v3786_v24 = vshll.u32 %v7608_v37, 16 }
  0xd6   : > { %5979 = vmatmul.mubr.msk.bf16.vlgmr.msra.gmra.mrb[0].mxu1 %vm702_vm3, %v8518_v60  ;;  %6134 = vmatprep.mubr.msk.bf16.mxu0 %vm702_vm3, %v6531_v59  ;;  %v3725_v59 = vor.u32 %v3724_v34, %v3721_v54  ;;  %v7595_v54 = vld [vmem:[%s8492_s1 + $0x20] sm:$0xff]   ;;  %v3769_v60 = vrot.slane %v3767_v13, 4  ;;  %v3800_v13 = vshll.u32 %v7590_v8, 16 }
  0xd7   : > { %6011 = vmatpush3.bf16.msra.mxu1 %v7193_v39  ;;  %5982 = vmatprep.mubr.msk.bf16.mxu1 %vm702_vm3, %v8519_v53  ;;  %v3748_v39 = vrot.slane %v3746_v16, 5  ;;  %8520 = vst [vmem:[#allocation7_spill] sm:$0xff] %v7595_v54  ;;  %v6532_v34 = vld [vmem:[%s6698_s27 + $0x9c] sm:$0xff]   ;;  %v7600_v53 = vrot.slane %v3776_v58, 5  ;;  %v3782_v16 = vrot.slane %v3780_v25, 4  ;;  %v7602_v42 = vrot.slane %v3738_v41, 5 }
  0xd8   : > { %6214 = vmatprep.subr.bf16.mxu1 %v7595_v54  ;;  %v7613_v58 = vrot.slane %v3725_v59, 4  ;;  %v3759_v41 = vor.u32 %v3758_v0, %v7587_v12  ;;  %v3773_v54 = vor.u32 %v3772_v15, %v3769_v60  ;;  %v1346_v59 = vrot.slane %v1344_v63, 4  ;;  %v1221_v0 = vld [vmem:[%s6698_s27 + $0xa8] sm:$0xe] }
  0xd9   : > { %v3749_v25 = vor.u32 %v3748_v39, %v3745_v31  ;;  %v3783_v1 = vor.u32 %v3782_v16, %v7600_v53  ;;  %v3764_v31 = vrot.slane %v3762_v57, 5  ;;  %v5215_v39 = vrot.slane %v1220_v38, 9  ;;  %v6589_v57 = vld [vmem:[%s6698_s27 + $0xa4] sm:$0x1] }
  0xda   : > { %v3796_v26 = vrot.slane %v3794_v22, 5  ;;  %v7631_v60 = vrot.slane %v3800_v13, 5  ;;  %v3760_v15 = vrot.slane %v3759_v41, 4  ;;  %v1353_v16 = vrot.slane %v1351_v55, 4  ;;  %v6590_v41 = vld [vmem:[%s6698_s27 + $0xb0] sm:$0x1] }
  0xdb   : > { %v1354_v38 = vrot.slane %v6589_v57, 5  ;;  %v5216_v49 = vrot.slane %v1221_v0, 9  ;;  %v3731_v22 = vsel %vm6717_vm2, %v7613_v58, %v7552_v50  ;;  %v8524_v13 = vrot.slane %v7555_v40, 9  ;;  %v1222_v50 = vld [vmem:[%s6698_s27 + $0xb4] sm:$0xe] }
  0xdc   : > { %v1361_v57 = vrot.slane %v6590_v41, 5  ;;  %v3810_v0 = vshll.u32 %v7635_v7, 16  ;;  %v5558_v58 = vld [vmem:[%s6698_s27 + $0x6c] sm:$0xf]  ;;  %v7659_v40 = vsel %vm6939_vm6, %v1346_v59, %v1347_v21  ;;  %v8526_v59 = vcombine.low %v7383_v43, %v7387_v44 }
  0xdd   : > { %6135 = vmatmul.mubr.msk.bf16.gmra.mrb[20].mxu0 %vm702_vm3, %v6532_v34  ;;  %v8522_v34 = vcombine.low %v7349_v17, %v7362_v27  ;;  %v3774_v17 = vrot.slane %v3773_v54, 4  ;;  %v3784_v27 = vrot.slane %v3783_v1, 4  ;;  %v3741_v1 = vsel %vm6717_vm2, %v3736_v62, %v7602_v42 }
  0xde   : > { %5983 = vmatmul.mubr.msk.bf16.gmra.mrb[4].mxu1 %vm702_vm3, %v8521_v11  ;;  %6138 = vmatprep.mubr.msk.bf16.mxu0 %vm702_vm3, %v6533_v14  ;;  %v3806_v11 = vrot.slane %v3804_v61, 4  ;;  %v3750_v14 = vrot.slane %v3749_v25, 4  ;;  %v7647_v61 = vsel %vm6939_vm6, %v8524_v13, %v1344_v63  ;;  %v1360_v25 = vrot.slane %v1358_v45, 4 }
  0xdf   : > { %5986 = vmatprep.mubr.msk.bf16.mxu1 %vm702_vm3, %v8522_v34  ;;  %v3788_v34 = vrot.slane %v3786_v24, 5  ;;  %v3797_v54 = vor.u32 %v3796_v26, %v3793_v19  ;;  %v7666_v42 = vsel %vm6939_vm6, %v5215_v39, %v1351_v55  ;;  %v7670_v62 = vsel %vm6939_vm6, %v1353_v16, %v1354_v38  ;;  %v6591_v39 = vld [vmem:[%s6698_s27 + $0xb8] sm:$0xf] }
  0xe0   : > { %v3807_v24 = vor.u32 %v3806_v11, %v7631_v60  ;;  %v3755_v63 = vsel %vm6717_vm2, %v3750_v14, %v7587_v12  ;;  %v3765_v19 = vsel %vm6717_vm2, %v3760_v15, %v3764_v31  ;;  %v3779_v21 = vsel %vm6717_vm2, %v3774_v17, %v7600_v53  ;;  %v7719_v17 = vld [vmem:[%s6698_s27 + $0x7c] sm:$0xf] }
  0xe1   : > { %v3789_v12 = vsel %vm6717_vm2, %v3784_v27, %v3788_v34  ;;  %v7682_v55 = vsel %vm6939_vm6, %v5216_v49, %v1358_v45  ;;  %v7691_v31 = vsel %vm6939_vm6, %v1360_v25, %v1361_v57  ;;  %v5217_v53 = vrot.slane %v1222_v50, 9  ;;  %v7695_v49 = vld [vmem:[%s6698_s27 + $0x70] sm:$0xf]  ;;  %8530 = vst [vmem:[#allocation12_spill] sm:$0xff] %v7719_v17  ;;  %v5564_v27 = vld [vmem:[%s6698_s27 + $0x84] sm:$0xf] }
  0xe2   : > { %8525 = vst [vmem:[#allocation9_spill] sm:$0xff] %v7682_v55  ;;  %8527 = vst [vmem:[#allocation10_spill] sm:$0xff] %v7691_v31  ;;  %v1365_v26 = vrot.slane %v6591_v39, 5  ;;  %v3815_v45 = vshrl.u32 %v5558_v58, 16  ;;  %v8529_v43 = vcombine.low %v7391_v47, %v7419_v3  ;;  %v7701_v44 = vcombine.low %v3731_v22, %v3741_v1  ;;  %v5561_v3 = vld [vmem:[%s6698_s27 + $0x78] sm:$0xf] }
  0xe3   : > { %8528 = vst [vmem:[#allocation11_spill] sm:$0xff] %v7695_v49  ;;  %v7703_v11 = vrot.slane %v3797_v54, 4  ;;  %v7705_v14 = vrot.slane %v3807_v24, 4  ;;  %v7707_v15 = vrot.slane %v3810_v0, 5  ;;  %v7711_v38 = vcombine.low %v3755_v63, %v3765_v19  ;;  %v6536_v34 = vld [vmem:[%s6698_s27 + $0xcc] sm:$0xff]  }
  0xe4   : > { %v7715_v47 = vcombine.low %v3779_v21, %v3789_v12  ;;  %v7726_v22 = vld [vmem:[%s6698_s27 + $0xbc] sm:$0x1]  ;;  %v3818_v25 = vshll.u32 %v5558_v58, 16  ;;  %v3824_v41 = vshll.u32 %v7695_v49, 16  ;;  %v7731_v57 = vld [vmem:[%s6698_s27 + $0x88] sm:$0xf]  ;;  %v7735_v1 = vsel %vm6939_vm6, %v5217_v53, %v1365_v26 }
  0xe5   : > { %6139 = vmatmul.mubr.msk.bf16.gmra.mrb[24].mxu0 %vm702_vm3, %v6534_v30  ;;  %8531 = vst [vmem:[#allocation13_spill] sm:$0xff] %v7731_v57  ;;  %v7737_v54 = vrot.slane %v1365_v26, 4  ;;  %v7739_v24 = vrot.slane %v3815_v45, 4  ;;  %v3828_v0 = vshrl.u32 %v7695_v49, 16  ;;  %v5567_v50 = vld [vmem:[%s6698_s27 + $0x90] sm:$0xf]  ;;  %v8534_v58 = vcombine.low %v7426_v51, %v7460_v33 }
  0xe6   : > { %5987 = vmatmul.mubr.msk.bf16.gmra.mrb[8].mxu1 %vm702_vm3, %v8526_v59  ;;  %6142 = vmatprep.mubr.msk.bf16.mxu0 %vm702_vm3, %v6535_v36  ;;  %v3839_v19 = vshrl.u32 %v5561_v3, 16  ;;  %v3842_v21 = vshll.u32 %v5561_v3, 16  ;;  %v7752_v12 = vld [vmem:[%s6698_s27 + $0x94] sm:$0xf]  ;;  %v3848_v53 = vshll.u32 %v7719_v17, 16  ;;  %v3852_v39 = vshrl.u32 %v7719_v17, 16 }
  0xe7   : > { %5990 = vmatprep.mubr.msk.bf16.mxu1 %vm702_vm3, %v8529_v43  ;;  %8532 = vst [vmem:[#allocation14_spill] sm:$0xff] %v7752_v12  ;;  %v7755_v59 = vld [vmem:[%s6698_s27 + $0x74] sm:$0x1]  ;;  %v3863_v26 = vshrl.u32 %v5564_v27, 16  ;;  %v3866_v45 = vshll.u32 %v5564_v27, 16  ;;  %v3872_v43 = vshll.u32 %v7731_v57, 16 }
  0xe8   : > { %8533 = vst [vmem:[#allocation15_spill] sm:$0xff] %v7755_v59  ;;  %v3876_v36 = vshrl.u32 %v7731_v57, 16  ;;  %v3887_v30 = vshrl.u32 %v5567_v50, 16  ;;  %v3890_v3 = vshll.u32 %v5567_v50, 16  ;;  %v3820_v63 = vrot.slane %v3818_v25, 5 }
  0xe9   : > { %v7768_v27 = vrot.slane %v3824_v41, 5  ;;  %v3896_v16 = vshll.u32 %v7752_v12, 16  ;;  %v3900_v13 = vshrl.u32 %v7752_v12, 16  ;;  %v8535_v50 = vcombine.low %v7455_v48, %v7468_v23  ;;  %v5570_v41 = vld [vmem:[%s6698_s27 + $0x9c] sm:$0xf] }
  0xea   : > { %v3830_v51 = vrot.slane %v3828_v0, 4  ;;  %v3834_v33 = vshll.u32 %v7755_v59, 16  ;;  %v3844_v25 = vrot.slane %v3842_v21, 5  ;;  %v3854_v57 = vrot.slane %v3852_v39, 4  ;;  %v7784_v17 = vld [vmem:[%s6698_s27 + $0x8c] sm:$0x1] }
  0xeb   : > { %v3865_v49 = vrot.slane %v3863_v26, 4  ;;  %v3868_v12 = vrot.slane %v3866_v45, 5  ;;  %v7786_v31 = vrot.slane %v3872_v43, 5  ;;  %v3878_v48 = vrot.slane %v3876_v36, 4  ;;  %v7792_v0 = vld [vmem:[%s6698_s27 + $0x98] sm:$0x1] }
  0xec   : > { %v3889_v23 = vrot.slane %v3887_v30, 4  ;;  %v3892_v55 = vrot.slane %v3890_v3, 5  ;;  %v7794_v59 = vrot.slane %v3896_v16, 5  ;;  %v3911_v21 = vshrl.u32 %v5570_v41, 16 }
  0xed   : > { %6143 = vmatmul.mubr.msk.bf16.gmra.mrb[28].mxu0 %vm702_vm3, %v6536_v34  ;;  %v7771_v34 = vld [vmem:[%s6698_s27 + $0x80] sm:$0x1]  ;;  %v3821_v39 = vor.u32 %v3820_v63, %v7739_v24  ;;  %v3831_v7 = vor.u32 %v3830_v51, %v7768_v27  ;;  %v3869_v30 = vor.u32 %v3868_v12, %v3865_v49  ;;  %v3879_v16 = vor.u32 %v3878_v48, %v7786_v31 }
  0xee   : > { %5991 = vmatmul.mubr.msk.bf16.gmra.mrb[12].mxu1 %vm702_vm3, %v8534_v58  ;;  %6148 = vmatprep.mubr.msk.bf16.mxu0 %vm702_vm3, %v7510_v52  ;;  %v3841_v52 = vrot.slane %v3839_v19, 4  ;;  %v7781_v58 = vrot.slane %v3848_v53, 5  ;;  %v3902_v19 = vrot.slane %v3900_v13, 4  ;;  %v3914_v53 = vshll.u32 %v5570_v41, 16 }
  0xef   : > { %5994 = vmatprep.mubr.msk.bf16.mxu1 %vm702_vm3, %v8535_v50  ;;  %v7789_v50 = vld [vmem:[%s6698_s27 + $0xa0] sm:$0xf]  ;;  %v3858_v45 = vshll.u32 %v7771_v34, 16  ;;  %v3882_v13 = vshll.u32 %v7784_v17, 16  ;;  %v3893_v24 = vor.u32 %v3892_v55, %v3889_v23  ;;  %v3906_v63 = vshll.u32 %v7792_v0, 16 }
  0xf0   : > { %v3845_v26 = vor.u32 %v3844_v25, %v3841_v52  ;;  %v3855_v36 = vor.u32 %v3854_v57, %v7781_v58  ;;  %v3920_v43 = vshll.u32 %v7789_v50, 16  ;;  %v3924_v3 = vshrl.u32 %v7789_v50, 16 }
  0xf1   : > { %v8536_v51 = vcombine.low %v7472_v29, %v7476_v9  ;;  %v3836_v49 = vrot.slane %v3834_v33, 5  ;;  %v3903_v57 = vor.u32 %v3902_v19, %v7794_v59  ;;  %v3913_v12 = vrot.slane %v3911_v21, 4 }
  0xf2   : > { %v8537_v52 = vcombine.low %v7522_v10, %v7526_v6  ;;  %v3822_v55 = vrot.slane %v3821_v39, 4  ;;  %v3832_v29 = vrot.slane %v3831_v7, 4  ;;  %v3846_v9 = vrot.slane %v3845_v26, 4 }
  0xf3   : > { %v3860_v25 = vrot.slane %v3858_v45, 5  ;;  %v3856_v33 = vrot.slane %v3855_v36, 4  ;;  %v3870_v41 = vrot.slane %v3869_v30, 4  ;;  %v7820_v48 = vrot.slane %v3920_v43, 5 }
  0xf4   : > { %v3926_v23 = vrot.slane %v3924_v3, 4  ;;  %v3880_v19 = vrot.slane %v3879_v16, 4  ;;  %v3884_v21 = vrot.slane %v3882_v13, 5  ;;  %v3894_v10 = vrot.slane %v3893_v24, 4 }
  0xf5   : > { %6149 = vmatmul.mubr.msk.bf16.vlgmr.msra.gmra.mrb[0].mxu0 %vm702_vm3, %v7567_v56  ;;  %v3916_v56 = vrot.slane %v3914_v53, 5  ;;  %v3908_v6 = vrot.slane %v3906_v63, 5  ;;  %v7823_v53 = vld [vmem:[%s6698_s27 + $0xa4] sm:$0x1]  ;;  %v8538_v26 = vrot.slane %v7726_v22, 5  ;;  %v3827_v36 = vsel %vm6717_vm2, %v3822_v55, %v7768_v27 }
  0xf6   : > { %5995 = vmatmul.mubr.msk.bf16.gmra.mrb[16].mxu1 %vm702_vm3, %v8536_v51  ;;  %6181 = vmatpush3.bf16.msra.mxu0 %v7294_v46  ;;  %v5573_v46 = vld [vmem:[%s6698_s27 + $0xa8] sm:$0xf]  ;;  %v3904_v51 = vrot.slane %v3903_v57, 4  ;;  %v3837_v30 = vsel %vm6717_vm2, %v3832_v29, %v3836_v49  ;;  %v3851_v43 = vsel %vm6717_vm2, %v3846_v9, %v7781_v58  ;;  %v3861_v22 = vsel %vm6717_vm2, %v3856_v33, %v3860_v25 }
  0xf7   : > { %5998 = vmatprep.mubr.msk.bf16.mxu1 %vm702_vm3, %v8537_v52  ;;  %6152 = vmatprep.mubr.msk.bf16.mxu0 %vm702_vm3, %v7571_v4  ;;  %v3917_v52 = vor.u32 %v3916_v56, %v3913_v12  ;;  %v7826_v4 = vld [vmem:[%s6698_s27 + $0xac] sm:$0xf]  ;;  %v3935_v7 = vshrl.u32 %v5573_v46, 16  ;;  %v3938_v39 = vshll.u32 %v5573_v46, 16  ;;  %v7833_v45 = vsel %vm6939_vm6, %v7737_v54, %v8538_v26 }
  0xf8   : > { %v3875_v54 = vsel %vm6717_vm2, %v3870_v41, %v7786_v31  ;;  %v3927_v3 = vor.u32 %v3926_v23, %v7820_v48  ;;  %v3930_v16 = vshll.u32 %v7823_v53, 16  ;;  %v3885_v27 = vsel %vm6717_vm2, %v3880_v19, %v3884_v21  ;;  %v5624_v31 = vld [vmem:[%s6698_s27 + $0x48] sm:$0xe]  ;;  %v5627_v26 = vld [vmem:[%s6698_s27 + $0x6c] sm:$0xe] }
  0xf9   : > { %v3899_v58 = vsel %vm6717_vm2, %v3894_v10, %v7794_v59  ;;  %v3944_v13 = vshll.u32 %v7826_v4, 16  ;;  %v3948_v24 = vshrl.u32 %v7826_v4, 16  ;;  %v8539_v63 = vcombine.low %v7537_v32, %v7547_v5  ;;  %v7869_v59 = vld [vmem:[%s6698_s27 + $0xb0] sm:$0x1] }
  0xfa   : > { %v3918_v49 = vrot.slane %v3917_v52, 4  ;;  %v3937_v57 = vrot.slane %v3935_v7, 4  ;;  %v3940_v12 = vrot.slane %v3938_v39, 5  ;;  %v8540_v56 = vcombine.low %v7647_v61, %v7659_v40  ;;  %v5576_v40 = vld [vmem:[%s6698_s27 + $0xb4] sm:$0xf] }
  0xfb   : > { %v8541_v32 = vsel %vm6717_vm2, %v7705_v14, %v7707_v15  ;;  %v8542_v5 = vsel %vm6717_vm2, %v7703_v11, %v7631_v60  ;;  %v5235_v55 = vcombine.low %v7735_v1, %v7833_v45  ;;  %v7887_v29 = vcombine.low %v3827_v36, %v3837_v30  ;;  %v5625_v15 = vld [vmem:[%s6698_s27 + $0x54] sm:$0xe] }
  0xfc   : > { %v7889_v61 = vcombine.low %v3851_v43, %v3861_v22  ;;  %v7892_v9 = vcombine.low %v3875_v54, %v3885_v27  ;;  %v3928_v25 = vrot.slane %v3927_v3, 4  ;;  %v3932_v46 = vrot.slane %v3930_v16, 5  ;;  %v8544_v16 = vld [vmem:[#allocation8_spill] sm:$0xff] }
  0xfd   : > { %6153 = vmatmul.mubr.msk.bf16.gmra.mrb[4].mxu0 %vm702_vm3, %v7701_v44  ;;  %v3909_v44 = vsel %vm6717_vm2, %v3904_v51, %v3908_v6  ;;  %v5640_v14 = vrot.slane %v5624_v31, 9  ;;  %v7897_v60 = vrot.slane %v3944_v13, 5  ;;  %v3950_v11 = vrot.slane %v3948_v24, 4  ;;  %v5626_v6 = vld [vmem:[%s6698_s27 + $0x60] sm:$0xe]  ;;  %v8545_v13 = vld [vmem:[#allocation9_spill] sm:$0xff] }
  0xfe   : > { %5999 = vmatmul.mubr.msk.bf16.gmra.mrb[20].mxu1 %vm702_vm3, %v8539_v63  ;;  %6156 = vmatprep.mubr.msk.bf16.mxu0 %vm702_vm3, %v7711_v38  ;;  %v5593_v38 = vcombine.low %v8542_v5, %v8541_v32  ;;  %v7895_v33 = vcombine.low %v3899_v58, %v3909_v44  ;;  %v3954_v41 = vshll.u32 %v7869_v59, 16  ;;  %v3923_v23 = vsel %vm6717_vm2, %v3918_v49, %v7820_v48  ;;  %v8546_v24 = vld [vmem:[#allocation10_spill] sm:$0xff]  ;;  %v8548_v63 = vld [vmem:[#allocation11_spill] sm:$0xff] }
  0xff   : > { %6002 = vmatprep.mubr.msk.bf16.mxu1 %vm702_vm3, %v8540_v56  ;;  %v3941_v19 = vor.u32 %v3940_v12, %v3937_v57  ;;  %v4422_v21 = vrot.slane %v7530_v20, 5  ;;  %v4425_v10 = vrot.slane %v7584_v35, 5  ;;  %v3959_v51 = vshrl.u32 %v5576_v40, 16  ;;  %v7919_v35 = vld [vmem:[%s6698_s27 + $0xb8] sm:$0xf]  ;;  %v8549_v49 = vld [vmem:[#allocation15_spill] sm:$0xff] }
 0x100   : > { %v5641_v52 = vrot.slane %v5625_v15, 9  ;;  %v4429_v7 = vrot.slane %v7541_v18, 5  ;;  %v4432_v39 = vrot.slane %v7608_v37, 5  ;;  %v3933_v36 = vsel %vm6717_vm2, %v3928_v25, %v3932_v46  ;;  %v5579_v12 = vld [vmem:[%s6698_s27 + $0xc0] sm:$0xf] }
 0x101   : > { %v3962_v30 = vshll.u32 %v5576_v40, 16  ;;  %v7913_v48 = vsel %vm6939_vm6, %v5640_v14, %v4422_v21  ;;  %v4424_v43 = vrot.slane %v4422_v21, 4  ;;  %v3951_v20 = vor.u32 %v3950_v11, %v7897_v60  ;;  %v5628_v14 = vld [vmem:[%s6698_s27 + $0x78] sm:$0xe] }
 0x102   : > { %v7923_v37 = vsel %vm6939_vm6, %v5641_v52, %v4429_v7  ;;  %v4431_v18 = vrot.slane %v4429_v7, 4  ;;  %v5642_v22 = vrot.slane %v5626_v6, 9  ;;  %v8543_v54 = vcombine.low %v7666_v42, %v7670_v62  ;;  %v6538_v6 = vld [vmem:[%s6698_s27 + $0xc] sm:$0xff]  }
 0x103   : > { %v4436_v3 = vrot.slane %v7590_v8, 5  ;;  %v4439_v27 = vrot.slane %v8544_v16, 5  ;;  %v5643_v58 = vrot.slane %v5627_v26, 9  ;;  %v8547_v31 = vcombine.low %v8545_v13, %v8546_v24  ;;  %v8551_v13 = vld [vmem:[#allocation3_spill] sm:$0xff]  ;;  %v8552_v24 = vld [vmem:[#allocation4_spill] sm:$0xff] }
 0x104   : > { %v7944_v62 = vsel %vm6939_vm6, %v4431_v18, %v4432_v39  ;;  %v4443_v44 = vrot.slane %v8548_v63, 5  ;;  %v4446_v8 = vrot.slane %v8549_v49, 5  ;;  %v3968_v57 = vshll.u32 %v7919_v35, 16  ;;  %v7981_v39 = vld [vmem:[%s6698_s27 + $0xc4] sm:$0xf]  ;;  %v8553_v49 = vld [vmem:[#allocation13_spill] sm:$0xff] }
 0x105   : > { %6157 = vmatmul.mubr.msk.bf16.gmra.mrb[8].mxu0 %vm702_vm3, %v7715_v47  ;;  %v7932_v47 = vsel %vm6939_vm6, %v4424_v43, %v4425_v10  ;;  %v5659_v56 = vcombine.low %v7923_v37, %v7944_v62  ;;  %v7954_v32 = vsel %vm6939_vm6, %v5642_v22, %v4436_v3  ;;  %v4438_v5 = vrot.slane %v4436_v3, 4  ;;  %v5347_v10 = vld [vmem:[%s6698_s27 + $0x78] sm:$0xf]  ;;  %v8550_v22 = vld [vmem:[#allocation12_spill] sm:$0xff]  ;;  %v6603_v62 = vld [vmem:[%s6698_s27 + $0xa0] sm:$0xf] }
 0x106   : > { %6003 = vmatmul.mubr.msk.bf16.gmra.mrb[24].mxu1 %vm702_vm3, %v8543_v54  ;;  %6160 = vmatprep.mubr.msk.bf16.mxu0 %vm702_vm3, %v5593_v38  ;;  %v5658_v42 = vcombine.low %v7913_v48, %v7932_v47  ;;  %v7956_v38 = vrot.slane %v3954_v41, 5  ;;  %v3972_v40 = vshrl.u32 %v7919_v35, 16  ;;  %v7961_v25 = vsel %vm6939_vm6, %v5643_v58, %v4443_v44 }
 0x107   : > { %6006 = vmatprep.mubr.msk.bf16.mxu1 %vm702_vm3, %v8547_v31  ;;  %v4445_v46 = vrot.slane %v4443_v44, 4  ;;  %v7964_v15 = vcombine.low %v3923_v23, %v3933_v36  ;;  %v7966_v11 = vrot.slane %v3941_v19, 4  ;;  %v7968_v21 = vrot.slane %v3959_v51, 4 }
 0x108   : > { %v7972_v41 = vsel %vm6939_vm6, %v4438_v5, %v4439_v27  ;;  %v7976_v52 = vrot.slane %v3951_v20, 4  ;;  %v7978_v7 = vrot.slane %v3962_v30, 5  ;;  %v7989_v51 = vrot.slane %v3968_v57, 5  ;;  %v5629_v20 = vld [vmem:[%s6698_s27 + $0x84] sm:$0xe] }
 0x109   : > { %v5660_v23 = vcombine.low %v7954_v32, %v7972_v41  ;;  %v7987_v19 = vsel %vm6939_vm6, %v4445_v46, %v4446_v8  ;;  %v3983_v26 = vshrl.u32 %v5579_v12, 16  ;;  %v5644_v43 = vrot.slane %v5628_v14, 9  ;;  %v7997_v30 = vld [vmem:[%s6698_s27 + $0xbc] sm:$0x1]  ;;  %v5582_v5 = vld [vmem:[%s6698_s27 + $0xcc] sm:$0xf] }
 0x10a   : > { %v5661_v36 = vcombine.low %v7961_v25, %v7987_v19  ;;  %v3986_v18 = vshll.u32 %v5579_v12, 16  ;;  %v4450_v54 = vrot.slane %v8550_v22, 5  ;;  %v4453_v3 = vrot.slane %v7771_v34, 5  ;;  %v6539_v14 = vld [vmem:[%s6698_s27 + $0x18] sm:$0xff]   ;;  %v5630_v22 = vld [vmem:[%s6698_s27 + $0x90] sm:$0xe] }
 0x10b   : > { %v2296_v16 = vshrl.u32 %v5347_v10, 16  ;;  %v3992_v27 = vshll.u32 %v7981_v39, 16  ;;  %v2299_v58 = vshll.u32 %v5347_v10, 16  ;;  %v2318_v34 = vsel %vm6717_vm2, %v8552_v24, %v8551_v13  ;;  %v8554_v24 = vld [vmem:[#allocation14_spill] sm:$0xff]  ;;  %v6607_v19 = vld [vmem:[%s6698_s27 + $0xac] sm:$0xf] }
 0x10c   : > { %v8016_v1 = vsel %vm6939_vm6, %v5644_v43, %v4450_v54  ;;  %v4452_v45 = vrot.slane %v4450_v54, 4  ;;  %v3974_v31 = vrot.slane %v3972_v40, 4  ;;  %v3978_v63 = vshll.u32 %v7997_v30, 16 }
 0x10d   : > { %6161 = vmatmul.mubr.msk.bf16.gmra.mrb[12].mxu0 %vm702_vm3, %v7887_v29  ;;  %v3996_v29 = vshrl.u32 %v7981_v39, 16  ;;  %v2301_v44 = vrot.slane %v2299_v58, 5  ;;  %v4457_v8 = vrot.slane %v8553_v49, 5  ;;  %v3947_v57 = vsel %vm6717_vm2, %v7966_v11, %v7897_v60  ;;  %v6540_v60 = vld [vmem:[%s6698_s27 + $0x24] sm:$0xff]  }
 0x10e   : > { %6007 = vmatmul.mubr.msk.bf16.gmra.mrb[28].mxu1 %vm702_vm3, %v5235_v55  ;;  %6164 = vmatprep.mubr.msk.bf16.mxu0 %vm702_vm3, %v7889_v61  ;;  %v2298_v55 = vrot.slane %v2296_v16, 4  ;;  %v5645_v61 = vrot.slane %v5629_v20, 9  ;;  %v3965_v12 = vor.u32 %v7978_v7, %v7968_v21  ;;  %v8029_v46 = vsel %vm6939_vm6, %v4452_v45, %v4453_v3  ;;  %v8040_v7 = vld [vmem:[%s6698_s27 + $0xd0] sm:$0xf] }
 0x10f   : > { %6012 = vmatprep.mubr.msk.bf16.mxu1 %vm702_vm3, %v6538_v6  ;;  %v4460_v40 = vrot.slane %v7784_v17, 5  ;;  %v3985_v10 = vrot.slane %v3983_v26, 4  ;;  %v3988_v6 = vrot.slane %v3986_v18, 5  ;;  %v5662_v43 = vcombine.low %v8016_v1, %v8029_v46  ;;  %v8052_v18 = vld [vmem:[%s6698_s27 + $0xc8] sm:$0x1] }
 0x110   : > { %v2302_v20 = vor.u32 %v2301_v44, %v2298_v55  ;;  %v8037_v11 = vrot.slane %v3992_v27, 5  ;;  %v3998_v21 = vrot.slane %v3996_v29, 4  ;;  %v8044_v54 = vsel %vm6939_vm6, %v5645_v61, %v4457_v8  ;;  %v8555_v55 = vld [vmem:[#allocation2_spill] sm:$0xff] }
 0x111   : > { %v4459_v3 = vrot.slane %v4457_v8, 4  ;;  %v3957_v17 = vsel %vm6717_vm2, %v7976_v52, %v7956_v38  ;;  %v3975_v26 = vor.u32 %v3974_v31, %v7989_v51  ;;  %v4007_v16 = vshrl.u32 %v5582_v5, 16  ;;  %v8556_v31 = vld [vmem:[#allocation7_spill] sm:$0xff] }
 0x112   : > { %v2303_v27 = vrot.slane %v2302_v20, 4  ;;  %v4010_v29 = vshll.u32 %v5582_v5, 16  ;;  %v5646_v13 = vrot.slane %v5630_v22, 9  ;;  %v4464_v45 = vrot.slane %v8554_v24, 5 }
 0x113   : > { %v8058_v58 = vsel %vm6939_vm6, %v4459_v3, %v4460_v40  ;;  %v4016_v38 = vshll.u32 %v8040_v7, 16  ;;  %v4020_v52 = vshrl.u32 %v8040_v7, 16  ;;  %v3989_v44 = vor.u32 %v3988_v6, %v3985_v10  ;;  %v5631_v10 = vld [vmem:[%s6698_s27 + $0x9c] sm:$0xe]  ;;  %v6541_v6 = vld [vmem:[%s6698_s27 + $0x30] sm:$0xff]  }
 0x114   : > { %v5663_v61 = vcombine.low %v8044_v54, %v8058_v58  ;;  %v4002_v49 = vshll.u32 %v8052_v18, 16  ;;  %v3980_v5 = vrot.slane %v3978_v63, 5  ;;  %v8079_v40 = vsel %vm6939_vm6, %v5646_v13, %v4464_v45  ;;  %v6542_v13 = vld [vmem:[%s6698_s27 + $0x3c] sm:$0xff]  }
 0x115   : > { %6165 = vmatmul.mubr.msk.bf16.gmra.mrb[16].mxu0 %vm702_vm3, %v7892_v9  ;;  %v2308_v9 = vsel %vm6717_vm2, %v2303_v27, %v8555_v55  ;;  %v4467_v20 = vrot.slane %v7792_v0, 5  ;;  %v5599_v22 = vcombine.low %v3947_v57, %v3957_v17  ;;  %v3966_v3 = vrot.slane %v3965_v12, 4 }
 0x116   : > { %6013 = vmatmul.mubr.msk.bf16.vlgmr.msra.gmra.mrb[0].mxu1 %vm702_vm3, %v6539_v14  ;;  %6168 = vmatprep.mubr.msk.bf16.mxu0 %vm702_vm3, %v7895_v33  ;;  %v3999_v33 = vor.u32 %v3998_v21, %v8037_v11  ;;  %v8075_v8 = vcombine.low %v2308_v9, %v2318_v34  ;;  %v4466_v14 = vrot.slane %v4464_v45, 4  ;;  %v3976_v27 = vrot.slane %v3975_v26, 4  ;;  %v8085_v21 = vld [vmem:[%s6698_s27 + $0xd4] sm:$0x1]  ;;  %v5620_v9 = vld [vmem:[%s6698_s27 + $0x18] sm:$0xe] }
 0x117   : > { %6215 = vmatpush3.bf16.msra.mxu1 %v8556_v31  ;;  %6016 = vmatprep.mubr.msk.bf16.mxu1 %vm702_vm3, %v6540_v60  ;;  %v4009_v60 = vrot.slane %v4007_v16, 4  ;;  %v4012_v24 = vrot.slane %v4010_v29, 5  ;;  %v8087_v34 = vrot.slane %v4016_v38, 5  ;;  %v4022_v55 = vrot.slane %v4020_v52, 4 }
 0x118   : > { %v8091_v63 = vsel %vm6939_vm6, %v4466_v14, %v4467_v20  ;;  %v3990_v45 = vrot.slane %v3989_v44, 4  ;;  %v4000_v0 = vrot.slane %v3999_v33, 4  ;;  %v4004_v57 = vrot.slane %v4002_v49, 5  ;;  %v6593_v33 = vld [vmem:[%s6698_s27 + $0x1c] sm:$0xf] }
 0x119   : > { %v5664_v12 = vcombine.low %v8079_v40, %v8091_v63  ;;  %v5647_v17 = vrot.slane %v5631_v10, 9  ;;  %v4471_v26 = vrot.slane %v7789_v50, 5  ;;  %v3971_v16 = vsel %vm6717_vm2, %v3966_v3, %v7989_v51  ;;  %v5632_v14 = vld [vmem:[%s6698_s27 + $0xa8] sm:$0xe] }
 0x11a   : > { %v3981_v29 = vsel %vm6717_vm2, %v3976_v27, %v3980_v5  ;;  %v4026_v38 = vshll.u32 %v8085_v21, 16  ;;  %v4474_v52 = vrot.slane %v7823_v53, 5  ;;  %v4013_v50 = vor.u32 %v4012_v24, %v4009_v60  ;;  %v6543_v60 = vld [vmem:[%s6698_s27 + $0x48] sm:$0xff]   ;;  %v6594_v24 = vld [vmem:[%s6698_s27 + $0x20] sm:$0x1] }
 0x11b   : > { %v8112_v51 = vsel %vm6939_vm6, %v5647_v17, %v4471_v26  ;;  %v4473_v31 = vrot.slane %v4471_v26, 4  ;;  %v3995_v53 = vsel %vm6717_vm2, %v3990_v45, %v8037_v11  ;;  %v4005_v44 = vsel %vm6717_vm2, %v4000_v0, %v4004_v57  ;;  %v5633_v26 = vld [vmem:[%s6698_s27 + $0xb4] sm:$0xe] }
 0x11c   : > { %v4394_v49 = vrot.slane %v6593_v33, 5  ;;  %v5600_v20 = vcombine.low %v3971_v16, %v3981_v29  ;;  %v5636_v3 = vrot.slane %v5620_v9, 9  ;;  %v5601_v11 = vcombine.low %v3995_v53, %v4005_v44  ;;  %v5622_v33 = vld [vmem:[%s6698_s27 + $0x30] sm:$0xe] }
 0x11d   : > { %6169 = vmatmul.mubr.msk.bf16.gmra.mrb[20].mxu0 %vm702_vm3, %v7964_v15  ;;  %v4023_v15 = vor.u32 %v4022_v55, %v8087_v34  ;;  %v8123_v5 = vsel %vm6939_vm6, %v4473_v31, %v4474_v52  ;;  %v4014_v10 = vrot.slane %v4013_v50, 4  ;;  %v4397_v55 = vrot.slane %v6594_v24, 5  ;;  %v5621_v52 = vld [vmem:[%s6698_s27 + $0x24] sm:$0xe]  ;;  %v6595_v50 = vld [vmem:[%s6698_s27 + $0x28] sm:$0xf] }
 0x11e   : > { %6017 = vmatmul.mubr.msk.bf16.gmra.mrb[4].mxu1 %vm702_vm3, %v6541_v6  ;;  %6172 = vmatprep.mubr.msk.bf16.mxu0 %vm702_vm3, %v5599_v22  ;;  %v4028_v22 = vrot.slane %v4026_v38, 5  ;;  %v5665_v27 = vcombine.low %v8112_v51, %v8123_v5  ;;  %v4396_v45 = vrot.slane %v4394_v49, 4  ;;  %v5648_v0 = vrot.slane %v5632_v14, 9  ;;  %v6596_v31 = vld [vmem:[%s6698_s27 + $0x34] sm:$0xf] }
 0x11f   : > { %6020 = vmatprep.mubr.msk.bf16.mxu1 %vm702_vm3, %v6542_v13  ;;  %v4024_v6 = vrot.slane %v4023_v15, 4  ;;  %v6544_v13 = vld [vmem:[%s6698_s27 + $0x54] sm:$0xff]   ;;  %v4478_v57 = vrot.slane %v7826_v4, 5  ;;  %v4481_v17 = vrot.slane %v7869_v59, 5  ;;  %v4019_v4 = vsel %vm6717_vm2, %v4014_v10, %v8087_v34  ;;  %v6545_v10 = vld [vmem:[%s6698_s27 + $0x60] sm:$0xff]  }
 0x120   : > { %v4395_v38 = vsel %vm6939_vm6, %v5636_v3, %v4394_v49  ;;  %v4401_v15 = vrot.slane %v6595_v50, 5  ;;  %v4398_v9 = vsel %vm6939_vm6, %v4396_v45, %v4397_v55  ;;  %v4408_v53 = vrot.slane %v6596_v31, 5  ;;  %v6597_v3 = vld [vmem:[%s6698_s27 + $0x2c] sm:$0x1]  ;;  %v6612_v51 = vld [vmem:[%s6698_s27 + $0xc8] sm:$0x1] }
 0x121   : > { %v8137_v16 = vsel %vm6939_vm6, %v5648_v0, %v4478_v57  ;;  %v4480_v29 = vrot.slane %v4478_v57, 4  ;;  %v4029_v59 = vsel %vm6717_vm2, %v4024_v6, %v4028_v22  ;;  %v5649_v44 = vrot.slane %v5633_v26, 9  ;;  %v6546_v45 = vld [vmem:[%s6698_s27 + $0x6c] sm:$0xff]   ;;  %v5634_v26 = vld [vmem:[%s6698_s27 + $0xc0] sm:$0xe] }
 0x122   : > { %v4485_v14 = vrot.slane %v7919_v35, 5  ;;  %v5637_v22 = vrot.slane %v5621_v52, 9  ;;  %v5654_v6 = vcombine.low %v4395_v38, %v4398_v9  ;;  %v4403_v24 = vrot.slane %v4401_v15, 4  ;;  %v6598_v35 = vld [vmem:[%s6698_s27 + $0x38] sm:$0x1] }
 0x123   : > { %v8156_v34 = vsel %vm6939_vm6, %v4480_v29, %v4481_v17  ;;  %v5638_v0 = vrot.slane %v5622_v33, 9  ;;  %v4410_v57 = vrot.slane %v4408_v53, 4  ;;  %v4411_v17 = vrot.slane %v6598_v35, 5  ;;  %v8557_v38 = vld [vmem:[#allocation5_spill] sm:$0xff] }
 0x124   : > { %v5666_v49 = vcombine.low %v8137_v16, %v8156_v34  ;;  %v8167_v55 = vsel %vm6939_vm6, %v5649_v44, %v4485_v14  ;;  %v4415_v52 = vrot.slane %v8557_v38, 5  ;;  %v5650_v50 = vrot.slane %v5634_v26, 9  ;;  %v5623_v44 = vld [vmem:[%s6698_s27 + $0x3c] sm:$0xe]  ;;  %v6599_v38 = vld [vmem:[%s6698_s27 + $0x70] sm:$0xf] }
 0x125   : > { %6173 = vmatmul.mubr.msk.bf16.gmra.mrb[24].mxu0 %vm702_vm3, %v5600_v20  ;;  %v5602_v20 = vcombine.low %v4019_v4, %v4029_v59  ;;  %v4402_v4 = vsel %vm6939_vm6, %v5637_v22, %v4401_v15  ;;  %v4409_v9 = vsel %vm6939_vm6, %v5638_v0, %v4408_v53  ;;  %v4412_v31 = vsel %vm6939_vm6, %v4410_v57, %v4411_v17  ;;  %v5344_v22 = vld [vmem:[%s6698_s27 + $0x6c] sm:$0xf] }
 0x126   : > { %6021 = vmatmul.mubr.msk.bf16.gmra.mrb[8].mxu1 %vm702_vm3, %v6543_v60  ;;  %6176 = vmatprep.mubr.msk.bf16.mxu0 %vm702_vm3, %v5601_v11  ;;  %v4404_v60 = vrot.slane %v6597_v3, 5  ;;  %v4488_v11 = vrot.slane %v7997_v30, 5  ;;  %v4492_v33 = vrot.slane %v7981_v39, 5  ;;  %v4495_v15 = vrot.slane %v8052_v18, 5 }
 0x127   : > { %6024 = vmatprep.mubr.msk.bf16.mxu1 %vm702_vm3, %v6544_v13  ;;  %v4487_v13 = vrot.slane %v4485_v14, 4  ;;  %v5635_v14 = vld [vmem:[%s6698_s27 + $0xcc] sm:$0xe]  ;;  %v4417_v53 = vrot.slane %v4415_v52, 4  ;;  %v2272_v0 = vshrl.u32 %v5344_v22, 16  ;;  %v2275_v57 = vshll.u32 %v5344_v22, 16 }
 0x128   : > { %v4405_v59 = vsel %vm6939_vm6, %v4403_v24, %v4404_v60  ;;  %v8198_v3 = vsel %vm6939_vm6, %v5650_v50, %v4492_v33  ;;  %v4494_v60 = vrot.slane %v4492_v33, 4  ;;  %v8558_v24 = vld [vmem:[#allocation6_spill] sm:$0xff]  ;;  %v5651_v18 = vrot.slane %v5635_v14, 9 }
 0x129   : > { %v8174_v29 = vsel %vm6939_vm6, %v4487_v13, %v4488_v11  ;;  %v6547_v11 = vld [vmem:[%s6698_s27 + $0x78] sm:$0xff]   ;;  %v4418_v13 = vrot.slane %v8558_v24, 5  ;;  %v4499_v17 = vrot.slane %v8040_v7, 5  ;;  %v4502_v26 = vrot.slane %v8085_v21, 5 }
 0x12a   : > { %v5667_v30 = vcombine.low %v8167_v55, %v8174_v29  ;;  %v8205_v39 = vsel %vm6939_vm6, %v4494_v60, %v4495_v15  ;;  %v2281_v50 = vshll.u32 %v6599_v38, 16  ;;  %v6549_v15 = vld [vmem:[%s6698_s27 + $0x90] sm:$0xff]   ;;  %v6550_v60 = vld [vmem:[%s6698_s27 + $0x9c] sm:$0xff]   ;;  %v2459_v5 = vshll.u32 %v6612_v51, 16 }
 0x12b   : > { %v5668_v35 = vcombine.low %v8198_v3, %v8205_v39  ;;  %v8222_v7 = vsel %vm6939_vm6, %v5651_v18, %v4499_v17  ;;  %v4501_v21 = vrot.slane %v4499_v17, 4  ;;  %v5353_v17 = vld [vmem:[%s6698_s27 + $0x90] sm:$0xf] }
 0x12c   : > { %v2283_v14 = vrot.slane %v2281_v50, 5 }
 0x12d   : > { %6177 = vmatmul.mubr.msk.bf16.gmra.mrb[28].mxu0 %vm702_vm3, %v5602_v20  ;;  %v5655_v20 = vcombine.low %v4402_v4, %v4405_v59  ;;  %v4419_v59 = vsel %vm6939_vm6, %v4417_v53, %v4418_v13 }
 0x12e   : > { %6025 = vmatmul.mubr.msk.bf16.gmra.mrb[12].mxu1 %vm702_vm3, %v6545_v10  ;;  %6182 = vmatprep.mubr.msk.bf16.mxu0 %vm702_vm3, %v5654_v6  ;;  %v5656_v10 = vcombine.low %v4409_v9, %v4412_v31  ;;  %v5639_v6 = vrot.slane %v5623_v44, 9  ;;  %v2285_v9 = vshrl.u32 %v6599_v38, 16  ;;  %v2274_v31 = vrot.slane %v2272_v0, 4  ;;  %v6552_v38 = vld [vmem:[%s6698_s27 + $0xb4] sm:$0xff]  }
 0x12f   : > { %6028 = vmatprep.mubr.msk.bf16.mxu1 %vm702_vm3, %v6546_v45  ;;  %v6548_v45 = vld [vmem:[%s6698_s27 + $0x84] sm:$0xff]   ;;  %v2277_v44 = vrot.slane %v2275_v57, 5 }
 0x130   : > { %v4416_v4 = vsel %vm6939_vm6, %v5639_v6, %v4415_v52  ;;  %v8226_v52 = vsel %vm6939_vm6, %v4501_v21, %v4502_v26  ;;  %v6600_v6 = vld [vmem:[%s6698_s27 + $0x74] sm:$0x1]  ;;  %v6551_v26 = vld [vmem:[%s6698_s27 + $0xa8] sm:$0xff]   ;;  %v2344_v21 = vshrl.u32 %v5353_v17, 16 }
 0x131   : > { %v5657_v33 = vcombine.low %v4416_v4, %v4419_v59  ;;  %v5669_v22 = vcombine.low %v8222_v7, %v8226_v52  ;;  %v2291_v53 = vshll.u32 %v6600_v6, 16  ;;  %v5356_v59 = vld [vmem:[%s6698_s27 + $0x9c] sm:$0xf]  ;;  %v6604_v6 = vld [vmem:[%s6698_s27 + $0x8c] sm:$0x1] }
 0x133   : > { %v2293_v48 = vrot.slane %v2291_v53, 5  ;;  %v2339_v53 = vshll.u32 %v6604_v6, 16 }
 0x135   : > { %6183 = vmatmul.mubr.msk.bf16.vlgmr.msra.gmra.mrb[0].mxu0 %vm702_vm3, %v5655_v20  ;;  %v2287_v20 = vrot.slane %v2285_v9, 4 }
 0x136   : > { %6029 = vmatmul.mubr.msk.bf16.gmra.mrb[16].mxu1 %vm702_vm3, %v6547_v11  ;;  %6186 = vmatprep.mubr.msk.bf16.mxu0 %vm702_vm3, %v5656_v10  ;;  %v5350_v11 = vld [vmem:[%s6698_s27 + $0x84] sm:$0xf]  ;;  %v2278_v10 = vor.u32 %v2277_v44, %v2274_v31  ;;  %v2347_v31 = vshll.u32 %v5353_v17, 16 }
 0x137   : > { %6032 = vmatprep.mubr.msk.bf16.mxu1 %vm702_vm3, %v6548_v45  ;;  %v2288_v2 = vor.u32 %v2287_v20, %v2283_v14  ;;  %v2320_v24 = vshrl.u32 %v5350_v11, 16  ;;  %v2323_v13 = vshll.u32 %v5350_v11, 16  ;;  %v6601_v45 = vld [vmem:[%s6698_s27 + $0x88] sm:$0xf]  ;;  %v2371_v11 = vshll.u32 %v5356_v59, 16 }
 0x138   : > { %v2329_v18 = vshll.u32 %v6601_v45, 16  ;;  %v2333_v0 = vshrl.u32 %v6601_v45, 16  ;;  %v2279_v57 = vrot.slane %v2278_v10, 4  ;;  %v2377_v10 = vshll.u32 %v6603_v62, 16 }
 0x139   : > { %v2289_v4 = vrot.slane %v2288_v2, 4  ;;  %v2322_v47 = vrot.slane %v2320_v24, 4  ;;  %v2346_v24 = vrot.slane %v2344_v21, 4  ;;  %v2349_v32 = vrot.slane %v2347_v31, 5  ;;  %v6606_v31 = vld [vmem:[%s6698_s27 + $0xa4] sm:$0x1] }
 0x13a   : > { %v8246_v50 = vrot.slane %v2329_v18, 5  ;;  %v2335_v9 = vrot.slane %v2333_v0, 4  ;;  %v2284_v44 = vsel %vm6717_vm2, %v2279_v57, %v2283_v14  ;;  %v2373_v45 = vrot.slane %v2371_v11, 5  ;;  %v6553_v18 = vld [vmem:[%s6698_s27 + $0xc0] sm:$0xff]  }
 0x13b   : > { %v2294_v14 = vsel %vm6717_vm2, %v2289_v4, %v2293_v48  ;;  %v8269_v17 = vrot.slane %v2377_v10, 5  ;;  %v5359_v4 = vld [vmem:[%s6698_s27 + $0xa8] sm:$0xf] }
 0x13c   : > { %v2336_v2 = vor.u32 %v2335_v9, %v8246_v50  ;;  %v5378_v0 = vcombine.low %v2284_v44, %v2294_v14  ;;  %v2387_v44 = vshll.u32 %v6606_v31, 16  ;;  %v2395_v25 = vshll.u32 %v5359_v4, 16 }
 0x13d   : > { %6187 = vmatmul.mubr.msk.bf16.gmra.mrb[4].mxu0 %vm702_vm3, %v5657_v33  ;;  %v6602_v33 = vld [vmem:[%s6698_s27 + $0x94] sm:$0xf] }
 0x13e   : > { %6033 = vmatmul.mubr.msk.bf16.gmra.mrb[20].mxu1 %vm702_vm3, %v6549_v15  ;;  %6190 = vmatprep.mubr.msk.bf16.mxu0 %vm702_vm3, %v5658_v42  ;;  %v2325_v42 = vrot.slane %v2323_v13, 5  ;;  %v2353_v15 = vshll.u32 %v6602_v33, 16  ;;  %v2357_v20 = vshrl.u32 %v6602_v33, 16  ;;  %v2337_v48 = vrot.slane %v2336_v2, 4 }
 0x13f   : > { %6036 = vmatprep.mubr.msk.bf16.mxu1 %vm702_vm3, %v6550_v60  ;;  %v2368_v60 = vshrl.u32 %v5356_v59, 16  ;;  %v6605_v59 = vld [vmem:[%s6698_s27 + $0x98] sm:$0x1]  ;;  %v2392_v33 = vshrl.u32 %v5359_v4, 16  ;;  %v5365_v4 = vld [vmem:[%s6698_s27 + $0xc0] sm:$0xf] }
 0x140   : > { %v2326_v37 = vor.u32 %v2325_v42, %v2322_v47  ;;  %v8266_v41 = vrot.slane %v2353_v15, 5  ;;  %v2341_v47 = vrot.slane %v2339_v53, 5  ;;  %v2350_v42 = vor.u32 %v2349_v32, %v2346_v24  ;;  %v5362_v15 = vld [vmem:[%s6698_s27 + $0xb4] sm:$0xf] }
 0x141   : > { %v2370_v13 = vrot.slane %v2368_v60, 4  ;;  %v2405_v60 = vshrl.u32 %v6607_v19, 16  ;;  %v2416_v1 = vshrl.u32 %v5362_v15, 16  ;;  %v2419_v46 = vshll.u32 %v5362_v15, 16 }
 0x142   : > { %v2327_v57 = vrot.slane %v2326_v37, 4  ;;  %v2342_v14 = vsel %vm6717_vm2, %v2337_v48, %v2341_v47  ;;  %v2351_v37 = vrot.slane %v2350_v42, 4  ;;  %v2389_v53 = vrot.slane %v2387_v44, 5 }
 0x143   : > { %v2374_v21 = vor.u32 %v2373_v45, %v2370_v13  ;;  %v2394_v24 = vrot.slane %v2392_v33, 4  ;;  %v2407_v45 = vrot.slane %v2405_v60, 4  ;;  %v6611_v33 = vld [vmem:[%s6698_s27 + $0xbc] sm:$0x1] }
 0x144   : > { %v2332_v11 = vsel %vm6717_vm2, %v2327_v57, %v8246_v50  ;;  %v2356_v48 = vsel %vm6717_vm2, %v2351_v37, %v8266_v41  ;;  %v2435_v40 = vshll.u32 %v6611_v33, 16 }
 0x145   : > { %6191 = vmatmul.mubr.msk.bf16.gmra.mrb[8].mxu0 %vm702_vm3, %v5659_v56  ;;  %v2381_v56 = vshrl.u32 %v6603_v62, 16  ;;  %v2375_v6 = vrot.slane %v2374_v21, 4  ;;  %v5380_v50 = vcombine.low %v2332_v11, %v2342_v14 }
 0x146   : > { %6037 = vmatmul.mubr.msk.bf16.gmra.mrb[24].mxu1 %vm702_vm3, %v6551_v26  ;;  %6194 = vmatprep.mubr.msk.bf16.mxu0 %vm702_vm3, %v5660_v23  ;;  %v2359_v23 = vrot.slane %v2357_v20, 4 }
 0x147   : > { %6040 = vmatprep.mubr.msk.bf16.mxu1 %vm702_vm3, %v6552_v38  ;;  %v2383_v26 = vrot.slane %v2381_v56, 4  ;;  %v2363_v38 = vshll.u32 %v6605_v59, 16  ;;  %v2380_v42 = vsel %vm6717_vm2, %v2375_v6, %v8269_v17  ;;  %v2461_v6 = vrot.slane %v2459_v5, 5 }
 0x148   : > { %v2360_v9 = vor.u32 %v2359_v23, %v8266_v41  ;;  %v2397_v23 = vrot.slane %v2395_v25, 5  ;;  %v6609_v41 = vld [vmem:[%s6698_s27 + $0xb0] sm:$0x1] }
 0x149   : > { %v2384_v20 = vor.u32 %v2383_v26, %v8269_v17  ;;  %v2365_v62 = vrot.slane %v2363_v38, 5  ;;  %v2411_v59 = vshll.u32 %v6609_v41, 16  ;;  %v2440_v38 = vshrl.u32 %v5365_v4, 16 }
 0x14a   : > { %v2361_v2 = vrot.slane %v2360_v9, 4  ;;  %v2398_v58 = vor.u32 %v2397_v23, %v2394_v24  ;;  %v2443_v17 = vshll.u32 %v5365_v4, 16  ;;  %v6610_v9 = vld [vmem:[%s6698_s27 + $0xc4] sm:$0xf] }
 0x14b   : > { %v2385_v32 = vrot.slane %v2384_v20, 4  ;;  %v2449_v21 = vshll.u32 %v6610_v9, 16  ;;  %v2453_v31 = vshrl.u32 %v6610_v9, 16  ;;  %v2413_v25 = vrot.slane %v2411_v59, 5 }
 0x14c   : > { %v2366_v47 = vsel %vm6717_vm2, %v2361_v2, %v2365_v62  ;;  %v2399_v15 = vrot.slane %v2398_v58, 4  ;;  %v2437_v62 = vrot.slane %v2435_v40, 5 }
 0x14d   : > { %6195 = vmatmul.mubr.msk.bf16.gmra.mrb[12].mxu0 %vm702_vm3, %v5661_v36  ;;  %v2401_v36 = vshll.u32 %v6607_v19, 16  ;;  %v2390_v54 = vsel %vm6717_vm2, %v2385_v32, %v2389_v53  ;;  %v5381_v63 = vcombine.low %v2356_v48, %v2366_v47  ;;  %v2442_v19 = vrot.slane %v2440_v38, 4 }
 0x14e   : > { %6041 = vmatmul.mubr.msk.bf16.gmra.mrb[28].mxu1 %vm702_vm3, %v6553_v18  ;;  %6198 = vmatprep.mubr.msk.bf16.mxu0 %vm702_vm3, %v5662_v43  ;;  %v6608_v43 = vld [vmem:[%s6698_s27 + $0xb8] sm:$0xf]  ;;  %v2418_v18 = vrot.slane %v2416_v1, 4  ;;  %v2451_v60 = vrot.slane %v2449_v21, 5  ;;  %v2455_v11 = vrot.slane %v2453_v31, 4 }
 0x14f   : > { %6062 = vmatprep.mubr.msk.bf16.mxu1 %vm702_vm3, %v5378_v0  ;;  %v2425_v10 = vshll.u32 %v6608_v43, 16  ;;  %v2429_v56 = vshrl.u32 %v6608_v43, 16  ;;  %v2403_v13 = vrot.slane %v2401_v36, 5  ;;  %v2421_v0 = vrot.slane %v2419_v46, 5 }
 0x150   : > { %v2445_v36 = vrot.slane %v2443_v17, 5 }
 0x151   : > { %v2427_v57 = vrot.slane %v2425_v10, 5  ;;  %v2431_v26 = vrot.slane %v2429_v56, 4  ;;  %v2404_v1 = vsel %vm6717_vm2, %v2399_v15, %v2403_v13  ;;  %v2456_v10 = vor.u32 %v2455_v11, %v2451_v60 }
 0x152   : > { %v2446_v43 = vor.u32 %v2445_v36, %v2442_v19 }
 0x153   : > { %v2432_v44 = vor.u32 %v2431_v26, %v2427_v57  ;;  %v2457_v2 = vrot.slane %v2456_v10, 4  ;;  %v8372_v26 = vld [vmem:[%s8493_s2] ss:$0 sm:$0xff] }
 0x154   : > { %v2447_v56 = vrot.slane %v2446_v43, 4 }
 0x155   : > { %6199 = vmatmul.mubr.msk.bf16.gmra.mrb[16].mxu0 %vm702_vm3, %v5663_v61  ;;  %v2408_v61 = vor.u32 %v2407_v45, %v2403_v13  ;;  %v2433_v37 = vrot.slane %v2432_v44, 4  ;;  %v2462_v24 = vsel %vm6717_vm2, %v2457_v2, %v2461_v6 }
 0x156   : > { %6063 = vmatmul.mubr.msk.bf16.vlgmr.msra.gmra.mrb[16].mxu1 %vm702_vm3, %v8075_v8  ;;  %6202 = vmatprep.mubr.msk.bf16.mxu0 %vm702_vm3, %v5664_v12  ;;  %v2422_v8 = vor.u32 %v2421_v0, %v2418_v18  ;;  %v5382_v12 = vcombine.low %v2380_v42, %v2390_v54  ;;  %v2452_v53 = vsel %vm6717_vm2, %v2447_v56, %v2451_v60 }
 0x157   : > { %6066 = vmatprep.mubr.msk.bf16.mxu1 %vm702_vm3, %v5380_v50  ;;  %v2409_v20 = vrot.slane %v2408_v61, 4  ;;  %v2438_v16 = vsel %vm6717_vm2, %v2433_v37, %v2437_v62  ;;  %v5385_v32 = vcombine.low %v2452_v53, %v2462_v24 }
 0x158   : > { %v2423_v14 = vrot.slane %v2422_v8, 4 }
 0x159   : > { %v2414_v46 = vsel %vm6717_vm2, %v2409_v20, %v2413_v25 }
 0x15a   : > { %v5383_v34 = vcombine.low %v2404_v1, %v2414_v46 }
 0x15d   : > { %6203 = vmatmul.mubr.msk.bf16.gmra.mrb[20].mxu0 %vm702_vm3, %v5665_v27  ;;  %v2428_v27 = vsel %vm6717_vm2, %v2423_v14, %v2427_v57 }
 0x15e   : > { %6067 = vmatmul.mubr.msk.bf16.gmra.mrb[20].mxu1 %vm702_vm3, %v5381_v63  ;;  %6206 = vmatprep.mubr.msk.bf16.mxu0 %vm702_vm3, %v5666_v49  ;;  %v5384_v49 = vcombine.low %v2428_v27, %v2438_v16 }
 0x15f   : > { %6070 = vmatprep.mubr.msk.bf16.mxu1 %vm702_vm3, %v5382_v12 }
 0x165   : > { %6207 = vmatmul.mubr.msk.bf16.gmra.mrb[24].mxu0 %vm702_vm3, %v5667_v30 }
 0x166   : > { %6071 = vmatmul.mubr.msk.bf16.gmra.mrb[24].mxu1 %vm702_vm3, %v5383_v34  ;;  %6210 = vmatprep.mubr.msk.bf16.mxu0 %vm702_vm3, %v5668_v35 }
 0x167   : > { %6074 = vmatprep.mubr.msk.bf16.mxu1 %vm702_vm3, %v5384_v49 }
 0x16d   : > { %6211 = vmatmul.mubr.msk.bf16.gmra.mrb[28].mxu0 %vm702_vm3, %v5669_v22 }
 0x16e   : > { %6075 = vmatmul.mubr.msk.bf16.gmra.mrb[28].mxu1 %vm702_vm3, %v5385_v32 }
 0x1e9   : > { %v6014_v55 = vpop.f32.mrb[0].mxu1 }
 0x1ea   : > { %v1872_v29 = vpop.f32.mrb[1].mxu1 }
 0x1eb   : > { %v6015_v30 = vpop.f32.mrb[2].mxu1 }
 0x1ec   : > { %v1875_v3 = vpop.f32.mrb[3].mxu1 }
 0x1f1   : > { %v6018_v39 = vpop.f32.mrb[4].mxu1 }
 0x1f2   : > { %v1888_v35 = vpop.f32.mrb[5].mxu1 }
 0x1f3   : > { %v6019_v23 = vpop.f32.mrb[6].mxu1 }
 0x1f4   : > { %v1891_v13 = vpop.f32.mrb[7].mxu1 }
 0x1f9   : > { %v6022_v45 = vpop.f32.mrb[8].mxu1 }
 0x1fa   : > { %v1904_v28 = vpop.f32.mrb[9].mxu1 }
 0x1fb   : > { %v8357_v50 = vpop.f32.mrb[10].mxu1 }
 0x1fc   : > { %v8359_v18 = vpop.f32.mrb[11].mxu1 }
 0x201   : > { %v8361_v7 = vpop.f32.mrb[12].mxu1 }
 0x202   : > { %v8363_v52 = vpop.f32.mrb[13].mxu1 }
 0x203   : > { %v8365_v22 = vpop.f32.mrb[14].mxu1 }
 0x204   : > { %v8367_v0 = vpop.f32.mrb[15].mxu1 }
 0x208   : > { %v6184_v57 = vpop.f32.mrb[0].mxu0 }
 0x209   : > { %v6216_v4 = vadd.f32 %v6184_v57, %v6014_v55  ;;  %v4643_v48 = vpop.f32.mrb[1].mxu0 }
 0x20a   : > { %v6217_v47 = vadd.f32 %v4643_v48, %v1872_v29  ;;  %v6185_v42 = vpop.f32.mrb[2].mxu0 }
 0x20b   : > { %v4811_v54 = vadd.f32 %v6216_v4, %v8372_v26  ;;  %v6218_v58 = vadd.f32 %v6185_v42, %v6015_v30  ;;  %v4646_v61 = vpop.f32.mrb[3].mxu0 }
 0x20c   : > { %v4809_v41 = vadd.f32 %v6217_v47, %v8372_v26  ;;  %v6219_v59 = vadd.f32 %v4646_v61, %v1875_v3 }
 0x20d   : > { %v4843_v38 = vmax.f32 %v4811_v54, 0.0  ;;  %v4812_v17 = vadd.f32 %v6218_v58, %v8372_v26 }
 0x20e   : > { %v4841_v9 = vmax.f32 %v4809_v41, 0.0  ;;  %v4810_v21 = vadd.f32 %v6219_v59, %v8372_v26 }
 0x20f   : > { %v5725_v31 = vpack.c.bf16 %v4843_v38, %v4843_v38  ;;  %v4844_v8 = vmax.f32 %v4812_v17, 0.0 }
 0x210   : > { %v5723_v44 = vpack.c.bf16 %v4841_v9, %v4841_v9  ;;  %v4842_v33 = vmax.f32 %v4810_v21, 0.0  ;;  %v6188_v40 = vpop.f32.mrb[4].mxu0 }
 0x211   : > { %5004 = vst.msk [vmem:[%s8381_s24 + $0x8] sm:$0xf] %vm5001_vm7, %v5725_v31  ;;  %v5726_v63 = vpack.c.bf16 %v4844_v8, %v4844_v8  ;;  %v6220_v12 = vadd.f32 %v6188_v40, %v6018_v39  ;;  %v4659_v15 = vpop.f32.mrb[5].mxu0 }
 0x212   : > { %5002 = vst.msk [vmem:[%s8381_s24] sm:$0xf] %vm5001_vm7, %v5723_v44  ;;  %v5724_v20 = vpack.c.bf16 %v4842_v33, %v4842_v33  ;;  %v6221_v25 = vadd.f32 %v4659_v15, %v1888_v35  ;;  %v6189_v19 = vpop.f32.mrb[6].mxu0 }
 0x213   : > { %5005 = vst.msk [vmem:[%s8381_s24 + $0xc] sm:$0xf] %vm5001_vm7, %v5726_v63  ;;  %v4815_v36 = vadd.f32 %v6220_v12, %v8372_v26  ;;  %v6222_v60 = vadd.f32 %v6189_v19, %v6019_v23  ;;  %v4662_v11 = vpop.f32.mrb[7].mxu0 }
 0x214   : > { %5003 = vst.msk [vmem:[%s8381_s24 + $0x4] sm:$0xf] %vm5001_vm7, %v5724_v20  ;;  %v4813_v14 = vadd.f32 %v6221_v25, %v8372_v26  ;;  %v6223_v37 = vadd.f32 %v4662_v11, %v1891_v13 }
 0x215   : > { %v4847_v62 = vmax.f32 %v4815_v36, 0.0  ;;  %v4816_v1 = vadd.f32 %v6222_v60, %v8372_v26 }
 0x216   : > { %v4845_v46 = vmax.f32 %v4813_v14, 0.0  ;;  %v4814_v43 = vadd.f32 %v6223_v37, %v8372_v26 }
 0x217   : > { %v5729_v10 = vpack.c.bf16 %v4847_v62, %v4847_v62  ;;  %v4848_v51 = vmax.f32 %v4816_v1, 0.0 }
 0x218   : > { %v5727_v5 = vpack.c.bf16 %v4845_v46, %v4845_v46  ;;  %v4846_v27 = vmax.f32 %v4814_v43, 0.0  ;;  %v6192_v16 = vpop.f32.mrb[8].mxu0 }
 0x219   : > { %5008 = vst.msk [vmem:[%s8381_s24 + $0x18] sm:$0xf] %vm5001_vm7, %v5729_v10  ;;  %v5730_v34 = vpack.c.bf16 %v4848_v51, %v4848_v51  ;;  %v6224_v49 = vadd.f32 %v6192_v16, %v6022_v45  ;;  %v4675_v56 = vpop.f32.mrb[9].mxu0 }
 0x21a   : > { %5006 = vst.msk [vmem:[%s8381_s24 + $0x10] sm:$0xf] %vm5001_vm7, %v5727_v5  ;;  %v5728_v2 = vpack.c.bf16 %v4846_v27, %v4846_v27  ;;  %v6225_v6 = vadd.f32 %v4675_v56, %v1904_v28  ;;  %v6193_v53 = vpop.f32.mrb[10].mxu0 }
 0x21b   : > { %5009 = vst.msk [vmem:[%s8381_s24 + $0x1c] sm:$0xf] %vm5001_vm7, %v5730_v34  ;;  %v4819_v24 = vadd.f32 %v6224_v49, %v8372_v26  ;;  %v6226_v32 = vadd.f32 %v6193_v53, %v8357_v50  ;;  %v4678_v55 = vpop.f32.mrb[11].mxu0 }
 0x21c   : > { %5007 = vst.msk [vmem:[%s8381_s24 + $0x14] sm:$0xf] %vm5001_vm7, %v5728_v2  ;;  %v4817_v29 = vadd.f32 %v6225_v6, %v8372_v26  ;;  %v6227_v30 = vadd.f32 %v4678_v55, %v8359_v18 }
 0x21d   : > { %v4851_v3 = vmax.f32 %v4819_v24, 0.0  ;;  %v4820_v39 = vadd.f32 %v6226_v32, %v8372_v26 }
 0x21e   : > { %v4849_v35 = vmax.f32 %v4817_v29, 0.0  ;;  %v4818_v23 = vadd.f32 %v6227_v30, %v8372_v26 }
 0x21f   : > { %v5733_v13 = vpack.c.bf16 %v4851_v3, %v4851_v3  ;;  %v4852_v45 = vmax.f32 %v4820_v39, 0.0 }
 0x220   : > { %v5731_v28 = vpack.c.bf16 %v4849_v35, %v4849_v35  ;;  %v4850_v50 = vmax.f32 %v4818_v23, 0.0  ;;  %v6196_v57 = vpop.f32.mrb[12].mxu0 }
 0x221   : > { %5012 = vst.msk [vmem:[%s8381_s24 + $0x28] sm:$0xf] %vm5001_vm7, %v5733_v13  ;;  %v5734_v4 = vpack.c.bf16 %v4852_v45, %v4852_v45  ;;  %v6228_v48 = vadd.f32 %v6196_v57, %v8361_v7  ;;  %v4691_v47 = vpop.f32.mrb[13].mxu0 }
 0x222   : > { %5010 = vst.msk [vmem:[%s8381_s24 + $0x20] sm:$0xf] %vm5001_vm7, %v5731_v28  ;;  %v5732_v18 = vpack.c.bf16 %v4850_v50, %v4850_v50  ;;  %v6229_v42 = vadd.f32 %v4691_v47, %v8363_v52  ;;  %v6197_v54 = vpop.f32.mrb[14].mxu0 }
 0x223   : > { %5013 = vst.msk [vmem:[%s8381_s24 + $0x2c] sm:$0xf] %vm5001_vm7, %v5734_v4  ;;  %v4823_v58 = vadd.f32 %v6228_v48, %v8372_v26  ;;  %v6230_v61 = vadd.f32 %v6197_v54, %v8365_v22  ;;  %v4694_v41 = vpop.f32.mrb[15].mxu0 }
 0x224   : > { %5011 = vst.msk [vmem:[%s8381_s24 + $0x24] sm:$0xf] %vm5001_vm7, %v5732_v18  ;;  %v4821_v7 = vadd.f32 %v6229_v42, %v8372_v26  ;;  %v6231_v59 = vadd.f32 %v4694_v41, %v8367_v0 }
 0x225   : > { %v4855_v38 = vmax.f32 %v4823_v58, 0.0  ;;  %v4824_v17 = vadd.f32 %v6230_v61, %v8372_v26 }
 0x226   : > { %v4853_v52 = vmax.f32 %v4821_v7, 0.0  ;;  %v4822_v9 = vadd.f32 %v6231_v59, %v8372_v26 }
 0x227   : > { %v5737_v21 = vpack.c.bf16 %v4855_v38, %v4855_v38  ;;  %v4856_v31 = vmax.f32 %v4824_v17, 0.0 }
 0x228   : > { %v5735_v8 = vpack.c.bf16 %v4853_v52, %v4853_v52  ;;  %v4854_v22 = vmax.f32 %v4822_v9, 0.0  ;;  %v6200_v44 = vpop.f32.mrb[16].mxu0 }
 0x229   : > { %5016 = vst.msk [vmem:[%s8381_s24 + $0x38] sm:$0xf] %vm5001_vm7, %v5737_v21  ;;  %v5738_v33 = vpack.c.bf16 %v4856_v31, %v4856_v31  ;;  %v6064_v40 = vpop.f32.mrb[16].mxu1  ;;  %v4707_v63 = vpop.f32.mrb[17].mxu0 }
 0x22a   : > { %5014 = vst.msk [vmem:[%s8381_s24 + $0x30] sm:$0xf] %vm5001_vm7, %v5735_v8  ;;  %v5736_v0 = vpack.c.bf16 %v4854_v22, %v4854_v22  ;;  %v6232_v12 = vadd.f32 %v6200_v44, %v6064_v40  ;;  %v2666_v15 = vpop.f32.mrb[17].mxu1  ;;  %v6201_v20 = vpop.f32.mrb[18].mxu0 }
 0x22b   : > { %5017 = vst.msk [vmem:[%s8381_s24 + $0x3c] sm:$0xf] %vm5001_vm7, %v5738_v33  ;;  %v6233_v25 = vadd.f32 %v4707_v63, %v2666_v15  ;;  %v6065_v19 = vpop.f32.mrb[18].mxu1  ;;  %v4710_v36 = vpop.f32.mrb[19].mxu0 }
 0x22c   : > { %5015 = vst.msk [vmem:[%s8381_s24 + $0x34] sm:$0xf] %vm5001_vm7, %v5736_v0  ;;  %v4827_v60 = vadd.f32 %v6232_v12, %v8372_v26  ;;  %v6234_v11 = vadd.f32 %v6201_v20, %v6065_v19  ;;  %v2669_v14 = vpop.f32.mrb[19].mxu1 }
 0x22d   : > { %v4825_v37 = vadd.f32 %v6233_v25, %v8372_v26  ;;  %v6235_v62 = vadd.f32 %v4710_v36, %v2669_v14 }
 0x22e   : > { %v4859_v1 = vmax.f32 %v4827_v60, 0.0  ;;  %v4828_v46 = vadd.f32 %v6234_v11, %v8372_v26 }
 0x22f   : > { %v4857_v43 = vmax.f32 %v4825_v37, 0.0  ;;  %v4826_v10 = vadd.f32 %v6235_v62, %v8372_v26 }
 0x230   : > { %v5741_v51 = vpack.c.bf16 %v4859_v1, %v4859_v1  ;;  %v4860_v5 = vmax.f32 %v4828_v46, 0.0  ;;  %v6204_v27 = vpop.f32.mrb[20].mxu0 }
 0x231   : > { %v5739_v16 = vpack.c.bf16 %v4857_v43, %v4857_v43  ;;  %v4858_v34 = vmax.f32 %v4826_v10, 0.0  ;;  %v6068_v49 = vpop.f32.mrb[20].mxu1  ;;  %v4723_v56 = vpop.f32.mrb[21].mxu0 }
 0x232   : > { %5020 = vst.msk [vmem:[%s8381_s24 + $0x48] sm:$0xf] %vm5001_vm7, %v5741_v51  ;;  %v5742_v2 = vpack.c.bf16 %v4860_v5, %v4860_v5  ;;  %v6236_v6 = vadd.f32 %v6204_v27, %v6068_v49  ;;  %v2682_v53 = vpop.f32.mrb[21].mxu1  ;;  %v6205_v24 = vpop.f32.mrb[22].mxu0 }
 0x233   : > { %5018 = vst.msk [vmem:[%s8381_s24 + $0x40] sm:$0xf] %vm5001_vm7, %v5739_v16  ;;  %v5740_v32 = vpack.c.bf16 %v4858_v34, %v4858_v34  ;;  %v6237_v55 = vadd.f32 %v4723_v56, %v2682_v53  ;;  %v6069_v29 = vpop.f32.mrb[22].mxu1  ;;  %v4726_v30 = vpop.f32.mrb[23].mxu0 }
 0x234   : > { %5021 = vst.msk [vmem:[%s8381_s24 + $0x4c] sm:$0xf] %vm5001_vm7, %v5742_v2  ;;  %v4831_v3 = vadd.f32 %v6236_v6, %v8372_v26  ;;  %v6238_v39 = vadd.f32 %v6205_v24, %v6069_v29  ;;  %v2685_v35 = vpop.f32.mrb[23].mxu1 }
 0x235   : > { %5019 = vst.msk [vmem:[%s8381_s24 + $0x44] sm:$0xf] %vm5001_vm7, %v5740_v32  ;;  %v4829_v23 = vadd.f32 %v6237_v55, %v8372_v26  ;;  %v6239_v13 = vadd.f32 %v4726_v30, %v2685_v35 }
 0x236   : > { %v4863_v45 = vmax.f32 %v4831_v3, 0.0  ;;  %v4832_v28 = vadd.f32 %v6238_v39, %v8372_v26 }
 0x237   : > { %v4861_v50 = vmax.f32 %v4829_v23, 0.0  ;;  %v4830_v57 = vadd.f32 %v6239_v13, %v8372_v26 }
 0x238   : > { %v5745_v4 = vpack.c.bf16 %v4863_v45, %v4863_v45  ;;  %v4864_v48 = vmax.f32 %v4832_v28, 0.0  ;;  %v6208_v47 = vpop.f32.mrb[24].mxu0 }
 0x239   : > { %v5743_v18 = vpack.c.bf16 %v4861_v50, %v4861_v50  ;;  %v4862_v42 = vmax.f32 %v4830_v57, 0.0  ;;  %v6072_v54 = vpop.f32.mrb[24].mxu1  ;;  %v4739_v58 = vpop.f32.mrb[25].mxu0 }
 0x23a   : > { %5024 = vst.msk [vmem:[%s8381_s24 + $0x58] sm:$0xf] %vm5001_vm7, %v5745_v4  ;;  %v5746_v61 = vpack.c.bf16 %v4864_v48, %v4864_v48  ;;  %v6240_v41 = vadd.f32 %v6208_v47, %v6072_v54  ;;  %v2698_v7 = vpop.f32.mrb[25].mxu1  ;;  %v6209_v59 = vpop.f32.mrb[26].mxu0 }
 0x23b   : > { %5022 = vst.msk [vmem:[%s8381_s24 + $0x50] sm:$0xf] %vm5001_vm7, %v5743_v18  ;;  %v5744_v38 = vpack.c.bf16 %v4862_v42, %v4862_v42  ;;  %v6241_v17 = vadd.f32 %v4739_v58, %v2698_v7  ;;  %v6073_v52 = vpop.f32.mrb[26].mxu1  ;;  %v4742_v9 = vpop.f32.mrb[27].mxu0 }
 0x23c   : > { %5025 = vst.msk [vmem:[%s8381_s24 + $0x5c] sm:$0xf] %vm5001_vm7, %v5746_v61  ;;  %v4835_v21 = vadd.f32 %v6240_v41, %v8372_v26  ;;  %v6242_v31 = vadd.f32 %v6209_v59, %v6073_v52  ;;  %v2701_v8 = vpop.f32.mrb[27].mxu1 }
 0x23d   : > { %5023 = vst.msk [vmem:[%s8381_s24 + $0x54] sm:$0xf] %vm5001_vm7, %v5744_v38  ;;  %v4833_v22 = vadd.f32 %v6241_v17, %v8372_v26  ;;  %v6243_v44 = vadd.f32 %v4742_v9, %v2701_v8 }
 0x23e   : > { %v4867_v33 = vmax.f32 %v4835_v21, 0.0  ;;  %v4836_v40 = vadd.f32 %v6242_v31, %v8372_v26 }
 0x23f   : > { %v4865_v63 = vmax.f32 %v4833_v22, 0.0  ;;  %v4834_v0 = vadd.f32 %v6243_v44, %v8372_v26 }
 0x240   : > { %v5749_v12 = vpack.c.bf16 %v4867_v33, %v4867_v33  ;;  %v4868_v15 = vmax.f32 %v4836_v40, 0.0  ;;  %v6212_v20 = vpop.f32.mrb[28].mxu0 }
 0x241   : > { %v5747_v25 = vpack.c.bf16 %v4865_v63, %v4865_v63  ;;  %v4866_v19 = vmax.f32 %v4834_v0, 0.0  ;;  %v6076_v36 = vpop.f32.mrb[28].mxu1  ;;  %v4755_v60 = vpop.f32.mrb[29].mxu0 }
 0x242   : > { %5028 = vst.msk [vmem:[%s8381_s24 + $0x68] sm:$0xf] %vm5001_vm7, %v5749_v12  ;;  %v5750_v11 = vpack.c.bf16 %v4868_v15, %v4868_v15  ;;  %v6244_v14 = vadd.f32 %v6212_v20, %v6076_v36  ;;  %v2714_v37 = vpop.f32.mrb[29].mxu1  ;;  %v6213_v62 = vpop.f32.mrb[30].mxu0 }
 0x243   : > { %5026 = vst.msk [vmem:[%s8381_s24 + $0x60] sm:$0xf] %vm5001_vm7, %v5747_v25  ;;  %v5748_v1 = vpack.c.bf16 %v4866_v19, %v4866_v19  ;;  %v6245_v46 = vadd.f32 %v4755_v60, %v2714_v37  ;;  %v6077_v43 = vpop.f32.mrb[30].mxu1  ;;  %v4758_v10 = vpop.f32.mrb[31].mxu0 }
 0x244   : > { %5029 = vst.msk [vmem:[%s8381_s24 + $0x6c] sm:$0xf] %vm5001_vm7, %v5750_v11  ;;  %v4839_v51 = vadd.f32 %v6244_v14, %v8372_v26  ;;  %v6246_v5 = vadd.f32 %v6213_v62, %v6077_v43  ;;  %v2717_v27 = vpop.f32.mrb[31].mxu1 }
 0x245   : > { %5027 = vst.msk [vmem:[%s8381_s24 + $0x64] sm:$0xf] %vm5001_vm7, %v5748_v1  ;;  %v4837_v16 = vadd.f32 %v6245_v46, %v8372_v26  ;;  %v6247_v34 = vadd.f32 %v4758_v10, %v2717_v27 }
 0x246   : > { %v4871_v49 = vmax.f32 %v4839_v51, 0.0  ;;  %v4840_v56 = vadd.f32 %v6246_v5, %v8372_v26 }
 0x247   : > { %v4869_v2 = vmax.f32 %v4837_v16, 0.0  ;;  %v4838_v6 = vadd.f32 %v6247_v34, %v8372_v26 }
 0x248   : > { %v5753_v53 = vpack.c.bf16 %v4871_v49, %v4871_v49  ;;  %v4872_v24 = vmax.f32 %v4840_v56, 0.0 }
 0x249   : > { %v5751_v32 = vpack.c.bf16 %v4869_v2, %v4869_v2  ;;  %v4870_v55 = vmax.f32 %v4838_v6, 0.0 }
 0x24a   : > { %5032 = vst.msk [vmem:[%s8381_s24 + $0x78] sm:$0xf] %vm5001_vm7, %v5753_v53  ;;  %v5754_v29 = vpack.c.bf16 %v4872_v24, %v4872_v24 }
 0x24b   : > { %5030 = vst.msk [vmem:[%s8381_s24 + $0x70] sm:$0xf] %vm5001_vm7, %v5751_v32  ;;  %v5752_v30 = vpack.c.bf16 %v4870_v55, %v4870_v55 }
 0x24c   : > { %5033 = vst.msk [vmem:[%s8381_s24 + $0x7c] sm:$0xf] %vm5001_vm7, %v5754_v29 }
 0x24d   : > { %5031 = vst.msk [vmem:[%s8381_s24 + $0x74] sm:$0xf] %vm5001_vm7, %v5752_v30 }
 0x24e PF: > { %s13_s14 = sadd.s32 1, %s6635_s14   ;;  %s8559_s12 = smov %s6631_s13 }
 0x24f   : > { %p10_p5 = scmp.ge.s32.totalorder %s13_s14, 4   ;;  %s8560_s13 = smov %s8562_s15 }
 0x251   :  { %12 = sbr.rel (!%p10_p5) target bundleno = 2 (0x2), region = 72 }

// kernel: run.17
= control target key start
LH: loop header
LB: loop body
LE: loop exit
PB: predicated region body
PF: predicated region fallthrough
CT: control target
= control target key end

     0   :  { %s2541_s12 = smov 0   ;;  %s2543_s13 = smov 0   ;;  %s3084_s0 = inlined_call_operand.vmem [shape: bf16[2,1,10,10,32], index: 0, kind: input, shape index: {}]   ;;  %s3085_s1 = inlined_call_operand.vmem [shape: bf16[3,3,32,32], index: 1, kind: input, shape index: {}]   ;;  %s3086_s2 = inlined_call_operand.vmem [shape: f32[1,32], index: 2, kind: input, shape index: {}]   ;;  %s3087_s3 = inlined_call_operand.vmem [shape: bf16[2,1,64,32], index: 3, kind: output, shape index: {}]  }
   0x1   :  { %s2545_s14 = smov 0  }
   0x2 LB: > { %s25_s15 = sadd.s32 1, %s2515_s13  ;;  %p1978_p0 = scmp.ge.s32.totalorder %s2519_s14, 1  ;;  %s2519_s14 = sphi %s2545_s14, %s13_s14   ;;  %s2515_s13 = sphi %s2543_s13, %s3093_s13   ;;  %s2511_s12 = sphi %s2541_s12, %s3092_s12  }
   0x3   : > { %p27_p1 = scmp.ge.s32.totalorder %s25_s15, 2  ;;  %p157_p2 = scmp.lt.s32.totalorder %s2519_s14, 3 }
   0x5   : > { %s3095_s15 = smov (%p27_p1, %s25_s15), 0  ;;  %p158_p3 = pnand %p1978_p0, %p157_p2 }
   0x6   : > { %v2467_v0 = vld [vmem:[%s3085_s1 + $0x10] sm:$0xff] (!%p158_p3)   ;;  %p189_p4 = scmp.lt.s32.totalorder (!%p158_p3), %s2511_s12, 1  ;;  %v2565_v1 = vld [vmem:[%s3085_s1 + $0x40] sm:$0xff] (!%p158_p3)   ;;  %v2469_v2 = vld [vmem:[%s3085_s1 + $0x18] sm:$0xff] (!%p158_p3)   ;;  %vm228_vm0 = vsmask.f32 (!%p158_p3), 3328 }
   0x7   : > { %161 = sbr.rel (%p158_p3) target bundleno = 339 (0x153), region = 32  ;;  %2266 = vmatprep.subr.bf16.mxu1 (!%p158_p3), %v2467_v0  ;;  %2314 = vmatprep.subr.bf16.mxu0 (!%p158_p3), %v2565_v1  ;;  %v2576_v3 = vld [vmem:[%s3085_s1 + $0x48] sm:$0xff] (!%p158_p3)   ;;  %v2583_v4 = vld [vmem:[%s3085_s1] sm:$0xff] (!%p158_p3)   ;;  %v2594_v5 = vld [vmem:[%s3085_s1 + $0x50] sm:$0xff] (!%p158_p3)   ;;  %vm229_vm1 = vsmask.f32 (!%p158_p3), 7440 }
   0x8   : > { %2267 = vmatpush3.bf16.msra.mxu1 (!%p158_p3), %v2467_v0  ;;  %2315 = vmatpush3.bf16.msra.mxu0 (!%p158_p3), %v2565_v1  ;;  %vm2628_vm2 = vmor (!%p158_p3), %vm228_vm0, %vm229_vm1  ;;  %vm372_vm3 = vcmask (!%p158_p3), 261120   ;;  %vm583_vm4 = vcmask (!%p158_p3), 1042432   ;;  %vm584_vm5 = vcmask (!%p158_p3), 1046532   ;;  %vm1873_vm7 = vcmask (!%p158_p3), 257024  }
   0x9   : > { %2268 = vmatprep.subr.bf16.mxu1 (!%p158_p3), %v2469_v2  ;;  %2316 = vmatprep.subr.bf16.mxu0 (!%p158_p3), %v2576_v3  ;;  %vm2735_vm6 = vmor (!%p158_p3), %vm583_vm4, %vm584_vm5 }
   0xc   : > { %2269 = vmatpush3.bf16.msra.mxu1 (!%p158_p3), %v2469_v2  ;;  %2317 = vmatpush3.bf16.msra.mxu0 (!%p158_p3), %v2576_v3 }
   0xd   : > { %2278 = vmatprep.subr.bf16.mxu1 (!%p158_p3), %v2583_v4  ;;  %2326 = vmatprep.subr.bf16.mxu0 (!%p158_p3), %v2594_v5 }
   0xe   : > { %s3097_s12 = smov (!%p189_p4, %s2511_s12), 1 }
   0xf   : > { %s2442_s24 = smul.u32 80, %s3097_s12  ;;  %s2203_s8 = sshll.u32 %s3097_s12, 5 }
  0x10   : > { %s3057_s11 = scalar_lea.vmem %s3087_s3, %s2203_s8 }
  0x11   : > { %s2589_s29 = scalar_lea.vmem %s3084_s0, %s2442_s24 }
  0x12   : > { %v2597_v6 = vld [vmem:[%s2589_s29] sm:$0xf]  ;;  %v2600_v7 = vld [vmem:[%s2589_s29 + $0x8] sm:$0xf]  ;;  %v2603_v8 = vld [vmem:[%s2589_s29 + $0x4] sm:$0x1] }
  0x13   : > { %v2607_v9 = vld [vmem:[%s2589_s29 + $0xc] sm:$0x1]  ;;  %v232_v10 = vshrl.u32 %v2597_v6, 16  ;;  %v235_v11 = vshll.u32 %v2597_v6, 16  ;;  %v241_v12 = vshll.u32 %v2603_v8, 16  ;;  %v246_v13 = vshrl.u32 %v2600_v7, 16 }
  0x14   : > { %v249_v14 = vshll.u32 %v2600_v7, 16  ;;  %v255_v15 = vshll.u32 %v2607_v9, 16  ;;  %v2050_v16 = vld [vmem:[%s2589_s29 + $0x8] sm:$0xf]  ;;  %v2619_v21 = vld [vmem:[%s2589_s29 + $0xc] sm:$0x1] }
  0x15   : > { %v234_v17 = vrot.slane %v232_v10, 4  ;;  %v237_v18 = vrot.slane %v235_v11, 5  ;;  %v243_v19 = vrot.slane %v241_v12, 5  ;;  %v248_v20 = vrot.slane %v246_v13, 4  ;;  %v2052_v24 = vld [vmem:[%s2589_s29 + $0x10] sm:$0xf] }
  0x16   : > { %v251_v22 = vrot.slane %v249_v14, 5  ;;  %v257_v23 = vrot.slane %v255_v15, 5  ;;  %v2623_v25 = vld [vmem:[%s2589_s29 + $0x14] sm:$0x1]  ;;  %v880_v27 = vshrl.u32 %v2050_v16, 16  ;;  %v883_v28 = vshll.u32 %v2050_v16, 16 }
  0x17   : > { %v238_v26 = vor.u32 %v237_v18, %v234_v17  ;;  %v889_v29 = vshll.u32 %v2619_v21, 16  ;;  %v894_v32 = vshrl.u32 %v2052_v24, 16  ;;  %v897_v33 = vshll.u32 %v2052_v24, 16  ;;  %v2634_v35 = vld [vmem:[%s2589_s29 + $0x10] sm:$0xf] }
  0x18   : > { %v252_v31 = vor.u32 %v251_v22, %v248_v20  ;;  %v903_v34 = vshll.u32 %v2623_v25, 16  ;;  %v882_v37 = vrot.slane %v880_v27, 4  ;;  %v885_v38 = vrot.slane %v883_v28, 5  ;;  %v2637_v39 = vld [vmem:[%s2589_s29 + $0x18] sm:$0xf] }
  0x19   : > { %v239_v36 = vrot.slane %v238_v26, 4  ;;  %v896_v41 = vrot.slane %v894_v32, 4  ;;  %v899_v42 = vrot.slane %v897_v33, 5  ;;  %v2640_v43 = vld [vmem:[%s2589_s29 + $0x14] sm:$0x1]  ;;  %v891_v46 = vrot.slane %v889_v29, 5 }
  0x1a   : > { %v253_v40 = vrot.slane %v252_v31, 4  ;;  %v886_v45 = vor.u32 %v885_v38, %v882_v37  ;;  %v905_v47 = vrot.slane %v903_v34, 5  ;;  %v2647_v50 = vld [vmem:[%s2589_s29 + $0x1c] sm:$0x1]  ;;  %v260_v51 = vshrl.u32 %v2634_v35, 16 }
  0x1b   : > { %v244_v44 = vsel %vm2628_vm2, %v239_v36, %v243_v19  ;;  %v900_v49 = vor.u32 %v899_v42, %v896_v41  ;;  %v263_v52 = vshll.u32 %v2634_v35, 16  ;;  %v2054_v53 = vld [vmem:[%s2589_s29 + $0x18] sm:$0xf]  ;;  %v269_v56 = vshll.u32 %v2640_v43, 16  ;;  %v2661_v10 = vld [vmem:[%s2589_s29 + $0x1c] sm:$0x1] }
  0x1c   : > { %v258_v48 = vsel %vm2628_vm2, %v253_v40, %v257_v23  ;;  %v887_v55 = vrot.slane %v886_v45, 4  ;;  %v274_v57 = vshrl.u32 %v2637_v39, 16  ;;  %v262_v59 = vrot.slane %v260_v51, 4  ;;  %v2056_v15 = vld [vmem:[%s2589_s29 + $0x20] sm:$0xf] }
  0x1d   : > { %v1986_v54 = vcombine.low %v244_v44, %v258_v48  ;;  %v901_v58 = vrot.slane %v900_v49, 4  ;;  %v265_v60 = vrot.slane %v263_v52, 5  ;;  %v277_v61 = vshll.u32 %v2637_v39, 16  ;;  %v2667_v16 = vld [vmem:[%s2589_s29 + $0x24] sm:$0x1]  ;;  %v2474_v52 = vld [vmem:[%s3085_s1 + $0x8] sm:$0xff]  }
  0x1e   : > { %v892_v62 = vsel %vm2628_vm2, %v887_v55, %v891_v46  ;;  %v1131_v63 = vrot.slane %v2619_v21, 5  ;;  %v276_v0 = vrot.slane %v274_v57, 4  ;;  %v283_v2 = vshll.u32 %v2647_v50, 16  ;;  %v2671_v22 = vld [vmem:[%s2589_s29 + $0x20] sm:$0xf] }
  0x1f   : > { %2270 = vmatprep.mubr.msk.bf16.mxu1 %vm372_vm3, %v1986_v54  ;;  %v906_v11 = vsel %vm2628_vm2, %v901_v58, %v905_v47  ;;  %v266_v12 = vor.u32 %v265_v60, %v262_v59  ;;  %v271_v13 = vrot.slane %v269_v56, 5  ;;  %v279_v14 = vrot.slane %v277_v61, 5  ;;  %v2679_v38 = vld [vmem:[%s2589_s29 + $0x24] sm:$0x1]  ;;  %v2683_v45 = vld [vmem:[%s2589_s29 + $0x28] sm:$0xf] }
  0x20   : > { %v2070_v17 = vcombine.low %v892_v62, %v906_v11  ;;  %v1135_v18 = vrot.slane %v2623_v25, 5  ;;  %v285_v19 = vrot.slane %v283_v2, 5  ;;  %v908_v20 = vshrl.u32 %v2054_v53, 16  ;;  %v2689_v49 = vld [vmem:[%s2589_s29 + $0x2c] sm:$0x1] }
  0x21   : > { %v267_v23 = vrot.slane %v266_v12, 4  ;;  %v280_v24 = vor.u32 %v279_v14, %v276_v0  ;;  %v911_v26 = vshll.u32 %v2054_v53, 16  ;;  %v917_v27 = vshll.u32 %v2661_v10, 16  ;;  %v2698_v57 = vld [vmem:[%s2589_s29 + $0x30] sm:$0xf] }
  0x22   : > { %2318 = vmatprep.mubr.msk.bf16.mxu0 %vm372_vm3, %v2070_v17  ;;  %v910_v28 = vrot.slane %v908_v20, 4  ;;  %v922_v29 = vshrl.u32 %v2056_v15, 16  ;;  %v925_v31 = vshll.u32 %v2056_v15, 16  ;;  %v931_v32 = vshll.u32 %v2667_v16, 16  ;;  %v2701_v58 = vld [vmem:[%s2589_s29 + $0x34] sm:$0x1] }
  0x23   : > { %v272_v33 = vsel %vm2628_vm2, %v267_v23, %v271_v13  ;;  %v281_v34 = vrot.slane %v280_v24, 4  ;;  %v913_v36 = vrot.slane %v911_v26, 5  ;;  %v919_v37 = vrot.slane %v917_v27, 5  ;;  %v2706_v0 = vld [vmem:[%s2589_s29 + $0x38] sm:$0xf]  ;;  %v2723_v24 = vld [vmem:[%s3085_s1 + $0x20] sm:$0xff]  }
  0x24   : > { %v924_v40 = vrot.slane %v922_v29, 4  ;;  %v927_v41 = vrot.slane %v925_v31, 5  ;;  %v933_v42 = vrot.slane %v931_v32, 5  ;;  %v1139_v44 = vrot.slane %v2661_v10, 5  ;;  %v2473_v15 = vld [vmem:[%s3085_s1 + $0x58] sm:$0xff]  }
  0x25   : > { %v286_v46 = vsel %vm2628_vm2, %v281_v34, %v285_v19  ;;  %v914_v47 = vor.u32 %v913_v36, %v910_v28  ;;  %v1143_v48 = vrot.slane %v2667_v16, 5  ;;  %v288_v51 = vshrl.u32 %v2671_v22, 16  ;;  %v2717_v20 = vld [vmem:[%s2589_s29 + $0x3c] sm:$0x1]  ;;  %v2080_v29 = vld [vmem:[%s2589_s29 + $0x8] sm:$0xe] }
  0x26   : > { %v1987_v53 = vcombine.low %v272_v33, %v286_v46  ;;  %v928_v54 = vor.u32 %v927_v41, %v924_v40  ;;  %v291_v55 = vshll.u32 %v2671_v22, 16  ;;  %v297_v56 = vshll.u32 %v2679_v38, 16  ;;  %v2081_v36 = vld [vmem:[%s2589_s29 + $0x10] sm:$0xe]  ;;  %v2087_v16 = vld [vmem:[%s2589_s29 + $0x40] sm:$0xe] }
  0x27   : > { %v915_v59 = vrot.slane %v914_v47, 4  ;;  %v290_v60 = vrot.slane %v288_v51, 4  ;;  %v302_v61 = vshrl.u32 %v2683_v45, 16  ;;  %v305_v62 = vshll.u32 %v2683_v45, 16  ;;  %v2082_v47 = vld [vmem:[%s2589_s29 + $0x18] sm:$0xe] }
  0x28   : > { %2271 = vmatmul.mubr.msk.bf16.vlgmr.msra.gmra.mrb[0].mxu1 %vm372_vm3, %v1987_v53  ;;  %v929_v2 = vrot.slane %v928_v54, 4  ;;  %v293_v11 = vrot.slane %v291_v55, 5  ;;  %v299_v12 = vrot.slane %v297_v56, 5  ;;  %v311_v13 = vshll.u32 %v2689_v49, 16  ;;  %v2475_v56 = vld [vmem:[%s3085_s1 + $0x60] sm:$0xff]  }
  0x29   : > { %2279 = vmatpush3.bf16.msra.mxu1 %v2583_v4  ;;  %v920_v14 = vsel %vm2628_vm2, %v915_v59, %v919_v37  ;;  %v304_v17 = vrot.slane %v302_v61, 4  ;;  %v307_v19 = vrot.slane %v305_v62, 5  ;;  %v316_v23 = vshrl.u32 %v2698_v57, 16  ;;  %v2083_v59 = vld [vmem:[%s2589_s29 + $0x20] sm:$0xe] }
  0x2a   : > { %v934_v4 = vsel %vm2628_vm2, %v929_v2, %v933_v42  ;;  %v294_v26 = vor.u32 %v293_v11, %v290_v60  ;;  %v313_v27 = vrot.slane %v311_v13, 5  ;;  %2280 = vmatprep.subr.bf16.mxu1 %v2474_v52  ;;  %v319_v28 = vshll.u32 %v2698_v57, 16  ;;  %v2192_v46 = vld [vmem:[%s3086_s2] ss:$0 sm:$0xff] }
  0x2b   : > { %v2071_v31 = vcombine.low %v920_v14, %v934_v4  ;;  %v308_v32 = vor.u32 %v307_v19, %v304_v17  ;;  %v318_v33 = vrot.slane %v316_v23, 4  ;;  %v325_v34 = vshll.u32 %v2701_v58, 16  ;;  %v2758_v14 = vld [vmem:[%s2589_s29 + $0x2c] sm:$0x1] }
  0x2c   : > { %v295_v37 = vrot.slane %v294_v26, 4  ;;  %v321_v40 = vrot.slane %v319_v28, 5  ;;  %v330_v41 = vshrl.u32 %v2706_v0, 16  ;;  %v333_v42 = vshll.u32 %v2706_v0, 16  ;;  %v2761_v26 = vld [vmem:[%s2589_s29 + $0x34] sm:$0x1] }
  0x2d   : > { %2319 = vmatmul.mubr.msk.bf16.vlgmr.msra.gmra.mrb[0].mxu0 %vm372_vm3, %v2071_v31  ;;  %v309_v51 = vrot.slane %v308_v32, 4  ;;  %v327_v53 = vrot.slane %v325_v34, 5  ;;  %v339_v54 = vshll.u32 %v2717_v20, 16  ;;  %2281 = vmatpush3.bf16.msra.mxu1 %v2474_v52  ;;  %v2088_v55 = vrot.slane %v2080_v29, 9  ;;  %v2084_v52 = vld [vmem:[%s2589_s29 + $0x28] sm:$0xe] }
  0x2e   : > { %2327 = vmatpush3.bf16.msra.mxu0 %v2594_v5  ;;  %v300_v60 = vsel %vm2628_vm2, %v295_v37, %v299_v12  ;;  %v322_v61 = vor.u32 %v321_v40, %v318_v33  ;;  %v332_v62 = vrot.slane %v330_v41, 4  ;;  %v335_v2 = vrot.slane %v333_v42, 5  ;;  %2290 = vmatprep.subr.bf16.mxu1 %v2723_v24  ;;  %v2085_v28 = vld [vmem:[%s2589_s29 + $0x30] sm:$0xe]  ;;  %v2769_v31 = vld [vmem:[%s2589_s29 + $0x3c] sm:$0x1] }
  0x2f   : > { %2328 = vmatprep.subr.bf16.mxu0 %v2473_v15  ;;  %v314_v11 = vsel %vm2628_vm2, %v309_v51, %v313_v27  ;;  %v341_v13 = vrot.slane %v339_v54, 5  ;;  %v1132_v5 = vsel %vm2735_vm6, %v2088_v55, %v1131_v63  ;;  %v2089_v12 = vrot.slane %v2081_v36, 9  ;;  %v2086_v63 = vld [vmem:[%s2589_s29 + $0x38] sm:$0xe] }
  0x30   : > { %v1988_v17 = vcombine.low %v300_v60, %v314_v11  ;;  %v323_v19 = vrot.slane %v322_v61, 4  ;;  %v336_v23 = vor.u32 %v335_v2, %v332_v62  ;;  %v2090_v4 = vrot.slane %v2082_v47, 9  ;;  %v560_v60 = vld [vmem:[%s2589_s29 + $0x8] sm:$0xe] }
  0x31   : > { %v1136_v27 = vsel %vm2735_vm6, %v2089_v12, %v1135_v18  ;;  %v2091_v29 = vrot.slane %v2083_v59, 9  ;;  %v2092_v21 = vrot.slane %v2084_v52, 9  ;;  %v2093_v36 = vrot.slane %v2085_v28, 9  ;;  %v559_v59 = vld [vmem:[%s2589_s29] sm:$0xe] }
  0x32   : > { %2329 = vmatpush3.bf16.msra.mxu0 %v2473_v15  ;;  %2274 = vmatprep.mubr.msk.bf16.mxu1 %vm372_vm3, %v1988_v17  ;;  %v328_v32 = vsel %vm2628_vm2, %v323_v19, %v327_v53  ;;  %v337_v33 = vrot.slane %v336_v23, 4  ;;  %v2100_v34 = vcombine.low %v1132_v5, %v1136_v27  ;;  %v1140_v25 = vsel %vm2735_vm6, %v2090_v4, %v1139_v44  ;;  %v2791_v44 = vld [vmem:[%s2589_s29 + $0x44] sm:$0x1]  ;;  %v561_v12 = vld [vmem:[%s2589_s29 + $0x10] sm:$0xe] }
  0x33   : > { %2338 = vmatprep.subr.bf16.mxu0 %v2475_v56  ;;  %v1144_v18 = vsel %vm2735_vm6, %v2091_v29, %v1143_v48  ;;  %v1147_v15 = vrot.slane %v2758_v14, 5  ;;  %v1151_v37 = vrot.slane %v2761_v26, 5  ;;  %v1996_v10 = vcombine.low %v2597_v6, %v2600_v7  ;;  %v2479_v6 = vld [vmem:[%s3085_s1 + $0x68] sm:$0xff]   ;;  %v562_v17 = vld [vmem:[%s2589_s29 + $0x18] sm:$0xe] }
  0x34   : > { %v342_v40 = vsel %vm2628_vm2, %v337_v33, %v341_v13  ;;  %2330 = vmatprep.mubr.msk.bf16.mxu0 %vm372_vm3, %v2100_v34  ;;  %v2101_v48 = vcombine.low %v1140_v25, %v1144_v18  ;;  %v2094_v53 = vrot.slane %v2086_v63, 9  ;;  %v1155_v54 = vrot.slane %v2769_v31, 5  ;;  %v2483_v28 = vld [vmem:[%s2589_s29 + $0x10] ss:$8 sps:$4 sm:$0xff]   ;;  %v563_v29 = vld [vmem:[%s2589_s29 + $0x20] sm:$0xe] }
  0x35   : > { %v1989_v41 = vcombine.low %v328_v32, %v342_v40  ;;  %v1148_v42 = vsel %vm2735_vm6, %v2092_v21, %v1147_v15  ;;  %v1152_v47 = vsel %vm2735_vm6, %v2093_v36, %v1151_v37  ;;  %v2095_v7 = vrot.slane %v2087_v16, 9  ;;  %v564_v33 = vld [vmem:[%s2589_s29 + $0x28] sm:$0xe]  ;;  %v2853_v34 = vld [vmem:[%s2589_s29 + $0x30] sm:$0xe] }
  0x36   : > { %v2102_v51 = vcombine.low %v1148_v42, %v1152_v47  ;;  %v1159_v55 = vrot.slane %v2791_v44, 5  ;;  %v588_v61 = vrot.slane %v2603_v8, 5  ;;  %v592_v62 = vrot.slane %v2607_v9, 5  ;;  %v2820_v8 = vld [vmem:[%s3085_s1 + $0x70] sm:$0xff]   ;;  %v2134_v37 = vld [vmem:[%s2589_s29 + $0x18] sm:$0xf] }
  0x37   : > { %2275 = vmatmul.mubr.msk.bf16.gmra.mrb[4].mxu1 %vm372_vm3, %v1989_v41  ;;  %v596_v2 = vrot.slane %v2640_v43, 5  ;;  %v600_v52 = vrot.slane %v2647_v50, 5  ;;  %v1156_v11 = vsel %vm2735_vm6, %v2094_v53, %v1155_v54  ;;  %v2006_v9 = vrot.slane %v559_v59, 9  ;;  %v2132_v25 = vld [vmem:[%s2589_s29 + $0x10] sm:$0xf]  ;;  %v2488_v50 = vld [vmem:[%s3085_s1 + $0x78] sm:$0xff]  }
  0x38   : > { %2282 = vmatprep.mubr.msk.bf16.mxu1 %vm372_vm3, %v1996_v10  ;;  %v1160_v13 = vsel %vm2735_vm6, %v2095_v7, %v1159_v55  ;;  %v2007_v43 = vrot.slane %v560_v60, 9  ;;  %v1997_v5 = vcombine.low %v2634_v35, %v2637_v39  ;;  %v1998_v19 = vcombine.low %v2671_v22, %v2683_v45  ;;  %v2860_v36 = vld [vmem:[%s2589_s29 + $0x14] sm:$0x1]  ;;  %v2869_v16 = vld [vmem:[%s2589_s29 + $0x1c] sm:$0x1] }
  0x39   : > { %2331 = vmatmul.mubr.msk.bf16.vlgmr.msra.gmra.mrb[0].mxu0 %vm372_vm3, %v2101_v48  ;;  %v973_v23 = vshll.u32 %v2769_v31, 16  ;;  %v2103_v4 = vcombine.low %v1156_v11, %v1160_v13  ;;  %v604_v27 = vrot.slane %v2679_v38, 5  ;;  %v589_v35 = vsel %vm2735_vm6, %v2006_v9, %v588_v61  ;;  %v2845_v38 = vld [vmem:[%s3085_s1 + $0x30] sm:$0xff]   ;;  %v2136_v59 = vld [vmem:[%s2589_s29 + $0x20] sm:$0xf] }
  0x3a   : > { %2339 = vmatpush3.bf16.msra.mxu0 %v2475_v56  ;;  %2334 = vmatprep.mubr.msk.bf16.mxu0 %vm372_vm3, %v2102_v51  ;;  %v2481_v56 = vld [vmem:[%s3085_s1 + $0x28] sm:$0xff]   ;;  %v2008_v39 = vrot.slane %v561_v12, 9  ;;  %v608_v21 = vrot.slane %v2689_v49, 5  ;;  %v593_v22 = vsel %vm2735_vm6, %v2007_v43, %v592_v62  ;;  %v2009_v45 = vrot.slane %v562_v17, 9  ;;  %v2487_v53 = vld [vmem:[%s2589_s29 + $0x30] ss:$8 sps:$4 sm:$0xff]  }
  0x3b   : > { %2340 = vmatprep.subr.bf16.mxu0 %v2479_v6  ;;  %v612_v63 = vrot.slane %v2701_v58, 5  ;;  %v616_v32 = vrot.slane %v2717_v20, 5  ;;  %v1999_v18 = vcombine.low %v2698_v57, %v2706_v0  ;;  %v2010_v15 = vrot.slane %v563_v29, 9  ;;  %v2485_v57 = vld [vmem:[%s2589_s29 + $0x20] ss:$8 sps:$4 sm:$0xff]  }
  0x3c   : > { %v1423_v40 = vshrl.u32 %v2132_v25, 16  ;;  %v2866_v10 = vsel %vm2735_vm6, %v2008_v39, %v596_v2  ;;  %v1426_v41 = vshll.u32 %v2132_v25, 16  ;;  %v1432_v48 = vshll.u32 %v2860_v36, 16  ;;  %v566_v62 = vld [vmem:[%s2589_s29 + $0x38] sm:$0xe] }
  0x3d   : > { %v2011_v0 = vrot.slane %v564_v33, 9  ;;  %v1437_v47 = vshrl.u32 %v2134_v37, 16  ;;  %v1440_v51 = vshll.u32 %v2134_v37, 16  ;;  %v2012_v54 = vrot.slane %v2853_v34, 9  ;;  %v2888_v13 = vld [vmem:[%s2589_s29 + $0x24] sm:$0x1] }
  0x3e   : > { %2341 = vmatpush3.bf16.msra.mxu0 %v2479_v6  ;;  %v1425_v42 = vrot.slane %v1423_v40, 4  ;;  %v1428_v6 = vrot.slane %v1426_v41, 5  ;;  %v1434_v7 = vrot.slane %v1432_v48, 5  ;;  %v1446_v55 = vshll.u32 %v2869_v16, 16  ;;  %v2138_v9 = vld [vmem:[%s2589_s29 + $0x28] sm:$0xf] }
  0x3f   : > { %2283 = vmatmul.mubr.msk.bf16.vlgmr.msra.gmra.mrb[0].mxu1 %vm372_vm3, %v1997_v5  ;;  %2350 = vmatprep.subr.bf16.mxu0 %v2820_v8  ;;  %v601_v60 = vsel %vm2735_vm6, %v2009_v45, %v600_v52  ;;  %v2884_v61 = vsel %vm2735_vm6, %v2010_v15, %v604_v27  ;;  %v1439_v2 = vrot.slane %v1437_v47, 4  ;;  %v1442_v11 = vrot.slane %v1440_v51, 5  ;;  %v2489_v49 = vld [vmem:[%s2589_s29 + $0x40] ss:$8 sps:$4 sm:$0xff]   ;;  %v2140_v48 = vld [vmem:[%s2589_s29 + $0x30] sm:$0xf] }
  0x40   : > { %2291 = vmatpush3.bf16.msra.mxu1 %v2723_v24  ;;  %2286 = vmatprep.mubr.msk.bf16.mxu1 %vm372_vm3, %v1998_v19  ;;  %v2018_v24 = vcombine.low %v589_v35, %v593_v22  ;;  %v1429_v43 = vor.u32 %v1428_v6, %v1425_v42  ;;  %v1448_v5 = vrot.slane %v1446_v55, 5  ;;  %v1451_v12 = vshrl.u32 %v2136_v59, 16  ;;  %v2142_v51 = vld [vmem:[%s2589_s29 + $0x38] sm:$0xf] }
  0x41   : > { %2335 = vmatmul.mubr.msk.bf16.gmra.mrb[4].mxu0 %vm372_vm3, %v2103_v4  ;;  %2292 = vmatprep.subr.bf16.mxu1 %v2481_v56  ;;  %v1454_v17 = vshll.u32 %v2136_v59, 16  ;;  %v1443_v52 = vor.u32 %v1442_v11, %v1439_v2  ;;  %v1460_v19 = vshll.u32 %v2888_v13, 16  ;;  %v1465_v4 = vshrl.u32 %v2138_v9, 16 }
  0x42   : > { %2342 = vmatprep.mubr.msk.bf16.mxu0 %vm372_vm3, %v2483_v28  ;;  %v1468_v28 = vshll.u32 %v2138_v9, 16  ;;  %v1430_v27 = vrot.slane %v1429_v43, 4  ;;  %v1453_v35 = vrot.slane %v1451_v12, 4  ;;  %v609_v22 = vsel %vm2735_vm6, %v2011_v0, %v608_v21  ;;  %v2490_v21 = vld [vmem:[%s3085_s1 + $0x38] sm:$0xff]   ;;  %v2144_v43 = vld [vmem:[%s2589_s29 + $0x40] sm:$0xf] }
  0x43   : > { %v1456_v39 = vrot.slane %v1454_v17, 5  ;;  %v1444_v45 = vrot.slane %v1443_v52, 4  ;;  %v1467_v33 = vrot.slane %v1465_v4, 4  ;;  %v2019_v25 = vcombine.low %v2866_v10, %v601_v60  ;;  %v2956_v17 = vld [vmem:[%s2589_s29 + $0x44] sm:$0x1] }
  0x44   : > { %2293 = vmatpush3.bf16.msra.mxu1 %v2481_v56  ;;  %v2892_v56 = vld [vmem:[%s2589_s29 + $0x2c] sm:$0x1]  ;;  %v1470_v34 = vrot.slane %v1468_v28, 5  ;;  %v2909_v37 = vrot.slane %v1460_v19, 5  ;;  %v1435_v40 = vsel %vm2628_vm2, %v1430_v27, %v1434_v7  ;;  %v2020_v0 = vcombine.low %v2884_v61, %v609_v22 }
  0x45   : > { %2302 = vmatprep.subr.bf16.mxu1 %v2845_v38  ;;  %v1474_v29 = vshll.u32 %v2892_v56, 16  ;;  %v1457_v15 = vor.u32 %v1456_v39, %v1453_v35  ;;  %v2933_v42 = vsel %vm2735_vm6, %v2012_v54, %v612_v63  ;;  %v1479_v6 = vshrl.u32 %v2140_v48, 16 }
  0x46   : > { %v1471_v10 = vor.u32 %v1470_v34, %v1467_v33  ;;  %v1482_v55 = vshll.u32 %v2140_v48, 16  ;;  %v1493_v60 = vshrl.u32 %v2142_v51, 16  ;;  %v1496_v58 = vshll.u32 %v2142_v51, 16 }
  0x47   : > { %2287 = vmatmul.mubr.msk.bf16.gmra.mrb[4].mxu1 %vm372_vm3, %v1999_v18  ;;  %v2013_v18 = vrot.slane %v566_v62, 9  ;;  %v1476_v41 = vrot.slane %v1474_v29, 5  ;;  %v1458_v47 = vrot.slane %v1457_v15, 4  ;;  %v1481_v61 = vrot.slane %v1479_v6, 4  ;;  %v2494_v6 = vld [vmem:[%s3085_s1 + $0x88] sm:$0xff]  }
  0x48   : > { %2294 = vmatprep.mubr.msk.bf16.mxu1 %vm372_vm3, %v2018_v24  ;;  %v2922_v24 = vld [vmem:[%s3085_s1 + $0x80] sm:$0xff]   ;;  %v1472_v7 = vrot.slane %v1471_v10, 4  ;;  %v1484_v2 = vrot.slane %v1482_v55, 5  ;;  %v1495_v9 = vrot.slane %v1493_v60, 4  ;;  %v1498_v12 = vrot.slane %v1496_v58, 5 }
  0x49   : > { %2343 = vmatmul.mubr.msk.bf16.vlgmr.msra.gmra.mrb[0].mxu0 %vm372_vm3, %v2485_v57  ;;  %v2926_v57 = vld [vmem:[%s2589_s29 + $0x34] sm:$0x1]  ;;  %v617_v54 = vsel %vm2735_vm6, %v2013_v18, %v616_v32  ;;  %v1507_v19 = vshrl.u32 %v2144_v43, 16  ;;  %v1510_v4 = vshll.u32 %v2144_v43, 16  ;;  %v1516_v28 = vshll.u32 %v2956_v17, 16 }
  0x4a   : > { %2351 = vmatpush3.bf16.msra.mxu0 %v2820_v8  ;;  %2346 = vmatprep.mubr.msk.bf16.mxu0 %vm372_vm3, %v2487_v53  ;;  %v1449_v8 = vsel %vm2628_vm2, %v1444_v45, %v1448_v5  ;;  %v2937_v53 = vld [vmem:[%s2589_s29 + $0x3c] sm:$0x1]  ;;  %v1488_v59 = vshll.u32 %v2926_v57, 16  ;;  %v1463_v5 = vsel %vm2628_vm2, %v1458_v47, %v2909_v37  ;;  %v1477_v20 = vsel %vm2628_vm2, %v1472_v7, %v1476_v41  ;;  %v2163_v47 = vld [vmem:[%s2589_s29 + $0x18] sm:$0xe] }
  0x4b   : > { %2352 = vmatprep.subr.bf16.mxu0 %v2488_v50  ;;  %v2152_v62 = vcombine.low %v1435_v40, %v1449_v8  ;;  %v1502_v63 = vshll.u32 %v2937_v53, 16  ;;  %v1485_v52 = vor.u32 %v1484_v2, %v1481_v61  ;;  %v1499_v27 = vor.u32 %v1498_v12, %v1495_v9  ;;  %v2164_v60 = vld [vmem:[%s2589_s29 + $0x20] sm:$0xe]  ;;  %v2165_v61 = vld [vmem:[%s2589_s29 + $0x28] sm:$0xe] }
  0x4c   : > { %v1490_v11 = vrot.slane %v1488_v59, 5  ;;  %v2021_v22 = vcombine.low %v2933_v42, %v617_v54  ;;  %v1509_v33 = vrot.slane %v1507_v19, 4  ;;  %v1512_v34 = vrot.slane %v1510_v4, 5  ;;  %v2162_v42 = vld [vmem:[%s2589_s29 + $0x10] sm:$0xe] }
  0x4d   : > { %v1504_v32 = vrot.slane %v1502_v63, 5  ;;  %v1486_v45 = vrot.slane %v1485_v52, 4  ;;  %v1500_v18 = vrot.slane %v1499_v27, 4  ;;  %v2153_v40 = vcombine.low %v1463_v5, %v1477_v20  ;;  %v2493_v54 = vld [vmem:[%s2589_s29 + $0x18] ss:$8 sps:$4 sm:$0xff]  }
  0x4e   : > { %2353 = vmatpush3.bf16.msra.mxu0 %v2488_v50  ;;  %v2146_v50 = vld [vmem:[%s2589_s29 + $0x48] sm:$0xf]  ;;  %v1513_v10 = vor.u32 %v1512_v34, %v1509_v33  ;;  %v1518_v41 = vrot.slane %v1516_v28, 5  ;;  %v2170_v55 = vrot.slane %v2162_v42, 9  ;;  %v2171_v59 = vrot.slane %v2163_v47, 9 }
  0x4f   : > { %2295 = vmatmul.mubr.msk.bf16.vlgmr.msra.gmra.mrb[0].mxu1 %vm372_vm3, %v2019_v25  ;;  %2362 = vmatprep.subr.bf16.mxu0 %v2922_v24  ;;  %v1521_v35 = vshrl.u32 %v2146_v50, 16  ;;  %v1524_v39 = vshll.u32 %v2146_v50, 16  ;;  %v2492_v25 = vld [vmem:[%s2589_s29 + $0x8] ss:$8 sps:$4 sm:$0xff]   ;;  %v1491_v8 = vsel %vm2628_vm2, %v1486_v45, %v1490_v11  ;;  %v1505_v48 = vsel %vm2628_vm2, %v1500_v18, %v1504_v32  ;;  %v2167_v50 = vld [vmem:[%s2589_s29 + $0x38] sm:$0xe] }
  0x50   : > { %2303 = vmatpush3.bf16.msra.mxu1 %v2845_v38  ;;  %2298 = vmatprep.mubr.msk.bf16.mxu1 %vm372_vm3, %v2020_v0  ;;  %v2961_v38 = vld [vmem:[%s2589_s29 + $0x4c] sm:$0x1]  ;;  %v2154_v51 = vcombine.low %v1491_v8, %v1505_v48  ;;  %v1514_v7 = vrot.slane %v1513_v10, 4  ;;  %v945_v58 = vshll.u32 %v2758_v14, 16  ;;  %v959_v63 = vshll.u32 %v2761_v26, 16 }
  0x51   : > { %2347 = vmatmul.mubr.msk.bf16.gmra.mrb[4].mxu0 %vm372_vm3, %v2489_v49  ;;  %2304 = vmatprep.subr.bf16.mxu1 %v2490_v21  ;;  %v1530_v29 = vshll.u32 %v2961_v38, 16  ;;  %v1523_v15 = vrot.slane %v1521_v35, 4  ;;  %v1526_v37 = vrot.slane %v1524_v39, 5  ;;  %v1674_v49 = vrot.slane %v2860_v36, 5  ;;  %v2060_v14 = vld [vmem:[%s2589_s29 + $0x30] sm:$0xf] }
  0x52   : > { %2354 = vmatprep.mubr.msk.bf16.mxu0 %vm372_vm3, %v2152_v62  ;;  %v1678_v36 = vrot.slane %v2869_v16, 5  ;;  %v1682_v16 = vrot.slane %v2888_v13, 5  ;;  %v1519_v2 = vsel %vm2628_vm2, %v1514_v7, %v1518_v41  ;;  %v2172_v43 = vrot.slane %v2164_v60, 9  ;;  %v2058_v13 = vld [vmem:[%s2589_s29 + $0x28] sm:$0xf] }
  0x53   : > { %v1532_v0 = vrot.slane %v1530_v29, 5  ;;  %v1675_v11 = vsel %vm2735_vm6, %v2170_v55, %v1674_v49  ;;  %v2495_v5 = vld [vmem:[%s2589_s29 + $0x28] ss:$8 sps:$4 sm:$0xff]   ;;  %v1686_v20 = vrot.slane %v2892_v56, 5  ;;  %v936_v12 = vshrl.u32 %v2058_v13, 16 }
  0x54   : > { %2305 = vmatpush3.bf16.msra.mxu1 %v2490_v21  ;;  %v1527_v21 = vor.u32 %v1526_v37, %v1523_v15  ;;  %v1679_v9 = vsel %vm2735_vm6, %v2171_v59, %v1678_v36  ;;  %v2166_v32 = vld [vmem:[%s2589_s29 + $0x30] sm:$0xe]  ;;  %v2173_v19 = vrot.slane %v2165_v61, 9  ;;  %v939_v4 = vshll.u32 %v2058_v13, 16  ;;  %v2062_v27 = vld [vmem:[%s2589_s29 + $0x38] sm:$0xf] }
  0x55   : > { %2374 = vmatprep.subr.bf16.mxu1 %v2565_v1  ;;  %v2182_v52 = vcombine.low %v1675_v11, %v1679_v9  ;;  %v950_v28 = vshrl.u32 %v2060_v14, 16  ;;  %v953_v39 = vshll.u32 %v2060_v14, 16  ;;  %v2174_v29 = vrot.slane %v2166_v32, 9  ;;  %v2496_v7 = vld [vmem:[%s2589_s29 + $0x38] ss:$8 sps:$4 sm:$0xff]  }
  0x56   : > { %v1528_v62 = vrot.slane %v1527_v21, 4  ;;  %v941_v45 = vrot.slane %v939_v4, 5  ;;  %v1690_v34 = vrot.slane %v2926_v57, 5  ;;  %v1694_v18 = vrot.slane %v2937_v53, 5  ;;  %v2168_v59 = vld [vmem:[%s2589_s29 + $0x40] sm:$0xe] }
  0x57   : > { %2299 = vmatmul.mubr.msk.bf16.gmra.mrb[4].mxu1 %vm372_vm3, %v2021_v22  ;;  %v2064_v22 = vld [vmem:[%s2589_s29 + $0x40] sm:$0xf]  ;;  %v952_v33 = vrot.slane %v950_v28, 4  ;;  %v955_v56 = vrot.slane %v953_v39, 5  ;;  %v964_v15 = vshrl.u32 %v2062_v27, 16  ;;  %v967_v37 = vshll.u32 %v2062_v27, 16 }
  0x58   : > { %2306 = vmatprep.mubr.msk.bf16.mxu1 %vm372_vm3, %v2492_v25  ;;  %v1533_v26 = vsel %vm2628_vm2, %v1528_v62, %v1532_v0  ;;  %v2175_v25 = vrot.slane %v2167_v50, 9  ;;  %v978_v8 = vshrl.u32 %v2064_v22, 16  ;;  %v981_v10 = vshll.u32 %v2064_v22, 16  ;;  %v2169_v60 = vld [vmem:[%s2589_s29 + $0x48] sm:$0xe] }
  0x59   : > { %2355 = vmatmul.mubr.msk.bf16.vlgmr.msra.gmra.mrb[0].mxu0 %vm372_vm3, %v2153_v40  ;;  %v2155_v35 = vcombine.low %v1519_v2, %v1533_v26  ;;  %v947_v40 = vrot.slane %v945_v58, 5  ;;  %v956_v41 = vor.u32 %v955_v56, %v952_v33  ;;  %v961_v57 = vrot.slane %v959_v63, 5 }
  0x5a   : > { %2363 = vmatpush3.bf16.msra.mxu0 %v2922_v24  ;;  %2358 = vmatprep.mubr.msk.bf16.mxu0 %vm372_vm3, %v2154_v51  ;;  %v938_v24 = vrot.slane %v936_v12, 4  ;;  %v966_v48 = vrot.slane %v964_v15, 4  ;;  %v969_v21 = vrot.slane %v967_v37, 5  ;;  %v1683_v53 = vsel %vm2735_vm6, %v2172_v43, %v1682_v16 }
  0x5b   : > { %2364 = vmatprep.subr.bf16.mxu0 %v2494_v6  ;;  %v980_v42 = vrot.slane %v978_v8, 4  ;;  %v983_v47 = vrot.slane %v981_v10, 5  ;;  %v957_v36 = vrot.slane %v956_v41, 4  ;;  %v1691_v51 = vsel %vm2735_vm6, %v2174_v29, %v1690_v34 }
  0x5c   : > { %v942_v49 = vor.u32 %v941_v45, %v938_v24  ;;  %v987_v62 = vshll.u32 %v2791_v44, 16  ;;  %v970_v16 = vor.u32 %v969_v21, %v966_v48  ;;  %v2176_v11 = vrot.slane %v2168_v59, 9 }
  0x5d   : > { %v962_v61 = vsel %vm2628_vm2, %v957_v36, %v961_v57  ;;  %v984_v58 = vor.u32 %v983_v47, %v980_v42  ;;  %v1698_v9 = vrot.slane %v2956_v17, 5  ;;  %v2177_v43 = vrot.slane %v2169_v60, 9 }
  0x5e   : > { %2365 = vmatpush3.bf16.msra.mxu0 %v2494_v6  ;;  %v943_v0 = vrot.slane %v942_v49, 4  ;;  %v1695_v6 = vsel %vm2735_vm6, %v2175_v25, %v1694_v18  ;;  %v1702_v13 = vrot.slane %v2961_v38, 5  ;;  %v975_v44 = vrot.slane %v973_v23, 5 }
  0x5f   : > { %2307 = vmatmul.mubr.msk.bf16.vlgmr.msra.gmra.mrb[0].mxu1 %vm372_vm3, %v2493_v54  ;;  %v2184_v2 = vcombine.low %v1691_v51, %v1695_v6  ;;  %v971_v14 = vrot.slane %v970_v16, 4  ;;  %v985_v26 = vrot.slane %v984_v58, 4  ;;  %v1699_v17 = vsel %vm2735_vm6, %v2176_v11, %v1698_v9 }
  0x60   : > { %2376 = vmatpush3.bf16.msra.mxu1 %v2565_v1  ;;  %2310 = vmatprep.mubr.msk.bf16.mxu1 %vm372_vm3, %v2495_v5  ;;  %v1687_v1 = vsel %vm2735_vm6, %v2173_v19, %v1686_v20  ;;  %v948_v55 = vsel %vm2628_vm2, %v943_v0, %v947_v40  ;;  %v1703_v38 = vsel %vm2735_vm6, %v2177_v43, %v1702_v13 }
  0x61   : > { %2359 = vmatmul.mubr.msk.bf16.gmra.mrb[4].mxu0 %vm372_vm3, %v2155_v35  ;;  %2375 = vmatprep.subr.bf16.mxu1 %v2576_v3  ;;  %v2183_v63 = vcombine.low %v1683_v53, %v1687_v1  ;;  %v2072_v54 = vcombine.low %v948_v55, %v962_v61  ;;  %v976_v5 = vsel %vm2628_vm2, %v971_v14, %v975_v44 }
  0x62   : > { %2366 = vmatprep.mubr.msk.bf16.mxu0 %vm372_vm3, %v2182_v52  ;;  %v2185_v23 = vcombine.low %v1699_v17, %v1703_v38 }
  0x64   : > { %2377 = vmatpush3.bf16.msra.mxu1 %v2576_v3  ;;  %v989_v3 = vrot.slane %v987_v62, 5 }
  0x66   : > { %v990_v31 = vsel %vm2628_vm2, %v985_v26, %v989_v3 }
  0x67   : > { %2311 = vmatmul.mubr.msk.bf16.gmra.mrb[4].mxu1 %vm372_vm3, %v2496_v7  ;;  %v2073_v20 = vcombine.low %v976_v5, %v990_v31 }
  0x68   : > { %2322 = vmatprep.mubr.msk.bf16.mxu1 %vm372_vm3, %v2072_v54 }
  0x69   : > { %2367 = vmatmul.mubr.msk.bf16.vlgmr.msra.gmra.mrb[0].mxu0 %vm372_vm3, %v2183_v63 }
  0x6a   : > { %2370 = vmatprep.mubr.msk.bf16.mxu0 %vm372_vm3, %v2184_v2 }
  0x71   : > { %2371 = vmatmul.mubr.msk.bf16.gmra.mrb[4].mxu0 %vm372_vm3, %v2185_v23 }
  0x73   : > { %2323 = vmatmul.mubr.msk.bf16.vlgmr.msra.gmra.mrb[4].mxu1 %vm372_vm3, %v2073_v20 }
 0x132   : > { %v2308_v12 = vpop.f32.mrb[0].mxu1 }
 0x133   : > { %v824_v32 = vpop.f32.mrb[1].mxu1 }
 0x134   : > { %v2309_v50 = vpop.f32.mrb[2].mxu1 }
 0x135   : > { %v827_v52 = vpop.f32.mrb[3].mxu1 }
 0x13c   : > { %v2368_v19 = vpop.f32.mrb[0].mxu0 }
 0x13d   : > { %v2378_v4 = vadd.f32 %v2368_v19, %v2308_v12  ;;  %v1779_v28 = vpop.f32.mrb[1].mxu0 }
 0x13e   : > { %v2379_v30 = vadd.f32 %v1779_v28, %v824_v32  ;;  %v2369_v27 = vpop.f32.mrb[2].mxu0 }
 0x13f   : > { %v1827_v35 = vadd.f32 %v2378_v4, %v2192_v46  ;;  %v2380_v24 = vadd.f32 %v2369_v27, %v2309_v50  ;;  %v1782_v39 = vpop.f32.mrb[3].mxu0 }
 0x140   : > { %v1825_v29 = vadd.f32 %v2379_v30, %v2192_v46  ;;  %v2381_v22 = vadd.f32 %v1782_v39, %v827_v52 }
 0x141   : > { %v1835_v45 = vmax.f32 %v1827_v35, 0.0  ;;  %v1828_v33 = vadd.f32 %v2380_v24, %v2192_v46 }
 0x142   : > { %v1833_v34 = vmax.f32 %v1825_v29, 0.0  ;;  %v1826_v25 = vadd.f32 %v2381_v22, %v2192_v46 }
 0x143   : > { %v2206_v56 = vpack.c.bf16 %v1835_v45, %v1835_v45  ;;  %v1836_v18 = vmax.f32 %v1828_v33, 0.0 }
 0x144   : > { %v2204_v15 = vpack.c.bf16 %v1833_v34, %v1833_v34  ;;  %v1834_v37 = vmax.f32 %v1826_v25, 0.0  ;;  %v2372_v49 = vpop.f32.mrb[4].mxu0 }
 0x145   : > { %1876 = vst.msk [vmem:[%s3057_s11 + $0x8] sm:$0xf] %vm1873_vm7, %v2206_v56  ;;  %v2207_v40 = vpack.c.bf16 %v1836_v18, %v1836_v18  ;;  %v1795_v8 = vpop.f32.mrb[5].mxu0 }
 0x146   : > { %1874 = vst.msk [vmem:[%s3057_s11] sm:$0xf] %vm1873_vm7, %v2204_v15  ;;  %v2205_v10 = vpack.c.bf16 %v1834_v37, %v1834_v37  ;;  %v2324_v41 = vpop.f32.mrb[4].mxu1  ;;  %v2373_v57 = vpop.f32.mrb[6].mxu0 }
 0x147   : > { %1877 = vst.msk [vmem:[%s3057_s11 + $0xc] sm:$0xf] %vm1873_vm7, %v2207_v40  ;;  %v2382_v48 = vadd.f32 %v2372_v49, %v2324_v41  ;;  %v1082_v21 = vpop.f32.mrb[5].mxu1  ;;  %v1798_v53 = vpop.f32.mrb[7].mxu0 }
 0x148   : > { %1875 = vst.msk [vmem:[%s3057_s11 + $0x4] sm:$0xf] %vm1873_vm7, %v2205_v10  ;;  %v2383_v0 = vadd.f32 %v1795_v8, %v1082_v21  ;;  %v2325_v42 = vpop.f32.mrb[6].mxu1 }
 0x149   : > { %v1831_v47 = vadd.f32 %v2382_v48, %v2192_v46  ;;  %v2384_v1 = vadd.f32 %v2373_v57, %v2325_v42  ;;  %v1085_v36 = vpop.f32.mrb[7].mxu1 }
 0x14a   : > { %v1829_v51 = vadd.f32 %v2383_v0, %v2192_v46  ;;  %v2385_v6 = vadd.f32 %v1798_v53, %v1085_v36 }
 0x14b   : > { %v1839_v7 = vmax.f32 %v1831_v47, 0.0  ;;  %v1832_v55 = vadd.f32 %v2384_v1, %v2192_v46 }
 0x14c   : > { %v1837_v59 = vmax.f32 %v1829_v51, 0.0  ;;  %v1830_v60 = vadd.f32 %v2385_v6, %v2192_v46 }
 0x14d   : > { %v2210_v62 = vpack.c.bf16 %v1839_v7, %v1839_v7  ;;  %v1840_v61 = vmax.f32 %v1832_v55, 0.0 }
 0x14e   : > { %v2208_v16 = vpack.c.bf16 %v1837_v59, %v1837_v59  ;;  %v1838_v58 = vmax.f32 %v1830_v60, 0.0 }
 0x14f   : > { %1880 = vst.msk [vmem:[%s3057_s11 + $0x18] sm:$0xf] %vm1873_vm7, %v2210_v62  ;;  %v2211_v63 = vpack.c.bf16 %v1840_v61, %v1840_v61 }
 0x150   : > { %1878 = vst.msk [vmem:[%s3057_s11 + $0x10] sm:$0xf] %vm1873_vm7, %v2208_v16  ;;  %v2209_v54 = vpack.c.bf16 %v1838_v58, %v1838_v58 }
 0x151   : > { %1881 = vst.msk [vmem:[%s3057_s11 + $0x1c] sm:$0xf] %vm1873_vm7, %v2211_v63 }
 0x152   : > { %1879 = vst.msk [vmem:[%s3057_s11 + $0x14] sm:$0xf] %vm1873_vm7, %v2209_v54 }
 0x153 PF: > { %s13_s14 = sadd.s32 1, %s2519_s14   ;;  %s3092_s12 = smov %s2515_s13 }
 0x154   : > { %p10_p5 = scmp.ge.s32.totalorder %s13_s14, 4   ;;  %s3093_s13 = smov %s3095_s15 }
 0x156   :  { %12 = sbr.rel (!%p10_p5) target bundleno = 2 (0x2), region = 72 }

// kernel: run.25
= control target key start
LH: loop header
LB: loop body
LE: loop exit
PB: predicated region body
PF: predicated region fallthrough
CT: control target
= control target key end

     0   :  { %10 = vsyncpa [#allocation3], 0  ;;  %s1929_s18 = smov 0   ;;  %s3029_s0 = inlined_call_operand.vmem [shape: bf16[512,32], index: 0, kind: input, shape index: {}]   ;;  %s3030_s1 = inlined_call_operand.vmem [shape: bf16[512,32], index: 1, kind: input, shape index: {}]   ;;  %s3031_s2 = inlined_call_operand.vmem [shape: f32[1,32], index: 2, kind: input, shape index: {}]   ;;  %s3032_s3 = inlined_call_operand.vmem [shape: f32[1,32], index: 3, kind: input, shape index: {}]   ;;  %s3033_s4 = inlined_call_operand.vmem [shape: f32[2], index: 4, kind: input, shape index: {}]   ;;  %s3034_s5 = inlined_call_operand.vmem [shape: bf16[512,32], index: 5, kind: output, shape index: {}]  }
   0x1 LB: > { %s1420_s19 = sadd.s32 4294967295, %s1896_s18   ;;  %p1422_p0 = scmp.ge.s32.totalorder %s1896_s18, 1  ;;  %s1896_s18 = sphi %s1929_s18, %s16_s18  }
   0x2   : > { %p162_p1 = scmp.lt.s32.totalorder %s1896_s18, 3  ;;  %s181_s22 = sshll.u32 %s3033_s4, 4  ;;  %s182_s22 = int_to_ptr.vmem [resolvable:$true] %s181_s22 }
   0x3   : > { %p1944_p3 = scmp.eq.s32.totalorder %s1420_s19, 0  ;;  %s1871_s25 = scalar_lea.vmem %s182_s22, 16 }
   0x4   : > { %p1940_p2 = pnand %p1422_p0, %p162_p1  ;;  %p1872_p6 = scmp.ne.s32.totalorder %s182_s22, %s1871_s25 }
   0x5   : > { %p1879_p10 = scmp.lt.s32.totalorder %s182_s22, %s182_s22  ;;  %p1880_p11 = scmp.lt.s32.totalorder %s1871_s25, %s1871_s25 }
   0x6   : > { %p1664_p4 = pneg %p1940_p2 }
   0x7   : > { %p1881_p12 = por %p1880_p11, %p1879_p10 }
   0x8   : > { %p1665_p5 = pnand %p1944_p3, %p1664_p4 }
   0xa   : > { %p1873_p7 = pneg %p1665_p5 }
   0xc   : > { %p1874_p8 = pnand %p1873_p7, %p1872_p6 }
   0xe   : > { %p1875_p9 = pneg %p1874_p8 }
  0x10   : > { %p1882_p13 = pnand %p1881_p12, %p1875_p9 }
  0x12   : > { %1885 = shalt.err (!%p1882_p13)
}
  0x13   : > { %s1898_s26 = smov [#allocation2]   ;;  %212 = sbr.rel (%p1940_p2) target bundleno = 412 (0x19c), region = 40 }
  0x14   : > { %1667 = dma.vmem_to_smem (!%p1665_p5), %s182_s22, 16, %s1898_s26, [#allocation3]  }
  0x1a   : > { %1891 = dma.done.wait (%p1944_p3), [#allocation3], 16  }
  0x1b   : > { %1893 = vsyncadd (%p1944_p3), [#allocation3], 4294967280 }
  0x1c   : > { %218 = sfence }
  0x1d   : > { %s1427_s27 = sshll.u32 %s1420_s19, 5  ;;  %v1969_v0 = vld [vmem:[%s3031_s2] ss:$0 sm:$0xff]  ;;  %vm431_vm0 = vcmask 261120   ;;  %s528_s14 = sld [smem:[#allocation2]]  ;;  %vm1307_vm1 = vcmask 257024  }
  0x1e   : > { %p247_p0 = scmp.lt.s32.totalorder %s1427_s27, 63  ;;  %s1435_s15 = sld [smem:[#allocation2 + $0x1]] }
  0x20   : > { %s3269_s27 = smov (!%p247_p0, %s1427_s27), 63 }
  0x21   : > { %s1958_s28 = sshll.u32 %s3269_s27, 2 }
  0x22   : > { %s1964_s6 = scalar_lea.vmem %s3029_s0, %s1958_s28  ;;  %s2163_s11 = scalar_lea.vmem %s3030_s1, %s1958_s28 }
  0x23   : > { %v1972_v1 = vld [vmem:[%s1964_s6 + $0x8] sm:$0xff]   ;;  %v1975_v2 = vld [vmem:[%s1964_s6] sm:$0xff]   ;;  %v1978_v3 = vld [vmem:[%s1964_s6 + $0x10] sm:$0xff]   ;;  %s2620_s19 = scalar_lea.vmem %s3034_s5, %s1958_s28 }
  0x24   : > { %v3092_v4 = vunpack.c.l.bf16 %v1972_v1  ;;  %v3096_v5 = vunpack.c.l.bf16 %v1975_v2  ;;  %v3094_v6 = vunpack.c.h.bf16 %v1972_v1  ;;  %v3098_v7 = vunpack.c.h.bf16 %v1975_v2  ;;  %v1999_v14 = vld [vmem:[%s1964_s6 + $0x18] sm:$0xff]   ;;  %v2014_v23 = vld [vmem:[%s1964_s6 + $0x20] sm:$0xff]   ;;  %v2027_v30 = vld [vmem:[%s1964_s6 + $0x28] sm:$0xff]  }
  0x25   : > { %v3090_v8 = vunpack.c.h.bf16 %v1978_v3  ;;  %v3088_v9 = vunpack.c.l.bf16 %v1978_v3  ;;  %v3086_v17 = vunpack.c.h.bf16 %v1999_v14  ;;  %v3083_v18 = vunpack.c.l.bf16 %v1999_v14  ;;  %v2040_v37 = vld [vmem:[%s1964_s6 + $0x30] sm:$0xff]   ;;  %v2053_v44 = vld [vmem:[%s1964_s6 + $0x38] sm:$0xff]   ;;  %v2066_v51 = vld [vmem:[%s1964_s6 + $0x40] sm:$0xff]  }
  0x26   : > { %v401_v10 = vmul.f32 %v3092_v4, %v1969_v0  ;;  %v399_v11 = vmul.f32 %v3096_v5, %v1969_v0  ;;  %v402_v12 = vmul.f32 %v3094_v6, %v1969_v0  ;;  %v400_v13 = vmul.f32 %v3098_v7, %v1969_v0  ;;  %3148 = vst [vmem:[#allocation5_spill] sm:$0xff] %v2053_v44  ;;  %v2079_v58 = vld [vmem:[%s1964_s6 + $0x48] sm:$0xff]  }
  0x27   : > { %v404_v21 = vmul.f32 %v3090_v8, %v1969_v0  ;;  %v403_v22 = vmul.f32 %v3088_v9, %v1969_v0  ;;  %v406_v24 = vmul.f32 %v3086_v17, %v1969_v0  ;;  %v405_v25 = vmul.f32 %v3083_v18, %v1969_v0  ;;  %3149 = vst [vmem:[#allocation6_spill] sm:$0xff] %v2066_v51 }
  0x28   : > { %v438_v15 = vsel %vm431_vm0, %v401_v10, 0.0  ;;  %v432_v16 = vsel %vm431_vm0, %v399_v11, 0.0  ;;  %v441_v19 = vsel %vm431_vm0, %v402_v12, 0.0  ;;  %v435_v20 = vsel %vm431_vm0, %v400_v13, 0.0  ;;  %3150 = vst [vmem:[#allocation7_spill] sm:$0xff] %v2079_v58  ;;  %v2092_v11 = vld [vmem:[%s1964_s6 + $0x50] sm:$0xff]  }
  0x29   : > { %439 = vadd.xlane.f32.xlu1 %v438_v15  ;;  %433 = vadd.xlane.f32.xlu0 %v432_v16  ;;  %v447_v26 = vsel %vm431_vm0, %v404_v21, 0.0  ;;  %v444_v27 = vsel %vm431_vm0, %v403_v22, 0.0  ;;  %v3080_v28 = vunpack.c.h.bf16 %v2014_v23  ;;  %v3078_v29 = vunpack.c.l.bf16 %v2014_v23  ;;  %3151 = vst [vmem:[#allocation8_spill] sm:$0xff] %v2092_v11  ;;  %v2105_v21 = vld [vmem:[%s1964_s6 + $0x58] sm:$0xff]  }
  0x2a   : > { %v453_v31 = vsel %vm431_vm0, %v406_v24, 0.0  ;;  %v450_v32 = vsel %vm431_vm0, %v405_v25, 0.0  ;;  %v3070_v35 = vunpack.c.h.bf16 %v2027_v30  ;;  %v3064_v36 = vunpack.c.l.bf16 %v2027_v30  ;;  %3152 = vst [vmem:[#allocation9_spill] sm:$0xff] %v2105_v21 }
  0x2b   : > { %v408_v33 = vmul.f32 %v3080_v28, %v1969_v0  ;;  %v407_v34 = vmul.f32 %v3078_v29, %v1969_v0  ;;  %v3058_v38 = vunpack.c.h.bf16 %v2040_v37  ;;  %v3054_v39 = vunpack.c.l.bf16 %v2040_v37 }
  0x2c   : > { %v410_v42 = vmul.f32 %v3070_v35, %v1969_v0  ;;  %v409_v43 = vmul.f32 %v3064_v36, %v1969_v0  ;;  %v3052_v45 = vunpack.c.h.bf16 %v2053_v44  ;;  %v3051_v46 = vunpack.c.l.bf16 %v2053_v44  ;;  %v2337_v36 = vld [vmem:[%s2163_s11 + $0x60] sm:$0xff]   ;;  %v2363_v35 = vld [vmem:[%s2163_s11 + $0x70] sm:$0xff]  }
  0x2d   : > { %442 = vadd.xlane.f32.xlu1 %v441_v19  ;;  %436 = vadd.xlane.f32.xlu0 %v435_v20  ;;  %v459_v40 = vsel %vm431_vm0, %v408_v33, 0.0  ;;  %v456_v41 = vsel %vm431_vm0, %v407_v34, 0.0  ;;  %v412_v49 = vmul.f32 %v3058_v38, %v1969_v0  ;;  %v411_v50 = vmul.f32 %v3054_v39, %v1969_v0  ;;  %v2311_v38 = vld [vmem:[%s2163_s11 + $0x50] sm:$0xff]   ;;  %3163 = vst [vmem:[#allocation20_spill] sm:$0xff] %v2337_v36 }
  0x2e   : > { %v465_v47 = vsel %vm431_vm0, %v410_v42, 0.0  ;;  %v462_v48 = vsel %vm431_vm0, %v409_v43, 0.0  ;;  %v414_v52 = vmul.f32 %v3052_v45, %v1969_v0  ;;  %v3050_v53 = vunpack.c.h.bf16 %v2066_v51  ;;  %v2285_v45 = vld [vmem:[%s2163_s11 + $0x40] sm:$0xff]   ;;  %3161 = vst [vmem:[#allocation18_spill] sm:$0xff] %v2311_v38  ;;  %3165 = vst [vmem:[#allocation22_spill] sm:$0xff] %v2363_v35 }
  0x2f   : > { %v471_v54 = vsel %vm431_vm0, %v412_v49, 0.0  ;;  %v468_v55 = vsel %vm431_vm0, %v411_v50, 0.0  ;;  %v413_v56 = vmul.f32 %v3051_v46, %v1969_v0  ;;  %v3049_v57 = vunpack.c.l.bf16 %v2066_v51  ;;  %3159 = vst [vmem:[#allocation16_spill] sm:$0xff] %v2285_v45 }
  0x30   : > { %v477_v59 = vsel %vm431_vm0, %v414_v52, 0.0  ;;  %v416_v60 = vmul.f32 %v3050_v53, %v1969_v0  ;;  %v3048_v63 = vunpack.c.h.bf16 %v2079_v58  ;;  %v3047_v10 = vunpack.c.l.bf16 %v2079_v58 }
  0x31   : > { %448 = vadd.xlane.f32.xlu1 %v447_v26  ;;  %445 = vadd.xlane.f32.xlu0 %v444_v27  ;;  %v474_v61 = vsel %vm431_vm0, %v413_v56, 0.0  ;;  %v415_v62 = vmul.f32 %v3049_v57, %v1969_v0  ;;  %v3046_v12 = vunpack.c.h.bf16 %v2092_v11  ;;  %v3045_v13 = vunpack.c.l.bf16 %v2092_v11  ;;  %v2144_v56 = vld [vmem:[%s1964_s6 + $0x70] sm:$0xff]   ;;  %v2272_v57 = vld [vmem:[%s2163_s11 + $0x38] sm:$0xff]  }
  0x32   : > { %v483_v15 = vsel %vm431_vm0, %v416_v60, 0.0  ;;  %v418_v19 = vmul.f32 %v3048_v63, %v1969_v0  ;;  %v417_v20 = vmul.f32 %v3047_v10, %v1969_v0  ;;  %v3044_v24 = vunpack.c.h.bf16 %v2105_v21  ;;  %3155 = vst [vmem:[#allocation12_spill] sm:$0xff] %v2144_v56  ;;  %3158 = vst [vmem:[#allocation15_spill] sm:$0xff] %v2272_v57 }
  0x33   : > { %v480_v16 = vsel %vm431_vm0, %v415_v62, 0.0  ;;  %v420_v22 = vmul.f32 %v3046_v12, %v1969_v0  ;;  %v419_v27 = vmul.f32 %v3045_v13, %v1969_v0  ;;  %v3037_v60 = vunpack.c.l.bf16 %v2144_v56  ;;  %v2259_v12 = vld [vmem:[%s2163_s11 + $0x30] sm:$0xff]  }
  0x34   : > { %v489_v25 = vsel %vm431_vm0, %v418_v19, 0.0  ;;  %v486_v26 = vsel %vm431_vm0, %v417_v20, 0.0  ;;  %v422_v33 = vmul.f32 %v3044_v24, %v1969_v0  ;;  %v2157_v19 = vld [vmem:[%s1964_s6 + $0x78] sm:$0xff]   ;;  %3157 = vst [vmem:[#allocation14_spill] sm:$0xff] %v2259_v12  ;;  %v3056_v46 = vunpack.c.l.bf16 %v2272_v57 }
  0x35   : > { %454 = vadd.xlane.f32.xlu1 %v453_v31  ;;  %451 = vadd.xlane.f32.xlu0 %v450_v32  ;;  %v3043_v31 = vunpack.c.l.bf16 %v2105_v21  ;;  %v2118_v32 = vld [vmem:[%s1964_s6 + $0x60] sm:$0xff]   ;;  %3156 = vst [vmem:[#allocation13_spill] sm:$0xff] %v2157_v19  ;;  %v3059_v39 = vunpack.c.l.bf16 %v2285_v45 }
  0x36   : > { %3153 = vst [vmem:[#allocation10_spill] sm:$0xff] %v2118_v32  ;;  %v3042_v34 = vunpack.c.h.bf16 %v2118_v32  ;;  %v3041_v43 = vunpack.c.l.bf16 %v2118_v32 }
  0x37   : > { %v421_v42 = vmul.f32 %v3043_v31, %v1969_v0  ;;  %v2246_v31 = vld [vmem:[%s2163_s11 + $0x28] sm:$0xff]  }
  0x38   : > { %v424_v49 = vmul.f32 %v3042_v34, %v1969_v0  ;;  %v423_v52 = vmul.f32 %v3041_v43, %v1969_v0  ;;  %v3067_v24 = vunpack.c.h.bf16 %v2246_v31  ;;  %v3061_v13 = vunpack.c.l.bf16 %v2246_v31 }
  0x39   : > { %460 = vadd.xlane.f32.xlu1 %v459_v40  ;;  %457 = vadd.xlane.f32.xlu0 %v456_v41  ;;  %v495_v40 = vsel %vm431_vm0, %v420_v22, 0.0  ;;  %v492_v41 = vsel %vm431_vm0, %v419_v27, 0.0  ;;  %v498_v50 = vsel %vm431_vm0, %v421_v42, 0.0  ;;  %v3036_v22 = vunpack.c.h.bf16 %v2157_v19 }
  0x3a   : > { %v504_v62 = vsel %vm431_vm0, %v423_v52, 0.0  ;;  %v427_v27 = vmul.f32 %v3037_v60, %v1969_v0  ;;  %v2190_v52 = vld [vmem:[%s3032_s3] ss:$0 sm:$0xff]  ;;  %v2220_v60 = vld [vmem:[%s2163_s11 + $0x18] sm:$0xff]  }
  0x3b   : > { %v580_v10 = vmul.f32 %v3067_v24, %v2190_v52  ;;  %v579_v63 = vmul.f32 %v3061_v13, %v2190_v52  ;;  %v2324_v13 = vld [vmem:[%s2163_s11 + $0x58] sm:$0xff]   ;;  %v2350_v24 = vld [vmem:[%s2163_s11 + $0x68] sm:$0xff]  }
  0x3c   : > { %3162 = vst [vmem:[#allocation19_spill] sm:$0xff] %v2324_v13  ;;  %3164 = vst [vmem:[#allocation21_spill] sm:$0xff] %v2350_v24 }
  0x3d   : > { %466 = vadd.xlane.f32.xlu1 %v465_v47  ;;  %463 = vadd.xlane.f32.xlu0 %v462_v48  ;;  %v2131_v47 = vld [vmem:[%s1964_s6 + $0x68] sm:$0xff]   ;;  %v501_v48 = vsel %vm431_vm0, %v422_v33, 0.0  ;;  %v3035_v33 = vunpack.c.l.bf16 %v2157_v19 }
  0x3e   : > { %3154 = vst [vmem:[#allocation11_spill] sm:$0xff] %v2131_v47 }
  0x41   : > { %472 = vadd.xlane.f32.xlu1 %v471_v54  ;;  %469 = vadd.xlane.f32.xlu0 %v468_v55  ;;  %v3040_v54 = vunpack.c.h.bf16 %v2131_v47  ;;  %v3039_v55 = vunpack.c.l.bf16 %v2131_v47 }
  0x45   : > { %478 = vadd.xlane.f32.xlu1 %v477_v59  ;;  %475 = vadd.xlane.f32.xlu0 %v474_v61  ;;  %v3038_v59 = vunpack.c.h.bf16 %v2144_v56  ;;  %v507_v61 = vsel %vm431_vm0, %v424_v49, 0.0  ;;  %v516_v49 = vsel %vm431_vm0, %v427_v27, 0.0  ;;  %v2207_v27 = vld [vmem:[%s2163_s11 + $0x10] sm:$0xff]  }
  0x47   : > { %v428_v20 = vmul.f32 %v3038_v59, %v1969_v0 }
  0x49   : > { %484 = vadd.xlane.f32.xlu1 %v483_v15  ;;  %481 = vadd.xlane.f32.xlu0 %v480_v16  ;;  %v426_v15 = vmul.f32 %v3040_v54, %v1969_v0  ;;  %v425_v16 = vmul.f32 %v3039_v55, %v1969_v0  ;;  %v3082_v55 = vunpack.c.l.bf16 %v2220_v60  ;;  %v2233_v54 = vld [vmem:[%s2163_s11 + $0x20] sm:$0xff]  }
  0x4a   : > { %v3073_v34 = vunpack.c.l.bf16 %v2233_v54 }
  0x4b   : > { %v575_v43 = vmul.f32 %v3082_v55, %v2190_v52 }
  0x4d   : > { %490 = vadd.xlane.f32.xlu1 %v489_v25  ;;  %487 = vadd.xlane.f32.xlu0 %v486_v26  ;;  %v513_v25 = vsel %vm431_vm0, %v426_v15, 0.0  ;;  %v510_v26 = vsel %vm431_vm0, %v425_v16, 0.0 }
  0x51   : > { %496 = vadd.xlane.f32.xlu1 %v495_v40  ;;  %493 = vadd.xlane.f32.xlu0 %v492_v41  ;;  %v2176_v40 = vld [vmem:[%s2163_s11] sm:$0xff]   ;;  %v430_v41 = vmul.f32 %v3036_v22, %v1969_v0 }
  0x52   : > { %v3097_v42 = vunpack.c.h.bf16 %v2176_v40 }
  0x53   : > { %v525_v15 = vsel %vm431_vm0, %v430_v41, 0.0  ;;  %v3089_v41 = vunpack.c.h.bf16 %v2207_v27 }
  0x54   : > { %v570_v16 = vmul.f32 %v3097_v42, %v2190_v52 }
  0x55   : > { %502 = vadd.xlane.f32.xlu1 %v501_v48  ;;  %499 = vadd.xlane.f32.xlu0 %v498_v50  ;;  %v519_v48 = vsel %vm431_vm0, %v428_v20, 0.0  ;;  %v429_v50 = vmul.f32 %v3035_v33, %v1969_v0 }
  0x57   : > { %v522_v0 = vsel %vm431_vm0, %v429_v50, 0.0 }
  0x59   : > { %508 = vadd.xlane.f32.xlu1 %v507_v61  ;;  %505 = vadd.xlane.f32.xlu0 %v504_v62  ;;  %v3095_v61 = vunpack.c.l.bf16 %v2176_v40  ;;  %v2194_v62 = vld [vmem:[%s2163_s11 + $0x8] sm:$0xff]  }
  0x5b   : > { %v569_v20 = vmul.f32 %v3095_v61, %v2190_v52 }
  0x5d   : > { %514 = vadd.xlane.f32.xlu1 %v513_v25  ;;  %511 = vadd.xlane.f32.xlu0 %v510_v26  ;;  %v3093_v25 = vunpack.c.h.bf16 %v2194_v62  ;;  %v3091_v26 = vunpack.c.l.bf16 %v2194_v62  ;;  %v601_v50 = vsel %vm431_vm0, %v569_v20, 0.0 }
  0x5f   : > { %v572_v33 = vmul.f32 %v3093_v25, %v2190_v52  ;;  %v571_v22 = vmul.f32 %v3091_v26, %v2190_v52 }
  0x61   : > { %520 = vadd.xlane.f32.xlu1 %v519_v48  ;;  %517 = vadd.xlane.f32.xlu0 %v516_v49  ;;  %v3087_v48 = vunpack.c.l.bf16 %v2207_v27  ;;  %v604_v49 = vsel %vm431_vm0, %v570_v16, 0.0  ;;  %v3084_v16 = vunpack.c.h.bf16 %v2220_v60  ;;  %v607_v20 = vsel %vm431_vm0, %v571_v22, 0.0 }
  0x63   : > { %v573_v59 = vmul.f32 %v3087_v48, %v2190_v52  ;;  %v2406_v48 = vstv %s528_s14 }
  0x65   : > { %526 = vadd.xlane.f32.xlu1 %v525_v15  ;;  %523 = vadd.xlane.f32.xlu0 %v522_v0  ;;  %v574_v15 = vmul.f32 %v3089_v41, %v2190_v52  ;;  %v610_v0 = vsel %vm431_vm0, %v572_v33, 0.0  ;;  %v613_v22 = vsel %vm431_vm0, %v573_v59, 0.0  ;;  %v577_v59 = vmul.f32 %v3073_v34, %v2190_v52  ;;  %v2376_v34 = vld [vmem:[%s2163_s11 + $0x78] sm:$0xff]  }
  0x66   : > { %3166 = vst [vmem:[#allocation23_spill] sm:$0xff] %v2376_v34 }
  0x67   : > { %v616_v33 = vsel %vm431_vm0, %v574_v15, 0.0  ;;  %v619_v15 = vsel %vm431_vm0, %v575_v43, 0.0  ;;  %v625_v43 = vsel %vm431_vm0, %v577_v59, 0.0  ;;  %v631_v59 = vsel %vm431_vm0, %v579_v63, 0.0 }
  0x69   : > { %605 = vadd.xlane.f32.xlu1 %v604_v49  ;;  %602 = vadd.xlane.f32.xlu0 %v601_v50  ;;  %v576_v49 = vmul.f32 %v3084_v16, %v2190_v52  ;;  %v3079_v50 = vunpack.c.h.bf16 %v2233_v54 }
  0x6d   : > { %611 = vadd.xlane.f32.xlu1 %v610_v0  ;;  %608 = vadd.xlane.f32.xlu0 %v607_v20  ;;  %v622_v0 = vsel %vm431_vm0, %v576_v49, 0.0  ;;  %v578_v20 = vmul.f32 %v3079_v50, %v2190_v52  ;;  %v3055_v49 = vunpack.c.h.bf16 %v2259_v12 }
  0x71   : > { %617 = vadd.xlane.f32.xlu1 %v616_v33  ;;  %614 = vadd.xlane.f32.xlu0 %v613_v22  ;;  %v3053_v33 = vunpack.c.l.bf16 %v2259_v12  ;;  %v628_v22 = vsel %vm431_vm0, %v578_v20, 0.0  ;;  %v3057_v20 = vunpack.c.h.bf16 %v2272_v57 }
  0x73   : > { %v581_v53 = vmul.f32 %v3053_v33, %v2190_v52  ;;  %v583_v33 = vmul.f32 %v3056_v46, %v2190_v52 }
  0x75   : > { %623 = vadd.xlane.f32.xlu1 %v622_v0  ;;  %620 = vadd.xlane.f32.xlu0 %v619_v15  ;;  %v582_v0 = vmul.f32 %v3055_v49, %v2190_v52  ;;  %v634_v15 = vsel %vm431_vm0, %v580_v10, 0.0  ;;  %v637_v63 = vsel %vm431_vm0, %v581_v53, 0.0  ;;  %v2298_v49 = vld [vmem:[%s2163_s11 + $0x48] sm:$0xff]   ;;  %v585_v53 = vmul.f32 %v3059_v39, %v2190_v52 }
  0x76   : > { %3160 = vst [vmem:[#allocation17_spill] sm:$0xff] %v2298_v49  ;;  %v3062_v46 = vunpack.c.h.bf16 %v2298_v49 }
  0x77   : > { %v640_v10 = vsel %vm431_vm0, %v582_v0, 0.0  ;;  %v643_v0 = vsel %vm431_vm0, %v583_v33, 0.0  ;;  %v649_v33 = vsel %vm431_vm0, %v585_v53, 0.0 }
  0x78   : > { %v588_v39 = vmul.f32 %v3062_v46, %v2190_v52 }
  0x79   : > { %629 = vadd.xlane.f32.xlu1 %v628_v22  ;;  %626 = vadd.xlane.f32.xlu0 %v625_v43  ;;  %v584_v22 = vmul.f32 %v3057_v20, %v2190_v52  ;;  %v3060_v43 = vunpack.c.h.bf16 %v2285_v45  ;;  %v3063_v20 = vunpack.c.l.bf16 %v2298_v49 }
  0x7d   : > { %635 = vadd.xlane.f32.xlu1 %v634_v15  ;;  %632 = vadd.xlane.f32.xlu0 %v631_v59  ;;  %v646_v15 = vsel %vm431_vm0, %v584_v22, 0.0  ;;  %v586_v59 = vmul.f32 %v3060_v43, %v2190_v52  ;;  %v3066_v22 = vunpack.c.h.bf16 %v2311_v38  ;;  %v587_v43 = vmul.f32 %v3063_v20, %v2190_v52 }
  0x7e   : > { %v3068_v20 = vunpack.c.l.bf16 %v2324_v13 }
  0x7f   : > { %v655_v53 = vsel %vm431_vm0, %v587_v43, 0.0 }
  0x81   : > { %641 = vadd.xlane.f32.xlu1 %v640_v10  ;;  %638 = vadd.xlane.f32.xlu0 %v637_v63  ;;  %v3065_v10 = vunpack.c.l.bf16 %v2311_v38  ;;  %v652_v63 = vsel %vm431_vm0, %v586_v59, 0.0  ;;  %v3069_v59 = vunpack.c.h.bf16 %v2324_v13 }
  0x83   : > { %v589_v46 = vmul.f32 %v3065_v10, %v2190_v52  ;;  %v591_v10 = vmul.f32 %v3068_v20, %v2190_v52  ;;  %v3074_v20 = vunpack.c.h.bf16 %v2350_v24 }
  0x85   : > { %647 = vadd.xlane.f32.xlu1 %v646_v15  ;;  %644 = vadd.xlane.f32.xlu0 %v643_v0  ;;  %v590_v15 = vmul.f32 %v3066_v22, %v2190_v52  ;;  %v658_v0 = vsel %vm431_vm0, %v588_v39, 0.0  ;;  %v661_v43 = vsel %vm431_vm0, %v589_v46, 0.0  ;;  %v3071_v22 = vunpack.c.l.bf16 %v2337_v36 }
  0x87   : > { %v664_v39 = vsel %vm431_vm0, %v590_v15, 0.0  ;;  %v667_v15 = vsel %vm431_vm0, %v591_v10, 0.0  ;;  %v593_v46 = vmul.f32 %v3071_v22, %v2190_v52  ;;  %v596_v22 = vmul.f32 %v3074_v20, %v2190_v52 }
  0x89   : > { %653 = vadd.xlane.f32.xlu1 %v652_v63  ;;  %650 = vadd.xlane.f32.xlu0 %v649_v33  ;;  %v592_v63 = vmul.f32 %v3069_v59, %v2190_v52  ;;  %v3072_v33 = vunpack.c.h.bf16 %v2337_v36  ;;  %v3075_v59 = vunpack.c.l.bf16 %v2350_v24  ;;  %v673_v10 = vsel %vm431_vm0, %v593_v46, 0.0 }
  0x8a   : > { %v2444_v36 = vstv %s1435_s15 }
  0x8d   : > { %659 = vadd.xlane.f32.xlu1 %v658_v0  ;;  %656 = vadd.xlane.f32.xlu0 %v655_v53  ;;  %v670_v0 = vsel %vm431_vm0, %v592_v63, 0.0  ;;  %v594_v53 = vmul.f32 %v3072_v33, %v2190_v52  ;;  %v3076_v63 = vunpack.c.h.bf16 %v2363_v35  ;;  %v595_v33 = vmul.f32 %v3075_v59, %v2190_v52 }
  0x8e   : > { %v3085_v59 = vunpack.c.l.bf16 %v2376_v34 }
  0x8f   : > { %v679_v46 = vsel %vm431_vm0, %v595_v33, 0.0 }
  0x91   : > { %665 = vadd.xlane.f32.xlu1 %v664_v39  ;;  %662 = vadd.xlane.f32.xlu0 %v661_v43  ;;  %v3077_v39 = vunpack.c.l.bf16 %v2363_v35  ;;  %v676_v43 = vsel %vm431_vm0, %v594_v53, 0.0  ;;  %v3081_v53 = vunpack.c.h.bf16 %v2376_v34 }
  0x93   : > { %v597_v20 = vmul.f32 %v3077_v39, %v2190_v52 }
  0x95   : > { %671 = vadd.xlane.f32.xlu1 %v670_v0  ;;  %668 = vadd.xlane.f32.xlu0 %v667_v15  ;;  %v598_v0 = vmul.f32 %v3076_v63, %v2190_v52  ;;  %v682_v15 = vsel %vm431_vm0, %v596_v22, 0.0  ;;  %v600_v63 = vmul.f32 %v3081_v53, %v2190_v52  ;;  %v599_v22 = vmul.f32 %v3085_v59, %v2190_v52 }
  0x97   : > { %v694_v33 = vsel %vm431_vm0, %v600_v63, 0.0  ;;  %v691_v39 = vsel %vm431_vm0, %v599_v22, 0.0 }
  0x99   : > { %677 = vadd.xlane.f32.xlu1 %v676_v43  ;;  %674 = vadd.xlane.f32.xlu0 %v673_v10  ;;  %v688_v43 = vsel %vm431_vm0, %v598_v0, 0.0  ;;  %v685_v10 = vsel %vm431_vm0, %v597_v20, 0.0 }
  0x9d   : > { %683 = vadd.xlane.f32.xlu1 %v682_v15  ;;  %680 = vadd.xlane.f32.xlu0 %v679_v46 }
  0xa1   : > { %689 = vadd.xlane.f32.xlu1 %v688_v43  ;;  %686 = vadd.xlane.f32.xlu0 %v685_v10 }
  0xa5   : > { %695 = vadd.xlane.f32.xlu1 %v694_v33  ;;  %692 = vadd.xlane.f32.xlu0 %v691_v39 }
  0xb6   : > { %v440_v15 = vpop.xlane.xlu1 %439  ;;  %v434_v0 = vpop.xlane.xlu0 %433 }
  0xba   : > { %v443_v46 = vpop.xlane.xlu1 %442  ;;  %v437_v20 = vpop.xlane.xlu0 %436 }
  0xbb   : > { %v531_v21 = vadd.f32 %v2406_v48, %v437_v20 }
  0xbe   : > { %v449_v29 = vpop.xlane.xlu1 %448  ;;  %v446_v50 = vpop.xlane.xlu0 %445 }
  0xc2   : > { %v455_v28 = vpop.xlane.xlu1 %454  ;;  %v452_v53 = vpop.xlane.xlu0 %451 }
  0xc6   : > { %v461_v55 = vpop.xlane.xlu1 %460  ;;  %v458_v18 = vpop.xlane.xlu0 %457 }
  0xca   : > { %v467_v16 = vpop.xlane.xlu1 %466  ;;  %v464_v52 = vpop.xlane.xlu0 %463 }
  0xce   : > { %v473_v43 = vpop.xlane.xlu1 %472  ;;  %v470_v10 = vpop.xlane.xlu0 %469 }
  0xcf   : > { %v2476_v11 = vadd.f32 %v2406_v48, %v470_v10 }
  0xd2   : > { %v479_v59 = vpop.xlane.xlu1 %478  ;;  %v476_v63 = vpop.xlane.xlu0 %475 }
  0xd6   : > { %v2398_v22 = vpop.xlane.xlu1 %484  ;;  %v2400_v39 = vpop.xlane.xlu0 %481 }
  0xda   : > { %v2402_v33 = vpop.xlane.xlu1 %490  ;;  %v2404_v17 = vpop.xlane.xlu0 %487 }
  0xde   : > { %v497_v9 = vpop.xlane.xlu1 %496  ;;  %v494_v41 = vpop.xlane.xlu0 %493 }
  0xdf   : > { %v2409_v8 = vadd.f32 %v2406_v48, %v497_v9  ;;  %v2412_v26 = vadd.f32 %v2406_v48, %v494_v41 }
  0xe2   : > { %v503_v4 = vpop.xlane.xlu1 %502  ;;  %v500_v25 = vpop.xlane.xlu0 %499 }
  0xe3   : > { %v2415_v6 = vadd.f32 %v2406_v48, %v503_v4  ;;  %v2418_v61 = vadd.f32 %v2406_v48, %v500_v25 }
  0xe5   : > { %3167 = vst [vmem:[#allocation24_spill] sm:$0xff] %v2418_v61  ;;  %v3181_v61 = vunpack.c.h.bf16 %v2194_v62 }
  0xe6   : > { %v509_v5 = vpop.xlane.xlu1 %508  ;;  %v506_v42 = vpop.xlane.xlu0 %505 }
  0xe7   : > { %v2421_v7 = vadd.f32 %v2406_v48, %v509_v5  ;;  %v2424_v34 = vadd.f32 %v2406_v48, %v506_v42 }
  0xe9   : > { %3168 = vst [vmem:[#allocation25_spill] sm:$0xff] %v2421_v7  ;;  %3169 = vst [vmem:[#allocation26_spill] sm:$0xff] %v2424_v34 }
  0xea   : > { %v515_v9 = vpop.xlane.xlu1 %514  ;;  %v512_v19 = vpop.xlane.xlu0 %511 }
  0xeb   : > { %v2427_v41 = vadd.f32 %v2406_v48, %v515_v9  ;;  %v2430_v35 = vadd.f32 %v2406_v48, %v512_v19  ;;  %v532_v19 = vadd.f32 %v2406_v48, %v440_v15  ;;  %v2458_v15 = vadd.f32 %v2406_v48, %v452_v53 }
  0xed   : > { %3170 = vst [vmem:[#allocation27_spill] sm:$0xff] %v2427_v41  ;;  %3171 = vst [vmem:[#allocation28_spill] sm:$0xff] %v2430_v35  ;;  %v2484_v41 = vadd.f32 %v2406_v48, %v476_v63 }
  0xee   : > { %v521_v4 = vpop.xlane.xlu1 %520  ;;  %v518_v25 = vpop.xlane.xlu0 %517 }
  0xef   : > { %v2433_v56 = vadd.f32 %v2406_v48, %v521_v4  ;;  %v2436_v5 = vadd.f32 %v2406_v48, %v518_v25  ;;  %v530_v4 = vadd.f32 %v2406_v48, %v434_v0  ;;  %v2461_v0 = vadd.f32 %v2406_v48, %v461_v55 }
  0xf1   : > { %3172 = vst [vmem:[#allocation29_spill] sm:$0xff] %v2433_v56  ;;  %3173 = vst [vmem:[#allocation30_spill] sm:$0xff] %v2436_v5 }
  0xf2   : > { %v527_v24 = vpop.xlane.xlu1 %526  ;;  %v524_v42 = vpop.xlane.xlu0 %523 }
  0xf3   : > { %v2439_v47 = vadd.f32 %v2406_v48, %v527_v24  ;;  %v2442_v9 = vadd.f32 %v2406_v48, %v524_v42  ;;  %v533_v24 = vadd.f32 %v2406_v48, %v443_v46  ;;  %v534_v42 = vadd.f32 %v2406_v48, %v446_v50 }
  0xf5   : > { %3174 = vst [vmem:[#allocation31_spill] sm:$0xff] %v2439_v47  ;;  %3175 = vst [vmem:[#allocation32_spill] sm:$0xff] %v2442_v9  ;;  %v535_v47 = vadd.f32 %v2406_v48, %v449_v29  ;;  %v2455_v9 = vadd.f32 %v2406_v48, %v455_v28  ;;  %v2470_v29 = vadd.f32 %v2406_v48, %v464_v52 }
  0xf6   : > { %v606_v32 = vpop.xlane.xlu1 %605  ;;  %v603_v13 = vpop.xlane.xlu0 %602  ;;  %v2473_v28 = vadd.f32 %v2406_v48, %v473_v43 }
  0xf7   : > { %v700_v25 = vadd.f32 %v2444_v36, %v606_v32  ;;  %v699_v5 = vadd.f32 %v2444_v36, %v603_v13  ;;  %v2464_v32 = vadd.f32 %v2406_v48, %v458_v18  ;;  %v2467_v13 = vadd.f32 %v2406_v48, %v467_v16 }
  0xf8   : > { %v2479_v18 = vadd.f32 %v2406_v48, %v479_v59 }
  0xf9   : > { %v732_v20 = vmax.f32 %v531_v21, %v700_v25  ;;  %v731_v56 = vmax.f32 %v530_v4, %v699_v5 }
  0xfa   : > { %v612_v50 = vpop.xlane.xlu1 %611  ;;  %v609_v53 = vpop.xlane.xlu0 %608 }
  0xfb   : > { %v764_v46 = vsub.f32 %v531_v21, %v732_v20  ;;  %v860_v35 = vsub.f32 %v700_v25, %v732_v20  ;;  %v763_v55 = vsub.f32 %v530_v4, %v731_v56  ;;  %v859_v38 = vsub.f32 %v699_v5, %v731_v56 }
  0xfc   : > { %v702_v16 = vadd.f32 %v2444_v36, %v612_v50  ;;  %v701_v52 = vadd.f32 %v2444_v36, %v609_v53  ;;  %v2488_v21 = vadd.f32 %v2406_v48, %v2398_v22  ;;  %v2492_v25 = vadd.f32 %v2406_v48, %v2400_v39 }
  0xfd   : > { %v797_v43 = vmul.f32 1.442695, %v764_v46  ;;  %v893_v49 = vmul.f32 1.442695, %v860_v35  ;;  %v795_v58 = vmul.f32 1.442695, %v763_v55 }
  0xfe   : > { %v891_v56 = vmul.f32 1.442695, %v859_v38  ;;  %v734_v10 = vmax.f32 %v533_v24, %v702_v16  ;;  %v733_v5 = vmax.f32 %v532_v19, %v701_v52  ;;  %v618_v4 = vpop.xlane.xlu1 %617  ;;  %v615_v59 = vpop.xlane.xlu0 %614 }
  0xff   : > { %1679 = vpow2.f32 %v797_v43  ;;  %v704_v63 = vadd.f32 %v2444_v36, %v618_v4  ;;  %v703_v20 = vadd.f32 %v2444_v36, %v615_v59 }
 0x100   : > { %1681 = vpow2.f32 %v893_v49  ;;  %v766_v35 = vsub.f32 %v533_v24, %v734_v10  ;;  %v862_v50 = vsub.f32 %v702_v16, %v734_v10  ;;  %v765_v53 = vsub.f32 %v532_v19, %v733_v5 }
 0x101   : > { %1683 = vpow2.f32 %v795_v58  ;;  %v861_v22 = vsub.f32 %v701_v52, %v733_v5  ;;  %v736_v38 = vmax.f32 %v535_v47, %v704_v63  ;;  %v735_v46 = vmax.f32 %v534_v42, %v703_v20 }
 0x102   : > { %1685 = vpow2.f32 %v891_v56  ;;  %v801_v55 = vmul.f32 1.442695, %v766_v35  ;;  %v897_v34 = vmul.f32 1.442695, %v862_v50  ;;  %v799_v7 = vmul.f32 1.442695, %v765_v53  ;;  %v624_v45 = vpop.xlane.xlu1 %623  ;;  %v621_v39 = vpop.xlane.xlu0 %620 }
 0x103   : > { %v895_v51 = vmul.f32 1.442695, %v861_v22  ;;  %v768_v43 = vsub.f32 %v535_v47, %v736_v38  ;;  %v864_v57 = vsub.f32 %v704_v63, %v736_v38  ;;  %v767_v4 = vsub.f32 %v534_v42, %v735_v46 }
 0x104   : > { %1687 = vpow2.f32 %v801_v55  ;;  %v863_v59 = vsub.f32 %v703_v20, %v735_v46  ;;  %v706_v49 = vadd.f32 %v2444_v36, %v624_v45  ;;  %v705_v19 = vadd.f32 %v2444_v36, %v621_v39 }
 0x105   : > { %v2500_v58 = vadd.f32 %v2406_v48, %v2402_v33  ;;  %1689 = vpow2.f32 %v897_v34  ;;  %v805_v24 = vmul.f32 1.442695, %v768_v43  ;;  %v901_v16 = vmul.f32 1.442695, %v864_v57 }
 0x106   : > { %1691 = vpow2.f32 %v799_v7  ;;  %v803_v52 = vmul.f32 1.442695, %v767_v4  ;;  %v738_v56 = vmax.f32 %v2455_v9, %v706_v49  ;;  %v737_v47 = vmax.f32 %v2458_v15, %v705_v19  ;;  %v630_v42 = vpop.xlane.xlu1 %629  ;;  %v627_v10 = vpop.xlane.xlu0 %626 }
 0x107   : > { %1693 = vpow2.f32 %v895_v51  ;;  %v899_v5 = vmul.f32 1.442695, %v863_v59  ;;  %v708_v45 = vadd.f32 %v2444_v36, %v630_v42  ;;  %v707_v63 = vadd.f32 %v2444_v36, %v627_v10 }
 0x108   : > { %1695 = vpow2.f32 %v805_v24  ;;  %v770_v33 = vsub.f32 %v2455_v9, %v738_v56  ;;  %v866_v34 = vsub.f32 %v706_v49, %v738_v56  ;;  %v769_v57 = vsub.f32 %v2458_v15, %v737_v47 }
 0x109   : > { %v2508_v7 = vpop.eup %1679  ;;  %1697 = vpow2.f32 %v901_v16  ;;  %v865_v20 = vsub.f32 %v705_v19, %v737_v47  ;;  %v740_v35 = vmax.f32 %v2461_v0, %v708_v45  ;;  %v739_v50 = vmax.f32 %v2464_v32, %v707_v63 }
 0x10a   : > { %v2512_v51 = vpop.eup %1681  ;;  %v2516_v53 = vadd.f32 %v2406_v48, %v2404_v17  ;;  %1699 = vpow2.f32 %v803_v52  ;;  %v809_v22 = vmul.f32 1.442695, %v770_v33  ;;  %v905_v9 = vmul.f32 1.442695, %v866_v34  ;;  %v636_v38 = vpop.xlane.xlu1 %635 }
 0x10b   : > { %v633_v46 = vpop.xlane.xlu0 %632  ;;  %v2518_v15 = vpop.eup %1683  ;;  %v956_v55 = vadd.f32 %v2512_v51, %v2508_v7  ;;  %1701 = vpow2.f32 %v899_v5  ;;  %v807_v39 = vmul.f32 1.442695, %v769_v57  ;;  %v772_v43 = vsub.f32 %v2461_v0, %v740_v35 }
 0x10c   : > { %v2523_v4 = vpop.eup %1685  ;;  %1703 = vpow2.f32 %v809_v22  ;;  %v868_v59 = vsub.f32 %v708_v45, %v740_v35  ;;  %v771_v17 = vsub.f32 %v2464_v32, %v739_v50  ;;  %v867_v48 = vsub.f32 %v707_v63, %v739_v50 }
 0x10d   : > { %1705 = vrcp.f32 %v956_v55  ;;  %v955_v49 = vadd.f32 %v2523_v4, %v2518_v15  ;;  %v903_v19 = vmul.f32 1.442695, %v865_v20  ;;  %v710_v24 = vadd.f32 %v2444_v36, %v636_v38 }
 0x10e   : > { %v2529_v16 = vpop.eup %1687  ;;  %1707 = vpow2.f32 %v905_v9  ;;  %v813_v52 = vmul.f32 1.442695, %v772_v43  ;;  %v909_v56 = vmul.f32 1.442695, %v868_v59  ;;  %v811_v0 = vmul.f32 1.442695, %v771_v17  ;;  %v642_v47 = vpop.xlane.xlu1 %641 }
 0x10f   : > { %v639_v42 = vpop.xlane.xlu0 %638  ;;  %v2531_v10 = vpop.eup %1689  ;;  %1709 = vrcp.f32 %v955_v49  ;;  %v742_v32 = vmax.f32 %v2467_v13, %v710_v24  ;;  %v709_v5 = vadd.f32 %v2444_v36, %v633_v46  ;;  %v712_v45 = vadd.f32 %v2444_v36, %v642_v47 }
 0x110   : > { %v2536_v63 = vpop.eup %1691  ;;  %v958_v33 = vadd.f32 %v2531_v10, %v2529_v16  ;;  %1711 = vpow2.f32 %v807_v39  ;;  %v907_v34 = vmul.f32 1.442695, %v867_v48  ;;  %v711_v57 = vadd.f32 %v2444_v36, %v639_v42 }
 0x111   : > { %v2541_v20 = vpop.eup %1693  ;;  %1713 = vpow2.f32 %v903_v19  ;;  %v774_v35 = vsub.f32 %v2467_v13, %v742_v32  ;;  %v870_v50 = vsub.f32 %v710_v24, %v742_v32  ;;  %v741_v22 = vmax.f32 %v2470_v29, %v709_v5 }
 0x112   : > { %v2545_v9 = vpop.eup %1695  ;;  %1715 = vrcp.f32 %v958_v33  ;;  %v957_v38 = vadd.f32 %v2541_v20, %v2536_v63  ;;  %v744_v46 = vmax.f32 %v2473_v28, %v712_v45  ;;  %v743_v55 = vmax.f32 %v2476_v11, %v711_v57  ;;  %v648_v39 = vpop.xlane.xlu1 %647 }
 0x113   : > { %v2551_v43 = vpop.eup %1697  ;;  %1717 = vpow2.f32 %v813_v52  ;;  %v817_v59 = vmul.f32 1.442695, %v774_v35  ;;  %v2553_v17 = vmul.f32 1.442695, %v870_v50  ;;  %v773_v13 = vsub.f32 %v2470_v29, %v741_v22 }
 0x114   : > { %v2556_v48 = vpop.eup %1699  ;;  %1719 = vrcp.f32 %v957_v38  ;;  %v960_v49 = vadd.f32 %v2551_v43, %v2545_v9  ;;  %v869_v19 = vsub.f32 %v709_v5, %v741_v22  ;;  %v776_v24 = vsub.f32 %v2473_v28, %v744_v46  ;;  %v645_v28 = vpop.xlane.xlu0 %644 }
 0x115   : > { %v2561_v47 = vpop.eup %1701  ;;  %1721 = vpow2.f32 %v909_v56  ;;  %v2563_v42 = vmul.f32 1.442695, %v773_v13  ;;  %v872_v52 = vsub.f32 %v712_v45, %v744_v46  ;;  %v775_v32 = vsub.f32 %v2476_v11, %v743_v55 }
 0x116   : > { %v2566_v33 = vpop.eup %1703  ;;  %1723 = vrcp.f32 %v960_v49  ;;  %v959_v29 = vadd.f32 %v2561_v47, %v2556_v48  ;;  %v2570_v35 = vmul.f32 1.442695, %v869_v19  ;;  %v2572_v5 = vmul.f32 1.442695, %v776_v24  ;;  %v654_v49 = vpop.xlane.xlu1 %653 }
 0x117   : > { %v1706_v50 = vpop.eup %1705  ;;  %1725 = vpow2.f32 %v811_v0  ;;  %v2574_v22 = vmul.f32 1.442695, %v872_v52  ;;  %v2576_v56 = vmul.f32 1.442695, %v775_v32  ;;  %v871_v45 = vsub.f32 %v711_v57, %v743_v55 }
 0x118   : > { %v2578_v38 = vpop.eup %1707  ;;  %v1020_v11 = vmul.f32 %v1706_v50, %v2508_v7  ;;  %v1084_v46 = vmul.f32 %v1706_v50, %v2512_v51  ;;  %1727 = vrcp.f32 %v959_v29  ;;  %v714_v13 = vadd.f32 %v2444_v36, %v648_v39 }
 0x119   : > { %v1710_v19 = vpop.eup %1709  ;;  %v962_v24 = vadd.f32 %v2578_v38, %v2566_v33  ;;  %1729 = vpow2.f32 %v907_v34  ;;  %v2585_v0 = vmul.f32 1.442695, %v871_v45  ;;  %v2588_v52 = vadd.f32 %v2444_v36, %v645_v28 }
 0x11a   : > { %v2590_v57 = vpop.eup %1711  ;;  %v3176_v7 = vunpack.c.h.bf16 %v1975_v2  ;;  %v3177_v55 = vunpack.c.h.bf16 %v2176_v40  ;;  %v1019_v32 = vmul.f32 %v1710_v19, %v2518_v15  ;;  %v1083_v29 = vmul.f32 %v1710_v19, %v2523_v4 }
 0x11b   : > { %v2598_v50 = vpop.eup %1713  ;;  %1731 = vrcp.f32 %v962_v24  ;;  %v746_v34 = vmax.f32 %v2479_v18, %v714_v13  ;;  %v2603_v28 = vmax.f32 %v2484_v41, %v2588_v52  ;;  %v2606_v45 = vadd.f32 %v2444_v36, %v654_v49 }
 0x11c   : > { %v1052_v51 = vmul.f32 %v3176_v7, %v1020_v11  ;;  %v1116_v39 = vmul.f32 %v3177_v55, %v1084_v46  ;;  %v1716_v11 = vpop.eup %1715  ;;  %v3178_v46 = vunpack.c.l.bf16 %v1975_v2  ;;  %v3179_v15 = vunpack.c.l.bf16 %v2176_v40 }
 0x11d   : > { %v961_v19 = vadd.f32 %v2598_v50, %v2590_v57  ;;  %v2614_v24 = vpop.eup %1717  ;;  %v1022_v49 = vmul.f32 %v1716_v11, %v2529_v16  ;;  %1733 = vpow2.f32 %v817_v59  ;;  %v778_v2 = vsub.f32 %v2479_v18, %v746_v34 }
 0x11e   : > { %v1148_v7 = vadd.f32 %v1116_v39, %v1052_v51  ;;  %v1051_v55 = vmul.f32 %v3178_v46, %v1019_v32  ;;  %v1115_v4 = vmul.f32 %v3179_v15, %v1083_v29  ;;  %v1086_v51 = vmul.f32 %v1716_v11, %v2531_v10  ;;  %v1720_v40 = vpop.eup %1719 }
 0x11f   : > { %1735 = vrcp.f32 %v961_v19  ;;  %v874_v29 = vsub.f32 %v714_v13, %v746_v34  ;;  %v2625_v46 = vpop.eup %1721  ;;  %v3180_v15 = vunpack.c.h.bf16 %v1972_v1  ;;  %v1021_v16 = vmul.f32 %v1720_v40, %v2536_v63 }
 0x120   : > { %v1471_v39 = vpack.c.bf16 %v1148_v7, %v1148_v7  ;;  %v1147_v32 = vadd.f32 %v1115_v4, %v1051_v55  ;;  %v1118_v12 = vmul.f32 %v3181_v61, %v1086_v51  ;;  %v1085_v10 = vmul.f32 %v1720_v40, %v2541_v20  ;;  %v1724_v59 = vpop.eup %1723 }
 0x121   : > { %v1054_v44 = vmul.f32 %v3180_v15, %v1022_v49  ;;  %v964_v13 = vadd.f32 %v2625_v46, %v2614_v24  ;;  %1737 = vpow2.f32 %v2553_v17  ;;  %v2638_v34 = vmul.f32 1.442695, %v778_v2  ;;  %v2640_v11 = vpop.eup %1725 }
 0x122   : > { %1309 = vst.msk [vmem:[%s2620_s19 + $0x4] sm:$0xf] %vm1307_vm1, %v1471_v39  ;;  %v1470_v18 = vpack.c.bf16 %v1147_v32, %v1147_v32  ;;  %v3182_v61 = vunpack.c.l.bf16 %v1972_v1  ;;  %v3183_v63 = vunpack.c.l.bf16 %v2194_v62  ;;  %v1024_v4 = vmul.f32 %v1724_v59, %v2545_v9  ;;  %v1728_v19 = vpop.eup %1727 }
 0x123   : > { %v1150_v7 = vadd.f32 %v1118_v12, %v1054_v44  ;;  %v1088_v49 = vmul.f32 %v1724_v59, %v2551_v43  ;;  %1739 = vrcp.f32 %v964_v13  ;;  %v2650_v17 = vmul.f32 1.442695, %v874_v29  ;;  %v2654_v12 = vpop.eup %1729 }
 0x124   : > { %v1053_v55 = vmul.f32 %v3182_v61, %v1021_v16  ;;  %v1117_v20 = vmul.f32 %v3183_v63, %v1085_v10  ;;  %1308 = vst.msk [vmem:[%s2620_s19] sm:$0xf] %vm1307_vm1, %v1470_v18  ;;  %v777_v44 = vsub.f32 %v2484_v41, %v2603_v28  ;;  %v3184_v62 = vunpack.c.h.bf16 %v1978_v3  ;;  %v651_v41 = vpop.xlane.xlu0 %650 }
 0x125   : > { %v1473_v1 = vpack.c.bf16 %v1150_v7, %v1150_v7  ;;  %v1023_v9 = vmul.f32 %v1728_v19, %v2556_v48  ;;  %v3185_v40 = vunpack.c.h.bf16 %v2207_v27  ;;  %v1087_v43 = vmul.f32 %v1728_v19, %v2561_v47  ;;  %v1732_v29 = vpop.eup %1731 }
 0x126   : > { %v1149_v51 = vadd.f32 %v1117_v20, %v1053_v55  ;;  %v1056_v2 = vmul.f32 %v3184_v62, %v1024_v4  ;;  %v963_v32 = vadd.f32 %v2654_v12, %v2640_v11  ;;  %1741 = vpow2.f32 %v2563_v42 }
 0x127   : > { %v1120_v39 = vmul.f32 %v3185_v40, %v1088_v49  ;;  %1311 = vst.msk [vmem:[%s2620_s19 + $0xc] sm:$0xf] %vm1307_vm1, %v1473_v1  ;;  %v3186_v16 = vunpack.c.l.bf16 %v1978_v3  ;;  %1743 = vpow2.f32 %v2570_v35  ;;  %v823_v48 = vmul.f32 1.442695, %v777_v44  ;;  %v2674_v42 = vpop.eup %1733 }
 0x128   : > { %v1472_v15 = vpack.c.bf16 %v1149_v51, %v1149_v51  ;;  %v3187_v18 = vunpack.c.l.bf16 %v2207_v27  ;;  %v1026_v13 = vmul.f32 %v1732_v29, %v2566_v33  ;;  %v1090_v7 = vmul.f32 %v1732_v29, %v2578_v38  ;;  %v657_v29 = vpop.xlane.xlu0 %656 }
 0x129   : > { %v1055_v10 = vmul.f32 %v3186_v16, %v1023_v9  ;;  %v1152_v59 = vadd.f32 %v1120_v39, %v1056_v2  ;;  %1745 = vrcp.f32 %v963_v32  ;;  %v873_v3 = vsub.f32 %v2588_v52, %v2603_v28  ;;  %v1736_v27 = vpop.eup %1735  ;;  %v660_v9 = vpop.xlane.xlu1 %659 }
 0x12a   : > { %v1119_v47 = vmul.f32 %v3187_v18, %v1087_v43  ;;  %1310 = vst.msk [vmem:[%s2620_s19 + $0x8] sm:$0xf] %vm1307_vm1, %v1472_v15  ;;  %v748_v35 = vmax.f32 %v2488_v21, %v2606_v45  ;;  %v715_v61 = vadd.f32 %v2444_v36, %v651_v41  ;;  %v3188_v33 = vunpack.c.h.bf16 %v1999_v14 }
 0x12b   : > { %v1475_v55 = vpack.c.bf16 %v1152_v59, %v1152_v59  ;;  %v3189_v20 = vunpack.c.h.bf16 %v2220_v60  ;;  %v1025_v19 = vmul.f32 %v1736_v27, %v2590_v57  ;;  %v1089_v49 = vmul.f32 %v1736_v27, %v2598_v50  ;;  %v2690_v28 = vpop.eup %1737 }
 0x12c   : > { %v1151_v63 = vadd.f32 %v1119_v47, %v1055_v10  ;;  %v1058_v38 = vmul.f32 %v3188_v33, %v1026_v13  ;;  %1747 = vpow2.f32 %v2572_v5  ;;  %v919_v52 = vmul.f32 1.442695, %v873_v3 }
 0x12d   : > { %v1122_v4 = vmul.f32 %v3189_v20, %v1090_v7  ;;  %1313 = vst.msk [vmem:[%s2620_s19 + $0x14] sm:$0xf] %vm1307_vm1, %v1475_v55  ;;  %1749 = vpow2.f32 %v2574_v22  ;;  %v780_v51 = vsub.f32 %v2488_v21, %v748_v35  ;;  %v3190_v62 = vunpack.c.l.bf16 %v1999_v14  ;;  %v1740_v40 = vpop.eup %1739 }
 0x12e   : > { %v1474_v44 = vpack.c.bf16 %v1151_v63, %v1151_v63  ;;  %v3191_v57 = vunpack.c.l.bf16 %v2220_v60  ;;  %v966_v5 = vadd.f32 %v2690_v28, %v2674_v42  ;;  %1751 = vpow2.f32 %v2576_v56  ;;  %v666_v63 = vpop.xlane.xlu1 %665 }
 0x12f   : > { %v1154_v1 = vadd.f32 %v1122_v4, %v1058_v38  ;;  %v1057_v2 = vmul.f32 %v3190_v62, %v1025_v19  ;;  %1753 = vpow2.f32 %v2585_v0  ;;  %v829_v21 = vmul.f32 1.442695, %v780_v51 }
 0x130   : > { %v1121_v50 = vmul.f32 %v3191_v57, %v1089_v49  ;;  %1312 = vst.msk [vmem:[%s2620_s19 + $0x10] sm:$0xf] %vm1307_vm1, %v1474_v44  ;;  %v876_v14 = vsub.f32 %v2606_v45, %v748_v35  ;;  %v1028_v60 = vmul.f32 %v1740_v40, %v2614_v24  ;;  %v1092_v43 = vmul.f32 %v1740_v40, %v2625_v46  ;;  %v2709_v32 = vpop.eup %1741 }
 0x131   : > { %v1477_v39 = vpack.c.bf16 %v1154_v1, %v1154_v1  ;;  %1755 = vrcp.f32 %v966_v5  ;;  %v747_v41 = vmax.f32 %v2492_v25, %v715_v61  ;;  %v718_v0 = vadd.f32 %v2444_v36, %v660_v9  ;;  %v2716_v45 = vpop.eup %1743 }
 0x132   : > { %v1153_v22 = vadd.f32 %v1121_v50, %v1057_v2  ;;  %1757 = vpow2.f32 %v2638_v34  ;;  %v925_v56 = vmul.f32 1.442695, %v876_v14  ;;  %v3192_v24 = vunpack.c.h.bf16 %v2014_v23 }
 0x133   : > { %1315 = vst.msk [vmem:[%s2620_s19 + $0x1c] sm:$0xf] %vm1307_vm1, %v1477_v39  ;;  %v3193_v16 = vunpack.c.h.bf16 %v2233_v54  ;;  %1759 = vpow2.f32 %v2650_v17  ;;  %v965_v34 = vadd.f32 %v2716_v45, %v2709_v32  ;;  %v779_v59 = vsub.f32 %v2492_v25, %v747_v41  ;;  %v1746_v47 = vpop.eup %1745  ;;  %v663_v39 = vpop.xlane.xlu0 %662 }
 0x134   : > { %v1476_v15 = vpack.c.bf16 %v1153_v22, %v1153_v22  ;;  %v1060_v46 = vmul.f32 %v3192_v24, %v1028_v60  ;;  %1761 = vpow2.f32 %v823_v48  ;;  %v875_v18 = vsub.f32 %v715_v61, %v747_v41 }
 0x135   : > { %v1124_v10 = vmul.f32 %v3193_v16, %v1092_v43  ;;  %1763 = vpow2.f32 %v919_v52  ;;  %v750_v7 = vmax.f32 %v2500_v58, %v718_v0  ;;  %v717_v3 = vadd.f32 %v2444_v36, %v657_v29  ;;  %v672_v43 = vpop.xlane.xlu1 %671 }
 0x136   : > { %1314 = vst.msk [vmem:[%s2620_s19 + $0x18] sm:$0xf] %vm1307_vm1, %v1476_v15  ;;  %v1027_v35 = vmul.f32 %v1746_v47, %v2640_v11  ;;  %v1091_v17 = vmul.f32 %v1746_v47, %v2654_v12  ;;  %1765 = vrcp.f32 %v965_v34  ;;  %v827_v27 = vmul.f32 1.442695, %v779_v59  ;;  %v2732_v48 = vpop.eup %1747 }
 0x137   : > { %v1156_v13 = vadd.f32 %v1124_v10, %v1060_v46  ;;  %1767 = vpow2.f32 %v829_v21  ;;  %v923_v61 = vmul.f32 1.442695, %v875_v18  ;;  %v782_v55 = vsub.f32 %v2500_v58, %v750_v7  ;;  %v2735_v33 = vpop.eup %1749 }
 0x138   : > { %v3194_v38 = vunpack.c.l.bf16 %v2014_v23  ;;  %v3195_v11 = vunpack.c.l.bf16 %v2233_v54  ;;  %1769 = vpow2.f32 %v925_v56  ;;  %v878_v12 = vsub.f32 %v718_v0, %v750_v7  ;;  %v2741_v19 = vpop.eup %1751 }
 0x139   : > { %v1479_v25 = vpack.c.bf16 %v1156_v13, %v1156_v13  ;;  %v968_v49 = vadd.f32 %v2735_v33, %v2732_v48  ;;  %1771 = vpow2.f32 %v827_v27  ;;  %v833_v58 = vmul.f32 1.442695, %v782_v55  ;;  %v2748_v44 = vpop.eup %1753  ;;  %v669_v27 = vpop.xlane.xlu0 %668 }
 0x13a   : > { %v1059_v20 = vmul.f32 %v3194_v38, %v1027_v35  ;;  %v1123_v4 = vmul.f32 %v3195_v11, %v1091_v17  ;;  %v749_v52 = vmax.f32 %v2516_v53, %v717_v3  ;;  %1773 = vpow2.f32 %v923_v61 }
 0x13b   : > { %1317 = vst.msk [vmem:[%s2620_s19 + $0x24] sm:$0xf] %vm1307_vm1, %v1479_v25  ;;  %v929_v1 = vmul.f32 1.442695, %v878_v12  ;;  %v720_v54 = vadd.f32 %v2444_v36, %v666_v63  ;;  %v1756_v51 = vpop.eup %1755  ;;  %1775 = vrcp.f32 %v968_v49  ;;  %v967_v62 = vadd.f32 %v2748_v44, %v2741_v19 }
 0x13c   : > { %v1155_v23 = vadd.f32 %v1123_v4, %v1059_v20  ;;  %v781_v2 = vsub.f32 %v2516_v53, %v749_v52  ;;  %v877_v57 = vsub.f32 %v717_v3, %v749_v52  ;;  %v2754_v50 = vpop.eup %1757  ;;  %v1030_v9 = vmul.f32 %v1756_v51, %v2674_v42 }
 0x13d   : > { %v1094_v40 = vmul.f32 %v1756_v51, %v2690_v28  ;;  %1777 = vpow2.f32 %v833_v58  ;;  %v2758_v21 = vpop.eup %1759  ;;  %v752_v60 = vmax.f32 %v2409_v8, %v720_v54  ;;  %v3196_v53 = vunpack.c.h.bf16 %v2027_v30 }
 0x13e   : > { %v1478_v5 = vpack.c.bf16 %v1155_v23, %v1155_v23  ;;  %1779 = vrcp.f32 %v967_v62  ;;  %v831_v14 = vmul.f32 1.442695, %v781_v2  ;;  %v927_v22 = vmul.f32 1.442695, %v877_v57  ;;  %v2761_v56 = vpop.eup %1761 }
 0x13f   : > { %v1062_v41 = vmul.f32 %v3196_v53, %v1030_v9  ;;  %v3197_v42 = vunpack.c.h.bf16 %v2246_v31  ;;  %v970_v0 = vadd.f32 %v2758_v21, %v2754_v50  ;;  %1781 = vpow2.f32 %v929_v1  ;;  %v2771_v29 = vpop.eup %1763 }
 0x140   : > { %1316 = vst.msk [vmem:[%s2620_s19 + $0x20] sm:$0xf] %vm1307_vm1, %v1478_v5  ;;  %1783 = vpow2.f32 %v831_v14  ;;  %v784_v15 = vsub.f32 %v2409_v8, %v752_v60  ;;  %v880_v24 = vsub.f32 %v720_v54, %v752_v60  ;;  %v719_v46 = vadd.f32 %v2444_v36, %v663_v39  ;;  %v1766_v16 = vpop.eup %1765 }
 0x141   : > { %v1126_v28 = vmul.f32 %v3197_v42, %v1094_v40  ;;  %1785 = vrcp.f32 %v970_v0  ;;  %v969_v34 = vadd.f32 %v2771_v29, %v2761_v56  ;;  %v722_v59 = vadd.f32 %v2444_v36, %v672_v43  ;;  %v2778_v18 = vpop.eup %1767  ;;  %v3201_v40 = vld [vmem:[#allocation14_spill] sm:$0xff] }
 0x142   : > { %v1029_v47 = vmul.f32 %v1766_v16, %v2709_v32  ;;  %v1093_v13 = vmul.f32 %v1766_v16, %v2716_v45  ;;  %1787 = vpow2.f32 %v927_v22  ;;  %v837_v8 = vmul.f32 1.442695, %v784_v15  ;;  %v2782_v7 = vpop.eup %1769 }
 0x143   : > { %v1158_v10 = vadd.f32 %v1126_v28, %v1062_v41  ;;  %1789 = vrcp.f32 %v969_v34  ;;  %v933_v35 = vmul.f32 1.442695, %v880_v24  ;;  %v751_v17 = vmax.f32 %v2412_v26, %v719_v46  ;;  %v2785_v25 = vpop.eup %1771 }
 0x144   : > { %v3198_v61 = vunpack.c.l.bf16 %v2027_v30  ;;  %v3199_v32 = vunpack.c.l.bf16 %v2246_v31  ;;  %v972_v45 = vadd.f32 %v2782_v7, %v2778_v18  ;;  %1791 = vpow2.f32 %v837_v8  ;;  %v2793_v38 = vpop.eup %1773 }
 0x145   : > { %v1481_v3 = vpack.c.bf16 %v1158_v10, %v1158_v10  ;;  %1793 = vpow2.f32 %v933_v35  ;;  %v783_v20 = vsub.f32 %v2412_v26, %v751_v17  ;;  %v879_v11 = vsub.f32 %v719_v46, %v751_v17  ;;  %v1776_v12 = vpop.eup %1775  ;;  %v3205_v46 = vld [vmem:[#allocation24_spill] sm:$0xff]  ;;  %v3208_v35 = vld [vmem:[#allocation15_spill] sm:$0xff] }
 0x146   : > { %v1061_v55 = vmul.f32 %v3198_v61, %v1029_v47  ;;  %v1125_v63 = vmul.f32 %v3199_v32, %v1093_v13  ;;  %v754_v4 = vmax.f32 %v2415_v6, %v722_v59  ;;  %1795 = vrcp.f32 %v972_v45  ;;  %v678_v47 = vpop.xlane.xlu1 %677  ;;  %v675_v13 = vpop.xlane.xlu0 %674 }
 0x147   : > { %1319 = vst.msk [vmem:[%s2620_s19 + $0x2c] sm:$0xf] %vm1307_vm1, %v1481_v3  ;;  %v971_v31 = vadd.f32 %v2793_v38, %v2785_v25  ;;  %v2802_v49 = vadd.f32 %v2444_v36, %v669_v27  ;;  %v2804_v58 = vpop.eup %1777  ;;  %v1032_v52 = vmul.f32 %v1776_v12, %v2732_v48  ;;  %v1096_v23 = vmul.f32 %v1776_v12, %v2735_v33  ;;  %v3206_v3 = vld [vmem:[#allocation5_spill] sm:$0xff] }
 0x148   : > { %v1157_v30 = vadd.f32 %v1125_v63, %v1061_v55  ;;  %v835_v26 = vmul.f32 1.442695, %v783_v20  ;;  %v931_v1 = vmul.f32 1.442695, %v879_v11  ;;  %v1780_v54 = vpop.eup %1779  ;;  %v786_v62 = vsub.f32 %v2415_v6, %v754_v4 }
 0x149   : > { %1797 = vrcp.f32 %v971_v31  ;;  %v882_v2 = vsub.f32 %v722_v59, %v754_v4  ;;  %v2809_v57 = vpop.eup %1781  ;;  %v3200_v5 = vunpack.c.h.bf16 %v2040_v37  ;;  %v3202_v39 = vunpack.c.h.bf16 %v3201_v40 }
 0x14a   : > { %v1480_v51 = vpack.c.bf16 %v1157_v30, %v1157_v30  ;;  %v1031_v48 = vmul.f32 %v1780_v54, %v2741_v19  ;;  %v1095_v33 = vmul.f32 %v1780_v54, %v2748_v44  ;;  %v2817_v22 = vpop.eup %1783  ;;  %v974_v6 = vadd.f32 %v2809_v57, %v2804_v58 }
 0x14b   : > { %v1064_v9 = vmul.f32 %v3200_v5, %v1032_v52  ;;  %v1128_v14 = vmul.f32 %v3202_v39, %v1096_v23  ;;  %1799 = vpow2.f32 %v835_v26  ;;  %v841_v60 = vmul.f32 1.442695, %v786_v62  ;;  %v1786_v53 = vpop.eup %1785  ;;  %v3212_v62 = vld [vmem:[#allocation6_spill] sm:$0xff] }
 0x14c   : > { %1318 = vst.msk [vmem:[%s2620_s19 + $0x28] sm:$0xf] %vm1307_vm1, %v1480_v51  ;;  %v937_v43 = vmul.f32 1.442695, %v882_v2  ;;  %v3203_v42 = vunpack.c.l.bf16 %v2040_v37  ;;  %v3204_v0 = vunpack.c.l.bf16 %v3201_v40  ;;  %1801 = vpow2.f32 %v931_v1  ;;  %v2827_v44 = vpop.eup %1787 }
 0x14d   : > { %v1160_v41 = vadd.f32 %v1128_v14, %v1064_v9  ;;  %v1034_v15 = vmul.f32 %v1786_v53, %v2754_v50  ;;  %v1098_v24 = vmul.f32 %v1786_v53, %v2758_v21  ;;  %1803 = vrcp.f32 %v974_v6  ;;  %v1790_v10 = vpop.eup %1789  ;;  %v3214_v9 = vld [vmem:[#allocation16_spill] sm:$0xff] }
 0x14e   : > { %v1063_v28 = vmul.f32 %v3203_v42, %v1031_v48  ;;  %v1127_v19 = vmul.f32 %v3204_v0, %v1095_v33  ;;  %v753_v16 = vmax.f32 %v3205_v46, %v2802_v49  ;;  %v973_v37 = vadd.f32 %v2827_v44, %v2817_v22  ;;  %v2835_v8 = vpop.eup %1791  ;;  %v684_v48 = vpop.xlane.xlu1 %683 }
 0x14f   : > { %v1483_v34 = vpack.c.bf16 %v1160_v41, %v1160_v41  ;;  %1805 = vpow2.f32 %v841_v60  ;;  %v3207_v50 = vunpack.c.h.bf16 %v3206_v3  ;;  %v3209_v17 = vunpack.c.h.bf16 %v3208_v35  ;;  %v2843_v32 = vpop.eup %1793 }
 0x150   : > { %v1159_v59 = vadd.f32 %v1127_v19, %v1063_v28  ;;  %v1033_v61 = vmul.f32 %v1790_v10, %v2761_v56  ;;  %v1097_v55 = vmul.f32 %v1790_v10, %v2771_v29  ;;  %1807 = vrcp.f32 %v973_v37  ;;  %v1796_v11 = vpop.eup %1795 }
 0x151   : > { %v1066_v21 = vmul.f32 %v3207_v50, %v1034_v15  ;;  %v1130_v27 = vmul.f32 %v3209_v17, %v1098_v24  ;;  %1321 = vst.msk [vmem:[%s2620_s19 + $0x34] sm:$0xf] %vm1307_vm1, %v1483_v34  ;;  %v785_v45 = vsub.f32 %v3205_v46, %v753_v16  ;;  %v881_v20 = vsub.f32 %v2802_v49, %v753_v16  ;;  %v3218_v15 = vld [vmem:[#allocation25_spill] sm:$0xff]  ;;  %v3219_v46 = vld [vmem:[#allocation26_spill] sm:$0xff] }
 0x152   : > { %v1482_v63 = vpack.c.bf16 %v1159_v59, %v1159_v59  ;;  %v3210_v12 = vunpack.c.l.bf16 %v3206_v3  ;;  %v3211_v31 = vunpack.c.l.bf16 %v3208_v35  ;;  %v976_v29 = vadd.f32 %v2843_v32, %v2835_v8 }
 0x153   : > { %v1162_v4 = vadd.f32 %v1130_v27, %v1066_v21  ;;  %v1036_v52 = vmul.f32 %v1796_v11, %v2778_v18  ;;  %v1100_v23 = vmul.f32 %v1796_v11, %v2782_v7  ;;  %1809 = vpow2.f32 %v937_v43  ;;  %v1798_v26 = vpop.eup %1797  ;;  %v2865_v7 = vpop.xlane.xlu0 %680  ;;  %v3220_v27 = vld [vmem:[#allocation7_spill] sm:$0xff] }
 0x154   : > { %v1065_v30 = vmul.f32 %v3210_v12, %v1033_v61  ;;  %v1129_v56 = vmul.f32 %v3211_v31, %v1097_v55  ;;  %1320 = vst.msk [vmem:[%s2620_s19 + $0x30] sm:$0xf] %vm1307_vm1, %v1482_v63  ;;  %v839_v49 = vmul.f32 1.442695, %v785_v45  ;;  %1811 = vrcp.f32 %v976_v29  ;;  %v3222_v63 = vld [vmem:[#allocation17_spill] sm:$0xff]  ;;  %v690_v11 = vpop.xlane.xlu1 %689 }
 0x155   : > { %v1485_v1 = vpack.c.bf16 %v1162_v4, %v1162_v4  ;;  %v935_v51 = vmul.f32 1.442695, %v881_v20  ;;  %v3213_v2 = vunpack.c.h.bf16 %v3212_v62  ;;  %v3215_v40 = vunpack.c.h.bf16 %v3214_v9  ;;  %v2867_v33 = vpop.eup %1799 }
 0x156   : > { %v1161_v54 = vadd.f32 %v1129_v56, %v1065_v30  ;;  %v1035_v14 = vmul.f32 %v1798_v26, %v2785_v25  ;;  %v1099_v18 = vmul.f32 %v1798_v26, %v2793_v38  ;;  %1813 = vpow2.f32 %v839_v49  ;;  %v2873_v53 = vpop.eup %1801  ;;  %v3224_v49 = vld [vmem:[#allocation27_spill] sm:$0xff] }
 0x157   : > { %v1068_v5 = vmul.f32 %v3213_v2, %v1036_v52  ;;  %v1132_v39 = vmul.f32 %v3215_v40, %v1100_v23  ;;  %1323 = vst.msk [vmem:[%s2620_s19 + $0x3c] sm:$0xf] %vm1307_vm1, %v1485_v1  ;;  %v724_v60 = vadd.f32 %v2444_v36, %v678_v47  ;;  %v723_v43 = vadd.f32 %v2444_v36, %v675_v13  ;;  %v1804_v0 = vpop.eup %1803 }
 0x158   : > { %v1484_v6 = vpack.c.bf16 %v1161_v54, %v1161_v54  ;;  %v3216_v25 = vunpack.c.l.bf16 %v3212_v62  ;;  %v3217_v38 = vunpack.c.l.bf16 %v3214_v9  ;;  %1815 = vpow2.f32 %v935_v51 }
 0x159   : > { %v1164_v41 = vadd.f32 %v1132_v39, %v1068_v5  ;;  %v975_v19 = vadd.f32 %v2873_v53, %v2867_v33  ;;  %v756_v24 = vmax.f32 %v3218_v15, %v724_v60  ;;  %v755_v16 = vmax.f32 %v3219_v46, %v723_v43  ;;  %v2886_v34 = vpop.eup %1805 }
 0x15a   : > { %v1067_v42 = vmul.f32 %v3216_v25, %v1035_v14  ;;  %v1131_v28 = vmul.f32 %v3217_v38, %v1099_v18  ;;  %1322 = vst.msk [vmem:[%s2620_s19 + $0x38] sm:$0xf] %vm1307_vm1, %v1484_v6  ;;  %v726_v10 = vadd.f32 %v2444_v36, %v684_v48  ;;  %v1038_v47 = vmul.f32 %v1804_v0, %v2804_v58  ;;  %v1808_v35 = vpop.eup %1807  ;;  %v3227_v6 = vld [vmem:[#allocation8_spill] sm:$0xff] }
 0x15b   : > { %v1487_v59 = vpack.c.bf16 %v1164_v41, %v1164_v41  ;;  %v1102_v13 = vmul.f32 %v1804_v0, %v2809_v57  ;;  %1817 = vrcp.f32 %v975_v19  ;;  %v788_v3 = vsub.f32 %v3218_v15, %v756_v24  ;;  %v687_v57 = vpop.xlane.xlu0 %686  ;;  %v3229_v41 = vld [vmem:[#allocation18_spill] sm:$0xff] }
 0x15c   : > { %v1163_v37 = vadd.f32 %v1131_v28, %v1067_v42  ;;  %v884_v50 = vsub.f32 %v724_v60, %v756_v24  ;;  %v787_v21 = vsub.f32 %v3219_v46, %v755_v16  ;;  %v3221_v61 = vunpack.c.h.bf16 %v3220_v27  ;;  %v696_v42 = vpop.xlane.xlu1 %695  ;;  %v3231_v46 = vld [vmem:[#allocation28_spill] sm:$0xff] }
 0x15d   : > { %1325 = vst.msk [vmem:[%s2620_s19 + $0x44] sm:$0xf] %vm1307_vm1, %v1487_v59  ;;  %v3223_v45 = vunpack.c.h.bf16 %v3222_v63  ;;  %v883_v58 = vsub.f32 %v723_v43, %v755_v16  ;;  %v1037_v4 = vmul.f32 %v1808_v35, %v2817_v22  ;;  %v1101_v12 = vmul.f32 %v1808_v35, %v2827_v44  ;;  %v2900_v56 = vpop.eup %1809 }
 0x15e   : > { %v1486_v17 = vpack.c.bf16 %v1163_v37, %v1163_v37  ;;  %v1070_v55 = vmul.f32 %v3221_v61, %v1038_v47  ;;  %v845_v30 = vmul.f32 1.442695, %v788_v3  ;;  %v941_v31 = vmul.f32 1.442695, %v884_v50  ;;  %v1812_v1 = vpop.eup %1811 }
 0x15f   : > { %v1134_v20 = vmul.f32 %v3223_v45, %v1102_v13  ;;  %v843_v52 = vmul.f32 1.442695, %v787_v21  ;;  %v939_v23 = vmul.f32 1.442695, %v883_v58  ;;  %v758_v26 = vmax.f32 %v3224_v49, %v726_v10  ;;  %v693_v38 = vpop.xlane.xlu0 %692  ;;  %v3235_v45 = vld [vmem:[#allocation30_spill] sm:$0xff] }
 0x160   : > { %1324 = vst.msk [vmem:[%s2620_s19 + $0x40] sm:$0xf] %vm1307_vm1, %v1486_v17  ;;  %v3225_v54 = vunpack.c.l.bf16 %v3220_v27  ;;  %v3226_v22 = vunpack.c.l.bf16 %v3222_v63  ;;  %v978_v44 = vadd.f32 %v2900_v56, %v2886_v34  ;;  %1819 = vpow2.f32 %v845_v30  ;;  %v2913_v40 = vpop.eup %1813  ;;  %v3232_v17 = vld [vmem:[#allocation29_spill] sm:$0xff] }
 0x161   : > { %v1166_v29 = vadd.f32 %v1134_v20, %v1070_v55  ;;  %v1040_v5 = vmul.f32 %v1812_v1, %v2835_v8  ;;  %v1104_v9 = vmul.f32 %v1812_v1, %v2843_v32  ;;  %1821 = vpow2.f32 %v941_v31 }
 0x162   : > { %v1069_v51 = vmul.f32 %v3225_v54, %v1037_v4  ;;  %v1133_v62 = vmul.f32 %v3226_v22, %v1101_v12  ;;  %1823 = vrcp.f32 %v978_v44  ;;  %v790_v14 = vsub.f32 %v3224_v49, %v758_v26  ;;  %v2916_v48 = vpop.eup %1815 }
 0x163   : > { %v1489_v2 = vpack.c.bf16 %v1166_v29, %v1166_v29  ;;  %v886_v18 = vsub.f32 %v726_v10, %v758_v26  ;;  %v3228_v60 = vunpack.c.h.bf16 %v3227_v6  ;;  %v3230_v8 = vunpack.c.h.bf16 %v3229_v41 }
 0x164   : > { %v1165_v39 = vadd.f32 %v1133_v62, %v1069_v51  ;;  %1825 = vpow2.f32 %v843_v52  ;;  %v725_v32 = vadd.f32 %v2444_v36, %v2865_v7  ;;  %v977_v0 = vadd.f32 %v2916_v48, %v2913_v40 }
 0x165   : > { %1327 = vst.msk [vmem:[%s2620_s19 + $0x4c] sm:$0xf] %vm1307_vm1, %v1489_v2  ;;  %v1072_v43 = vmul.f32 %v3228_v60, %v1040_v5  ;;  %v1136_v25 = vmul.f32 %v3230_v8, %v1104_v9  ;;  %1827 = vpow2.f32 %v939_v23  ;;  %v849_v19 = vmul.f32 1.442695, %v790_v14  ;;  %v1818_v59 = vpop.eup %1817 }
 0x166   : > { %v1488_v28 = vpack.c.bf16 %v1165_v39, %v1165_v39  ;;  %v945_v24 = vmul.f32 1.442695, %v886_v18  ;;  %v757_v16 = vmax.f32 %v3231_v46, %v725_v32  ;;  %v728_v10 = vadd.f32 %v2444_v36, %v690_v11  ;;  %v3237_v39 = vld [vmem:[#allocation9_spill] sm:$0xff] }
 0x167   : > { %v1168_v15 = vadd.f32 %v1136_v25, %v1072_v43  ;;  %1829 = vrcp.f32 %v977_v0  ;;  %v727_v7 = vadd.f32 %v2444_v36, %v687_v57  ;;  %v730_v37 = vadd.f32 %v2444_v36, %v696_v42 }
 0x168   : > { %1326 = vst.msk [vmem:[%s2620_s19 + $0x48] sm:$0xf] %vm1307_vm1, %v1488_v28  ;;  %v2935_v47 = vadd.f32 %v2444_v36, %v693_v38  ;;  %v1039_v3 = vmul.f32 %v1818_v59, %v2867_v33  ;;  %v1103_v50 = vmul.f32 %v1818_v59, %v2873_v53  ;;  %1831 = vpow2.f32 %v849_v19  ;;  %v3236_v33 = vld [vmem:[#allocation31_spill] sm:$0xff] }
 0x169   : > { %v1491_v13 = vpack.c.bf16 %v1168_v15, %v1168_v15  ;;  %1833 = vpow2.f32 %v945_v24  ;;  %v789_v21 = vsub.f32 %v3231_v46, %v757_v16  ;;  %v885_v35 = vsub.f32 %v725_v32, %v757_v16 }
 0x16a   : > { %v760_v27 = vmax.f32 %v3232_v17, %v728_v10  ;;  %v3233_v61 = vunpack.c.l.bf16 %v3227_v6  ;;  %v3234_v36 = vunpack.c.l.bf16 %v3229_v41  ;;  %v759_v20 = vmax.f32 %v3235_v45, %v727_v7  ;;  %v2949_v53 = vpop.eup %1819  ;;  %v3239_v6 = vld [vmem:[#allocation19_spill] sm:$0xff] }
 0x16b   : > { %1329 = vst.msk [vmem:[%s2620_s19 + $0x54] sm:$0xf] %vm1307_vm1, %v1491_v13  ;;  %v762_v58 = vmax.f32 %v3236_v33, %v730_v37  ;;  %v847_v11 = vmul.f32 1.442695, %v789_v21  ;;  %v943_v57 = vmul.f32 1.442695, %v885_v35  ;;  %v1822_v30 = vpop.eup %1821  ;;  %v3238_v14 = vunpack.c.h.bf16 %v3237_v39 }
 0x16c   : > { %v1071_v55 = vmul.f32 %v3233_v61, %v1039_v3  ;;  %v1135_v63 = vmul.f32 %v3234_v36, %v1103_v50  ;;  %v792_v4 = vsub.f32 %v3232_v17, %v760_v27  ;;  %v888_v12 = vsub.f32 %v728_v10, %v760_v27  ;;  %v1824_v49 = vpop.eup %1823 }
 0x16d   : > { %v791_v29 = vsub.f32 %v3235_v45, %v759_v20  ;;  %v887_v52 = vsub.f32 %v727_v7, %v759_v20  ;;  %v794_v23 = vsub.f32 %v3236_v33, %v762_v58  ;;  %v980_v26 = vadd.f32 %v1822_v30, %v2949_v53  ;;  %v3244_v45 = vld [vmem:[#allocation10_spill] sm:$0xff] }
 0x16e   : > { %v1167_v31 = vadd.f32 %v1135_v63, %v1071_v55  ;;  %1835 = vpow2.f32 %v847_v11  ;;  %v853_v1 = vmul.f32 1.442695, %v792_v4  ;;  %v949_v54 = vmul.f32 1.442695, %v888_v12  ;;  %v1826_v51 = vpop.eup %1825 }
 0x16f   : > { %v1042_v62 = vmul.f32 %v1824_v49, %v2886_v34  ;;  %v1106_v44 = vmul.f32 %v1824_v49, %v2900_v56  ;;  %1837 = vpow2.f32 %v943_v57  ;;  %v1828_v2 = vpop.eup %1827  ;;  %v851_v5 = vmul.f32 1.442695, %v791_v29  ;;  %v3241_v56 = vld [vmem:[#allocation32_spill] sm:$0xff] }
 0x170   : > { %v1490_v22 = vpack.c.bf16 %v1167_v31, %v1167_v31  ;;  %1839 = vrcp.f32 %v980_v26  ;;  %v947_v9 = vmul.f32 1.442695, %v887_v52  ;;  %v3240_v60 = vunpack.c.h.bf16 %v3239_v6 }
 0x171   : > { %v1074_v18 = vmul.f32 %v3238_v14, %v1042_v62  ;;  %v979_v41 = vadd.f32 %v1828_v2, %v1826_v51  ;;  %1841 = vpow2.f32 %v853_v1  ;;  %v1830_v8 = vpop.eup %1829  ;;  %v857_v34 = vmul.f32 1.442695, %v794_v23  ;;  %v3250_v14 = vld [vmem:[#allocation11_spill] sm:$0xff] }
 0x172   : > { %1328 = vst.msk [vmem:[%s2620_s19 + $0x50] sm:$0xf] %vm1307_vm1, %v1490_v22  ;;  %v1138_v43 = vmul.f32 %v3240_v60, %v1106_v44  ;;  %1843 = vpow2.f32 %v949_v54  ;;  %v890_v25 = vsub.f32 %v730_v37, %v762_v58  ;;  %v761_v32 = vmax.f32 %v3241_v56, %v2935_v47  ;;  %v1832_v42 = vpop.eup %1831  ;;  %v3246_v58 = vld [vmem:[#allocation20_spill] sm:$0xff]  ;;  %v3252_v60 = vld [vmem:[#allocation21_spill] sm:$0xff] }
 0x173   : > { %v1041_v28 = vmul.f32 %v1830_v8, %v2913_v40  ;;  %v1105_v0 = vmul.f32 %v1830_v8, %v2916_v48  ;;  %1845 = vrcp.f32 %v979_v41  ;;  %v1834_v19 = vpop.eup %1833  ;;  %v3242_v10 = vunpack.c.l.bf16 %v3237_v39 }
 0x174   : > { %v1170_v38 = vadd.f32 %v1138_v43, %v1074_v18  ;;  %1847 = vpow2.f32 %v851_v5  ;;  %v953_v15 = vmul.f32 1.442695, %v890_v25  ;;  %v793_v24 = vsub.f32 %v3241_v56, %v761_v32 }
 0x175   : > { %v889_v46 = vsub.f32 %v2935_v47, %v761_v32  ;;  %v1073_v59 = vmul.f32 %v3242_v10, %v1041_v28  ;;  %v3243_v7 = vunpack.c.l.bf16 %v3239_v6  ;;  %v982_v13 = vadd.f32 %v1834_v19, %v1832_v42 }
 0x176   : > { %v1493_v16 = vpack.c.bf16 %v1170_v38, %v1170_v38  ;;  %1849 = vpow2.f32 %v947_v9  ;;  %v855_v40 = vmul.f32 1.442695, %v793_v24  ;;  %v3245_v20 = vunpack.c.h.bf16 %v3244_v45 }
 0x177   : > { %v1137_v37 = vmul.f32 %v3243_v7, %v1105_v0  ;;  %1851 = vrcp.f32 %v982_v13  ;;  %v951_v3 = vmul.f32 1.442695, %v889_v46  ;;  %v3247_v11 = vunpack.c.h.bf16 %v3246_v58  ;;  %v3256_v7 = vld [vmem:[#allocation12_spill] sm:$0xff] }
 0x178   : > { %1331 = vst.msk [vmem:[%s2620_s19 + $0x5c] sm:$0xf] %vm1307_vm1, %v1493_v16  ;;  %v1836_v50 = vpop.eup %1835  ;;  %1853 = vpow2.f32 %v857_v34  ;;  %v3249_v49 = vunpack.c.l.bf16 %v3246_v58  ;;  %v3251_v18 = vunpack.c.h.bf16 %v3250_v14  ;;  %v3253_v43 = vunpack.c.h.bf16 %v3252_v60 }
 0x179   : > { %v1169_v48 = vadd.f32 %v1137_v37, %v1073_v59  ;;  %v1838_v21 = vpop.eup %1837  ;;  %1855 = vpow2.f32 %v953_v15  ;;  %v3255_v24 = vunpack.c.l.bf16 %v3252_v60  ;;  %v3257_v37 = vunpack.c.h.bf16 %v3256_v7 }
 0x17a   : > { %v1840_v35 = vpop.eup %1839  ;;  %v981_v17 = vadd.f32 %v1838_v21, %v1836_v50  ;;  %1857 = vpow2.f32 %v855_v40  ;;  %v3258_v40 = vld [vmem:[#allocation22_spill] sm:$0xff] }
 0x17b   : > { %v1492_v47 = vpack.c.bf16 %v1169_v48, %v1169_v48  ;;  %v1842_v27 = vpop.eup %1841  ;;  %v1044_v61 = vmul.f32 %v1840_v35, %v2949_v53  ;;  %v1108_v55 = vmul.f32 %v1840_v35, %v1822_v30  ;;  %1859 = vpow2.f32 %v951_v3 }
 0x17c   : > { %v1844_v36 = vpop.eup %1843  ;;  %1861 = vrcp.f32 %v981_v17  ;;  %v3248_v53 = vunpack.c.l.bf16 %v3244_v45  ;;  %v3259_v48 = vunpack.c.h.bf16 %v3258_v40 }
 0x17d   : > { %1330 = vst.msk [vmem:[%s2620_s19 + $0x58] sm:$0xf] %vm1307_vm1, %v1492_v47  ;;  %v1846_v63 = vpop.eup %1845  ;;  %v1076_v33 = vmul.f32 %v3245_v20, %v1044_v61  ;;  %v1140_v57 = vmul.f32 %v3247_v11, %v1108_v55  ;;  %v984_v4 = vadd.f32 %v1844_v36, %v1842_v27 }
 0x17e   : > { %v1848_v12 = vpop.eup %1847  ;;  %v1043_v31 = vmul.f32 %v1846_v63, %v1826_v51  ;;  %v1107_v29 = vmul.f32 %v1846_v63, %v1828_v2  ;;  %v3261_v63 = vunpack.c.l.bf16 %v3258_v40 }
 0x17f   : > { %v1172_v52 = vadd.f32 %v1140_v57, %v1076_v33  ;;  %1863 = vrcp.f32 %v984_v4  ;;  %v3262_v57 = vld [vmem:[#allocation13_spill] sm:$0xff] }
 0x180   : > { %v1850_v23 = vpop.eup %1849  ;;  %v1075_v30 = vmul.f32 %v3248_v53, %v1043_v31  ;;  %v1139_v26 = vmul.f32 %v3249_v49, %v1107_v29  ;;  %v3263_v4 = vunpack.c.h.bf16 %v3262_v57  ;;  %v3264_v31 = vld [vmem:[#allocation23_spill] sm:$0xff] }
 0x181   : > { %v1852_v1 = vpop.eup %1851  ;;  %v1495_v54 = vpack.c.bf16 %v1172_v52, %v1172_v52  ;;  %v983_v22 = vadd.f32 %v1850_v23, %v1848_v12  ;;  %v3265_v29 = vunpack.c.h.bf16 %v3264_v31 }
 0x182   : > { %v1854_v62 = vpop.eup %1853  ;;  %v1171_v44 = vadd.f32 %v1139_v26, %v1075_v30  ;;  %v1046_v5 = vmul.f32 %v1852_v1, %v1832_v42  ;;  %v1110_v9 = vmul.f32 %v1852_v1, %v1834_v19  ;;  %v3254_v19 = vunpack.c.l.bf16 %v3250_v14 }
 0x183   : > { %v1856_v39 = vpop.eup %1855  ;;  %1333 = vst.msk [vmem:[%s2620_s19 + $0x64] sm:$0xf] %vm1307_vm1, %v1495_v54  ;;  %1865 = vrcp.f32 %v983_v22  ;;  %v3266_v26 = vunpack.c.l.bf16 %v3262_v57  ;;  %v3267_v54 = vunpack.c.l.bf16 %v3264_v31 }
 0x184   : > { %v1858_v51 = vpop.eup %1857  ;;  %v1494_v2 = vpack.c.bf16 %v1171_v44, %v1171_v44  ;;  %v1078_v6 = vmul.f32 %v3251_v18, %v1046_v5  ;;  %v1142_v41 = vmul.f32 %v3253_v43, %v1110_v9  ;;  %v986_v8 = vadd.f32 %v1856_v39, %v1854_v62 }
 0x185   : > { %v1860_v34 = vpop.eup %1859 }
 0x186   : > { %v1862_v25 = vpop.eup %1861  ;;  %1332 = vst.msk [vmem:[%s2620_s19 + $0x60] sm:$0xf] %vm1307_vm1, %v1494_v2  ;;  %v1174_v56 = vadd.f32 %v1142_v41, %v1078_v6  ;;  %1867 = vrcp.f32 %v986_v8  ;;  %v985_v32 = vadd.f32 %v1860_v34, %v1858_v51 }
 0x187   : > { %v1045_v42 = vmul.f32 %v1862_v25, %v1836_v50  ;;  %v1109_v38 = vmul.f32 %v1862_v25, %v1838_v21 }
 0x188   : > { %v1497_v28 = vpack.c.bf16 %v1174_v56, %v1174_v56  ;;  %1869 = vrcp.f32 %v985_v32 }
 0x189   : > { %v1864_v0 = vpop.eup %1863  ;;  %v1077_v15 = vmul.f32 %v3254_v19, %v1045_v42  ;;  %v1141_v46 = vmul.f32 %v3255_v24, %v1109_v38 }
 0x18a   : > { %1335 = vst.msk [vmem:[%s2620_s19 + $0x6c] sm:$0xf] %vm1307_vm1, %v1497_v28  ;;  %v1048_v16 = vmul.f32 %v1864_v0, %v1842_v27  ;;  %v1112_v10 = vmul.f32 %v1864_v0, %v1844_v36  ;;  %v3260_v27 = vunpack.c.l.bf16 %v3256_v7 }
 0x18b   : > { %v1173_v59 = vadd.f32 %v1141_v46, %v1077_v15 }
 0x18c   : > { %v1080_v13 = vmul.f32 %v3257_v37, %v1048_v16  ;;  %v1144_v3 = vmul.f32 %v3259_v48, %v1112_v10 }
 0x18d   : > { %v1866_v50 = vpop.eup %1865  ;;  %v1496_v21 = vpack.c.bf16 %v1173_v59, %v1173_v59 }
 0x18e   : > { %v1176_v47 = vadd.f32 %v1144_v3, %v1080_v13  ;;  %v1047_v35 = vmul.f32 %v1866_v50, %v1848_v12  ;;  %v1111_v17 = vmul.f32 %v1866_v50, %v1850_v23 }
 0x18f   : > { %1334 = vst.msk [vmem:[%s2620_s19 + $0x68] sm:$0xf] %vm1307_vm1, %v1496_v21 }
 0x190   : > { %v1868_v61 = vpop.eup %1867  ;;  %v1499_v55 = vpack.c.bf16 %v1176_v47, %v1176_v47  ;;  %v1079_v36 = vmul.f32 %v3260_v27, %v1047_v35  ;;  %v1143_v45 = vmul.f32 %v3261_v63, %v1111_v17 }
 0x191   : > { %v1050_v20 = vmul.f32 %v1868_v61, %v1854_v62  ;;  %v1114_v33 = vmul.f32 %v1868_v61, %v1856_v39 }
 0x192   : > { %v1870_v58 = vpop.eup %1869  ;;  %1337 = vst.msk [vmem:[%s2620_s19 + $0x74] sm:$0xf] %vm1307_vm1, %v1499_v55  ;;  %v1175_v11 = vadd.f32 %v1143_v45, %v1079_v36 }
 0x193   : > { %v1082_v12 = vmul.f32 %v3263_v4, %v1050_v20  ;;  %v1146_v52 = vmul.f32 %v3265_v29, %v1114_v33  ;;  %v1049_v23 = vmul.f32 %v1870_v58, %v1858_v51  ;;  %v1113_v53 = vmul.f32 %v1870_v58, %v1860_v34 }
 0x194   : > { %v1498_v30 = vpack.c.bf16 %v1175_v11, %v1175_v11 }
 0x195   : > { %v1178_v49 = vadd.f32 %v1146_v52, %v1082_v12  ;;  %v1081_v1 = vmul.f32 %v3266_v26, %v1049_v23  ;;  %v1145_v22 = vmul.f32 %v3267_v54, %v1113_v53 }
 0x196   : > { %1336 = vst.msk [vmem:[%s2620_s19 + $0x70] sm:$0xf] %vm1307_vm1, %v1498_v30 }
 0x197   : > { %v1501_v62 = vpack.c.bf16 %v1178_v49, %v1178_v49  ;;  %v1177_v44 = vadd.f32 %v1145_v22, %v1081_v1 }
 0x199   : > { %1339 = vst.msk [vmem:[%s2620_s19 + $0x7c] sm:$0xf] %vm1307_vm1, %v1501_v62  ;;  %v1500_v5 = vpack.c.bf16 %v1177_v44, %v1177_v44 }
 0x19b   : > { %1338 = vst.msk [vmem:[%s2620_s19 + $0x78] sm:$0xf] %vm1307_vm1, %v1500_v5 }
 0x19c PF: > { %s16_s18 = sadd.s32 1, %s1896_s18  }
 0x19d   : > { %p13_p1 = scmp.ge.s32.totalorder %s16_s18, 4  }
 0x19f   :  { %15 = sbr.rel (!%p13_p1) target bundleno = 1 (0x1), region = 78 }
 0x1a6   :  { %1362 = vsyncpa [#allocation3], 1 }
 0x1a7   :  { %1364 = vsyncpa [#allocation3 + $0x1], 1 }

</bundles_post_ra>
